<compile_context>
chip_gen: v7x
topology: tpu7x:2x2x1
jax: 0.10.0
libtpu: 0.0.40
codegen_flags: <defaults>
</compile_context>

<pallas_src>
import functools

import jax
import jax.numpy as jnp
from jax.experimental import pallas as pl
from jax.experimental.pallas import tpu as pltpu


# --------------------- fused conv + BN + maxpool + ReLU ---------------------


def _conv_bn_pool_relu_kernel(p_ref, w_ref, shift_ref, o_ref, ybuf,
                              *, Wo, Po, Qo):
    # One image per grid step.
    #   p_ref    : (Ho*Wo, K)    bf16 im2col patches (K = 9*Cin)
    #   w_ref    : (K, Cout)     bf16 conv weights with BN scale folded in
    #   shift_ref: (1, Cout)     f32 folded BN shift (includes conv bias)
    #   o_ref    : (Po, Qo, Cout) bf16 pooled+ReLU'd output
    #   ybuf     : VMEM scratch (Ho*Wo + 8, Cout) f32 for strided pooling reads
    y = jnp.dot(p_ref[...], w_ref[...], preferred_element_type=jnp.float32)
    y = y + shift_ref[...]                       # BN affine (scale pre-folded)
    n = y.shape[0]                               # Ho * Wo (static)
    ybuf[0:n, :] = y

    # MaxPool2d(2,2) (floor) + ReLU.  Row p of ybuf is spatial (ho, wo) with
    # p = ho*Wo + wo; the stride-2 column selection is a strided sublane load.
    for a in range(Po):                          # static unroll, Po <= 23
        r0 = 2 * a * Wo
        r1 = r0 + Wo
        t = jnp.maximum(
            jnp.maximum(ybuf[pl.ds(r0, Qo, stride=2), :],
                        ybuf[pl.ds(r0 + 1, Qo, stride=2), :]),
            jnp.maximum(ybuf[pl.ds(r1, Qo, stride=2), :],
                        ybuf[pl.ds(r1 + 1, Qo, stride=2), :]))
        o_ref[a] = jnp.maximum(t, 0.0).astype(o_ref.dtype)


def _im2col(x, kh=3, kw=3):
    # XLA glue: (B, H, W, C) -> (B, Ho*Wo, kh*kw*C), minor order (kh, kw, cin).
    B, H, W, C = x.shape
    Ho, Wo = H - kh + 1, W - kw + 1
    cols = [x[:, i:i + Ho, j:j + Wo, :] for i in range(kh) for j in range(kw)]
    patches = jnp.concatenate(cols, axis=-1).reshape(B, Ho * Wo, kh * kw * C)
    return patches, Ho, Wo


def conv_bn_pool_relu(x_nhwc, w9k, shift):
    """Conv2d(3x3, s=1, p=0) + BatchNorm(eval) + MaxPool2d(2,2) + ReLU (NHWC)."""
    B, H, W, _ = x_nhwc.shape
    K, cout = w9k.shape
    patches, Ho, Wo = _im2col(x_nhwc)
    patches = patches.astype(jnp.bfloat16)
    Po, Qo = Ho // 2, Wo // 2

    kern = functools.partial(_conv_bn_pool_relu_kernel, Wo=Wo, Po=Po, Qo=Qo)
    flops = 2 * B * Ho * Wo * K * cout
    bytes_accessed = (patches.size * 2 + w9k.size * 2 + cout * 4
                      + B * Po * Qo * cout * 2)
    return pl.pallas_call(
        kern,
        out_shape=jax.ShapeDtypeStruct((B, Po, Qo, cout), jnp.bfloat16),
        grid=(B,),
        in_specs=[
            pl.BlockSpec((None, Ho * Wo, K), lambda b: (b, 0, 0)),
            pl.BlockSpec((K, cout), lambda b: (0, 0)),
            pl.BlockSpec((1, cout), lambda b: (0, 0)),
        ],
        out_specs=pl.BlockSpec((None, Po, Qo, cout), lambda b: (b, 0, 0, 0)),
        scratch_shapes=[pltpu.VMEM((Ho * Wo + 8, cout), jnp.float32)],
        compiler_params=pltpu.CompilerParams(
            dimension_semantics=("parallel",),
            vmem_limit_bytes=32 * 1024 * 1024),
        cost_estimate=pl.CostEstimate(flops=int(flops), transcendentals=0,
                                      bytes_accessed=int(bytes_accessed)),
    )(patches, w9k, shift)


# ----------------------- fused MLP head (fc1+ReLU+fc2) ----------------------


def _mlp_kernel(x_ref, w1_ref, b1_ref, w2_ref, b2_ref, o_ref):
    h = jnp.dot(x_ref[...], w1_ref[...], preferred_element_type=jnp.float32)
    h = jnp.maximum(h + b1_ref[...], 0.0)
    # TODO(synk): nn.Dropout(0.5) between fc1 and fc2 is identity in eval mode.
    y = jnp.dot(h.astype(w2_ref.dtype), w2_ref[...],
                preferred_element_type=jnp.float32)
    o_ref[...] = (y + b2_ref[...]).astype(o_ref.dtype)


def mlp_head(x, w1, b1, w2, b2, *, block_m=256):
    M, K = x.shape
    K1, N1 = w1.shape
    N1b, N2 = w2.shape
    assert K == K1 and N1 == N1b
    bm = min(block_m, M)
    grid_m = pl.cdiv(M, bm)
    flops = 2 * M * (K * N1 + N1 * N2)
    bytes_accessed = (x.size * 2 + w1.size * 2 + w2.size * 2
                      + (N1 + N2) * 4 + M * N2 * 4)
    return pl.pallas_call(
        _mlp_kernel,
        out_shape=jax.ShapeDtypeStruct((M, N2), jnp.float32),
        grid=(grid_m,),
        in_specs=[
            pl.BlockSpec((bm, K), lambda i: (i, 0)),
            pl.BlockSpec((K1, N1), lambda i: (0, 0)),
            pl.BlockSpec((1, N1), lambda i: (0, 0)),
            pl.BlockSpec((N1b, N2), lambda i: (0, 0)),
            pl.BlockSpec((1, N2), lambda i: (0, 0)),
        ],
        out_specs=pl.BlockSpec((bm, N2), lambda i: (i, 0)),
        compiler_params=pltpu.CompilerParams(
            dimension_semantics=("parallel",),
            vmem_limit_bytes=32 * 1024 * 1024),
        cost_estimate=pl.CostEstimate(flops=int(flops), transcendentals=0,
                                      bytes_accessed=int(bytes_accessed)),
    )(x, w1, b1, w2, b2)


# --------------------------------- forward ----------------------------------


def cnn_base_forward(params, x_nchw):
    # One boundary transpose: NCHW -> NHWC, bf16 activations from here on.
    x = jnp.transpose(x_nchw, (0, 2, 3, 1)).astype(jnp.bfloat16)

    y = conv_bn_pool_relu(x, params["w1"], params["shift1"])   # (B, 23, 23, 32)
    # TODO(synk): Dropout2d(0.5) after conv2/conv3 BN is identity in eval mode.
    y = conv_bn_pool_relu(y, params["w2"], params["shift2"])   # (B, 10, 10, 64)
    y = conv_bn_pool_relu(y, params["w3"], params["shift3"])   # (B, 4, 4, 128)

    # NHWC flatten; fc1's input dim was pre-permuted to this order host-side,
    # so no NHWC->NCHW transpose is needed here.
    B = y.shape[0]
    flat = y.reshape(B, -1)                                    # (B, 2048) bf16
    return mlp_head(flat, params["fc1_w"], params["fc1_b"],
                    params["fc2_w"], params["fc2_b"])          # (B, 50) f32


# ------------------- host-side parameter folding / packing ------------------


def prepare_params(raw, eps=1e-5):
    """Fold BN into conv weights, pre-transpose/permute fc weights, cast bf16."""
    def fold(conv_w, conv_b, bn):
        gamma, beta, mean, var = bn
        s = gamma / jnp.sqrt(var + eps)                        # BN scale
        cout, cin, kh, kw = conv_w.shape
        # (Cout, Cin, KH, KW) -> (KH*KW*Cin, Cout), BN scale folded in.
        wk = jnp.transpose(conv_w, (2, 3, 1, 0)).reshape(kh * kw * cin, cout)
        wk = (wk * s[None, :]).astype(jnp.bfloat16)
        shift = ((conv_b - mean) * s + beta).reshape(1, cout).astype(jnp.float32)
        return wk, shift

    p = {}
    p["w1"], p["shift1"] = fold(raw["conv1_w"], raw["conv1_b"], raw["bn1"])
    p["w2"], p["shift2"] = fold(raw["conv2_w"], raw["conv2_b"], raw["bn2"])
    p["w3"], p["shift3"] = fold(raw["conv3_w"], raw["conv3_b"], raw["bn3"])

    # fc1: PyTorch weight (512, 2048) expects NCHW-flatten (C=128, H=4, W=4).
    # Pre-transpose to (2048, 512) and permute rows so the kernel can consume
    # the NHWC-flattened activations directly.
    C, Hs, Ws = 128, 4, 4
    nchw_idx = jnp.arange(C * Hs * Ws).reshape(C, Hs, Ws)
    nhwc_to_nchw = jnp.transpose(nchw_idx, (1, 2, 0)).reshape(-1)
    fc1_t = jnp.transpose(raw["fc1_w"])[nhwc_to_nchw, :]       # (2048, 512)
    p["fc1_w"] = fc1_t.astype(jnp.bfloat16)
    p["fc1_b"] = raw["fc1_b"].reshape(1, -1).astype(jnp.float32)
    p["fc2_w"] = jnp.transpose(raw["fc2_w"]).astype(jnp.bfloat16)   # (512, 50)
    p["fc2_b"] = raw["fc2_b"].reshape(1, -1).astype(jnp.float32)
    return p


# --------------------------- deterministic params ---------------------------


def init_params(key):
    ks = jax.random.split(key, 13)

    def conv(kw_, kb_, cout, cin, k):
        w = 0.05 * jax.random.normal(kw_, (cout, cin, k, k), jnp.float32)
        b = 0.05 * jax.random.normal(kb_, (cout,), jnp.float32)
        return w, b

    def bn(k_, c):
        k1, k2, k3, k4 = jax.random.split(k_, 4)
        gamma = 1.0 + 0.1 * jax.random.normal(k1, (c,), jnp.float32)
        beta = 0.1 * jax.random.normal(k2, (c,), jnp.float32)
        mean = 0.1 * jax.random.normal(k3, (c,), jnp.float32)
        var = 1.0 + 0.1 * jnp.abs(jax.random.normal(k4, (c,), jnp.float32))
        return gamma, beta, mean, var

    p = {}
    p["conv1_w"], p["conv1_b"] = conv(ks[0], ks[1], 32, 3, 3)
    p["bn1"] = bn(ks[2], 32)
    p["conv2_w"], p["conv2_b"] = conv(ks[3], ks[4], 64, 32, 3)
    p["bn2"] = bn(ks[5], 64)
    p["conv3_w"], p["conv3_b"] = conv(ks[6], ks[7], 128, 64, 3)
    p["bn3"] = bn(ks[8], 128)
    p["fc1_w"] = 0.02 * jax.random.normal(ks[9], (512, 2048), jnp.float32)
    p["fc1_b"] = 0.02 * jax.random.normal(ks[10], (512,), jnp.float32)
    p["fc2_w"] = 0.02 * jax.random.normal(ks[11], (50, 512), jnp.float32)
    p["fc2_b"] = 0.02 * jax.random.normal(ks[12], (50,), jnp.float32)
    return p


if __name__ == "__main__":
    key = jax.random.PRNGKey(0)
    pkey, xkey = jax.random.split(key)
    raw = init_params(pkey)
    params = prepare_params(raw)       # host-side folding, runs once
    # Linear(2048, 512) after three (conv3x3 -> pool2) stages implies 48x48 input.
    x = jax.random.normal(xkey, (2, 3, 48, 48), jnp.float32)
    fwd = jax.jit(cnn_base_forward)
    out = jax.block_until_ready(fwd(params, x))
    assert out.shape == (2, 50) and out.dtype == jnp.float32
    assert bool(jnp.all(jnp.isfinite(out)))
    print("KERNEL_OK")
</pallas_src>

<mosaic_0001>
module attributes {stable_mosaic.version = 11 : i64} {
  func.func @_conv_bn_pool_relu_kernel(%arg0: i32, %arg1: memref<1x2116x27xbf16, #tpu.memory_space<vmem>>, %arg2: memref<27x32xbf16, #tpu.memory_space<vmem>>, %arg3: memref<1x32xf32, #tpu.memory_space<vmem>>, %arg4: memref<1x23x23x32xbf16, #tpu.memory_space<vmem>>, %arg5: memref<2124x32xf32, #tpu.memory_space<vmem>>) attributes {dimension_semantics = [#tpu.dimension_semantics<parallel>], iteration_bounds = array<i64: 2>, scalar_prefetch = 0 : i64, scratch_operands = 1 : i64, tpu.core_type = #tpu.core_type<tc>, window_params = [{transform_indices = @transform_0, window_bounds = array<i64: 1, 2116, 27>}, {pipeline_mode = #tpu.pipeline_mode<synchronous>, transform_indices = @transform_1, window_bounds = array<i64: 27, 32>}, {pipeline_mode = #tpu.pipeline_mode<synchronous>, transform_indices = @transform_2, window_bounds = array<i64: 1, 32>}, {transform_indices = @transform_3, window_bounds = array<i64: 1, 23, 23, 32>}]} {
    %c0 = arith.constant 0 : index
    %c0_0 = arith.constant 0 : index
    %c0_1 = arith.constant 0 : index
    %0 = vector.load %arg1[%c0, %c0_0, %c0_1] : memref<1x2116x27xbf16, #tpu.memory_space<vmem>>, vector<1x2116x27xbf16>
    %1 = vector.shape_cast %0 : vector<1x2116x27xbf16> to vector<2116x27xbf16>
    %c0_2 = arith.constant 0 : index
    %c0_3 = arith.constant 0 : index
    %2 = vector.load %arg2[%c0_2, %c0_3] : memref<27x32xbf16, #tpu.memory_space<vmem>>, vector<27x32xbf16>
    %cst = arith.constant dense<0.000000e+00> : vector<2116x32xf32>
    %3 = tpu.matmul %1, %2, %cst {dimension_numbers = #tpu.dot_dimension_numbers<[1], [0], [0], [1], [0, 0, 1, 1], [], []>} : vector<2116x27xbf16>, vector<27x32xbf16>, vector<2116x32xf32> -> vector<2116x32xf32>
    %c0_4 = arith.constant 0 : index
    %c0_5 = arith.constant 0 : index
    %4 = vector.load %arg3[%c0_4, %c0_5] : memref<1x32xf32, #tpu.memory_space<vmem>>, vector<1x32xf32>
    %5 = vector.broadcast %4 : vector<1x32xf32> to vector<2116x32xf32>
    %6 = arith.addf %3, %5 : vector<2116x32xf32>
    %c0_6 = arith.constant 0 : index
    %c0_7 = arith.constant 0 : index
    %7 = vector.load %arg5[%c0_6, %c0_7] : memref<2124x32xf32, #tpu.memory_space<vmem>>, vector<2116x32xf32>
    tpu.vector_store %arg5[%c0_6, %c0_7], %6 {strides = array<i32>} : memref<2124x32xf32, #tpu.memory_space<vmem>>, vector<2116x32xf32>,
    %c0_8 = arith.constant 0 : index
    %c0_9 = arith.constant 0 : index
    %8 = tpu.strided_load %arg5[%c0_8, %c0_9] {strides = array<i32: 2, 1>} : memref<2124x32xf32, #tpu.memory_space<vmem>>, vector<23x32xf32>
    %c1 = arith.constant 1 : index
    %c0_10 = arith.constant 0 : index
    %9 = tpu.strided_load %arg5[%c1, %c0_10] {strides = array<i32: 2, 1>} : memref<2124x32xf32, #tpu.memory_space<vmem>>, vector<23x32xf32>
    %10 = arith.maximumf %8, %9 : vector<23x32xf32>
    %c46 = arith.constant 46 : index
    %c0_11 = arith.constant 0 : index
    %11 = tpu.strided_load %arg5[%c46, %c0_11] {strides = array<i32: 2, 1>} : memref<2124x32xf32, #tpu.memory_space<vmem>>, vector<23x32xf32>
    %c47 = arith.constant 47 : index
    %c0_12 = arith.constant 0 : index
    %12 = tpu.strided_load %arg5[%c47, %c0_12] {strides = array<i32: 2, 1>} : memref<2124x32xf32, #tpu.memory_space<vmem>>, vector<23x32xf32>
    %13 = arith.maximumf %11, %12 : vector<23x32xf32>
    %14 = arith.maximumf %10, %13 : vector<23x32xf32>
    %cst_13 = arith.constant 0.000000e+00 : f32
    %15 = vector.broadcast %cst_13 : f32 to vector<23x32xf32>
    %16 = arith.maximumf %14, %15 : vector<23x32xf32>
    %17 = arith.truncf %16 : vector<23x32xf32> to vector<23x32xbf16>
    %c0_14 = arith.constant 0 : index
    %c0_15 = arith.constant 0 : index
    %c0_16 = arith.constant 0 : index
    %c0_17 = arith.constant 0 : index
    %18 = vector.load %arg4[%c0_14, %c0_15, %c0_16, %c0_17] : memref<1x23x23x32xbf16, #tpu.memory_space<vmem>>, vector<1x1x23x32xbf16>
    %19 = vector.shape_cast %18 : vector<1x1x23x32xbf16> to vector<23x32xbf16>
    %20 = vector.shape_cast %17 : vector<23x32xbf16> to vector<1x1x23x32xbf16>
    tpu.vector_store %arg4[%c0_14, %c0_15, %c0_16, %c0_17], %20 {strides = array<i32>} : memref<1x23x23x32xbf16, #tpu.memory_space<vmem>>, vector<1x1x23x32xbf16>,
    %c92 = arith.constant 92 : index
    %c0_18 = arith.constant 0 : index
    %21 = tpu.strided_load %arg5[%c92, %c0_18] {strides = array<i32: 2, 1>} : memref<2124x32xf32, #tpu.memory_space<vmem>>, vector<23x32xf32>
    %c93 = arith.constant 93 : index
    %c0_19 = arith.constant 0 : index
    %22 = tpu.strided_load %arg5[%c93, %c0_19] {strides = array<i32: 2, 1>} : memref<2124x32xf32, #tpu.memory_space<vmem>>, vector<23x32xf32>
    %23 = arith.maximumf %21, %22 : vector<23x32xf32>
    %c138 = arith.constant 138 : index
    %c0_20 = arith.constant 0 : index
    %24 = tpu.strided_load %arg5[%c138, %c0_20] {strides = array<i32: 2, 1>} : memref<2124x32xf32, #tpu.memory_space<vmem>>, vector<23x32xf32>
    %c139 = arith.constant 139 : index
    %c0_21 = arith.constant 0 : index
    %25 = tpu.strided_load %arg5[%c139, %c0_21] {strides = array<i32: 2, 1>} : memref<2124x32xf32, #tpu.memory_space<vmem>>, vector<23x32xf32>
    %26 = arith.maximumf %24, %25 : vector<23x32xf32>
    %27 = arith.maximumf %23, %26 : vector<23x32xf32>
    %cst_22 = arith.constant 0.000000e+00 : f32
    %28 = vector.broadcast %cst_22 : f32 to vector<23x32xf32>
    %29 = arith.maximumf %27, %28 : vector<23x32xf32>
    %30 = arith.truncf %29 : vector<23x32xf32> to vector<23x32xbf16>
    %c0_23 = arith.constant 0 : index
    %c1_24 = arith.constant 1 : index
    %c0_25 = arith.constant 0 : index
    %c0_26 = arith.constant 0 : index
    %31 = vector.load %arg4[%c0_23, %c1_24, %c0_25, %c0_26] : memref<1x23x23x32xbf16, #tpu.memory_space<vmem>>, vector<1x1x23x32xbf16>
    %32 = vector.shape_cast %31 : vector<1x1x23x32xbf16> to vector<23x32xbf16>
    %33 = vector.shape_cast %30 : vector<23x32xbf16> to vector<1x1x23x32xbf16>
    tpu.vector_store %arg4[%c0_23, %c1_24, %c0_25, %c0_26], %33 {strides = array<i32>} : memref<1x23x23x32xbf16, #tpu.memory_space<vmem>>, vector<1x1x23x32xbf16>,
    %c184 = arith.constant 184 : index
    %c0_27 = arith.constant 0 : index
    %34 = tpu.strided_load %arg5[%c184, %c0_27] {strides = array<i32: 2, 1>} : memref<2124x32xf32, #tpu.memory_space<vmem>>, vector<23x32xf32>
    %c185 = arith.constant 185 : index
    %c0_28 = arith.constant 0 : index
    %35 = tpu.strided_load %arg5[%c185, %c0_28] {strides = array<i32: 2, 1>} : memref<2124x32xf32, #tpu.memory_space<vmem>>, vector<23x32xf32>
    %36 = arith.maximumf %34, %35 : vector<23x32xf32>
    %c230 = arith.constant 230 : index
    %c0_29 = arith.constant 0 : index
    %37 = tpu.strided_load %arg5[%c230, %c0_29] {strides = array<i32: 2, 1>} : memref<2124x32xf32, #tpu.memory_space<vmem>>, vector<23x32xf32>
    %c231 = arith.constant 231 : index
    %c0_30 = arith.constant 0 : index
    %38 = tpu.strided_load %arg5[%c231, %c0_30] {strides = array<i32: 2, 1>} : memref<2124x32xf32, #tpu.memory_space<vmem>>, vector<23x32xf32>
    %39 = arith.maximumf %37, %38 : vector<23x32xf32>
    %40 = arith.maximumf %36, %39 : vector<23x32xf32>
    %cst_31 = arith.constant 0.000000e+00 : f32
    %41 = vector.broadcast %cst_31 : f32 to vector<23x32xf32>
    %42 = arith.maximumf %40, %41 : vector<23x32xf32>
    %43 = arith.truncf %42 : vector<23x32xf32> to vector<23x32xbf16>
    %c0_32 = arith.constant 0 : index
    %c2 = arith.constant 2 : index
    %c0_33 = arith.constant 0 : index
    %c0_34 = arith.constant 0 : index
    %44 = vector.load %arg4[%c0_32, %c2, %c0_33, %c0_34] : memref<1x23x23x32xbf16, #tpu.memory_space<vmem>>, vector<1x1x23x32xbf16>
    %45 = vector.shape_cast %44 : vector<1x1x23x32xbf16> to vector<23x32xbf16>
    %46 = vector.shape_cast %43 : vector<23x32xbf16> to vector<1x1x23x32xbf16>
    tpu.vector_store %arg4[%c0_32, %c2, %c0_33, %c0_34], %46 {strides = array<i32>} : memref<1x23x23x32xbf16, #tpu.memory_space<vmem>>, vector<1x1x23x32xbf16>,
    %c276 = arith.constant 276 : index
    %c0_35 = arith.constant 0 : index
    %47 = tpu.strided_load %arg5[%c276, %c0_35] {strides = array<i32: 2, 1>} : memref<2124x32xf32, #tpu.memory_space<vmem>>, vector<23x32xf32>
    %c277 = arith.constant 277 : index
    %c0_36 = arith.constant 0 : index
    %48 = tpu.strided_load %arg5[%c277, %c0_36] {strides = array<i32: 2, 1>} : memref<2124x32xf32, #tpu.memory_space<vmem>>, vector<23x32xf32>
    %49 = arith.maximumf %47, %48 : vector<23x32xf32>
    %c322 = arith.constant 322 : index
    %c0_37 = arith.constant 0 : index
    %50 = tpu.strided_load %arg5[%c322, %c0_37] {strides = array<i32: 2, 1>} : memref<2124x32xf32, #tpu.memory_space<vmem>>, vector<23x32xf32>
    %c323 = arith.constant 323 : index
    %c0_38 = arith.constant 0 : index
    %51 = tpu.strided_load %arg5[%c323, %c0_38] {strides = array<i32: 2, 1>} : memref<2124x32xf32, #tpu.memory_space<vmem>>, vector<23x32xf32>
    %52 = arith.maximumf %50, %51 : vector<23x32xf32>
    %53 = arith.maximumf %49, %52 : vector<23x32xf32>
    %cst_39 = arith.constant 0.000000e+00 : f32
    %54 = vector.broadcast %cst_39 : f32 to vector<23x32xf32>
    %55 = arith.maximumf %53, %54 : vector<23x32xf32>
    %56 = arith.truncf %55 : vector<23x32xf32> to vector<23x32xbf16>
    %c0_40 = arith.constant 0 : index
    %c3 = arith.constant 3 : index
    %c0_41 = arith.constant 0 : index
    %c0_42 = arith.constant 0 : index
    %57 = vector.load %arg4[%c0_40, %c3, %c0_41, %c0_42] : memref<1x23x23x32xbf16, #tpu.memory_space<vmem>>, vector<1x1x23x32xbf16>
    %58 = vector.shape_cast %57 : vector<1x1x23x32xbf16> to vector<23x32xbf16>
    %59 = vector.shape_cast %56 : vector<23x32xbf16> to vector<1x1x23x32xbf16>
    tpu.vector_store %arg4[%c0_40, %c3, %c0_41, %c0_42], %59 {strides = array<i32>} : memref<1x23x23x32xbf16, #tpu.memory_space<vmem>>, vector<1x1x23x32xbf16>,
    %c368 = arith.constant 368 : index
    %c0_43 = arith.constant 0 : index
    %60 = tpu.strided_load %arg5[%c368, %c0_43] {strides = array<i32: 2, 1>} : memref<2124x32xf32, #tpu.memory_space<vmem>>, vector<23x32xf32>
    %c369 = arith.constant 369 : index
    %c0_44 = arith.constant 0 : index
    %61 = tpu.strided_load %arg5[%c369, %c0_44] {strides = array<i32: 2, 1>} : memref<2124x32xf32, #tpu.memory_space<vmem>>, vector<23x32xf32>
    %62 = arith.maximumf %60, %61 : vector<23x32xf32>
    %c414 = arith.constant 414 : index
    %c0_45 = arith.constant 0 : index
    %63 = tpu.strided_load %arg5[%c414, %c0_45] {strides = array<i32: 2, 1>} : memref<2124x32xf32, #tpu.memory_space<vmem>>, vector<23x32xf32>
    %c415 = arith.constant 415 : index
    %c0_46 = arith.constant 0 : index
    %64 = tpu.strided_load %arg5[%c415, %c0_46] {strides = array<i32: 2, 1>} : memref<2124x32xf32, #tpu.memory_space<vmem>>, vector<23x32xf32>
    %65 = arith.maximumf %63, %64 : vector<23x32xf32>
    %66 = arith.maximumf %62, %65 : vector<23x32xf32>
    %cst_47 = arith.constant 0.000000e+00 : f32
    %67 = vector.broadcast %cst_47 : f32 to vector<23x32xf32>
    %68 = arith.maximumf %66, %67 : vector<23x32xf32>
    %69 = arith.truncf %68 : vector<23x32xf32> to vector<23x32xbf16>
    %c0_48 = arith.constant 0 : index
    %c4 = arith.constant 4 : index
    %c0_49 = arith.constant 0 : index
    %c0_50 = arith.constant 0 : index
    %70 = vector.load %arg4[%c0_48, %c4, %c0_49, %c0_50] : memref<1x23x23x32xbf16, #tpu.memory_space<vmem>>, vector<1x1x23x32xbf16>
    %71 = vector.shape_cast %70 : vector<1x1x23x32xbf16> to vector<23x32xbf16>
    %72 = vector.shape_cast %69 : vector<23x32xbf16> to vector<1x1x23x32xbf16>
    tpu.vector_store %arg4[%c0_48, %c4, %c0_49, %c0_50], %72 {strides = array<i32>} : memref<1x23x23x32xbf16, #tpu.memory_space<vmem>>, vector<1x1x23x32xbf16>,
    %c460 = arith.constant 460 : index
    %c0_51 = arith.constant 0 : index
    %73 = tpu.strided_load %arg5[%c460, %c0_51] {strides = array<i32: 2, 1>} : memref<2124x32xf32, #tpu.memory_space<vmem>>, vector<23x32xf32>
    %c461 = arith.constant 461 : index
    %c0_52 = arith.constant 0 : index
    %74 = tpu.strided_load %arg5[%c461, %c0_52] {strides = array<i32: 2, 1>} : memref<2124x32xf32, #tpu.memory_space<vmem>>, vector<23x32xf32>
    %75 = arith.maximumf %73, %74 : vector<23x32xf32>
    %c506 = arith.constant 506 : index
    %c0_53 = arith.constant 0 : index
    %76 = tpu.strided_load %arg5[%c506, %c0_53] {strides = array<i32: 2, 1>} : memref<2124x32xf32, #tpu.memory_space<vmem>>, vector<23x32xf32>
    %c507 = arith.constant 507 : index
    %c0_54 = arith.constant 0 : index
    %77 = tpu.strided_load %arg5[%c507, %c0_54] {strides = array<i32: 2, 1>} : memref<2124x32xf32, #tpu.memory_space<vmem>>, vector<23x32xf32>
    %78 = arith.maximumf %76, %77 : vector<23x32xf32>
    %79 = arith.maximumf %75, %78 : vector<23x32xf32>
    %cst_55 = arith.constant 0.000000e+00 : f32
    %80 = vector.broadcast %cst_55 : f32 to vector<23x32xf32>
    %81 = arith.maximumf %79, %80 : vector<23x32xf32>
    %82 = arith.truncf %81 : vector<23x32xf32> to vector<23x32xbf16>
    %c0_56 = arith.constant 0 : index
    %c5 = arith.constant 5 : index
    %c0_57 = arith.constant 0 : index
    %c0_58 = arith.constant 0 : index
    %83 = vector.load %arg4[%c0_56, %c5, %c0_57, %c0_58] : memref<1x23x23x32xbf16, #tpu.memory_space<vmem>>, vector<1x1x23x32xbf16>
    %84 = vector.shape_cast %83 : vector<1x1x23x32xbf16> to vector<23x32xbf16>
    %85 = vector.shape_cast %82 : vector<23x32xbf16> to vector<1x1x23x32xbf16>
    tpu.vector_store %arg4[%c0_56, %c5, %c0_57, %c0_58], %85 {strides = array<i32>} : memref<1x23x23x32xbf16, #tpu.memory_space<vmem>>, vector<1x1x23x32xbf16>,
    %c552 = arith.constant 552 : index
    %c0_59 = arith.constant 0 : index
    %86 = tpu.strided_load %arg5[%c552, %c0_59] {strides = array<i32: 2, 1>} : memref<2124x32xf32, #tpu.memory_space<vmem>>, vector<23x32xf32>
    %c553 = arith.constant 553 : index
    %c0_60 = arith.constant 0 : index
    %87 = tpu.strided_load %arg5[%c553, %c0_60] {strides = array<i32: 2, 1>} : memref<2124x32xf32, #tpu.memory_space<vmem>>, vector<23x32xf32>
    %88 = arith.maximumf %86, %87 : vector<23x32xf32>
    %c598 = arith.constant 598 : index
    %c0_61 = arith.constant 0 : index
    %89 = tpu.strided_load %arg5[%c598, %c0_61] {strides = array<i32: 2, 1>} : memref<2124x32xf32, #tpu.memory_space<vmem>>, vector<23x32xf32>
    %c599 = arith.constant 599 : index
    %c0_62 = arith.constant 0 : index
    %90 = tpu.strided_load %arg5[%c599, %c0_62] {strides = array<i32: 2, 1>} : memref<2124x32xf32, #tpu.memory_space<vmem>>, vector<23x32xf32>
    %91 = arith.maximumf %89, %90 : vector<23x32xf32>
    %92 = arith.maximumf %88, %91 : vector<23x32xf32>
    %cst_63 = arith.constant 0.000000e+00 : f32
    %93 = vector.broadcast %cst_63 : f32 to vector<23x32xf32>
    %94 = arith.maximumf %92, %93 : vector<23x32xf32>
    %95 = arith.truncf %94 : vector<23x32xf32> to vector<23x32xbf16>
    %c0_64 = arith.constant 0 : index
    %c6 = arith.constant 6 : index
    %c0_65 = arith.constant 0 : index
    %c0_66 = arith.constant 0 : index
    %96 = vector.load %arg4[%c0_64, %c6, %c0_65, %c0_66] : memref<1x23x23x32xbf16, #tpu.memory_space<vmem>>, vector<1x1x23x32xbf16>
    %97 = vector.shape_cast %96 : vector<1x1x23x32xbf16> to vector<23x32xbf16>
    %98 = vector.shape_cast %95 : vector<23x32xbf16> to vector<1x1x23x32xbf16>
    tpu.vector_store %arg4[%c0_64, %c6, %c0_65, %c0_66], %98 {strides = array<i32>} : memref<1x23x23x32xbf16, #tpu.memory_space<vmem>>, vector<1x1x23x32xbf16>,
    %c644 = arith.constant 644 : index
    %c0_67 = arith.constant 0 : index
    %99 = tpu.strided_load %arg5[%c644, %c0_67] {strides = array<i32: 2, 1>} : memref<2124x32xf32, #tpu.memory_space<vmem>>, vector<23x32xf32>
    %c645 = arith.constant 645 : index
    %c0_68 = arith.constant 0 : index
    %100 = tpu.strided_load %arg5[%c645, %c0_68] {strides = array<i32: 2, 1>} : memref<2124x32xf32, #tpu.memory_space<vmem>>, vector<23x32xf32>
    %101 = arith.maximumf %99, %100 : vector<23x32xf32>
    %c690 = arith.constant 690 : index
    %c0_69 = arith.constant 0 : index
    %102 = tpu.strided_load %arg5[%c690, %c0_69] {strides = array<i32: 2, 1>} : memref<2124x32xf32, #tpu.memory_space<vmem>>, vector<23x32xf32>
    %c691 = arith.constant 691 : index
    %c0_70 = arith.constant 0 : index
    %103 = tpu.strided_load %arg5[%c691, %c0_70] {strides = array<i32: 2, 1>} : memref<2124x32xf32, #tpu.memory_space<vmem>>, vector<23x32xf32>
    %104 = arith.maximumf %102, %103 : vector<23x32xf32>
    %105 = arith.maximumf %101, %104 : vector<23x32xf32>
    %cst_71 = arith.constant 0.000000e+00 : f32
    %106 = vector.broadcast %cst_71 : f32 to vector<23x32xf32>
    %107 = arith.maximumf %105, %106 : vector<23x32xf32>
    %108 = arith.truncf %107 : vector<23x32xf32> to vector<23x32xbf16>
    %c0_72 = arith.constant 0 : index
    %c7 = arith.constant 7 : index
    %c0_73 = arith.constant 0 : index
    %c0_74 = arith.constant 0 : index
    %109 = vector.load %arg4[%c0_72, %c7, %c0_73, %c0_74] : memref<1x23x23x32xbf16, #tpu.memory_space<vmem>>, vector<1x1x23x32xbf16>
    %110 = vector.shape_cast %109 : vector<1x1x23x32xbf16> to vector<23x32xbf16>
    %111 = vector.shape_cast %108 : vector<23x32xbf16> to vector<1x1x23x32xbf16>
    tpu.vector_store %arg4[%c0_72, %c7, %c0_73, %c0_74], %111 {strides = array<i32>} : memref<1x23x23x32xbf16, #tpu.memory_space<vmem>>, vector<1x1x23x32xbf16>,
    %c736 = arith.constant 736 : index
    %c0_75 = arith.constant 0 : index
    %112 = tpu.strided_load %arg5[%c736, %c0_75] {strides = array<i32: 2, 1>} : memref<2124x32xf32, #tpu.memory_space<vmem>>, vector<23x32xf32>
    %c737 = arith.constant 737 : index
    %c0_76 = arith.constant 0 : index
    %113 = tpu.strided_load %arg5[%c737, %c0_76] {strides = array<i32: 2, 1>} : memref<2124x32xf32, #tpu.memory_space<vmem>>, vector<23x32xf32>
    %114 = arith.maximumf %112, %113 : vector<23x32xf32>
    %c782 = arith.constant 782 : index
    %c0_77 = arith.constant 0 : index
    %115 = tpu.strided_load %arg5[%c782, %c0_77] {strides = array<i32: 2, 1>} : memref<2124x32xf32, #tpu.memory_space<vmem>>, vector<23x32xf32>
    %c783 = arith.constant 783 : index
    %c0_78 = arith.constant 0 : index
    %116 = tpu.strided_load %arg5[%c783, %c0_78] {strides = array<i32: 2, 1>} : memref<2124x32xf32, #tpu.memory_space<vmem>>, vector<23x32xf32>
    %117 = arith.maximumf %115, %116 : vector<23x32xf32>
    %118 = arith.maximumf %114, %117 : vector<23x32xf32>
    %cst_79 = arith.constant 0.000000e+00 : f32
    %119 = vector.broadcast %cst_79 : f32 to vector<23x32xf32>
    %120 = arith.maximumf %118, %119 : vector<23x32xf32>
    %121 = arith.truncf %120 : vector<23x32xf32> to vector<23x32xbf16>
    %c0_80 = arith.constant 0 : index
    %c8 = arith.constant 8 : index
    %c0_81 = arith.constant 0 : index
    %c0_82 = arith.constant 0 : index
    %122 = vector.load %arg4[%c0_80, %c8, %c0_81, %c0_82] : memref<1x23x23x32xbf16, #tpu.memory_space<vmem>>, vector<1x1x23x32xbf16>
    %123 = vector.shape_cast %122 : vector<1x1x23x32xbf16> to vector<23x32xbf16>
    %124 = vector.shape_cast %121 : vector<23x32xbf16> to vector<1x1x23x32xbf16>
    tpu.vector_store %arg4[%c0_80, %c8, %c0_81, %c0_82], %124 {strides = array<i32>} : memref<1x23x23x32xbf16, #tpu.memory_space<vmem>>, vector<1x1x23x32xbf16>,
    %c828 = arith.constant 828 : index
    %c0_83 = arith.constant 0 : index
    %125 = tpu.strided_load %arg5[%c828, %c0_83] {strides = array<i32: 2, 1>} : memref<2124x32xf32, #tpu.memory_space<vmem>>, vector<23x32xf32>
    %c829 = arith.constant 829 : index
    %c0_84 = arith.constant 0 : index
    %126 = tpu.strided_load %arg5[%c829, %c0_84] {strides = array<i32: 2, 1>} : memref<2124x32xf32, #tpu.memory_space<vmem>>, vector<23x32xf32>
    %127 = arith.maximumf %125, %126 : vector<23x32xf32>
    %c874 = arith.constant 874 : index
    %c0_85 = arith.constant 0 : index
    %128 = tpu.strided_load %arg5[%c874, %c0_85] {strides = array<i32: 2, 1>} : memref<2124x32xf32, #tpu.memory_space<vmem>>, vector<23x32xf32>
    %c875 = arith.constant 875 : index
    %c0_86 = arith.constant 0 : index
    %129 = tpu.strided_load %arg5[%c875, %c0_86] {strides = array<i32: 2, 1>} : memref<2124x32xf32, #tpu.memory_space<vmem>>, vector<23x32xf32>
    %130 = arith.maximumf %128, %129 : vector<23x32xf32>
    %131 = arith.maximumf %127, %130 : vector<23x32xf32>
    %cst_87 = arith.constant 0.000000e+00 : f32
    %132 = vector.broadcast %cst_87 : f32 to vector<23x32xf32>
    %133 = arith.maximumf %131, %132 : vector<23x32xf32>
    %134 = arith.truncf %133 : vector<23x32xf32> to vector<23x32xbf16>
    %c0_88 = arith.constant 0 : index
    %c9 = arith.constant 9 : index
    %c0_89 = arith.constant 0 : index
    %c0_90 = arith.constant 0 : index
    %135 = vector.load %arg4[%c0_88, %c9, %c0_89, %c0_90] : memref<1x23x23x32xbf16, #tpu.memory_space<vmem>>, vector<1x1x23x32xbf16>
    %136 = vector.shape_cast %135 : vector<1x1x23x32xbf16> to vector<23x32xbf16>
    %137 = vector.shape_cast %134 : vector<23x32xbf16> to vector<1x1x23x32xbf16>
    tpu.vector_store %arg4[%c0_88, %c9, %c0_89, %c0_90], %137 {strides = array<i32>} : memref<1x23x23x32xbf16, #tpu.memory_space<vmem>>, vector<1x1x23x32xbf16>,
    %c920 = arith.constant 920 : index
    %c0_91 = arith.constant 0 : index
    %138 = tpu.strided_load %arg5[%c920, %c0_91] {strides = array<i32: 2, 1>} : memref<2124x32xf32, #tpu.memory_space<vmem>>, vector<23x32xf32>
    %c921 = arith.constant 921 : index
    %c0_92 = arith.constant 0 : index
    %139 = tpu.strided_load %arg5[%c921, %c0_92] {strides = array<i32: 2, 1>} : memref<2124x32xf32, #tpu.memory_space<vmem>>, vector<23x32xf32>
    %140 = arith.maximumf %138, %139 : vector<23x32xf32>
    %c966 = arith.constant 966 : index
    %c0_93 = arith.constant 0 : index
    %141 = tpu.strided_load %arg5[%c966, %c0_93] {strides = array<i32: 2, 1>} : memref<2124x32xf32, #tpu.memory_space<vmem>>, vector<23x32xf32>
    %c967 = arith.constant 967 : index
    %c0_94 = arith.constant 0 : index
    %142 = tpu.strided_load %arg5[%c967, %c0_94] {strides = array<i32: 2, 1>} : memref<2124x32xf32, #tpu.memory_space<vmem>>, vector<23x32xf32>
    %143 = arith.maximumf %141, %142 : vector<23x32xf32>
    %144 = arith.maximumf %140, %143 : vector<23x32xf32>
    %cst_95 = arith.constant 0.000000e+00 : f32
    %145 = vector.broadcast %cst_95 : f32 to vector<23x32xf32>
    %146 = arith.maximumf %144, %145 : vector<23x32xf32>
    %147 = arith.truncf %146 : vector<23x32xf32> to vector<23x32xbf16>
    %c0_96 = arith.constant 0 : index
    %c10 = arith.constant 10 : index
    %c0_97 = arith.constant 0 : index
    %c0_98 = arith.constant 0 : index
    %148 = vector.load %arg4[%c0_96, %c10, %c0_97, %c0_98] : memref<1x23x23x32xbf16, #tpu.memory_space<vmem>>, vector<1x1x23x32xbf16>
    %149 = vector.shape_cast %148 : vector<1x1x23x32xbf16> to vector<23x32xbf16>
    %150 = vector.shape_cast %147 : vector<23x32xbf16> to vector<1x1x23x32xbf16>
    tpu.vector_store %arg4[%c0_96, %c10, %c0_97, %c0_98], %150 {strides = array<i32>} : memref<1x23x23x32xbf16, #tpu.memory_space<vmem>>, vector<1x1x23x32xbf16>,
    %c1012 = arith.constant 1012 : index
    %c0_99 = arith.constant 0 : index
    %151 = tpu.strided_load %arg5[%c1012, %c0_99] {strides = array<i32: 2, 1>} : memref<2124x32xf32, #tpu.memory_space<vmem>>, vector<23x32xf32>
    %c1013 = arith.constant 1013 : index
    %c0_100 = arith.constant 0 : index
    %152 = tpu.strided_load %arg5[%c1013, %c0_100] {strides = array<i32: 2, 1>} : memref<2124x32xf32, #tpu.memory_space<vmem>>, vector<23x32xf32>
    %153 = arith.maximumf %151, %152 : vector<23x32xf32>
    %c1058 = arith.constant 1058 : index
    %c0_101 = arith.constant 0 : index
    %154 = tpu.strided_load %arg5[%c1058, %c0_101] {strides = array<i32: 2, 1>} : memref<2124x32xf32, #tpu.memory_space<vmem>>, vector<23x32xf32>
    %c1059 = arith.constant 1059 : index
    %c0_102 = arith.constant 0 : index
    %155 = tpu.strided_load %arg5[%c1059, %c0_102] {strides = array<i32: 2, 1>} : memref<2124x32xf32, #tpu.memory_space<vmem>>, vector<23x32xf32>
    %156 = arith.maximumf %154, %155 : vector<23x32xf32>
    %157 = arith.maximumf %153, %156 : vector<23x32xf32>
    %cst_103 = arith.constant 0.000000e+00 : f32
    %158 = vector.broadcast %cst_103 : f32 to vector<23x32xf32>
    %159 = arith.maximumf %157, %158 : vector<23x32xf32>
    %160 = arith.truncf %159 : vector<23x32xf32> to vector<23x32xbf16>
    %c0_104 = arith.constant 0 : index
    %c11 = arith.constant 11 : index
    %c0_105 = arith.constant 0 : index
    %c0_106 = arith.constant 0 : index
    %161 = vector.load %arg4[%c0_104, %c11, %c0_105, %c0_106] : memref<1x23x23x32xbf16, #tpu.memory_space<vmem>>, vector<1x1x23x32xbf16>
    %162 = vector.shape_cast %161 : vector<1x1x23x32xbf16> to vector<23x32xbf16>
    %163 = vector.shape_cast %160 : vector<23x32xbf16> to vector<1x1x23x32xbf16>
    tpu.vector_store %arg4[%c0_104, %c11, %c0_105, %c0_106], %163 {strides = array<i32>} : memref<1x23x23x32xbf16, #tpu.memory_space<vmem>>, vector<1x1x23x32xbf16>,
    %c1104 = arith.constant 1104 : index
    %c0_107 = arith.constant 0 : index
    %164 = tpu.strided_load %arg5[%c1104, %c0_107] {strides = array<i32: 2, 1>} : memref<2124x32xf32, #tpu.memory_space<vmem>>, vector<23x32xf32>
    %c1105 = arith.constant 1105 : index
    %c0_108 = arith.constant 0 : index
    %165 = tpu.strided_load %arg5[%c1105, %c0_108] {strides = array<i32: 2, 1>} : memref<2124x32xf32, #tpu.memory_space<vmem>>, vector<23x32xf32>
    %166 = arith.maximumf %164, %165 : vector<23x32xf32>
    %c1150 = arith.constant 1150 : index
    %c0_109 = arith.constant 0 : index
    %167 = tpu.strided_load %arg5[%c1150, %c0_109] {strides = array<i32: 2, 1>} : memref<2124x32xf32, #tpu.memory_space<vmem>>, vector<23x32xf32>
    %c1151 = arith.constant 1151 : index
    %c0_110 = arith.constant 0 : index
    %168 = tpu.strided_load %arg5[%c1151, %c0_110] {strides = array<i32: 2, 1>} : memref<2124x32xf32, #tpu.memory_space<vmem>>, vector<23x32xf32>
    %169 = arith.maximumf %167, %168 : vector<23x32xf32>
    %170 = arith.maximumf %166, %169 : vector<23x32xf32>
    %cst_111 = arith.constant 0.000000e+00 : f32
    %171 = vector.broadcast %cst_111 : f32 to vector<23x32xf32>
    %172 = arith.maximumf %170, %171 : vector<23x32xf32>
    %173 = arith.truncf %172 : vector<23x32xf32> to vector<23x32xbf16>
    %c0_112 = arith.constant 0 : index
    %c12 = arith.constant 12 : index
    %c0_113 = arith.constant 0 : index
    %c0_114 = arith.constant 0 : index
    %174 = vector.load %arg4[%c0_112, %c12, %c0_113, %c0_114] : memref<1x23x23x32xbf16, #tpu.memory_space<vmem>>, vector<1x1x23x32xbf16>
    %175 = vector.shape_cast %174 : vector<1x1x23x32xbf16> to vector<23x32xbf16>
    %176 = vector.shape_cast %173 : vector<23x32xbf16> to vector<1x1x23x32xbf16>
    tpu.vector_store %arg4[%c0_112, %c12, %c0_113, %c0_114], %176 {strides = array<i32>} : memref<1x23x23x32xbf16, #tpu.memory_space<vmem>>, vector<1x1x23x32xbf16>,
    %c1196 = arith.constant 1196 : index
    %c0_115 = arith.constant 0 : index
    %177 = tpu.strided_load %arg5[%c1196, %c0_115] {strides = array<i32: 2, 1>} : memref<2124x32xf32, #tpu.memory_space<vmem>>, vector<23x32xf32>
    %c1197 = arith.constant 1197 : index
    %c0_116 = arith.constant 0 : index
    %178 = tpu.strided_load %arg5[%c1197, %c0_116] {strides = array<i32: 2, 1>} : memref<2124x32xf32, #tpu.memory_space<vmem>>, vector<23x32xf32>
    %179 = arith.maximumf %177, %178 : vector<23x32xf32>
    %c1242 = arith.constant 1242 : index
    %c0_117 = arith.constant 0 : index
    %180 = tpu.strided_load %arg5[%c1242, %c0_117] {strides = array<i32: 2, 1>} : memref<2124x32xf32, #tpu.memory_space<vmem>>, vector<23x32xf32>
    %c1243 = arith.constant 1243 : index
    %c0_118 = arith.constant 0 : index
    %181 = tpu.strided_load %arg5[%c1243, %c0_118] {strides = array<i32: 2, 1>} : memref<2124x32xf32, #tpu.memory_space<vmem>>, vector<23x32xf32>
    %182 = arith.maximumf %180, %181 : vector<23x32xf32>
    %183 = arith.maximumf %179, %182 : vector<23x32xf32>
    %cst_119 = arith.constant 0.000000e+00 : f32
    %184 = vector.broadcast %cst_119 : f32 to vector<23x32xf32>
    %185 = arith.maximumf %183, %184 : vector<23x32xf32>
    %186 = arith.truncf %185 : vector<23x32xf32> to vector<23x32xbf16>
    %c0_120 = arith.constant 0 : index
    %c13 = arith.constant 13 : index
    %c0_121 = arith.constant 0 : index
    %c0_122 = arith.constant 0 : index
    %187 = vector.load %arg4[%c0_120, %c13, %c0_121, %c0_122] : memref<1x23x23x32xbf16, #tpu.memory_space<vmem>>, vector<1x1x23x32xbf16>
    %188 = vector.shape_cast %187 : vector<1x1x23x32xbf16> to vector<23x32xbf16>
    %189 = vector.shape_cast %186 : vector<23x32xbf16> to vector<1x1x23x32xbf16>
    tpu.vector_store %arg4[%c0_120, %c13, %c0_121, %c0_122], %189 {strides = array<i32>} : memref<1x23x23x32xbf16, #tpu.memory_space<vmem>>, vector<1x1x23x32xbf16>,
    %c1288 = arith.constant 1288 : index
    %c0_123 = arith.constant 0 : index
    %190 = tpu.strided_load %arg5[%c1288, %c0_123] {strides = array<i32: 2, 1>} : memref<2124x32xf32, #tpu.memory_space<vmem>>, vector<23x32xf32>
    %c1289 = arith.constant 1289 : index
    %c0_124 = arith.constant 0 : index
    %191 = tpu.strided_load %arg5[%c1289, %c0_124] {strides = array<i32: 2, 1>} : memref<2124x32xf32, #tpu.memory_space<vmem>>, vector<23x32xf32>
    %192 = arith.maximumf %190, %191 : vector<23x32xf32>
    %c1334 = arith.constant 1334 : index
    %c0_125 = arith.constant 0 : index
    %193 = tpu.strided_load %arg5[%c1334, %c0_125] {strides = array<i32: 2, 1>} : memref<2124x32xf32, #tpu.memory_space<vmem>>, vector<23x32xf32>
    %c1335 = arith.constant 1335 : index
    %c0_126 = arith.constant 0 : index
    %194 = tpu.strided_load %arg5[%c1335, %c0_126] {strides = array<i32: 2, 1>} : memref<2124x32xf32, #tpu.memory_space<vmem>>, vector<23x32xf32>
    %195 = arith.maximumf %193, %194 : vector<23x32xf32>
    %196 = arith.maximumf %192, %195 : vector<23x32xf32>
    %cst_127 = arith.constant 0.000000e+00 : f32
    %197 = vector.broadcast %cst_127 : f32 to vector<23x32xf32>
    %198 = arith.maximumf %196, %197 : vector<23x32xf32>
    %199 = arith.truncf %198 : vector<23x32xf32> to vector<23x32xbf16>
    %c0_128 = arith.constant 0 : index
    %c14 = arith.constant 14 : index
    %c0_129 = arith.constant 0 : index
    %c0_130 = arith.constant 0 : index
    %200 = vector.load %arg4[%c0_128, %c14, %c0_129, %c0_130] : memref<1x23x23x32xbf16, #tpu.memory_space<vmem>>, vector<1x1x23x32xbf16>
    %201 = vector.shape_cast %200 : vector<1x1x23x32xbf16> to vector<23x32xbf16>
    %202 = vector.shape_cast %199 : vector<23x32xbf16> to vector<1x1x23x32xbf16>
    tpu.vector_store %arg4[%c0_128, %c14, %c0_129, %c0_130], %202 {strides = array<i32>} : memref<1x23x23x32xbf16, #tpu.memory_space<vmem>>, vector<1x1x23x32xbf16>,
    %c1380 = arith.constant 1380 : index
    %c0_131 = arith.constant 0 : index
    %203 = tpu.strided_load %arg5[%c1380, %c0_131] {strides = array<i32: 2, 1>} : memref<2124x32xf32, #tpu.memory_space<vmem>>, vector<23x32xf32>
    %c1381 = arith.constant 1381 : index
    %c0_132 = arith.constant 0 : index
    %204 = tpu.strided_load %arg5[%c1381, %c0_132] {strides = array<i32: 2, 1>} : memref<2124x32xf32, #tpu.memory_space<vmem>>, vector<23x32xf32>
    %205 = arith.maximumf %203, %204 : vector<23x32xf32>
    %c1426 = arith.constant 1426 : index
    %c0_133 = arith.constant 0 : index
    %206 = tpu.strided_load %arg5[%c1426, %c0_133] {strides = array<i32: 2, 1>} : memref<2124x32xf32, #tpu.memory_space<vmem>>, vector<23x32xf32>
    %c1427 = arith.constant 1427 : index
    %c0_134 = arith.constant 0 : index
    %207 = tpu.strided_load %arg5[%c1427, %c0_134] {strides = array<i32: 2, 1>} : memref<2124x32xf32, #tpu.memory_space<vmem>>, vector<23x32xf32>
    %208 = arith.maximumf %206, %207 : vector<23x32xf32>
    %209 = arith.maximumf %205, %208 : vector<23x32xf32>
    %cst_135 = arith.constant 0.000000e+00 : f32
    %210 = vector.broadcast %cst_135 : f32 to vector<23x32xf32>
    %211 = arith.maximumf %209, %210 : vector<23x32xf32>
    %212 = arith.truncf %211 : vector<23x32xf32> to vector<23x32xbf16>
    %c0_136 = arith.constant 0 : index
    %c15 = arith.constant 15 : index
    %c0_137 = arith.constant 0 : index
    %c0_138 = arith.constant 0 : index
    %213 = vector.load %arg4[%c0_136, %c15, %c0_137, %c0_138] : memref<1x23x23x32xbf16, #tpu.memory_space<vmem>>, vector<1x1x23x32xbf16>
    %214 = vector.shape_cast %213 : vector<1x1x23x32xbf16> to vector<23x32xbf16>
    %215 = vector.shape_cast %212 : vector<23x32xbf16> to vector<1x1x23x32xbf16>
    tpu.vector_store %arg4[%c0_136, %c15, %c0_137, %c0_138], %215 {strides = array<i32>} : memref<1x23x23x32xbf16, #tpu.memory_space<vmem>>, vector<1x1x23x32xbf16>,
    %c1472 = arith.constant 1472 : index
    %c0_139 = arith.constant 0 : index
    %216 = tpu.strided_load %arg5[%c1472, %c0_139] {strides = array<i32: 2, 1>} : memref<2124x32xf32, #tpu.memory_space<vmem>>, vector<23x32xf32>
    %c1473 = arith.constant 1473 : index
    %c0_140 = arith.constant 0 : index
    %217 = tpu.strided_load %arg5[%c1473, %c0_140] {strides = array<i32: 2, 1>} : memref<2124x32xf32, #tpu.memory_space<vmem>>, vector<23x32xf32>
    %218 = arith.maximumf %216, %217 : vector<23x32xf32>
    %c1518 = arith.constant 1518 : index
    %c0_141 = arith.constant 0 : index
    %219 = tpu.strided_load %arg5[%c1518, %c0_141] {strides = array<i32: 2, 1>} : memref<2124x32xf32, #tpu.memory_space<vmem>>, vector<23x32xf32>
    %c1519 = arith.constant 1519 : index
    %c0_142 = arith.constant 0 : index
    %220 = tpu.strided_load %arg5[%c1519, %c0_142] {strides = array<i32: 2, 1>} : memref<2124x32xf32, #tpu.memory_space<vmem>>, vector<23x32xf32>
    %221 = arith.maximumf %219, %220 : vector<23x32xf32>
    %222 = arith.maximumf %218, %221 : vector<23x32xf32>
    %cst_143 = arith.constant 0.000000e+00 : f32
    %223 = vector.broadcast %cst_143 : f32 to vector<23x32xf32>
    %224 = arith.maximumf %222, %223 : vector<23x32xf32>
    %225 = arith.truncf %224 : vector<23x32xf32> to vector<23x32xbf16>
    %c0_144 = arith.constant 0 : index
    %c16 = arith.constant 16 : index
    %c0_145 = arith.constant 0 : index
    %c0_146 = arith.constant 0 : index
    %226 = vector.load %arg4[%c0_144, %c16, %c0_145, %c0_146] : memref<1x23x23x32xbf16, #tpu.memory_space<vmem>>, vector<1x1x23x32xbf16>
    %227 = vector.shape_cast %226 : vector<1x1x23x32xbf16> to vector<23x32xbf16>
    %228 = vector.shape_cast %225 : vector<23x32xbf16> to vector<1x1x23x32xbf16>
    tpu.vector_store %arg4[%c0_144, %c16, %c0_145, %c0_146], %228 {strides = array<i32>} : memref<1x23x23x32xbf16, #tpu.memory_space<vmem>>, vector<1x1x23x32xbf16>,
    %c1564 = arith.constant 1564 : index
    %c0_147 = arith.constant 0 : index
    %229 = tpu.strided_load %arg5[%c1564, %c0_147] {strides = array<i32: 2, 1>} : memref<2124x32xf32, #tpu.memory_space<vmem>>, vector<23x32xf32>
    %c1565 = arith.constant 1565 : index
    %c0_148 = arith.constant 0 : index
    %230 = tpu.strided_load %arg5[%c1565, %c0_148] {strides = array<i32: 2, 1>} : memref<2124x32xf32, #tpu.memory_space<vmem>>, vector<23x32xf32>
    %231 = arith.maximumf %229, %230 : vector<23x32xf32>
    %c1610 = arith.constant 1610 : index
    %c0_149 = arith.constant 0 : index
    %232 = tpu.strided_load %arg5[%c1610, %c0_149] {strides = array<i32: 2, 1>} : memref<2124x32xf32, #tpu.memory_space<vmem>>, vector<23x32xf32>
    %c1611 = arith.constant 1611 : index
    %c0_150 = arith.constant 0 : index
    %233 = tpu.strided_load %arg5[%c1611, %c0_150] {strides = array<i32: 2, 1>} : memref<2124x32xf32, #tpu.memory_space<vmem>>, vector<23x32xf32>
    %234 = arith.maximumf %232, %233 : vector<23x32xf32>
    %235 = arith.maximumf %231, %234 : vector<23x32xf32>
    %cst_151 = arith.constant 0.000000e+00 : f32
    %236 = vector.broadcast %cst_151 : f32 to vector<23x32xf32>
    %237 = arith.maximumf %235, %236 : vector<23x32xf32>
    %238 = arith.truncf %237 : vector<23x32xf32> to vector<23x32xbf16>
    %c0_152 = arith.constant 0 : index
    %c17 = arith.constant 17 : index
    %c0_153 = arith.constant 0 : index
    %c0_154 = arith.constant 0 : index
    %239 = vector.load %arg4[%c0_152, %c17, %c0_153, %c0_154] : memref<1x23x23x32xbf16, #tpu.memory_space<vmem>>, vector<1x1x23x32xbf16>
    %240 = vector.shape_cast %239 : vector<1x1x23x32xbf16> to vector<23x32xbf16>
    %241 = vector.shape_cast %238 : vector<23x32xbf16> to vector<1x1x23x32xbf16>
    tpu.vector_store %arg4[%c0_152, %c17, %c0_153, %c0_154], %241 {strides = array<i32>} : memref<1x23x23x32xbf16, #tpu.memory_space<vmem>>, vector<1x1x23x32xbf16>,
    %c1656 = arith.constant 1656 : index
    %c0_155 = arith.constant 0 : index
    %242 = tpu.strided_load %arg5[%c1656, %c0_155] {strides = array<i32: 2, 1>} : memref<2124x32xf32, #tpu.memory_space<vmem>>, vector<23x32xf32>
    %c1657 = arith.constant 1657 : index
    %c0_156 = arith.constant 0 : index
    %243 = tpu.strided_load %arg5[%c1657, %c0_156] {strides = array<i32: 2, 1>} : memref<2124x32xf32, #tpu.memory_space<vmem>>, vector<23x32xf32>
    %244 = arith.maximumf %242, %243 : vector<23x32xf32>
    %c1702 = arith.constant 1702 : index
    %c0_157 = arith.constant 0 : index
    %245 = tpu.strided_load %arg5[%c1702, %c0_157] {strides = array<i32: 2, 1>} : memref<2124x32xf32, #tpu.memory_space<vmem>>, vector<23x32xf32>
    %c1703 = arith.constant 1703 : index
    %c0_158 = arith.constant 0 : index
    %246 = tpu.strided_load %arg5[%c1703, %c0_158] {strides = array<i32: 2, 1>} : memref<2124x32xf32, #tpu.memory_space<vmem>>, vector<23x32xf32>
    %247 = arith.maximumf %245, %246 : vector<23x32xf32>
    %248 = arith.maximumf %244, %247 : vector<23x32xf32>
    %cst_159 = arith.constant 0.000000e+00 : f32
    %249 = vector.broadcast %cst_159 : f32 to vector<23x32xf32>
    %250 = arith.maximumf %248, %249 : vector<23x32xf32>
    %251 = arith.truncf %250 : vector<23x32xf32> to vector<23x32xbf16>
    %c0_160 = arith.constant 0 : index
    %c18 = arith.constant 18 : index
    %c0_161 = arith.constant 0 : index
    %c0_162 = arith.constant 0 : index
    %252 = vector.load %arg4[%c0_160, %c18, %c0_161, %c0_162] : memref<1x23x23x32xbf16, #tpu.memory_space<vmem>>, vector<1x1x23x32xbf16>
    %253 = vector.shape_cast %252 : vector<1x1x23x32xbf16> to vector<23x32xbf16>
    %254 = vector.shape_cast %251 : vector<23x32xbf16> to vector<1x1x23x32xbf16>
    tpu.vector_store %arg4[%c0_160, %c18, %c0_161, %c0_162], %254 {strides = array<i32>} : memref<1x23x23x32xbf16, #tpu.memory_space<vmem>>, vector<1x1x23x32xbf16>,
    %c1748 = arith.constant 1748 : index
    %c0_163 = arith.constant 0 : index
    %255 = tpu.strided_load %arg5[%c1748, %c0_163] {strides = array<i32: 2, 1>} : memref<2124x32xf32, #tpu.memory_space<vmem>>, vector<23x32xf32>
    %c1749 = arith.constant 1749 : index
    %c0_164 = arith.constant 0 : index
    %256 = tpu.strided_load %arg5[%c1749, %c0_164] {strides = array<i32: 2, 1>} : memref<2124x32xf32, #tpu.memory_space<vmem>>, vector<23x32xf32>
    %257 = arith.maximumf %255, %256 : vector<23x32xf32>
    %c1794 = arith.constant 1794 : index
    %c0_165 = arith.constant 0 : index
    %258 = tpu.strided_load %arg5[%c1794, %c0_165] {strides = array<i32: 2, 1>} : memref<2124x32xf32, #tpu.memory_space<vmem>>, vector<23x32xf32>
    %c1795 = arith.constant 1795 : index
    %c0_166 = arith.constant 0 : index
    %259 = tpu.strided_load %arg5[%c1795, %c0_166] {strides = array<i32: 2, 1>} : memref<2124x32xf32, #tpu.memory_space<vmem>>, vector<23x32xf32>
    %260 = arith.maximumf %258, %259 : vector<23x32xf32>
    %261 = arith.maximumf %257, %260 : vector<23x32xf32>
    %cst_167 = arith.constant 0.000000e+00 : f32
    %262 = vector.broadcast %cst_167 : f32 to vector<23x32xf32>
    %263 = arith.maximumf %261, %262 : vector<23x32xf32>
    %264 = arith.truncf %263 : vector<23x32xf32> to vector<23x32xbf16>
    %c0_168 = arith.constant 0 : index
    %c19 = arith.constant 19 : index
    %c0_169 = arith.constant 0 : index
    %c0_170 = arith.constant 0 : index
    %265 = vector.load %arg4[%c0_168, %c19, %c0_169, %c0_170] : memref<1x23x23x32xbf16, #tpu.memory_space<vmem>>, vector<1x1x23x32xbf16>
    %266 = vector.shape_cast %265 : vector<1x1x23x32xbf16> to vector<23x32xbf16>
    %267 = vector.shape_cast %264 : vector<23x32xbf16> to vector<1x1x23x32xbf16>
    tpu.vector_store %arg4[%c0_168, %c19, %c0_169, %c0_170], %267 {strides = array<i32>} : memref<1x23x23x32xbf16, #tpu.memory_space<vmem>>, vector<1x1x23x32xbf16>,
    %c1840 = arith.constant 1840 : index
    %c0_171 = arith.constant 0 : index
    %268 = tpu.strided_load %arg5[%c1840, %c0_171] {strides = array<i32: 2, 1>} : memref<2124x32xf32, #tpu.memory_space<vmem>>, vector<23x32xf32>
    %c1841 = arith.constant 1841 : index
    %c0_172 = arith.constant 0 : index
    %269 = tpu.strided_load %arg5[%c1841, %c0_172] {strides = array<i32: 2, 1>} : memref<2124x32xf32, #tpu.memory_space<vmem>>, vector<23x32xf32>
    %270 = arith.maximumf %268, %269 : vector<23x32xf32>
    %c1886 = arith.constant 1886 : index
    %c0_173 = arith.constant 0 : index
    %271 = tpu.strided_load %arg5[%c1886, %c0_173] {strides = array<i32: 2, 1>} : memref<2124x32xf32, #tpu.memory_space<vmem>>, vector<23x32xf32>
    %c1887 = arith.constant 1887 : index
    %c0_174 = arith.constant 0 : index
    %272 = tpu.strided_load %arg5[%c1887, %c0_174] {strides = array<i32: 2, 1>} : memref<2124x32xf32, #tpu.memory_space<vmem>>, vector<23x32xf32>
    %273 = arith.maximumf %271, %272 : vector<23x32xf32>
    %274 = arith.maximumf %270, %273 : vector<23x32xf32>
    %cst_175 = arith.constant 0.000000e+00 : f32
    %275 = vector.broadcast %cst_175 : f32 to vector<23x32xf32>
    %276 = arith.maximumf %274, %275 : vector<23x32xf32>
    %277 = arith.truncf %276 : vector<23x32xf32> to vector<23x32xbf16>
    %c0_176 = arith.constant 0 : index
    %c20 = arith.constant 20 : index
    %c0_177 = arith.constant 0 : index
    %c0_178 = arith.constant 0 : index
    %278 = vector.load %arg4[%c0_176, %c20, %c0_177, %c0_178] : memref<1x23x23x32xbf16, #tpu.memory_space<vmem>>, vector<1x1x23x32xbf16>
    %279 = vector.shape_cast %278 : vector<1x1x23x32xbf16> to vector<23x32xbf16>
    %280 = vector.shape_cast %277 : vector<23x32xbf16> to vector<1x1x23x32xbf16>
    tpu.vector_store %arg4[%c0_176, %c20, %c0_177, %c0_178], %280 {strides = array<i32>} : memref<1x23x23x32xbf16, #tpu.memory_space<vmem>>, vector<1x1x23x32xbf16>,
    %c1932 = arith.constant 1932 : index
    %c0_179 = arith.constant 0 : index
    %281 = tpu.strided_load %arg5[%c1932, %c0_179] {strides = array<i32: 2, 1>} : memref<2124x32xf32, #tpu.memory_space<vmem>>, vector<23x32xf32>
    %c1933 = arith.constant 1933 : index
    %c0_180 = arith.constant 0 : index
    %282 = tpu.strided_load %arg5[%c1933, %c0_180] {strides = array<i32: 2, 1>} : memref<2124x32xf32, #tpu.memory_space<vmem>>, vector<23x32xf32>
    %283 = arith.maximumf %281, %282 : vector<23x32xf32>
    %c1978 = arith.constant 1978 : index
    %c0_181 = arith.constant 0 : index
    %284 = tpu.strided_load %arg5[%c1978, %c0_181] {strides = array<i32: 2, 1>} : memref<2124x32xf32, #tpu.memory_space<vmem>>, vector<23x32xf32>
    %c1979 = arith.constant 1979 : index
    %c0_182 = arith.constant 0 : index
    %285 = tpu.strided_load %arg5[%c1979, %c0_182] {strides = array<i32: 2, 1>} : memref<2124x32xf32, #tpu.memory_space<vmem>>, vector<23x32xf32>
    %286 = arith.maximumf %284, %285 : vector<23x32xf32>
    %287 = arith.maximumf %283, %286 : vector<23x32xf32>
    %cst_183 = arith.constant 0.000000e+00 : f32
    %288 = vector.broadcast %cst_183 : f32 to vector<23x32xf32>
    %289 = arith.maximumf %287, %288 : vector<23x32xf32>
    %290 = arith.truncf %289 : vector<23x32xf32> to vector<23x32xbf16>
    %c0_184 = arith.constant 0 : index
    %c21 = arith.constant 21 : index
    %c0_185 = arith.constant 0 : index
    %c0_186 = arith.constant 0 : index
    %291 = vector.load %arg4[%c0_184, %c21, %c0_185, %c0_186] : memref<1x23x23x32xbf16, #tpu.memory_space<vmem>>, vector<1x1x23x32xbf16>
    %292 = vector.shape_cast %291 : vector<1x1x23x32xbf16> to vector<23x32xbf16>
    %293 = vector.shape_cast %290 : vector<23x32xbf16> to vector<1x1x23x32xbf16>
    tpu.vector_store %arg4[%c0_184, %c21, %c0_185, %c0_186], %293 {strides = array<i32>} : memref<1x23x23x32xbf16, #tpu.memory_space<vmem>>, vector<1x1x23x32xbf16>,
    %c2024 = arith.constant 2024 : index
    %c0_187 = arith.constant 0 : index
    %294 = tpu.strided_load %arg5[%c2024, %c0_187] {strides = array<i32: 2, 1>} : memref<2124x32xf32, #tpu.memory_space<vmem>>, vector<23x32xf32>
    %c2025 = arith.constant 2025 : index
    %c0_188 = arith.constant 0 : index
    %295 = tpu.strided_load %arg5[%c2025, %c0_188] {strides = array<i32: 2, 1>} : memref<2124x32xf32, #tpu.memory_space<vmem>>, vector<23x32xf32>
    %296 = arith.maximumf %294, %295 : vector<23x32xf32>
    %c2070 = arith.constant 2070 : index
    %c0_189 = arith.constant 0 : index
    %297 = tpu.strided_load %arg5[%c2070, %c0_189] {strides = array<i32: 2, 1>} : memref<2124x32xf32, #tpu.memory_space<vmem>>, vector<23x32xf32>
    %c2071 = arith.constant 2071 : index
    %c0_190 = arith.constant 0 : index
    %298 = tpu.strided_load %arg5[%c2071, %c0_190] {strides = array<i32: 2, 1>} : memref<2124x32xf32, #tpu.memory_space<vmem>>, vector<23x32xf32>
    %299 = arith.maximumf %297, %298 : vector<23x32xf32>
    %300 = arith.maximumf %296, %299 : vector<23x32xf32>
    %cst_191 = arith.constant 0.000000e+00 : f32
    %301 = vector.broadcast %cst_191 : f32 to vector<23x32xf32>
    %302 = arith.maximumf %300, %301 : vector<23x32xf32>
    %303 = arith.truncf %302 : vector<23x32xf32> to vector<23x32xbf16>
    %c0_192 = arith.constant 0 : index
    %c22 = arith.constant 22 : index
    %c0_193 = arith.constant 0 : index
    %c0_194 = arith.constant 0 : index
    %304 = vector.load %arg4[%c0_192, %c22, %c0_193, %c0_194] : memref<1x23x23x32xbf16, #tpu.memory_space<vmem>>, vector<1x1x23x32xbf16>
    %305 = vector.shape_cast %304 : vector<1x1x23x32xbf16> to vector<23x32xbf16>
    %306 = vector.shape_cast %303 : vector<23x32xbf16> to vector<1x1x23x32xbf16>
    tpu.vector_store %arg4[%c0_192, %c22, %c0_193, %c0_194], %306 {strides = array<i32>} : memref<1x23x23x32xbf16, #tpu.memory_space<vmem>>, vector<1x1x23x32xbf16>,
    return
  }
  func.func @transform_0(%arg0: i32) -> (i32, i32, i32) {
    %c0_i32 = arith.constant 0 : i32
    %c0_i32_0 = arith.constant 0 : i32
    %c0_i32_1 = arith.constant 0 : i32
    return %arg0, %c0_i32, %c0_i32_0 : i32, i32, i32
  }
  func.func @transform_1(%arg0: i32) -> (i32, i32) {
    %c0_i32 = arith.constant 0 : i32
    %c0_i32_0 = arith.constant 0 : i32
    %c0_i32_1 = arith.constant 0 : i32
    return %c0_i32, %c0_i32_0 : i32, i32
  }
  func.func @transform_2(%arg0: i32) -> (i32, i32) {
    %c0_i32 = arith.constant 0 : i32
    %c0_i32_0 = arith.constant 0 : i32
    %c0_i32_1 = arith.constant 0 : i32
    return %c0_i32, %c0_i32_0 : i32, i32
  }
  func.func @transform_3(%arg0: i32) -> (i32, i32, i32, i32) {
    %c0_i32 = arith.constant 0 : i32
    %c0_i32_0 = arith.constant 0 : i32
    %c0_i32_1 = arith.constant 0 : i32
    %c0_i32_2 = arith.constant 0 : i32
    return %arg0, %c0_i32, %c0_i32_0, %c0_i32_1 : i32, i32, i32, i32
  }
}

module attributes {stable_mosaic.version = 11 : i64} {
  func.func @_conv_bn_pool_relu_kernel(%arg0: i32, %arg1: memref<1x441x288xbf16, #tpu.memory_space<vmem>>, %arg2: memref<288x64xbf16, #tpu.memory_space<vmem>>, %arg3: memref<1x64xf32, #tpu.memory_space<vmem>>, %arg4: memref<1x10x10x64xbf16, #tpu.memory_space<vmem>>, %arg5: memref<449x64xf32, #tpu.memory_space<vmem>>) attributes {dimension_semantics = [#tpu.dimension_semantics<parallel>], iteration_bounds = array<i64: 2>, scalar_prefetch = 0 : i64, scratch_operands = 1 : i64, tpu.core_type = #tpu.core_type<tc>, window_params = [{transform_indices = @transform_0, window_bounds = array<i64: 1, 441, 288>}, {pipeline_mode = #tpu.pipeline_mode<synchronous>, transform_indices = @transform_1, window_bounds = array<i64: 288, 64>}, {pipeline_mode = #tpu.pipeline_mode<synchronous>, transform_indices = @transform_2, window_bounds = array<i64: 1, 64>}, {transform_indices = @transform_3, window_bounds = array<i64: 1, 10, 10, 64>}]} {
    %c0 = arith.constant 0 : index
    %c0_0 = arith.constant 0 : index
    %c0_1 = arith.constant 0 : index
    %0 = vector.load %arg1[%c0, %c0_0, %c0_1] : memref<1x441x288xbf16, #tpu.memory_space<vmem>>, vector<1x441x288xbf16>
    %1 = vector.shape_cast %0 : vector<1x441x288xbf16> to vector<441x288xbf16>
    %c0_2 = arith.constant 0 : index
    %c0_3 = arith.constant 0 : index
    %2 = vector.load %arg2[%c0_2, %c0_3] : memref<288x64xbf16, #tpu.memory_space<vmem>>, vector<288x64xbf16>
    %cst = arith.constant dense<0.000000e+00> : vector<441x64xf32>
    %3 = tpu.matmul %1, %2, %cst {dimension_numbers = #tpu.dot_dimension_numbers<[1], [0], [0], [1], [0, 0, 1, 1], [], []>} : vector<441x288xbf16>, vector<288x64xbf16>, vector<441x64xf32> -> vector<441x64xf32>
    %c0_4 = arith.constant 0 : index
    %c0_5 = arith.constant 0 : index
    %4 = vector.load %arg3[%c0_4, %c0_5] : memref<1x64xf32, #tpu.memory_space<vmem>>, vector<1x64xf32>
    %5 = vector.broadcast %4 : vector<1x64xf32> to vector<441x64xf32>
    %6 = arith.addf %3, %5 : vector<441x64xf32>
    %c0_6 = arith.constant 0 : index
    %c0_7 = arith.constant 0 : index
    %7 = vector.load %arg5[%c0_6, %c0_7] : memref<449x64xf32, #tpu.memory_space<vmem>>, vector<441x64xf32>
    tpu.vector_store %arg5[%c0_6, %c0_7], %6 {strides = array<i32>} : memref<449x64xf32, #tpu.memory_space<vmem>>, vector<441x64xf32>,
    %c0_8 = arith.constant 0 : index
    %c0_9 = arith.constant 0 : index
    %8 = tpu.strided_load %arg5[%c0_8, %c0_9] {strides = array<i32: 2, 1>} : memref<449x64xf32, #tpu.memory_space<vmem>>, vector<10x64xf32>
    %c1 = arith.constant 1 : index
    %c0_10 = arith.constant 0 : index
    %9 = tpu.strided_load %arg5[%c1, %c0_10] {strides = array<i32: 2, 1>} : memref<449x64xf32, #tpu.memory_space<vmem>>, vector<10x64xf32>
    %10 = arith.maximumf %8, %9 : vector<10x64xf32>
    %c21 = arith.constant 21 : index
    %c0_11 = arith.constant 0 : index
    %11 = tpu.strided_load %arg5[%c21, %c0_11] {strides = array<i32: 2, 1>} : memref<449x64xf32, #tpu.memory_space<vmem>>, vector<10x64xf32>
    %c22 = arith.constant 22 : index
    %c0_12 = arith.constant 0 : index
    %12 = tpu.strided_load %arg5[%c22, %c0_12] {strides = array<i32: 2, 1>} : memref<449x64xf32, #tpu.memory_space<vmem>>, vector<10x64xf32>
    %13 = arith.maximumf %11, %12 : vector<10x64xf32>
    %14 = arith.maximumf %10, %13 : vector<10x64xf32>
    %cst_13 = arith.constant 0.000000e+00 : f32
    %15 = vector.broadcast %cst_13 : f32 to vector<10x64xf32>
    %16 = arith.maximumf %14, %15 : vector<10x64xf32>
    %17 = arith.truncf %16 : vector<10x64xf32> to vector<10x64xbf16>
    %c0_14 = arith.constant 0 : index
    %c0_15 = arith.constant 0 : index
    %c0_16 = arith.constant 0 : index
    %c0_17 = arith.constant 0 : index
    %18 = vector.load %arg4[%c0_14, %c0_15, %c0_16, %c0_17] : memref<1x10x10x64xbf16, #tpu.memory_space<vmem>>, vector<1x1x10x64xbf16>
    %19 = vector.shape_cast %18 : vector<1x1x10x64xbf16> to vector<10x64xbf16>
    %20 = vector.shape_cast %17 : vector<10x64xbf16> to vector<1x1x10x64xbf16>
    tpu.vector_store %arg4[%c0_14, %c0_15, %c0_16, %c0_17], %20 {strides = array<i32>} : memref<1x10x10x64xbf16, #tpu.memory_space<vmem>>, vector<1x1x10x64xbf16>,
    %c42 = arith.constant 42 : index
    %c0_18 = arith.constant 0 : index
    %21 = tpu.strided_load %arg5[%c42, %c0_18] {strides = array<i32: 2, 1>} : memref<449x64xf32, #tpu.memory_space<vmem>>, vector<10x64xf32>
    %c43 = arith.constant 43 : index
    %c0_19 = arith.constant 0 : index
    %22 = tpu.strided_load %arg5[%c43, %c0_19] {strides = array<i32: 2, 1>} : memref<449x64xf32, #tpu.memory_space<vmem>>, vector<10x64xf32>
    %23 = arith.maximumf %21, %22 : vector<10x64xf32>
    %c63 = arith.constant 63 : index
    %c0_20 = arith.constant 0 : index
    %24 = tpu.strided_load %arg5[%c63, %c0_20] {strides = array<i32: 2, 1>} : memref<449x64xf32, #tpu.memory_space<vmem>>, vector<10x64xf32>
    %c64 = arith.constant 64 : index
    %c0_21 = arith.constant 0 : index
    %25 = tpu.strided_load %arg5[%c64, %c0_21] {strides = array<i32: 2, 1>} : memref<449x64xf32, #tpu.memory_space<vmem>>, vector<10x64xf32>
    %26 = arith.maximumf %24, %25 : vector<10x64xf32>
    %27 = arith.maximumf %23, %26 : vector<10x64xf32>
    %cst_22 = arith.constant 0.000000e+00 : f32
    %28 = vector.broadcast %cst_22 : f32 to vector<10x64xf32>
    %29 = arith.maximumf %27, %28 : vector<10x64xf32>
    %30 = arith.truncf %29 : vector<10x64xf32> to vector<10x64xbf16>
    %c0_23 = arith.constant 0 : index
    %c1_24 = arith.constant 1 : index
    %c0_25 = arith.constant 0 : index
    %c0_26 = arith.constant 0 : index
    %31 = vector.load %arg4[%c0_23, %c1_24, %c0_25, %c0_26] : memref<1x10x10x64xbf16, #tpu.memory_space<vmem>>, vector<1x1x10x64xbf16>
    %32 = vector.shape_cast %31 : vector<1x1x10x64xbf16> to vector<10x64xbf16>
    %33 = vector.shape_cast %30 : vector<10x64xbf16> to vector<1x1x10x64xbf16>
    tpu.vector_store %arg4[%c0_23, %c1_24, %c0_25, %c0_26], %33 {strides = array<i32>} : memref<1x10x10x64xbf16, #tpu.memory_space<vmem>>, vector<1x1x10x64xbf16>,
    %c84 = arith.constant 84 : index
    %c0_27 = arith.constant 0 : index
    %34 = tpu.strided_load %arg5[%c84, %c0_27] {strides = array<i32: 2, 1>} : memref<449x64xf32, #tpu.memory_space<vmem>>, vector<10x64xf32>
    %c85 = arith.constant 85 : index
    %c0_28 = arith.constant 0 : index
    %35 = tpu.strided_load %arg5[%c85, %c0_28] {strides = array<i32: 2, 1>} : memref<449x64xf32, #tpu.memory_space<vmem>>, vector<10x64xf32>
    %36 = arith.maximumf %34, %35 : vector<10x64xf32>
    %c105 = arith.constant 105 : index
    %c0_29 = arith.constant 0 : index
    %37 = tpu.strided_load %arg5[%c105, %c0_29] {strides = array<i32: 2, 1>} : memref<449x64xf32, #tpu.memory_space<vmem>>, vector<10x64xf32>
    %c106 = arith.constant 106 : index
    %c0_30 = arith.constant 0 : index
    %38 = tpu.strided_load %arg5[%c106, %c0_30] {strides = array<i32: 2, 1>} : memref<449x64xf32, #tpu.memory_space<vmem>>, vector<10x64xf32>
    %39 = arith.maximumf %37, %38 : vector<10x64xf32>
    %40 = arith.maximumf %36, %39 : vector<10x64xf32>
    %cst_31 = arith.constant 0.000000e+00 : f32
    %41 = vector.broadcast %cst_31 : f32 to vector<10x64xf32>
    %42 = arith.maximumf %40, %41 : vector<10x64xf32>
    %43 = arith.truncf %42 : vector<10x64xf32> to vector<10x64xbf16>
    %c0_32 = arith.constant 0 : index
    %c2 = arith.constant 2 : index
    %c0_33 = arith.constant 0 : index
    %c0_34 = arith.constant 0 : index
    %44 = vector.load %arg4[%c0_32, %c2, %c0_33, %c0_34] : memref<1x10x10x64xbf16, #tpu.memory_space<vmem>>, vector<1x1x10x64xbf16>
    %45 = vector.shape_cast %44 : vector<1x1x10x64xbf16> to vector<10x64xbf16>
    %46 = vector.shape_cast %43 : vector<10x64xbf16> to vector<1x1x10x64xbf16>
    tpu.vector_store %arg4[%c0_32, %c2, %c0_33, %c0_34], %46 {strides = array<i32>} : memref<1x10x10x64xbf16, #tpu.memory_space<vmem>>, vector<1x1x10x64xbf16>,
    %c126 = arith.constant 126 : index
    %c0_35 = arith.constant 0 : index
    %47 = tpu.strided_load %arg5[%c126, %c0_35] {strides = array<i32: 2, 1>} : memref<449x64xf32, #tpu.memory_space<vmem>>, vector<10x64xf32>
    %c127 = arith.constant 127 : index
    %c0_36 = arith.constant 0 : index
    %48 = tpu.strided_load %arg5[%c127, %c0_36] {strides = array<i32: 2, 1>} : memref<449x64xf32, #tpu.memory_space<vmem>>, vector<10x64xf32>
    %49 = arith.maximumf %47, %48 : vector<10x64xf32>
    %c147 = arith.constant 147 : index
    %c0_37 = arith.constant 0 : index
    %50 = tpu.strided_load %arg5[%c147, %c0_37] {strides = array<i32: 2, 1>} : memref<449x64xf32, #tpu.memory_space<vmem>>, vector<10x64xf32>
    %c148 = arith.constant 148 : index
    %c0_38 = arith.constant 0 : index
    %51 = tpu.strided_load %arg5[%c148, %c0_38] {strides = array<i32: 2, 1>} : memref<449x64xf32, #tpu.memory_space<vmem>>, vector<10x64xf32>
    %52 = arith.maximumf %50, %51 : vector<10x64xf32>
    %53 = arith.maximumf %49, %52 : vector<10x64xf32>
    %cst_39 = arith.constant 0.000000e+00 : f32
    %54 = vector.broadcast %cst_39 : f32 to vector<10x64xf32>
    %55 = arith.maximumf %53, %54 : vector<10x64xf32>
    %56 = arith.truncf %55 : vector<10x64xf32> to vector<10x64xbf16>
    %c0_40 = arith.constant 0 : index
    %c3 = arith.constant 3 : index
    %c0_41 = arith.constant 0 : index
    %c0_42 = arith.constant 0 : index
    %57 = vector.load %arg4[%c0_40, %c3, %c0_41, %c0_42] : memref<1x10x10x64xbf16, #tpu.memory_space<vmem>>, vector<1x1x10x64xbf16>
    %58 = vector.shape_cast %57 : vector<1x1x10x64xbf16> to vector<10x64xbf16>
    %59 = vector.shape_cast %56 : vector<10x64xbf16> to vector<1x1x10x64xbf16>
    tpu.vector_store %arg4[%c0_40, %c3, %c0_41, %c0_42], %59 {strides = array<i32>} : memref<1x10x10x64xbf16, #tpu.memory_space<vmem>>, vector<1x1x10x64xbf16>,
    %c168 = arith.constant 168 : index
    %c0_43 = arith.constant 0 : index
    %60 = tpu.strided_load %arg5[%c168, %c0_43] {strides = array<i32: 2, 1>} : memref<449x64xf32, #tpu.memory_space<vmem>>, vector<10x64xf32>
    %c169 = arith.constant 169 : index
    %c0_44 = arith.constant 0 : index
    %61 = tpu.strided_load %arg5[%c169, %c0_44] {strides = array<i32: 2, 1>} : memref<449x64xf32, #tpu.memory_space<vmem>>, vector<10x64xf32>
    %62 = arith.maximumf %60, %61 : vector<10x64xf32>
    %c189 = arith.constant 189 : index
    %c0_45 = arith.constant 0 : index
    %63 = tpu.strided_load %arg5[%c189, %c0_45] {strides = array<i32: 2, 1>} : memref<449x64xf32, #tpu.memory_space<vmem>>, vector<10x64xf32>
    %c190 = arith.constant 190 : index
    %c0_46 = arith.constant 0 : index
    %64 = tpu.strided_load %arg5[%c190, %c0_46] {strides = array<i32: 2, 1>} : memref<449x64xf32, #tpu.memory_space<vmem>>, vector<10x64xf32>
    %65 = arith.maximumf %63, %64 : vector<10x64xf32>
    %66 = arith.maximumf %62, %65 : vector<10x64xf32>
    %cst_47 = arith.constant 0.000000e+00 : f32
    %67 = vector.broadcast %cst_47 : f32 to vector<10x64xf32>
    %68 = arith.maximumf %66, %67 : vector<10x64xf32>
    %69 = arith.truncf %68 : vector<10x64xf32> to vector<10x64xbf16>
    %c0_48 = arith.constant 0 : index
    %c4 = arith.constant 4 : index
    %c0_49 = arith.constant 0 : index
    %c0_50 = arith.constant 0 : index
    %70 = vector.load %arg4[%c0_48, %c4, %c0_49, %c0_50] : memref<1x10x10x64xbf16, #tpu.memory_space<vmem>>, vector<1x1x10x64xbf16>
    %71 = vector.shape_cast %70 : vector<1x1x10x64xbf16> to vector<10x64xbf16>
    %72 = vector.shape_cast %69 : vector<10x64xbf16> to vector<1x1x10x64xbf16>
    tpu.vector_store %arg4[%c0_48, %c4, %c0_49, %c0_50], %72 {strides = array<i32>} : memref<1x10x10x64xbf16, #tpu.memory_space<vmem>>, vector<1x1x10x64xbf16>,
    %c210 = arith.constant 210 : index
    %c0_51 = arith.constant 0 : index
    %73 = tpu.strided_load %arg5[%c210, %c0_51] {strides = array<i32: 2, 1>} : memref<449x64xf32, #tpu.memory_space<vmem>>, vector<10x64xf32>
    %c211 = arith.constant 211 : index
    %c0_52 = arith.constant 0 : index
    %74 = tpu.strided_load %arg5[%c211, %c0_52] {strides = array<i32: 2, 1>} : memref<449x64xf32, #tpu.memory_space<vmem>>, vector<10x64xf32>
    %75 = arith.maximumf %73, %74 : vector<10x64xf32>
    %c231 = arith.constant 231 : index
    %c0_53 = arith.constant 0 : index
    %76 = tpu.strided_load %arg5[%c231, %c0_53] {strides = array<i32: 2, 1>} : memref<449x64xf32, #tpu.memory_space<vmem>>, vector<10x64xf32>
    %c232 = arith.constant 232 : index
    %c0_54 = arith.constant 0 : index
    %77 = tpu.strided_load %arg5[%c232, %c0_54] {strides = array<i32: 2, 1>} : memref<449x64xf32, #tpu.memory_space<vmem>>, vector<10x64xf32>
    %78 = arith.maximumf %76, %77 : vector<10x64xf32>
    %79 = arith.maximumf %75, %78 : vector<10x64xf32>
    %cst_55 = arith.constant 0.000000e+00 : f32
    %80 = vector.broadcast %cst_55 : f32 to vector<10x64xf32>
    %81 = arith.maximumf %79, %80 : vector<10x64xf32>
    %82 = arith.truncf %81 : vector<10x64xf32> to vector<10x64xbf16>
    %c0_56 = arith.constant 0 : index
    %c5 = arith.constant 5 : index
    %c0_57 = arith.constant 0 : index
    %c0_58 = arith.constant 0 : index
    %83 = vector.load %arg4[%c0_56, %c5, %c0_57, %c0_58] : memref<1x10x10x64xbf16, #tpu.memory_space<vmem>>, vector<1x1x10x64xbf16>
    %84 = vector.shape_cast %83 : vector<1x1x10x64xbf16> to vector<10x64xbf16>
    %85 = vector.shape_cast %82 : vector<10x64xbf16> to vector<1x1x10x64xbf16>
    tpu.vector_store %arg4[%c0_56, %c5, %c0_57, %c0_58], %85 {strides = array<i32>} : memref<1x10x10x64xbf16, #tpu.memory_space<vmem>>, vector<1x1x10x64xbf16>,
    %c252 = arith.constant 252 : index
    %c0_59 = arith.constant 0 : index
    %86 = tpu.strided_load %arg5[%c252, %c0_59] {strides = array<i32: 2, 1>} : memref<449x64xf32, #tpu.memory_space<vmem>>, vector<10x64xf32>
    %c253 = arith.constant 253 : index
    %c0_60 = arith.constant 0 : index
    %87 = tpu.strided_load %arg5[%c253, %c0_60] {strides = array<i32: 2, 1>} : memref<449x64xf32, #tpu.memory_space<vmem>>, vector<10x64xf32>
    %88 = arith.maximumf %86, %87 : vector<10x64xf32>
    %c273 = arith.constant 273 : index
    %c0_61 = arith.constant 0 : index
    %89 = tpu.strided_load %arg5[%c273, %c0_61] {strides = array<i32: 2, 1>} : memref<449x64xf32, #tpu.memory_space<vmem>>, vector<10x64xf32>
    %c274 = arith.constant 274 : index
    %c0_62 = arith.constant 0 : index
    %90 = tpu.strided_load %arg5[%c274, %c0_62] {strides = array<i32: 2, 1>} : memref<449x64xf32, #tpu.memory_space<vmem>>, vector<10x64xf32>
    %91 = arith.maximumf %89, %90 : vector<10x64xf32>
    %92 = arith.maximumf %88, %91 : vector<10x64xf32>
    %cst_63 = arith.constant 0.000000e+00 : f32
    %93 = vector.broadcast %cst_63 : f32 to vector<10x64xf32>
    %94 = arith.maximumf %92, %93 : vector<10x64xf32>
    %95 = arith.truncf %94 : vector<10x64xf32> to vector<10x64xbf16>
    %c0_64 = arith.constant 0 : index
    %c6 = arith.constant 6 : index
    %c0_65 = arith.constant 0 : index
    %c0_66 = arith.constant 0 : index
    %96 = vector.load %arg4[%c0_64, %c6, %c0_65, %c0_66] : memref<1x10x10x64xbf16, #tpu.memory_space<vmem>>, vector<1x1x10x64xbf16>
    %97 = vector.shape_cast %96 : vector<1x1x10x64xbf16> to vector<10x64xbf16>
    %98 = vector.shape_cast %95 : vector<10x64xbf16> to vector<1x1x10x64xbf16>
    tpu.vector_store %arg4[%c0_64, %c6, %c0_65, %c0_66], %98 {strides = array<i32>} : memref<1x10x10x64xbf16, #tpu.memory_space<vmem>>, vector<1x1x10x64xbf16>,
    %c294 = arith.constant 294 : index
    %c0_67 = arith.constant 0 : index
    %99 = tpu.strided_load %arg5[%c294, %c0_67] {strides = array<i32: 2, 1>} : memref<449x64xf32, #tpu.memory_space<vmem>>, vector<10x64xf32>
    %c295 = arith.constant 295 : index
    %c0_68 = arith.constant 0 : index
    %100 = tpu.strided_load %arg5[%c295, %c0_68] {strides = array<i32: 2, 1>} : memref<449x64xf32, #tpu.memory_space<vmem>>, vector<10x64xf32>
    %101 = arith.maximumf %99, %100 : vector<10x64xf32>
    %c315 = arith.constant 315 : index
    %c0_69 = arith.constant 0 : index
    %102 = tpu.strided_load %arg5[%c315, %c0_69] {strides = array<i32: 2, 1>} : memref<449x64xf32, #tpu.memory_space<vmem>>, vector<10x64xf32>
    %c316 = arith.constant 316 : index
    %c0_70 = arith.constant 0 : index
    %103 = tpu.strided_load %arg5[%c316, %c0_70] {strides = array<i32: 2, 1>} : memref<449x64xf32, #tpu.memory_space<vmem>>, vector<10x64xf32>
    %104 = arith.maximumf %102, %103 : vector<10x64xf32>
    %105 = arith.maximumf %101, %104 : vector<10x64xf32>
    %cst_71 = arith.constant 0.000000e+00 : f32
    %106 = vector.broadcast %cst_71 : f32 to vector<10x64xf32>
    %107 = arith.maximumf %105, %106 : vector<10x64xf32>
    %108 = arith.truncf %107 : vector<10x64xf32> to vector<10x64xbf16>
    %c0_72 = arith.constant 0 : index
    %c7 = arith.constant 7 : index
    %c0_73 = arith.constant 0 : index
    %c0_74 = arith.constant 0 : index
    %109 = vector.load %arg4[%c0_72, %c7, %c0_73, %c0_74] : memref<1x10x10x64xbf16, #tpu.memory_space<vmem>>, vector<1x1x10x64xbf16>
    %110 = vector.shape_cast %109 : vector<1x1x10x64xbf16> to vector<10x64xbf16>
    %111 = vector.shape_cast %108 : vector<10x64xbf16> to vector<1x1x10x64xbf16>
    tpu.vector_store %arg4[%c0_72, %c7, %c0_73, %c0_74], %111 {strides = array<i32>} : memref<1x10x10x64xbf16, #tpu.memory_space<vmem>>, vector<1x1x10x64xbf16>,
    %c336 = arith.constant 336 : index
    %c0_75 = arith.constant 0 : index
    %112 = tpu.strided_load %arg5[%c336, %c0_75] {strides = array<i32: 2, 1>} : memref<449x64xf32, #tpu.memory_space<vmem>>, vector<10x64xf32>
    %c337 = arith.constant 337 : index
    %c0_76 = arith.constant 0 : index
    %113 = tpu.strided_load %arg5[%c337, %c0_76] {strides = array<i32: 2, 1>} : memref<449x64xf32, #tpu.memory_space<vmem>>, vector<10x64xf32>
    %114 = arith.maximumf %112, %113 : vector<10x64xf32>
    %c357 = arith.constant 357 : index
    %c0_77 = arith.constant 0 : index
    %115 = tpu.strided_load %arg5[%c357, %c0_77] {strides = array<i32: 2, 1>} : memref<449x64xf32, #tpu.memory_space<vmem>>, vector<10x64xf32>
    %c358 = arith.constant 358 : index
    %c0_78 = arith.constant 0 : index
    %116 = tpu.strided_load %arg5[%c358, %c0_78] {strides = array<i32: 2, 1>} : memref<449x64xf32, #tpu.memory_space<vmem>>, vector<10x64xf32>
    %117 = arith.maximumf %115, %116 : vector<10x64xf32>
    %118 = arith.maximumf %114, %117 : vector<10x64xf32>
    %cst_79 = arith.constant 0.000000e+00 : f32
    %119 = vector.broadcast %cst_79 : f32 to vector<10x64xf32>
    %120 = arith.maximumf %118, %119 : vector<10x64xf32>
    %121 = arith.truncf %120 : vector<10x64xf32> to vector<10x64xbf16>
    %c0_80 = arith.constant 0 : index
    %c8 = arith.constant 8 : index
    %c0_81 = arith.constant 0 : index
    %c0_82 = arith.constant 0 : index
    %122 = vector.load %arg4[%c0_80, %c8, %c0_81, %c0_82] : memref<1x10x10x64xbf16, #tpu.memory_space<vmem>>, vector<1x1x10x64xbf16>
    %123 = vector.shape_cast %122 : vector<1x1x10x64xbf16> to vector<10x64xbf16>
    %124 = vector.shape_cast %121 : vector<10x64xbf16> to vector<1x1x10x64xbf16>
    tpu.vector_store %arg4[%c0_80, %c8, %c0_81, %c0_82], %124 {strides = array<i32>} : memref<1x10x10x64xbf16, #tpu.memory_space<vmem>>, vector<1x1x10x64xbf16>,
    %c378 = arith.constant 378 : index
    %c0_83 = arith.constant 0 : index
    %125 = tpu.strided_load %arg5[%c378, %c0_83] {strides = array<i32: 2, 1>} : memref<449x64xf32, #tpu.memory_space<vmem>>, vector<10x64xf32>
    %c379 = arith.constant 379 : index
    %c0_84 = arith.constant 0 : index
    %126 = tpu.strided_load %arg5[%c379, %c0_84] {strides = array<i32: 2, 1>} : memref<449x64xf32, #tpu.memory_space<vmem>>, vector<10x64xf32>
    %127 = arith.maximumf %125, %126 : vector<10x64xf32>
    %c399 = arith.constant 399 : index
    %c0_85 = arith.constant 0 : index
    %128 = tpu.strided_load %arg5[%c399, %c0_85] {strides = array<i32: 2, 1>} : memref<449x64xf32, #tpu.memory_space<vmem>>, vector<10x64xf32>
    %c400 = arith.constant 400 : index
    %c0_86 = arith.constant 0 : index
    %129 = tpu.strided_load %arg5[%c400, %c0_86] {strides = array<i32: 2, 1>} : memref<449x64xf32, #tpu.memory_space<vmem>>, vector<10x64xf32>
    %130 = arith.maximumf %128, %129 : vector<10x64xf32>
    %131 = arith.maximumf %127, %130 : vector<10x64xf32>
    %cst_87 = arith.constant 0.000000e+00 : f32
    %132 = vector.broadcast %cst_87 : f32 to vector<10x64xf32>
    %133 = arith.maximumf %131, %132 : vector<10x64xf32>
    %134 = arith.truncf %133 : vector<10x64xf32> to vector<10x64xbf16>
    %c0_88 = arith.constant 0 : index
    %c9 = arith.constant 9 : index
    %c0_89 = arith.constant 0 : index
    %c0_90 = arith.constant 0 : index
    %135 = vector.load %arg4[%c0_88, %c9, %c0_89, %c0_90] : memref<1x10x10x64xbf16, #tpu.memory_space<vmem>>, vector<1x1x10x64xbf16>
    %136 = vector.shape_cast %135 : vector<1x1x10x64xbf16> to vector<10x64xbf16>
    %137 = vector.shape_cast %134 : vector<10x64xbf16> to vector<1x1x10x64xbf16>
    tpu.vector_store %arg4[%c0_88, %c9, %c0_89, %c0_90], %137 {strides = array<i32>} : memref<1x10x10x64xbf16, #tpu.memory_space<vmem>>, vector<1x1x10x64xbf16>,
    return
  }
  func.func @transform_0(%arg0: i32) -> (i32, i32, i32) {
    %c0_i32 = arith.constant 0 : i32
    %c0_i32_0 = arith.constant 0 : i32
    %c0_i32_1 = arith.constant 0 : i32
    return %arg0, %c0_i32, %c0_i32_0 : i32, i32, i32
  }
  func.func @transform_1(%arg0: i32) -> (i32, i32) {
    %c0_i32 = arith.constant 0 : i32
    %c0_i32_0 = arith.constant 0 : i32
    %c0_i32_1 = arith.constant 0 : i32
    return %c0_i32, %c0_i32_0 : i32, i32
  }
  func.func @transform_2(%arg0: i32) -> (i32, i32) {
    %c0_i32 = arith.constant 0 : i32
    %c0_i32_0 = arith.constant 0 : i32
    %c0_i32_1 = arith.constant 0 : i32
    return %c0_i32, %c0_i32_0 : i32, i32
  }
  func.func @transform_3(%arg0: i32) -> (i32, i32, i32, i32) {
    %c0_i32 = arith.constant 0 : i32
    %c0_i32_0 = arith.constant 0 : i32
    %c0_i32_1 = arith.constant 0 : i32
    %c0_i32_2 = arith.constant 0 : i32
    return %arg0, %c0_i32, %c0_i32_0, %c0_i32_1 : i32, i32, i32, i32
  }
}

module attributes {stable_mosaic.version = 11 : i64} {
  func.func @_conv_bn_pool_relu_kernel(%arg0: i32, %arg1: memref<1x64x576xbf16, #tpu.memory_space<vmem>>, %arg2: memref<576x128xbf16, #tpu.memory_space<vmem>>, %arg3: memref<1x128xf32, #tpu.memory_space<vmem>>, %arg4: memref<1x4x4x128xbf16, #tpu.memory_space<vmem>>, %arg5: memref<72x128xf32, #tpu.memory_space<vmem>>) attributes {dimension_semantics = [#tpu.dimension_semantics<parallel>], iteration_bounds = array<i64: 2>, scalar_prefetch = 0 : i64, scratch_operands = 1 : i64, tpu.core_type = #tpu.core_type<tc>, window_params = [{transform_indices = @transform_0, window_bounds = array<i64: 1, 64, 576>}, {pipeline_mode = #tpu.pipeline_mode<synchronous>, transform_indices = @transform_1, window_bounds = array<i64: 576, 128>}, {pipeline_mode = #tpu.pipeline_mode<synchronous>, transform_indices = @transform_2, window_bounds = array<i64: 1, 128>}, {transform_indices = @transform_3, window_bounds = array<i64: 1, 4, 4, 128>}]} {
    %c0 = arith.constant 0 : index
    %c0_0 = arith.constant 0 : index
    %c0_1 = arith.constant 0 : index
    %0 = vector.load %arg1[%c0, %c0_0, %c0_1] : memref<1x64x576xbf16, #tpu.memory_space<vmem>>, vector<1x64x576xbf16>
    %1 = vector.shape_cast %0 : vector<1x64x576xbf16> to vector<64x576xbf16>
    %c0_2 = arith.constant 0 : index
    %c0_3 = arith.constant 0 : index
    %2 = vector.load %arg2[%c0_2, %c0_3] : memref<576x128xbf16, #tpu.memory_space<vmem>>, vector<576x128xbf16>
    %cst = arith.constant dense<0.000000e+00> : vector<64x128xf32>
    %3 = tpu.matmul %1, %2, %cst {dimension_numbers = #tpu.dot_dimension_numbers<[1], [0], [0], [1], [0, 0, 1, 1], [], []>} : vector<64x576xbf16>, vector<576x128xbf16>, vector<64x128xf32> -> vector<64x128xf32>
    %c0_4 = arith.constant 0 : index
    %c0_5 = arith.constant 0 : index
    %4 = vector.load %arg3[%c0_4, %c0_5] : memref<1x128xf32, #tpu.memory_space<vmem>>, vector<1x128xf32>
    %5 = vector.broadcast %4 : vector<1x128xf32> to vector<64x128xf32>
    %6 = arith.addf %3, %5 : vector<64x128xf32>
    %c0_6 = arith.constant 0 : index
    %c0_7 = arith.constant 0 : index
    %7 = vector.load %arg5[%c0_6, %c0_7] : memref<72x128xf32, #tpu.memory_space<vmem>>, vector<64x128xf32>
    tpu.vector_store %arg5[%c0_6, %c0_7], %6 {strides = array<i32>} : memref<72x128xf32, #tpu.memory_space<vmem>>, vector<64x128xf32>,
    %c0_8 = arith.constant 0 : index
    %c0_9 = arith.constant 0 : index
    %8 = tpu.strided_load %arg5[%c0_8, %c0_9] {strides = array<i32: 2, 1>} : memref<72x128xf32, #tpu.memory_space<vmem>>, vector<4x128xf32>
    %c1 = arith.constant 1 : index
    %c0_10 = arith.constant 0 : index
    %9 = tpu.strided_load %arg5[%c1, %c0_10] {strides = array<i32: 2, 1>} : memref<72x128xf32, #tpu.memory_space<vmem>>, vector<4x128xf32>
    %10 = arith.maximumf %8, %9 : vector<4x128xf32>
    %c8 = arith.constant 8 : index
    %c0_11 = arith.constant 0 : index
    %11 = tpu.strided_load %arg5[%c8, %c0_11] {strides = array<i32: 2, 1>} : memref<72x128xf32, #tpu.memory_space<vmem>>, vector<4x128xf32>
    %c9 = arith.constant 9 : index
    %c0_12 = arith.constant 0 : index
    %12 = tpu.strided_load %arg5[%c9, %c0_12] {strides = array<i32: 2, 1>} : memref<72x128xf32, #tpu.memory_space<vmem>>, vector<4x128xf32>
    %13 = arith.maximumf %11, %12 : vector<4x128xf32>
    %14 = arith.maximumf %10, %13 : vector<4x128xf32>
    %cst_13 = arith.constant 0.000000e+00 : f32
    %15 = vector.broadcast %cst_13 : f32 to vector<4x128xf32>
    %16 = arith.maximumf %14, %15 : vector<4x128xf32>
    %17 = arith.truncf %16 : vector<4x128xf32> to vector<4x128xbf16>
    %c0_14 = arith.constant 0 : index
    %c0_15 = arith.constant 0 : index
    %c0_16 = arith.constant 0 : index
    %c0_17 = arith.constant 0 : index
    %18 = vector.load %arg4[%c0_14, %c0_15, %c0_16, %c0_17] : memref<1x4x4x128xbf16, #tpu.memory_space<vmem>>, vector<1x1x4x128xbf16>
    %19 = vector.shape_cast %18 : vector<1x1x4x128xbf16> to vector<4x128xbf16>
    %20 = vector.shape_cast %17 : vector<4x128xbf16> to vector<1x1x4x128xbf16>
    tpu.vector_store %arg4[%c0_14, %c0_15, %c0_16, %c0_17], %20 {strides = array<i32>} : memref<1x4x4x128xbf16, #tpu.memory_space<vmem>>, vector<1x1x4x128xbf16>,
    %c16 = arith.constant 16 : index
    %c0_18 = arith.constant 0 : index
    %21 = tpu.strided_load %arg5[%c16, %c0_18] {strides = array<i32: 2, 1>} : memref<72x128xf32, #tpu.memory_space<vmem>>, vector<4x128xf32>
    %c17 = arith.constant 17 : index
    %c0_19 = arith.constant 0 : index
    %22 = tpu.strided_load %arg5[%c17, %c0_19] {strides = array<i32: 2, 1>} : memref<72x128xf32, #tpu.memory_space<vmem>>, vector<4x128xf32>
    %23 = arith.maximumf %21, %22 : vector<4x128xf32>
    %c24 = arith.constant 24 : index
    %c0_20 = arith.constant 0 : index
    %24 = tpu.strided_load %arg5[%c24, %c0_20] {strides = array<i32: 2, 1>} : memref<72x128xf32, #tpu.memory_space<vmem>>, vector<4x128xf32>
    %c25 = arith.constant 25 : index
    %c0_21 = arith.constant 0 : index
    %25 = tpu.strided_load %arg5[%c25, %c0_21] {strides = array<i32: 2, 1>} : memref<72x128xf32, #tpu.memory_space<vmem>>, vector<4x128xf32>
    %26 = arith.maximumf %24, %25 : vector<4x128xf32>
    %27 = arith.maximumf %23, %26 : vector<4x128xf32>
    %cst_22 = arith.constant 0.000000e+00 : f32
    %28 = vector.broadcast %cst_22 : f32 to vector<4x128xf32>
    %29 = arith.maximumf %27, %28 : vector<4x128xf32>
    %30 = arith.truncf %29 : vector<4x128xf32> to vector<4x128xbf16>
    %c0_23 = arith.constant 0 : index
    %c1_24 = arith.constant 1 : index
    %c0_25 = arith.constant 0 : index
    %c0_26 = arith.constant 0 : index
    %31 = vector.load %arg4[%c0_23, %c1_24, %c0_25, %c0_26] : memref<1x4x4x128xbf16, #tpu.memory_space<vmem>>, vector<1x1x4x128xbf16>
    %32 = vector.shape_cast %31 : vector<1x1x4x128xbf16> to vector<4x128xbf16>
    %33 = vector.shape_cast %30 : vector<4x128xbf16> to vector<1x1x4x128xbf16>
    tpu.vector_store %arg4[%c0_23, %c1_24, %c0_25, %c0_26], %33 {strides = array<i32>} : memref<1x4x4x128xbf16, #tpu.memory_space<vmem>>, vector<1x1x4x128xbf16>,
    %c32 = arith.constant 32 : index
    %c0_27 = arith.constant 0 : index
    %34 = tpu.strided_load %arg5[%c32, %c0_27] {strides = array<i32: 2, 1>} : memref<72x128xf32, #tpu.memory_space<vmem>>, vector<4x128xf32>
    %c33 = arith.constant 33 : index
    %c0_28 = arith.constant 0 : index
    %35 = tpu.strided_load %arg5[%c33, %c0_28] {strides = array<i32: 2, 1>} : memref<72x128xf32, #tpu.memory_space<vmem>>, vector<4x128xf32>
    %36 = arith.maximumf %34, %35 : vector<4x128xf32>
    %c40 = arith.constant 40 : index
    %c0_29 = arith.constant 0 : index
    %37 = tpu.strided_load %arg5[%c40, %c0_29] {strides = array<i32: 2, 1>} : memref<72x128xf32, #tpu.memory_space<vmem>>, vector<4x128xf32>
    %c41 = arith.constant 41 : index
    %c0_30 = arith.constant 0 : index
    %38 = tpu.strided_load %arg5[%c41, %c0_30] {strides = array<i32: 2, 1>} : memref<72x128xf32, #tpu.memory_space<vmem>>, vector<4x128xf32>
    %39 = arith.maximumf %37, %38 : vector<4x128xf32>
    %40 = arith.maximumf %36, %39 : vector<4x128xf32>
    %cst_31 = arith.constant 0.000000e+00 : f32
    %41 = vector.broadcast %cst_31 : f32 to vector<4x128xf32>
    %42 = arith.maximumf %40, %41 : vector<4x128xf32>
    %43 = arith.truncf %42 : vector<4x128xf32> to vector<4x128xbf16>
    %c0_32 = arith.constant 0 : index
    %c2 = arith.constant 2 : index
    %c0_33 = arith.constant 0 : index
    %c0_34 = arith.constant 0 : index
    %44 = vector.load %arg4[%c0_32, %c2, %c0_33, %c0_34] : memref<1x4x4x128xbf16, #tpu.memory_space<vmem>>, vector<1x1x4x128xbf16>
    %45 = vector.shape_cast %44 : vector<1x1x4x128xbf16> to vector<4x128xbf16>
    %46 = vector.shape_cast %43 : vector<4x128xbf16> to vector<1x1x4x128xbf16>
    tpu.vector_store %arg4[%c0_32, %c2, %c0_33, %c0_34], %46 {strides = array<i32>} : memref<1x4x4x128xbf16, #tpu.memory_space<vmem>>, vector<1x1x4x128xbf16>,
    %c48 = arith.constant 48 : index
    %c0_35 = arith.constant 0 : index
    %47 = tpu.strided_load %arg5[%c48, %c0_35] {strides = array<i32: 2, 1>} : memref<72x128xf32, #tpu.memory_space<vmem>>, vector<4x128xf32>
    %c49 = arith.constant 49 : index
    %c0_36 = arith.constant 0 : index
    %48 = tpu.strided_load %arg5[%c49, %c0_36] {strides = array<i32: 2, 1>} : memref<72x128xf32, #tpu.memory_space<vmem>>, vector<4x128xf32>
    %49 = arith.maximumf %47, %48 : vector<4x128xf32>
    %c56 = arith.constant 56 : index
    %c0_37 = arith.constant 0 : index
    %50 = tpu.strided_load %arg5[%c56, %c0_37] {strides = array<i32: 2, 1>} : memref<72x128xf32, #tpu.memory_space<vmem>>, vector<4x128xf32>
    %c57 = arith.constant 57 : index
    %c0_38 = arith.constant 0 : index
    %51 = tpu.strided_load %arg5[%c57, %c0_38] {strides = array<i32: 2, 1>} : memref<72x128xf32, #tpu.memory_space<vmem>>, vector<4x128xf32>
    %52 = arith.maximumf %50, %51 : vector<4x128xf32>
    %53 = arith.maximumf %49, %52 : vector<4x128xf32>
    %cst_39 = arith.constant 0.000000e+00 : f32
    %54 = vector.broadcast %cst_39 : f32 to vector<4x128xf32>
    %55 = arith.maximumf %53, %54 : vector<4x128xf32>
    %56 = arith.truncf %55 : vector<4x128xf32> to vector<4x128xbf16>
    %c0_40 = arith.constant 0 : index
    %c3 = arith.constant 3 : index
    %c0_41 = arith.constant 0 : index
    %c0_42 = arith.constant 0 : index
    %57 = vector.load %arg4[%c0_40, %c3, %c0_41, %c0_42] : memref<1x4x4x128xbf16, #tpu.memory_space<vmem>>, vector<1x1x4x128xbf16>
    %58 = vector.shape_cast %57 : vector<1x1x4x128xbf16> to vector<4x128xbf16>
    %59 = vector.shape_cast %56 : vector<4x128xbf16> to vector<1x1x4x128xbf16>
    tpu.vector_store %arg4[%c0_40, %c3, %c0_41, %c0_42], %59 {strides = array<i32>} : memref<1x4x4x128xbf16, #tpu.memory_space<vmem>>, vector<1x1x4x128xbf16>,
    return
  }
  func.func @transform_0(%arg0: i32) -> (i32, i32, i32) {
    %c0_i32 = arith.constant 0 : i32
    %c0_i32_0 = arith.constant 0 : i32
    %c0_i32_1 = arith.constant 0 : i32
    return %arg0, %c0_i32, %c0_i32_0 : i32, i32, i32
  }
  func.func @transform_1(%arg0: i32) -> (i32, i32) {
    %c0_i32 = arith.constant 0 : i32
    %c0_i32_0 = arith.constant 0 : i32
    %c0_i32_1 = arith.constant 0 : i32
    return %c0_i32, %c0_i32_0 : i32, i32
  }
  func.func @transform_2(%arg0: i32) -> (i32, i32) {
    %c0_i32 = arith.constant 0 : i32
    %c0_i32_0 = arith.constant 0 : i32
    %c0_i32_1 = arith.constant 0 : i32
    return %c0_i32, %c0_i32_0 : i32, i32
  }
  func.func @transform_3(%arg0: i32) -> (i32, i32, i32, i32) {
    %c0_i32 = arith.constant 0 : i32
    %c0_i32_0 = arith.constant 0 : i32
    %c0_i32_1 = arith.constant 0 : i32
    %c0_i32_2 = arith.constant 0 : i32
    return %arg0, %c0_i32, %c0_i32_0, %c0_i32_1 : i32, i32, i32, i32
  }
}

module attributes {stable_mosaic.version = 11 : i64} {
  func.func @_mlp_kernel(%arg0: i32, %arg1: memref<2x2048xbf16, #tpu.memory_space<vmem>>, %arg2: memref<2048x512xbf16, #tpu.memory_space<vmem>>, %arg3: memref<1x512xf32, #tpu.memory_space<vmem>>, %arg4: memref<512x50xbf16, #tpu.memory_space<vmem>>, %arg5: memref<1x50xf32, #tpu.memory_space<vmem>>, %arg6: memref<2x50xf32, #tpu.memory_space<vmem>>) attributes {dimension_semantics = [#tpu.dimension_semantics<parallel>], iteration_bounds = array<i64: 1>, scalar_prefetch = 0 : i64, scratch_operands = 0 : i64, tpu.core_type = #tpu.core_type<tc>, window_params = [{transform_indices = @transform_0, window_bounds = array<i64: 2, 2048>}, {pipeline_mode = #tpu.pipeline_mode<synchronous>, transform_indices = @transform_1, window_bounds = array<i64: 2048, 512>}, {pipeline_mode = #tpu.pipeline_mode<synchronous>, transform_indices = @transform_2, window_bounds = array<i64: 1, 512>}, {pipeline_mode = #tpu.pipeline_mode<synchronous>, transform_indices = @transform_3, window_bounds = array<i64: 512, 50>}, {pipeline_mode = #tpu.pipeline_mode<synchronous>, transform_indices = @transform_4, window_bounds = array<i64: 1, 50>}, {transform_indices = @transform_5, window_bounds = array<i64: 2, 50>}]} {
    %c0 = arith.constant 0 : index
    %c0_0 = arith.constant 0 : index
    %0 = vector.load %arg1[%c0, %c0_0] : memref<2x2048xbf16, #tpu.memory_space<vmem>>, vector<2x2048xbf16>
    %c0_1 = arith.constant 0 : index
    %c0_2 = arith.constant 0 : index
    %1 = vector.load %arg2[%c0_1, %c0_2] : memref<2048x512xbf16, #tpu.memory_space<vmem>>, vector<2048x512xbf16>
    %cst = arith.constant dense<0.000000e+00> : vector<2x512xf32>
    %2 = tpu.matmul %0, %1, %cst {dimension_numbers = #tpu.dot_dimension_numbers<[1], [0], [0], [1], [0, 0, 1, 1], [], []>} : vector<2x2048xbf16>, vector<2048x512xbf16>, vector<2x512xf32> -> vector<2x512xf32>
    %c0_3 = arith.constant 0 : index
    %c0_4 = arith.constant 0 : index
    %3 = vector.load %arg3[%c0_3, %c0_4] : memref<1x512xf32, #tpu.memory_space<vmem>>, vector<1x512xf32>
    %4 = vector.broadcast %3 : vector<1x512xf32> to vector<2x512xf32>
    %5 = arith.addf %2, %4 : vector<2x512xf32>
    %cst_5 = arith.constant 0.000000e+00 : f32
    %6 = vector.broadcast %cst_5 : f32 to vector<2x512xf32>
    %7 = arith.maximumf %5, %6 : vector<2x512xf32>
    %8 = arith.truncf %7 : vector<2x512xf32> to vector<2x512xbf16>
    %c0_6 = arith.constant 0 : index
    %c0_7 = arith.constant 0 : index
    %9 = vector.load %arg4[%c0_6, %c0_7] : memref<512x50xbf16, #tpu.memory_space<vmem>>, vector<512x50xbf16>
    %cst_8 = arith.constant dense<0.000000e+00> : vector<2x50xf32>
    %10 = tpu.matmul %8, %9, %cst_8 {dimension_numbers = #tpu.dot_dimension_numbers<[1], [0], [0], [1], [0, 0, 1, 1], [], []>} : vector<2x512xbf16>, vector<512x50xbf16>, vector<2x50xf32> -> vector<2x50xf32>
    %c0_9 = arith.constant 0 : index
    %c0_10 = arith.constant 0 : index
    %11 = vector.load %arg5[%c0_9, %c0_10] : memref<1x50xf32, #tpu.memory_space<vmem>>, vector<1x50xf32>
    %12 = vector.broadcast %11 : vector<1x50xf32> to vector<2x50xf32>
    %13 = arith.addf %10, %12 : vector<2x50xf32>
    %c0_11 = arith.constant 0 : index
    %c0_12 = arith.constant 0 : index
    %14 = vector.load %arg6[%c0_11, %c0_12] : memref<2x50xf32, #tpu.memory_space<vmem>>, vector<2x50xf32>
    tpu.vector_store %arg6[%c0_11, %c0_12], %13 {strides = array<i32>} : memref<2x50xf32, #tpu.memory_space<vmem>>, vector<2x50xf32>,
    return
  }
  func.func @transform_0(%arg0: i32) -> (i32, i32) {
    %c0_i32 = arith.constant 0 : i32
    %c0_i32_0 = arith.constant 0 : i32
    return %arg0, %c0_i32 : i32, i32
  }
  func.func @transform_1(%arg0: i32) -> (i32, i32) {
    %c0_i32 = arith.constant 0 : i32
    %c0_i32_0 = arith.constant 0 : i32
    %c0_i32_1 = arith.constant 0 : i32
    return %c0_i32, %c0_i32_0 : i32, i32
  }
  func.func @transform_2(%arg0: i32) -> (i32, i32) {
    %c0_i32 = arith.constant 0 : i32
    %c0_i32_0 = arith.constant 0 : i32
    %c0_i32_1 = arith.constant 0 : i32
    return %c0_i32, %c0_i32_0 : i32, i32
  }
  func.func @transform_3(%arg0: i32) -> (i32, i32) {
    %c0_i32 = arith.constant 0 : i32
    %c0_i32_0 = arith.constant 0 : i32
    %c0_i32_1 = arith.constant 0 : i32
    return %c0_i32, %c0_i32_0 : i32, i32
  }
  func.func @transform_4(%arg0: i32) -> (i32, i32) {
    %c0_i32 = arith.constant 0 : i32
    %c0_i32_0 = arith.constant 0 : i32
    %c0_i32_1 = arith.constant 0 : i32
    return %c0_i32, %c0_i32_0 : i32, i32
  }
  func.func @transform_5(%arg0: i32) -> (i32, i32) {
    %c0_i32 = arith.constant 0 : i32
    %c0_i32_0 = arith.constant 0 : i32
    return %arg0, %c0_i32 : i32, i32
  }
}

</mosaic_0001>

<bundles_post_ra>
// kernel: cnn_base_forward.4
= control target key start
LH: loop header
LB: loop body
LE: loop exit
PB: predicated region body
PF: predicated region fallthrough
CT: control target
= control target key end

     0   :  { %s5574_s12 = smov 0   ;;  %s6880_s0 = inlined_call_operand.vmem [shape: bf16[2,2116,27], index: 0, kind: input, shape index: {}]   ;;  %s6881_s1 = inlined_call_operand.vmem [shape: bf16[27,32], index: 1, kind: input, shape index: {}]   ;;  %s6882_s2 = inlined_call_operand.vmem [shape: f32[1,32], index: 2, kind: input, shape index: {}]   ;;  %s6883_s3 = inlined_call_operand.vmem [shape: bf16[2,23,23,32], index: 3, kind: output, shape index: {}]  }
   0x1 LB: > { %s4213_s13 = sadd.s32 4294967295, %s5549_s12   ;;  %p4217_p0 = scmp.ge.s32.totalorder %s5549_s12, 1  ;;  %s5549_s12 = sphi %s5574_s12, %s13_s12  }
   0x2   : > { %p137_p1 = scmp.lt.s32.totalorder %s5549_s12, 3 }
   0x4   : > { %p138_p2 = pnand %p4217_p0, %p137_p1 }
   0x5   : > { %v5405_v0 = vld [vmem:[%s6881_s1] sm:$0xff] (!%p138_p2)   ;;  %v5551_v1 = vmov (!%p138_p2), 0.0   ;;  %v5406_v2 = vld [vmem:[%s6881_s1 + $0x8] sm:$0x3f] (!%p138_p2)   ;;  %vm1522_vm0 = vcmask (!%p138_p2), 1044480   ;;  %vm1523_vm1 = vcmask (!%p138_p2), 1045504  }
   0x6   : > { %141 = sbr.rel (%p138_p2) target bundleno = 780 (0x30c), region = 32  ;;  %4852 = vmatprep.subr.bf16.mxu0 (!%p138_p2), %v5551_v1  ;;  %5388 = vmatprep.subr.bf16.mxu1 (!%p138_p2), %v5551_v1  ;;  %p161_p3 = scmp.lt.s32.totalorder (!%p138_p2), %s4213_s13, 1  ;;  %v5552_v3 = vmov (!%p138_p2), 65535   ;;  %vm5553_vm2 = vmmov (!%p138_p2), 0   ;;  %vm1122_vm3 = vcmask (!%p138_p2), 220160   ;;  %vm2625_vm4 = vcmask (!%p138_p2), 261120  }
   0x7   : > { %4853 = vmatpush3.bf16.msra.mxu0 (!%p138_p2), %v5405_v0  ;;  %5390 = vmatpush3.bf16.msra.mxu1 (!%p138_p2), %v5405_v0  ;;  %v1524_v4 = vsel (!%p138_p2), %vm1522_vm0, 4294967295, %v5552_v3  ;;  %v5819_v61 = vld [vmem:[%s6882_s2] ss:$0 sm:$0xff] (!%p138_p2)  ;;  %vm2890_vm5 = vcmask (!%p138_p2), 257024   ;;  %vm2943_vm6 = vsmask.f32 (!%p138_p2), 3328 }
   0x8   : > { %4854 = vmatprep.subr.bf16.mxu0 (!%p138_p2), %v5551_v1  ;;  %5389 = vmatprep.subr.bf16.mxu1 (!%p138_p2), %v5551_v1  ;;  %v1525_v5 = vsel (!%p138_p2), %vm1523_vm1, %v1524_v4, 0  ;;  %vm5950_vm7 = vmand (!%p138_p2), %vm2890_vm5, %vm2943_vm6 }
   0x9   : > { %4856 = vmatprep.mubr.msk.bf16.mxu0 (!%p138_p2), %vm5553_vm2, %v5551_v1  ;;  %5124 = vmatprep.mubr.msk.bf16.mxu1 (!%p138_p2), %vm5553_vm2, %v5551_v1  ;;  %v1527_v6 = vand.u32 (!%p138_p2), %v5406_v2, %v1525_v5 }
   0xb   : > { %4855 = vmatpush3.bf16.msra.mxu0 (!%p138_p2), %v1527_v6  ;;  %5391 = vmatpush3.bf16.msra.mxu1 (!%p138_p2), %v1527_v6 }
   0xd   : > { %s6887_s13 = smov (!%p161_p3, %s4213_s13), 1 }
   0xe   : > { %s5392_s18 = smul.u32 1060, %s6887_s13 }
   0xf   : > { %s5393_s24 = smul.u32 276, %s6887_s13 }
  0x10   : > { %s5602_s21 = scalar_lea.vmem %s6880_s0, %s5392_s18 }
  0x11   : > { %v5407_v7 = vld [vmem:[%s5602_s21] sm:$0xff]   ;;  %v5408_v8 = vld [vmem:[%s5602_s21 + $0x218] sm:$0xff]   ;;  %v5409_v9 = vld [vmem:[%s5602_s21 + $0x8] sm:$0xff]   ;;  %s5912_s27 = scalar_lea.vmem %s6883_s3, %s5393_s24 }
  0x12   : > { %4857 = vmatmul.mubr.msk.bf16.vlgmr.msra.gmra.mrb[0].mxu0 %vm1122_vm3, %v5407_v7  ;;  %5125 = vmatmul.mubr.msk.bf16.vlgmr.msra.gmra.mrb[0].mxu1 %vm1122_vm3, %v5408_v8  ;;  %v5410_v10 = vld [vmem:[%s5602_s21 + $0x220] sm:$0xff]   ;;  %v5411_v11 = vld [vmem:[%s5602_s21 + $0x10] sm:$0xff]   ;;  %v5412_v12 = vld [vmem:[%s5602_s21 + $0x228] sm:$0xff]  }
  0x13   : > { %4860 = vmatprep.mubr.msk.bf16.mxu0 %vm5553_vm2, %v5551_v1  ;;  %5128 = vmatprep.mubr.msk.bf16.mxu1 %vm5553_vm2, %v5551_v1  ;;  %v5413_v13 = vld [vmem:[%s5602_s21 + $0x18] sm:$0xff]   ;;  %v5414_v14 = vld [vmem:[%s5602_s21 + $0x230] sm:$0xff]   ;;  %v5415_v15 = vld [vmem:[%s5602_s21 + $0x20] sm:$0xff]  }
  0x14   : > { %v5416_v16 = vld [vmem:[%s5602_s21 + $0x238] sm:$0xff]   ;;  %v5417_v17 = vld [vmem:[%s5602_s21 + $0x28] sm:$0xff]   ;;  %v5418_v18 = vld [vmem:[%s5602_s21 + $0x240] sm:$0xff]  }
  0x15   : > { %v5419_v19 = vld [vmem:[%s5602_s21 + $0x30] sm:$0xff]   ;;  %v5420_v20 = vld [vmem:[%s5602_s21 + $0x248] sm:$0xff]   ;;  %v5421_v21 = vld [vmem:[%s5602_s21 + $0x38] sm:$0xff]  }
  0x16   : > { %v5422_v22 = vld [vmem:[%s5602_s21 + $0x250] sm:$0xff]   ;;  %v5423_v23 = vld [vmem:[%s5602_s21 + $0x40] sm:$0xff]   ;;  %v5424_v24 = vld [vmem:[%s5602_s21 + $0x258] sm:$0xff]  }
  0x17   : > { %v5425_v25 = vld [vmem:[%s5602_s21 + $0x48] sm:$0xff]   ;;  %v5426_v26 = vld [vmem:[%s5602_s21 + $0x260] sm:$0xff]   ;;  %v5427_v27 = vld [vmem:[%s5602_s21 + $0x50] sm:$0xff]  }
  0x18   : > { %v5428_v28 = vld [vmem:[%s5602_s21 + $0x268] sm:$0xff]   ;;  %v5429_v29 = vld [vmem:[%s5602_s21 + $0x58] sm:$0xff]   ;;  %v5430_v30 = vld [vmem:[%s5602_s21 + $0x270] sm:$0xff]  }
  0x19   : > { %v5431_v31 = vld [vmem:[%s5602_s21 + $0x60] sm:$0xff]   ;;  %v5432_v32 = vld [vmem:[%s5602_s21 + $0x278] sm:$0xff]   ;;  %v5433_v33 = vld [vmem:[%s5602_s21 + $0x68] sm:$0xff]  }
  0x1a   : > { %4861 = vmatmul.mubr.msk.bf16.gmra.mrb[4].mxu0 %vm1122_vm3, %v5409_v9  ;;  %5129 = vmatmul.mubr.msk.bf16.gmra.mrb[4].mxu1 %vm1122_vm3, %v5410_v10  ;;  %v5434_v34 = vld [vmem:[%s5602_s21 + $0x280] sm:$0xff]   ;;  %v5435_v35 = vld [vmem:[%s5602_s21 + $0x70] sm:$0xff]   ;;  %v5436_v36 = vld [vmem:[%s5602_s21 + $0x288] sm:$0xff]  }
  0x1b   : > { %4864 = vmatprep.mubr.msk.bf16.mxu0 %vm5553_vm2, %v5551_v1  ;;  %5132 = vmatprep.mubr.msk.bf16.mxu1 %vm5553_vm2, %v5551_v1  ;;  %v5437_v37 = vld [vmem:[%s5602_s21 + $0x78] sm:$0xff]   ;;  %v5438_v38 = vld [vmem:[%s5602_s21 + $0x290] sm:$0xff]   ;;  %v5439_v39 = vld [vmem:[%s5602_s21 + $0x80] sm:$0xff]  }
  0x1c   : > { %v5440_v40 = vld [vmem:[%s5602_s21 + $0x298] sm:$0xff]   ;;  %v5441_v41 = vld [vmem:[%s5602_s21 + $0x88] sm:$0xff]   ;;  %v5442_v42 = vld [vmem:[%s5602_s21 + $0x2a0] sm:$0xff]  }
  0x1d   : > { %v5443_v43 = vld [vmem:[%s5602_s21 + $0x90] sm:$0xff]   ;;  %v5444_v44 = vld [vmem:[%s5602_s21 + $0x2a8] sm:$0xff]   ;;  %v5445_v45 = vld [vmem:[%s5602_s21 + $0x98] sm:$0xff]  }
  0x1e   : > { %v5446_v46 = vld [vmem:[%s5602_s21 + $0x2b0] sm:$0xff]   ;;  %v5447_v47 = vld [vmem:[%s5602_s21 + $0xa0] sm:$0xff]   ;;  %v5448_v48 = vld [vmem:[%s5602_s21 + $0x2b8] sm:$0xff]  }
  0x1f   : > { %v5449_v49 = vld [vmem:[%s5602_s21 + $0xa8] sm:$0xff]   ;;  %v5450_v50 = vld [vmem:[%s5602_s21 + $0x2c0] sm:$0xff]   ;;  %v5451_v51 = vld [vmem:[%s5602_s21 + $0xb0] sm:$0xff]  }
  0x20   : > { %v5452_v52 = vld [vmem:[%s5602_s21 + $0x2c8] sm:$0xff]   ;;  %v5453_v53 = vld [vmem:[%s5602_s21 + $0xb8] sm:$0xff]   ;;  %v5454_v54 = vld [vmem:[%s5602_s21 + $0x2d0] sm:$0xff]  }
  0x21   : > { %v5455_v55 = vld [vmem:[%s5602_s21 + $0xc0] sm:$0xff]   ;;  %v5456_v56 = vld [vmem:[%s5602_s21 + $0x2d8] sm:$0xff]   ;;  %v5457_v57 = vld [vmem:[%s5602_s21 + $0xc8] sm:$0xff]  }
  0x22   : > { %4865 = vmatmul.mubr.msk.bf16.gmra.mrb[8].mxu0 %vm1122_vm3, %v5411_v11  ;;  %5133 = vmatmul.mubr.msk.bf16.gmra.mrb[8].mxu1 %vm1122_vm3, %v5412_v12  ;;  %v5458_v58 = vld [vmem:[%s5602_s21 + $0x2e0] sm:$0xff]   ;;  %v5459_v59 = vld [vmem:[%s5602_s21 + $0xd0] sm:$0xff]   ;;  %v5460_v60 = vld [vmem:[%s5602_s21 + $0x2e8] sm:$0xff]  }
  0x23   : > { %4868 = vmatprep.mubr.msk.bf16.mxu0 %vm5553_vm2, %v5551_v1  ;;  %5136 = vmatprep.mubr.msk.bf16.mxu1 %vm5553_vm2, %v5551_v1  ;;  %v5461_v2 = vld [vmem:[%s5602_s21 + $0xd8] sm:$0xff]   ;;  %v5462_v6 = vld [vmem:[%s5602_s21 + $0x2f0] sm:$0xff]  }
  0x2a   : > { %4869 = vmatmul.mubr.msk.bf16.gmra.mrb[12].mxu0 %vm1122_vm3, %v5413_v13  ;;  %5137 = vmatmul.mubr.msk.bf16.gmra.mrb[12].mxu1 %vm1122_vm3, %v5414_v14 }
  0x2b   : > { %4872 = vmatprep.mubr.msk.bf16.mxu0 %vm5553_vm2, %v5551_v1  ;;  %5140 = vmatprep.mubr.msk.bf16.mxu1 %vm5553_vm2, %v5551_v1 }
  0x32   : > { %4873 = vmatmul.mubr.msk.bf16.gmra.mrb[16].mxu0 %vm1122_vm3, %v5415_v15  ;;  %5141 = vmatmul.mubr.msk.bf16.gmra.mrb[16].mxu1 %vm1122_vm3, %v5416_v16 }
  0x33   : > { %4876 = vmatprep.mubr.msk.bf16.mxu0 %vm5553_vm2, %v5551_v1  ;;  %5144 = vmatprep.mubr.msk.bf16.mxu1 %vm5553_vm2, %v5551_v1 }
  0x3a   : > { %4877 = vmatmul.mubr.msk.bf16.gmra.mrb[20].mxu0 %vm1122_vm3, %v5417_v17  ;;  %5145 = vmatmul.mubr.msk.bf16.gmra.mrb[20].mxu1 %vm1122_vm3, %v5418_v18  ;;  %v5463_v17 = vld [vmem:[%s5602_s21 + $0xe0] sm:$0xff]  }
  0x3b   : > { %4880 = vmatprep.mubr.msk.bf16.mxu0 %vm5553_vm2, %v5551_v1  ;;  %5148 = vmatprep.mubr.msk.bf16.mxu1 %vm5553_vm2, %v5551_v1 }
  0x42   : > { %4881 = vmatmul.mubr.msk.bf16.gmra.mrb[24].mxu0 %vm1122_vm3, %v5419_v19  ;;  %5149 = vmatmul.mubr.msk.bf16.gmra.mrb[24].mxu1 %vm1122_vm3, %v5420_v20  ;;  %v5464_v20 = vld [vmem:[%s5602_s21 + $0x2f8] sm:$0xff]  }
  0x43   : > { %4884 = vmatprep.mubr.msk.bf16.mxu0 %vm5553_vm2, %v5551_v1  ;;  %5152 = vmatprep.mubr.msk.bf16.mxu1 %vm5553_vm2, %v5551_v1 }
  0x4a   : > { %4885 = vmatmul.mubr.msk.bf16.gmra.mrb[28].mxu0 %vm1122_vm3, %v5421_v21  ;;  %5153 = vmatmul.mubr.msk.bf16.gmra.mrb[28].mxu1 %vm1122_vm3, %v5422_v22 }
  0x4b   : > { %4888 = vmatprep.mubr.msk.bf16.mxu0 %vm5553_vm2, %v5551_v1  ;;  %5156 = vmatprep.mubr.msk.bf16.mxu1 %vm5553_vm2, %v5551_v1 }
  0x52   : > { %4889 = vmatmul.mubr.msk.bf16.gmra.mrb[32].mxu0 %vm1122_vm3, %v5423_v23  ;;  %5157 = vmatmul.mubr.msk.bf16.gmra.mrb[32].mxu1 %vm1122_vm3, %v5424_v24 }
  0x53   : > { %4892 = vmatprep.mubr.msk.bf16.mxu0 %vm5553_vm2, %v5551_v1  ;;  %5160 = vmatprep.mubr.msk.bf16.mxu1 %vm5553_vm2, %v5551_v1 }
  0x5a   : > { %4893 = vmatmul.mubr.msk.bf16.gmra.mrb[36].mxu0 %vm1122_vm3, %v5425_v25  ;;  %5161 = vmatmul.mubr.msk.bf16.gmra.mrb[36].mxu1 %vm1122_vm3, %v5426_v26 }
  0x5b   : > { %4896 = vmatprep.mubr.msk.bf16.mxu0 %vm5553_vm2, %v5551_v1  ;;  %5164 = vmatprep.mubr.msk.bf16.mxu1 %vm5553_vm2, %v5551_v1 }
  0x62   : > { %4897 = vmatmul.mubr.msk.bf16.gmra.mrb[40].mxu0 %vm1122_vm3, %v5427_v27  ;;  %5165 = vmatmul.mubr.msk.bf16.gmra.mrb[40].mxu1 %vm1122_vm3, %v5428_v28 }
  0x63   : > { %4900 = vmatprep.mubr.msk.bf16.mxu0 %vm5553_vm2, %v5551_v1  ;;  %5168 = vmatprep.mubr.msk.bf16.mxu1 %vm5553_vm2, %v5551_v1 }
  0x6a   : > { %4901 = vmatmul.mubr.msk.bf16.gmra.mrb[44].mxu0 %vm1122_vm3, %v5429_v29  ;;  %5169 = vmatmul.mubr.msk.bf16.gmra.mrb[44].mxu1 %vm1122_vm3, %v5430_v30  ;;  %v5465_v30 = vld [vmem:[%s5602_s21 + $0xe8] sm:$0xff]  }
  0x6b   : > { %4904 = vmatprep.mubr.msk.bf16.mxu0 %vm5553_vm2, %v5551_v1  ;;  %5172 = vmatprep.mubr.msk.bf16.mxu1 %vm5553_vm2, %v5551_v1 }
  0x72   : > { %4905 = vmatmul.mubr.msk.bf16.gmra.mrb[48].mxu0 %vm1122_vm3, %v5431_v31  ;;  %5173 = vmatmul.mubr.msk.bf16.gmra.mrb[48].mxu1 %vm1122_vm3, %v5432_v32 }
  0x73   : > { %4908 = vmatprep.mubr.msk.bf16.mxu0 %vm5553_vm2, %v5551_v1  ;;  %5176 = vmatprep.mubr.msk.bf16.mxu1 %vm5553_vm2, %v5551_v1 }
  0x7a   : > { %4909 = vmatmul.mubr.msk.bf16.gmra.mrb[52].mxu0 %vm1122_vm3, %v5433_v33  ;;  %5177 = vmatmul.mubr.msk.bf16.gmra.mrb[52].mxu1 %vm1122_vm3, %v5434_v34  ;;  %v5466_v33 = vld [vmem:[%s5602_s21 + $0x300] sm:$0xff]  }
  0x7b   : > { %4912 = vmatprep.mubr.msk.bf16.mxu0 %vm5553_vm2, %v5551_v1  ;;  %5180 = vmatprep.mubr.msk.bf16.mxu1 %vm5553_vm2, %v5551_v1 }
  0x82   : > { %4913 = vmatmul.mubr.msk.bf16.gmra.mrb[56].mxu0 %vm1122_vm3, %v5435_v35  ;;  %5181 = vmatmul.mubr.msk.bf16.gmra.mrb[56].mxu1 %vm1122_vm3, %v5436_v36 }
  0x83   : > { %4916 = vmatprep.mubr.msk.bf16.mxu0 %vm5553_vm2, %v5551_v1  ;;  %5184 = vmatprep.mubr.msk.bf16.mxu1 %vm5553_vm2, %v5551_v1 }
  0x8a   : > { %4917 = vmatmul.mubr.msk.bf16.gmra.mrb[60].mxu0 %vm1122_vm3, %v5437_v37  ;;  %5185 = vmatmul.mubr.msk.bf16.gmra.mrb[60].mxu1 %vm1122_vm3, %v5438_v38 }
  0x8b   : > { %4920 = vmatprep.mubr.msk.bf16.mxu0 %vm5553_vm2, %v5551_v1  ;;  %5188 = vmatprep.mubr.msk.bf16.mxu1 %vm5553_vm2, %v5551_v1 }
  0x92   : > { %4921 = vmatmul.mubr.msk.bf16.gmra.mrb[64].mxu0 %vm1122_vm3, %v5439_v39  ;;  %5189 = vmatmul.mubr.msk.bf16.gmra.mrb[64].mxu1 %vm1122_vm3, %v5440_v40 }
  0x93   : > { %4924 = vmatprep.mubr.msk.bf16.mxu0 %vm5553_vm2, %v5551_v1  ;;  %5192 = vmatprep.mubr.msk.bf16.mxu1 %vm5553_vm2, %v5551_v1 }
  0x9a   : > { %4925 = vmatmul.mubr.msk.bf16.gmra.mrb[68].mxu0 %vm1122_vm3, %v5441_v41  ;;  %5193 = vmatmul.mubr.msk.bf16.gmra.mrb[68].mxu1 %vm1122_vm3, %v5442_v42 }
  0x9b   : > { %4928 = vmatprep.mubr.msk.bf16.mxu0 %vm5553_vm2, %v5551_v1  ;;  %5196 = vmatprep.mubr.msk.bf16.mxu1 %vm5553_vm2, %v5551_v1 }
  0xa2   : > { %4929 = vmatmul.mubr.msk.bf16.gmra.mrb[72].mxu0 %vm1122_vm3, %v5443_v43  ;;  %5197 = vmatmul.mubr.msk.bf16.gmra.mrb[72].mxu1 %vm1122_vm3, %v5444_v44  ;;  %v5467_v44 = vld [vmem:[%s5602_s21 + $0xf0] sm:$0xff]  }
  0xa3   : > { %4932 = vmatprep.mubr.msk.bf16.mxu0 %vm5553_vm2, %v5551_v1  ;;  %5200 = vmatprep.mubr.msk.bf16.mxu1 %vm5553_vm2, %v5551_v1 }
  0xaa   : > { %4933 = vmatmul.mubr.msk.bf16.gmra.mrb[76].mxu0 %vm1122_vm3, %v5445_v45  ;;  %5201 = vmatmul.mubr.msk.bf16.gmra.mrb[76].mxu1 %vm1122_vm3, %v5446_v46 }
  0xab   : > { %4936 = vmatprep.mubr.msk.bf16.mxu0 %vm5553_vm2, %v5551_v1  ;;  %5204 = vmatprep.mubr.msk.bf16.mxu1 %vm5553_vm2, %v5551_v1 }
  0xb2   : > { %4937 = vmatmul.mubr.msk.bf16.gmra.mrb[80].mxu0 %vm1122_vm3, %v5447_v47  ;;  %5205 = vmatmul.mubr.msk.bf16.gmra.mrb[80].mxu1 %vm1122_vm3, %v5448_v48  ;;  %v5468_v47 = vld [vmem:[%s5602_s21 + $0x308] sm:$0xff]  }
  0xb3   : > { %4940 = vmatprep.mubr.msk.bf16.mxu0 %vm5553_vm2, %v5551_v1  ;;  %5208 = vmatprep.mubr.msk.bf16.mxu1 %vm5553_vm2, %v5551_v1 }
  0xba   : > { %4941 = vmatmul.mubr.msk.bf16.gmra.mrb[84].mxu0 %vm1122_vm3, %v5449_v49  ;;  %5209 = vmatmul.mubr.msk.bf16.gmra.mrb[84].mxu1 %vm1122_vm3, %v5450_v50 }
  0xbb   : > { %4944 = vmatprep.mubr.msk.bf16.mxu0 %vm5553_vm2, %v5551_v1  ;;  %5212 = vmatprep.mubr.msk.bf16.mxu1 %vm5553_vm2, %v5551_v1 }
  0xc2   : > { %4945 = vmatmul.mubr.msk.bf16.gmra.mrb[88].mxu0 %vm1122_vm3, %v5451_v51  ;;  %5213 = vmatmul.mubr.msk.bf16.gmra.mrb[88].mxu1 %vm1122_vm3, %v5452_v52 }
  0xc3   : > { %4948 = vmatprep.mubr.msk.bf16.mxu0 %vm5553_vm2, %v5551_v1  ;;  %5216 = vmatprep.mubr.msk.bf16.mxu1 %vm5553_vm2, %v5551_v1 }
  0xca   : > { %4949 = vmatmul.mubr.msk.bf16.gmra.mrb[92].mxu0 %vm1122_vm3, %v5453_v53  ;;  %5217 = vmatmul.mubr.msk.bf16.gmra.mrb[92].mxu1 %vm1122_vm3, %v5454_v54 }
  0xcb   : > { %4952 = vmatprep.mubr.msk.bf16.mxu0 %vm5553_vm2, %v5551_v1  ;;  %5220 = vmatprep.mubr.msk.bf16.mxu1 %vm5553_vm2, %v5551_v1 }
  0xd2   : > { %4953 = vmatmul.mubr.msk.bf16.gmra.mrb[96].mxu0 %vm1122_vm3, %v5455_v55  ;;  %5221 = vmatmul.mubr.msk.bf16.gmra.mrb[96].mxu1 %vm1122_vm3, %v5456_v56 }
  0xd3   : > { %4956 = vmatprep.mubr.msk.bf16.mxu0 %vm5553_vm2, %v5551_v1  ;;  %5224 = vmatprep.mubr.msk.bf16.mxu1 %vm5553_vm2, %v5551_v1 }
  0xda   : > { %4957 = vmatmul.mubr.msk.bf16.gmra.mrb[100].mxu0 %vm1122_vm3, %v5457_v57  ;;  %5225 = vmatmul.mubr.msk.bf16.gmra.mrb[100].mxu1 %vm1122_vm3, %v5458_v58 }
  0xdb   : > { %4960 = vmatprep.mubr.msk.bf16.mxu0 %vm5553_vm2, %v5551_v1  ;;  %5228 = vmatprep.mubr.msk.bf16.mxu1 %vm5553_vm2, %v5551_v1 }
  0xe2   : > { %4961 = vmatmul.mubr.msk.bf16.gmra.mrb[104].mxu0 %vm1122_vm3, %v5459_v59  ;;  %5229 = vmatmul.mubr.msk.bf16.gmra.mrb[104].mxu1 %vm1122_vm3, %v5460_v60  ;;  %v5469_v59 = vld [vmem:[%s5602_s21 + $0xf8] sm:$0xff]   ;;  %v5470_v60 = vld [vmem:[%s5602_s21 + $0x310] sm:$0xff]  }
  0xe3   : > { %4964 = vmatprep.mubr.msk.bf16.mxu0 %vm5553_vm2, %v5551_v1  ;;  %5232 = vmatprep.mubr.msk.bf16.mxu1 %vm5553_vm2, %v5551_v1 }
  0xe5   : > { %v1563_v62 = vpop.f32.mrb[0].mxu0  ;;  %v2099_v3 = vpop.f32.mrb[0].mxu1 }
  0xe6   : > { %v1564_v63 = vadd.f32 %v5819_v61, %v1563_v62  ;;  %v4858_v0 = vpop.f32.mrb[1].mxu0  ;;  %v2100_v5 = vadd.f32 %v5819_v61, %v2099_v3  ;;  %v5126_v7 = vpop.f32.mrb[1].mxu1 }
  0xe7   : > { %v1566_v4 = vpop.f32.mrb[2].mxu0  ;;  %v2102_v10 = vpop.f32.mrb[2].mxu1 }
  0xe8   : > { %2626 = vst.msk [vmem:[#allocation2] sm:$0xff] %vm2625_vm4, %v1564_v63  ;;  %v1567_v8 = vadd.f32 %v5819_v61, %v1566_v4  ;;  %v4859_v9 = vpop.f32.mrb[3].mxu0  ;;  %2760 = vst.msk [vmem:[#allocation2 + $0x430] sm:$0xff] %vm2625_vm4, %v2100_v5  ;;  %v2103_v11 = vadd.f32 %v5819_v61, %v2102_v10  ;;  %v5127_v12 = vpop.f32.mrb[3].mxu1 }
  0xea   : > { %2627 = vst.msk [vmem:[#allocation2 + $0x8] sm:$0xff] %vm2625_vm4, %v1567_v8  ;;  %4965 = vmatmul.mubr.msk.bf16.gmra.mrb[108].mxu0 %vm1122_vm3, %v5461_v2  ;;  %5233 = vmatmul.mubr.msk.bf16.gmra.mrb[108].mxu1 %vm1122_vm3, %v5462_v6  ;;  %2761 = vst.msk [vmem:[#allocation2 + $0x438] sm:$0xff] %vm2625_vm4, %v2103_v11 }
  0xeb   : > { %4968 = vmatprep.mubr.msk.bf16.mxu0 %vm5553_vm2, %v5551_v1  ;;  %5236 = vmatprep.mubr.msk.bf16.mxu1 %vm5553_vm2, %v5551_v1 }
  0xed   : > { %v1571_v13 = vpop.f32.mrb[4].mxu0  ;;  %v2107_v16 = vpop.f32.mrb[4].mxu1 }
  0xee   : > { %v1572_v14 = vadd.f32 %v5819_v61, %v1571_v13  ;;  %v4862_v15 = vpop.f32.mrb[5].mxu0  ;;  %v2108_v18 = vadd.f32 %v5819_v61, %v2107_v16  ;;  %v5130_v21 = vpop.f32.mrb[5].mxu1 }
  0xef   : > { %v1574_v19 = vpop.f32.mrb[6].mxu0  ;;  %v2110_v24 = vpop.f32.mrb[6].mxu1 }
  0xf0   : > { %2628 = vst.msk [vmem:[#allocation2 + $0x10] sm:$0xff] %vm2625_vm4, %v1572_v14  ;;  %v1575_v22 = vadd.f32 %v5819_v61, %v1574_v19  ;;  %v4863_v23 = vpop.f32.mrb[7].mxu0  ;;  %2762 = vst.msk [vmem:[#allocation2 + $0x440] sm:$0xff] %vm2625_vm4, %v2108_v18  ;;  %v2111_v25 = vadd.f32 %v5819_v61, %v2110_v24  ;;  %v5131_v26 = vpop.f32.mrb[7].mxu1  ;;  %v5471_v19 = vld [vmem:[%s5602_s21 + $0x100] sm:$0xff]  }
  0xf1   : > { %v2892_v62 = vld [vmem:[#allocation2] ss:$2 sm:$0xff]  ;;  %v2898_v63 = vld [vmem:[#allocation2 + $0x1] ss:$2 sm:$0xff] }
  0xf2   : > { %2629 = vst.msk [vmem:[#allocation2 + $0x18] sm:$0xff] %vm2625_vm4, %v1575_v22  ;;  %4969 = vmatmul.mubr.msk.bf16.gmra.mrb[112].mxu0 %vm1122_vm3, %v5463_v17  ;;  %5237 = vmatmul.mubr.msk.bf16.gmra.mrb[112].mxu1 %vm1122_vm3, %v5464_v20  ;;  %2763 = vst.msk [vmem:[#allocation2 + $0x448] sm:$0xff] %vm2625_vm4, %v2111_v25  ;;  %v2903_v11 = vmax.f32 %v2892_v62, %v2898_v63  ;;  %v5472_v20 = vld [vmem:[%s5602_s21 + $0x318] sm:$0xff]  }
  0xf3   : > { %4972 = vmatprep.mubr.msk.bf16.mxu0 %vm5553_vm2, %v5551_v1  ;;  %5240 = vmatprep.mubr.msk.bf16.mxu1 %vm5553_vm2, %v5551_v1 }
  0xf5   : > { %v1579_v27 = vpop.f32.mrb[8].mxu0  ;;  %v2115_v31 = vpop.f32.mrb[8].mxu1 }
  0xf6   : > { %v1580_v28 = vadd.f32 %v5819_v61, %v1579_v27  ;;  %v4866_v29 = vpop.f32.mrb[9].mxu0  ;;  %v2116_v34 = vadd.f32 %v5819_v61, %v2115_v31  ;;  %v5134_v35 = vpop.f32.mrb[9].mxu1 }
  0xf7   : > { %v1582_v32 = vpop.f32.mrb[10].mxu0  ;;  %v2118_v38 = vpop.f32.mrb[10].mxu1 }
  0xf8   : > { %2630 = vst.msk [vmem:[#allocation2 + $0x20] sm:$0xff] %vm2625_vm4, %v1580_v28  ;;  %v1583_v36 = vadd.f32 %v5819_v61, %v1582_v32  ;;  %v4867_v37 = vpop.f32.mrb[11].mxu0  ;;  %2764 = vst.msk [vmem:[#allocation2 + $0x450] sm:$0xff] %vm2625_vm4, %v2116_v34  ;;  %v2119_v39 = vadd.f32 %v5819_v61, %v2118_v38  ;;  %v5135_v40 = vpop.f32.mrb[11].mxu1  ;;  %v5473_v38 = vld [vmem:[%s5602_s21 + $0x108] sm:$0xff]  }
  0xf9   : > { %v2894_v21 = vld [vmem:[#allocation2 + $0x10] ss:$2 sm:$0xff]  ;;  %v2900_v22 = vld [vmem:[#allocation2 + $0x11] ss:$2 sm:$0xff] }
  0xfa   : > { %2631 = vst.msk [vmem:[#allocation2 + $0x28] sm:$0xff] %vm2625_vm4, %v1583_v36  ;;  %4973 = vmatmul.mubr.msk.bf16.gmra.mrb[116].mxu0 %vm1122_vm3, %v5465_v30  ;;  %5241 = vmatmul.mubr.msk.bf16.gmra.mrb[116].mxu1 %vm1122_vm3, %v5466_v33  ;;  %2765 = vst.msk [vmem:[#allocation2 + $0x458] sm:$0xff] %vm2625_vm4, %v2119_v39  ;;  %v2904_v34 = vmax.f32 %v2894_v21, %v2900_v22 }
  0xfb   : > { %4976 = vmatprep.mubr.msk.bf16.mxu0 %vm5553_vm2, %v5551_v1  ;;  %5244 = vmatprep.mubr.msk.bf16.mxu1 %vm5553_vm2, %v5551_v1 }
  0xfd   : > { %v1587_v41 = vpop.f32.mrb[12].mxu0  ;;  %v2123_v45 = vpop.f32.mrb[12].mxu1 }
  0xfe   : > { %v1588_v42 = vadd.f32 %v5819_v61, %v1587_v41  ;;  %v4870_v43 = vpop.f32.mrb[13].mxu0  ;;  %v2124_v48 = vadd.f32 %v5819_v61, %v2123_v45  ;;  %v5138_v49 = vpop.f32.mrb[13].mxu1 }
  0xff   : > { %v1590_v46 = vpop.f32.mrb[14].mxu0  ;;  %v2126_v52 = vpop.f32.mrb[14].mxu1 }
 0x100   : > { %2632 = vst.msk [vmem:[#allocation2 + $0x30] sm:$0xff] %vm2625_vm4, %v1588_v42  ;;  %v1591_v50 = vadd.f32 %v5819_v61, %v1590_v46  ;;  %v4871_v51 = vpop.f32.mrb[15].mxu0  ;;  %2766 = vst.msk [vmem:[#allocation2 + $0x460] sm:$0xff] %vm2625_vm4, %v2124_v48  ;;  %v2127_v53 = vadd.f32 %v5819_v61, %v2126_v52  ;;  %v5139_v54 = vpop.f32.mrb[15].mxu1  ;;  %v5474_v48 = vld [vmem:[%s5602_s21 + $0x320] sm:$0xff]  }
 0x101   : > { %v2896_v39 = vld [vmem:[#allocation2 + $0x20] ss:$2 sm:$0x7f]  ;;  %v3554_v49 = vld [vmem:[#allocation2 + $0x450] ss:$2 sm:$0xff] }
 0x102   : > { %2633 = vst.msk [vmem:[#allocation2 + $0x38] sm:$0xff] %vm2625_vm4, %v1591_v50  ;;  %4977 = vmatmul.mubr.msk.bf16.gmra.mrb[120].mxu0 %vm1122_vm3, %v5467_v44  ;;  %5245 = vmatmul.mubr.msk.bf16.gmra.mrb[120].mxu1 %vm1122_vm3, %v5468_v47  ;;  %2767 = vst.msk [vmem:[#allocation2 + $0x468] sm:$0xff] %vm2625_vm4, %v2127_v53  ;;  %v2902_v44 = vld [vmem:[#allocation2 + $0x21] ss:$2 sm:$0x7f] }
 0x103   : > { %4980 = vmatprep.mubr.msk.bf16.mxu0 %vm5553_vm2, %v5551_v1  ;;  %5248 = vmatprep.mubr.msk.bf16.mxu1 %vm5553_vm2, %v5551_v1  ;;  %v3560_v50 = vld [vmem:[#allocation2 + $0x451] ss:$2 sm:$0xff] }
 0x105   : > { %v1595_v55 = vpop.f32.mrb[16].mxu0  ;;  %v2131_v58 = vpop.f32.mrb[16].mxu1 }
 0x106   : > { %v1596_v56 = vadd.f32 %v5819_v61, %v1595_v55  ;;  %v4874_v57 = vpop.f32.mrb[17].mxu0  ;;  %v2132_v2 = vadd.f32 %v5819_v61, %v2131_v58  ;;  %v5142_v3 = vpop.f32.mrb[17].mxu1  ;;  %v2905_v58 = vmax.f32 %v2896_v39, %v2902_v44 }
 0x107   : > { %v1598_v0 = vpop.f32.mrb[18].mxu0  ;;  %v2134_v6 = vpop.f32.mrb[18].mxu1 }
 0x108   : > { %2634 = vst.msk [vmem:[#allocation2 + $0x40] sm:$0xff] %vm2625_vm4, %v1596_v56  ;;  %v1599_v4 = vadd.f32 %v5819_v61, %v1598_v0  ;;  %v4875_v5 = vpop.f32.mrb[19].mxu0  ;;  %2768 = vst.msk [vmem:[#allocation2 + $0x470] sm:$0xff] %vm2625_vm4, %v2132_v2  ;;  %v2135_v9 = vadd.f32 %v5819_v61, %v2134_v6  ;;  %v5143_v10 = vpop.f32.mrb[19].mxu1  ;;  %v3565_v0 = vmax.f32 %v3554_v49, %v3560_v50 }
 0x109   : > { %v2907_v7 = vld [vmem:[#allocation2 + $0x2e] ss:$2 sm:$0xff]  ;;  %v2913_v8 = vld [vmem:[#allocation2 + $0x2f] ss:$2 sm:$0xff] }
 0x10a   : > { %v2918_v12 = vmax.f32 %v2907_v7, %v2913_v8  ;;  %2635 = vst.msk [vmem:[#allocation2 + $0x48] sm:$0xff] %vm2625_vm4, %v1599_v4  ;;  %4981 = vmatmul.mubr.msk.bf16.gmra.mrb[124].mxu0 %vm1122_vm3, %v5469_v59  ;;  %5249 = vmatmul.mubr.msk.bf16.gmra.mrb[124].mxu1 %vm1122_vm3, %v5470_v60  ;;  %2769 = vst.msk [vmem:[#allocation2 + $0x478] sm:$0xff] %vm2625_vm4, %v2135_v9  ;;  %v5475_v10 = vld [vmem:[%s5602_s21 + $0x110] sm:$0xff]  }
 0x10b   : > { %4984 = vmatprep.mubr.msk.bf16.mxu0 %vm5553_vm2, %v5551_v1  ;;  %5252 = vmatprep.mubr.msk.bf16.mxu1 %vm5553_vm2, %v5551_v1 }
 0x10c   : > { %v2921_v13 = vmax.f32 %v2903_v11, %v2918_v12  ;;  %v2945_v12 = vld [vmem:[%s5912_s27 + $0x8] sm:$0xf] }
 0x10d   : > { %v1603_v14 = vpop.f32.mrb[20].mxu0  ;;  %v2139_v17 = vpop.f32.mrb[20].mxu1 }
 0x10e   : > { %v2924_v15 = vmax.f32 %v2921_v13, 0.0  ;;  %v1604_v16 = vadd.f32 %v5819_v61, %v1603_v14  ;;  %v4878_v18 = vpop.f32.mrb[21].mxu0  ;;  %v2140_v23 = vadd.f32 %v5819_v61, %v2139_v17  ;;  %v5146_v24 = vpop.f32.mrb[21].mxu1  ;;  %v5476_v17 = vld [vmem:[%s5602_s21 + $0x328] sm:$0xff]  }
 0x10f   : > { %v1606_v25 = vpop.f32.mrb[22].mxu0  ;;  %v2142_v28 = vpop.f32.mrb[22].mxu1  ;;  %v3556_v18 = vld [vmem:[#allocation2 + $0x460] ss:$2 sm:$0xff] }
 0x110   : > { %v4648_v26 = vpack.c.bf16 %v2924_v15, %v2924_v15  ;;  %2636 = vst.msk [vmem:[#allocation2 + $0x50] sm:$0xff] %vm2625_vm4, %v1604_v16  ;;  %v1607_v27 = vadd.f32 %v5819_v61, %v1606_v25  ;;  %v4879_v29 = vpop.f32.mrb[23].mxu0  ;;  %2770 = vst.msk [vmem:[#allocation2 + $0x480] sm:$0xff] %vm2625_vm4, %v2140_v23  ;;  %v2143_v32 = vadd.f32 %v5819_v61, %v2142_v28  ;;  %v5147_v33 = vpop.f32.mrb[23].mxu1 }
 0x111   : > { %v2909_v30 = vld [vmem:[#allocation2 + $0x3e] ss:$2 sm:$0xff]  ;;  %v2915_v31 = vld [vmem:[#allocation2 + $0x3f] ss:$2 sm:$0xff] }
 0x112   : > { %2940 = vst.msk [vmem:[%s5912_s27] sm:$0xf] %vm2890_vm5, %v4648_v26  ;;  %v2919_v35 = vmax.f32 %v2909_v30, %v2915_v31  ;;  %4985 = vmatmul.mubr.msk.bf16.gmra.mrb[128].mxu0 %vm1122_vm3, %v5471_v19  ;;  %5253 = vmatmul.mubr.msk.bf16.gmra.mrb[128].mxu1 %vm1122_vm3, %v5472_v20  ;;  %v3562_v19 = vld [vmem:[#allocation2 + $0x461] ss:$2 sm:$0xff] }
 0x113   : > { %2637 = vst.msk [vmem:[#allocation2 + $0x58] sm:$0xff] %vm2625_vm4, %v1607_v27  ;;  %2771 = vst.msk [vmem:[#allocation2 + $0x488] sm:$0xff] %vm2625_vm4, %v2143_v32  ;;  %4988 = vmatprep.mubr.msk.bf16.mxu0 %vm5553_vm2, %v5551_v1  ;;  %5256 = vmatprep.mubr.msk.bf16.mxu1 %vm5553_vm2, %v5551_v1  ;;  %v3566_v30 = vmax.f32 %v3556_v18, %v3562_v19  ;;  %v3558_v39 = vld [vmem:[#allocation2 + $0x470] ss:$2 sm:$0x7f]  ;;  %v5482_v18 = vld [vmem:[%s5602_s21 + $0x340] sm:$0xff]  }
 0x114   : > { %v2922_v36 = vmax.f32 %v2904_v34, %v2919_v35  ;;  %v3564_v44 = vld [vmem:[#allocation2 + $0x471] ss:$2 sm:$0x7f] }
 0x115   : > { %v1611_v37 = vpop.f32.mrb[24].mxu0  ;;  %v2147_v42 = vpop.f32.mrb[24].mxu1 }
 0x116   : > { %v2925_v40 = vmax.f32 %v2922_v36, 0.0  ;;  %v1612_v41 = vadd.f32 %v5819_v61, %v1611_v37  ;;  %v4882_v43 = vpop.f32.mrb[25].mxu0  ;;  %v2148_v45 = vadd.f32 %v5819_v61, %v2147_v42  ;;  %v5150_v46 = vpop.f32.mrb[25].mxu1  ;;  %v5477_v37 = vld [vmem:[%s5602_s21 + $0x118] sm:$0xff]  }
 0x117   : > { %v1614_v47 = vpop.f32.mrb[26].mxu0  ;;  %v2150_v53 = vpop.f32.mrb[26].mxu1 }
 0x118   : > { %v4649_v51 = vpack.c.bf16 %v2925_v40, %v2925_v40  ;;  %2638 = vst.msk [vmem:[#allocation2 + $0x60] sm:$0xff] %vm2625_vm4, %v1612_v41  ;;  %v1615_v52 = vadd.f32 %v5819_v61, %v1614_v47  ;;  %v4883_v54 = vpop.f32.mrb[27].mxu0  ;;  %2772 = vst.msk [vmem:[#allocation2 + $0x490] sm:$0xff] %vm2625_vm4, %v2148_v45  ;;  %v2151_v57 = vadd.f32 %v5819_v61, %v2150_v53  ;;  %v5151_v63 = vpop.f32.mrb[27].mxu1 }
 0x119   : > { %v3567_v53 = vmax.f32 %v3558_v39, %v3564_v44  ;;  %v5483_v39 = vld [vmem:[%s5602_s21 + $0x130] sm:$0xff]  }
 0x11a   : > { %v2911_v55 = vld [vmem:[#allocation2 + $0x4e] ss:$2 sm:$0x7f]  ;;  %v2917_v56 = vld [vmem:[#allocation2 + $0x4f] ss:$2 sm:$0x7f]  ;;  %4989 = vmatmul.mubr.msk.bf16.gmra.mrb[132].mxu0 %vm1122_vm3, %v5473_v38  ;;  %5257 = vmatmul.mubr.msk.bf16.gmra.mrb[132].mxu1 %vm1122_vm3, %v5474_v48 }
 0x11b   : > { %2941 = vst.msk [vmem:[%s5912_s27 + $0x4] sm:$0xf] %vm2890_vm5, %v4649_v51  ;;  %v2920_v59 = vmax.f32 %v2911_v55, %v2917_v56  ;;  %v3569_v60 = vld [vmem:[#allocation2 + $0x47e] ss:$2 sm:$0xff]  ;;  %v3575_v62 = vld [vmem:[#allocation2 + $0x47f] ss:$2 sm:$0xff]  ;;  %4992 = vmatprep.mubr.msk.bf16.mxu0 %vm5553_vm2, %v5551_v1  ;;  %5260 = vmatprep.mubr.msk.bf16.mxu1 %vm5553_vm2, %v5551_v1 }
 0x11c   : > { %2639 = vst.msk [vmem:[#allocation2 + $0x68] sm:$0xff] %vm2625_vm4, %v1615_v52  ;;  %v3580_v2 = vmax.f32 %v3569_v60, %v3575_v62  ;;  %2773 = vst.msk [vmem:[#allocation2 + $0x498] sm:$0xff] %vm2625_vm4, %v2151_v57  ;;  %v5478_v38 = vld [vmem:[%s5602_s21 + $0x330] sm:$0xff]   ;;  %v5479_v60 = vld [vmem:[%s5602_s21 + $0x120] sm:$0xff]  }
 0x11d   : > { %v2923_v3 = vmax.f32 %v2905_v58, %v2920_v59  ;;  %v1619_v5 = vpop.f32.mrb[28].mxu0  ;;  %v2155_v8 = vpop.f32.mrb[28].mxu1 }
 0x11e   : > { %v3583_v4 = vmax.f32 %v3565_v0, %v3580_v2  ;;  %v1620_v7 = vadd.f32 %v5819_v61, %v1619_v5  ;;  %v4886_v9 = vpop.f32.mrb[29].mxu0  ;;  %v2156_v14 = vadd.f32 %v5819_v61, %v2155_v8  ;;  %v5154_v15 = vpop.f32.mrb[29].mxu1 }
 0x11f   : > { %v2926_v6 = vmax.f32 %v2923_v3, 0.0  ;;  %v1622_v16 = vpop.f32.mrb[30].mxu0  ;;  %v2158_v22 = vpop.f32.mrb[30].mxu1  ;;  %v5480_v3 = vld [vmem:[%s5602_s21 + $0x338] sm:$0xff]  }
 0x120   : > { %v3586_v13 = vmax.f32 %v3583_v4, 0.0  ;;  %2640 = vst.msk [vmem:[#allocation2 + $0x70] sm:$0xff] %vm2625_vm4, %v1620_v7  ;;  %v1623_v21 = vadd.f32 %v5819_v61, %v1622_v16  ;;  %v4887_v23 = vpop.f32.mrb[31].mxu0  ;;  %2774 = vst.msk [vmem:[#allocation2 + $0x4a0] sm:$0xff] %vm2625_vm4, %v2156_v14  ;;  %v2159_v25 = vadd.f32 %v5819_v61, %v2158_v22  ;;  %v5155_v26 = vpop.f32.mrb[31].mxu1 }
 0x121   : > { %v4650_v20 = vpack.c.bf16 %v2926_v6, %v2926_v6  ;;  %v4574_v4 = vld [vmem:[%s5912_s27 + $0x98] sm:$0xf] }
 0x122   : > { %v4684_v24 = vpack.c.bf16 %v3586_v13, %v3586_v13  ;;  %2641 = vst.msk [vmem:[#allocation2 + $0x78] sm:$0xff] %vm2625_vm4, %v1623_v21  ;;  %4993 = vmatmul.mubr.msk.bf16.gmra.mrb[136].mxu0 %vm1122_vm3, %v5475_v10  ;;  %2775 = vst.msk [vmem:[#allocation2 + $0x4a8] sm:$0xff] %vm2625_vm4, %v2159_v25  ;;  %5261 = vmatmul.mubr.msk.bf16.gmra.mrb[136].mxu1 %vm1122_vm3, %v5476_v17  ;;  %v5481_v17 = vld [vmem:[%s5602_s21 + $0x128] sm:$0xff]  }
 0x123   : > { %v2946_v27 = vsel %vm5950_vm7, %v4650_v20, %v2945_v12  ;;  %v3571_v28 = vld [vmem:[#allocation2 + $0x48e] ss:$2 sm:$0xff]  ;;  %v3577_v29 = vld [vmem:[#allocation2 + $0x48f] ss:$2 sm:$0xff]  ;;  %4996 = vmatprep.mubr.msk.bf16.mxu0 %vm5553_vm2, %v5551_v1  ;;  %5264 = vmatprep.mubr.msk.bf16.mxu1 %vm5553_vm2, %v5551_v1 }
 0x124   : > { %2947 = vst [vmem:[%s5912_s27 + $0x8] sm:$0xf] %v2946_v27  ;;  %4572 = vst.msk [vmem:[%s5912_s27 + $0x90] sm:$0xf] %vm2890_vm5, %v4684_v24  ;;  %v3581_v31 = vmax.f32 %v3571_v28, %v3577_v29  ;;  %v2949_v19 = vld [vmem:[#allocation2 + $0x5c] ss:$2 sm:$0xff] }
 0x125   : > { %v1627_v33 = vpop.f32.mrb[32].mxu0  ;;  %v2163_v35 = vpop.f32.mrb[32].mxu1  ;;  %v2955_v20 = vld [vmem:[#allocation2 + $0x5d] ss:$2 sm:$0xff] }
 0x126   : > { %v3584_v32 = vmax.f32 %v3566_v30, %v3581_v31  ;;  %v1628_v34 = vadd.f32 %v5819_v61, %v1627_v33  ;;  %v4890_v36 = vpop.f32.mrb[33].mxu0  ;;  %v2164_v41 = vadd.f32 %v5819_v61, %v2163_v35  ;;  %v5158_v42 = vpop.f32.mrb[33].mxu1  ;;  %v2960_v31 = vmax.f32 %v2949_v19, %v2955_v20 }
 0x127   : > { %v1630_v43 = vpop.f32.mrb[34].mxu0  ;;  %v2166_v46 = vpop.f32.mrb[34].mxu1 }
 0x128   : > { %v3587_v40 = vmax.f32 %v3584_v32, 0.0  ;;  %2642 = vst.msk [vmem:[#allocation2 + $0x80] sm:$0xff] %vm2625_vm4, %v1628_v34  ;;  %v1631_v45 = vadd.f32 %v5819_v61, %v1630_v43  ;;  %v4891_v47 = vpop.f32.mrb[35].mxu0  ;;  %2776 = vst.msk [vmem:[#allocation2 + $0x4b0] sm:$0xff] %vm2625_vm4, %v2164_v41  ;;  %v2167_v49 = vadd.f32 %v5819_v61, %v2166_v46  ;;  %v5159_v50 = vpop.f32.mrb[35].mxu1 }
 0x129   : > { %v3573_v51 = vld [vmem:[#allocation2 + $0x49e] ss:$2 sm:$0x7f]  ;;  %v3579_v52 = vld [vmem:[#allocation2 + $0x49f] ss:$2 sm:$0x7f] }
 0x12a   : > { %v4685_v48 = vpack.c.bf16 %v3587_v40, %v3587_v40  ;;  %2643 = vst.msk [vmem:[#allocation2 + $0x88] sm:$0xff] %vm2625_vm4, %v1631_v45  ;;  %4997 = vmatmul.mubr.msk.bf16.gmra.mrb[140].mxu0 %vm1122_vm3, %v5477_v37  ;;  %v3582_v54 = vmax.f32 %v3573_v51, %v3579_v52  ;;  %2777 = vst.msk [vmem:[#allocation2 + $0x4b8] sm:$0xff] %vm2625_vm4, %v2167_v49  ;;  %5265 = vmatmul.mubr.msk.bf16.gmra.mrb[140].mxu1 %vm1122_vm3, %v5478_v38  ;;  %v5484_v40 = vld [vmem:[%s5602_s21 + $0x348] sm:$0xff]  }
 0x12b   : > { %5000 = vmatprep.mubr.msk.bf16.mxu0 %vm5553_vm2, %v5551_v1  ;;  %5268 = vmatprep.mubr.msk.bf16.mxu1 %vm5553_vm2, %v5551_v1  ;;  %v2951_v41 = vld [vmem:[#allocation2 + $0x6c] ss:$2 sm:$0xff]  ;;  %v2957_v42 = vld [vmem:[#allocation2 + $0x6d] ss:$2 sm:$0xff] }
 0x12c   : > { %4573 = vst.msk [vmem:[%s5912_s27 + $0x94] sm:$0xf] %vm2890_vm5, %v4685_v48  ;;  %v3585_v55 = vmax.f32 %v3567_v53, %v3582_v54  ;;  %v2961_v54 = vmax.f32 %v2951_v41, %v2957_v42 }
 0x12d   : > { %v1635_v56 = vpop.f32.mrb[36].mxu0  ;;  %v2171_v58 = vpop.f32.mrb[36].mxu1 }
 0x12e   : > { %v1636_v57 = vadd.f32 %v5819_v61, %v1635_v56  ;;  %v4894_v59 = vpop.f32.mrb[37].mxu0  ;;  %v3588_v62 = vmax.f32 %v3585_v55, 0.0  ;;  %v2172_v63 = vadd.f32 %v5819_v61, %v2171_v58  ;;  %v5162_v0 = vpop.f32.mrb[37].mxu1 }
 0x12f   : > { %v1638_v2 = vpop.f32.mrb[38].mxu0  ;;  %v2174_v6 = vpop.f32.mrb[38].mxu1 }
 0x130   : > { %2644 = vst.msk [vmem:[#allocation2 + $0x90] sm:$0xff] %vm2625_vm4, %v1636_v57  ;;  %v1639_v5 = vadd.f32 %v5819_v61, %v1638_v2  ;;  %v4895_v7 = vpop.f32.mrb[39].mxu0  ;;  %v4686_v8 = vpack.c.bf16 %v3588_v62, %v3588_v62  ;;  %2778 = vst.msk [vmem:[#allocation2 + $0x4c0] sm:$0xff] %vm2625_vm4, %v2172_v63  ;;  %v2175_v9 = vadd.f32 %v5819_v61, %v2174_v6  ;;  %v5163_v10 = vpop.f32.mrb[39].mxu1  ;;  %v5485_v2 = vld [vmem:[%s5602_s21 + $0x138] sm:$0xff]  }
 0x131   : > { %v2953_v56 = vld [vmem:[#allocation2 + $0x7c] ss:$2 sm:$0x7f]  ;;  %v2959_v58 = vld [vmem:[#allocation2 + $0x7d] ss:$2 sm:$0x7f] }
 0x132   : > { %2645 = vst.msk [vmem:[#allocation2 + $0x98] sm:$0xff] %vm2625_vm4, %v1639_v5  ;;  %5001 = vmatmul.mubr.msk.bf16.gmra.mrb[144].mxu0 %vm1122_vm3, %v5479_v60  ;;  %v3606_v12 = vsel %vm5950_vm7, %v4686_v8, %v4574_v4  ;;  %2779 = vst.msk [vmem:[#allocation2 + $0x4c8] sm:$0xff] %vm2625_vm4, %v2175_v9  ;;  %5269 = vmatmul.mubr.msk.bf16.gmra.mrb[144].mxu1 %vm1122_vm3, %v5480_v3  ;;  %v5486_v3 = vld [vmem:[%s5602_s21 + $0x350] sm:$0xff]   ;;  %v2962_v7 = vmax.f32 %v2953_v56, %v2959_v58  ;;  %v5489_v58 = vld [vmem:[%s5602_s21 + $0x148] sm:$0xff]  }
 0x133   : > { %5004 = vmatprep.mubr.msk.bf16.mxu0 %vm5553_vm2, %v5551_v1  ;;  %4575 = vst [vmem:[%s5912_s27 + $0x98] sm:$0xf] %v3606_v12  ;;  %5272 = vmatprep.mubr.msk.bf16.mxu1 %vm5553_vm2, %v5551_v1  ;;  %v3609_v8 = vld [vmem:[#allocation2 + $0x4ac] ss:$2 sm:$0xff]  ;;  %v3615_v9 = vld [vmem:[#allocation2 + $0x4ad] ss:$2 sm:$0xff] }
 0x135   : > { %v1643_v13 = vpop.f32.mrb[40].mxu0  ;;  %v2179_v15 = vpop.f32.mrb[40].mxu1 }
 0x136   : > { %v1644_v14 = vadd.f32 %v5819_v61, %v1643_v13  ;;  %v4898_v16 = vpop.f32.mrb[41].mxu0  ;;  %v2180_v21 = vadd.f32 %v5819_v61, %v2179_v15  ;;  %v5166_v22 = vpop.f32.mrb[41].mxu1 }
 0x137   : > { %v1646_v23 = vpop.f32.mrb[42].mxu0  ;;  %v2182_v25 = vpop.f32.mrb[42].mxu1 }
 0x138   : > { %2646 = vst.msk [vmem:[#allocation2 + $0xa0] sm:$0xff] %vm2625_vm4, %v1644_v14  ;;  %v1647_v24 = vadd.f32 %v5819_v61, %v1646_v23  ;;  %v4899_v26 = vpop.f32.mrb[43].mxu0  ;;  %2780 = vst.msk [vmem:[#allocation2 + $0x4d0] sm:$0xff] %vm2625_vm4, %v2180_v21  ;;  %v2183_v29 = vadd.f32 %v5819_v61, %v2182_v25  ;;  %v5167_v30 = vpop.f32.mrb[43].mxu1  ;;  %v3620_v23 = vmax.f32 %v3609_v8, %v3615_v9 }
 0x139   : > { %v2964_v27 = vld [vmem:[#allocation2 + $0x8a] ss:$2 sm:$0xff]  ;;  %v2970_v28 = vld [vmem:[#allocation2 + $0x8b] ss:$2 sm:$0xff] }
 0x13a   : > { %v2975_v32 = vmax.f32 %v2964_v27, %v2970_v28  ;;  %2647 = vst.msk [vmem:[#allocation2 + $0xa8] sm:$0xff] %vm2625_vm4, %v1647_v24  ;;  %5005 = vmatmul.mubr.msk.bf16.gmra.mrb[148].mxu0 %vm1122_vm3, %v5481_v17  ;;  %2781 = vst.msk [vmem:[#allocation2 + $0x4d8] sm:$0xff] %vm2625_vm4, %v2183_v29  ;;  %5273 = vmatmul.mubr.msk.bf16.gmra.mrb[148].mxu1 %vm1122_vm3, %v5482_v18  ;;  %v4497_v26 = vld [vmem:[%s5912_s27 + $0x14] sm:$0xf]  ;;  %v3611_v42 = vld [vmem:[#allocation2 + $0x4bc] ss:$2 sm:$0xff] }
 0x13b   : > { %5008 = vmatprep.mubr.msk.bf16.mxu0 %vm5553_vm2, %v5551_v1  ;;  %5276 = vmatprep.mubr.msk.bf16.mxu1 %vm5553_vm2, %v5551_v1 }
 0x13c   : > { %v2978_v33 = vmax.f32 %v2960_v31, %v2975_v32 }
 0x13d   : > { %v1651_v34 = vpop.f32.mrb[44].mxu0  ;;  %v2187_v37 = vpop.f32.mrb[44].mxu1 }
 0x13e   : > { %v2981_v35 = vmax.f32 %v2978_v33, 0.0  ;;  %v1652_v36 = vadd.f32 %v5819_v61, %v1651_v34  ;;  %v4902_v38 = vpop.f32.mrb[45].mxu0  ;;  %v2188_v43 = vadd.f32 %v5819_v61, %v2187_v37  ;;  %v5170_v44 = vpop.f32.mrb[45].mxu1  ;;  %v5487_v33 = vld [vmem:[%s5602_s21 + $0x140] sm:$0xff]   ;;  %v5488_v37 = vld [vmem:[%s5602_s21 + $0x358] sm:$0xff]  }
 0x13f   : > { %v1654_v45 = vpop.f32.mrb[46].mxu0  ;;  %v2190_v48 = vpop.f32.mrb[46].mxu1 }
 0x140   : > { %v4651_v46 = vpack.c.bf16 %v2981_v35, %v2981_v35  ;;  %2648 = vst.msk [vmem:[#allocation2 + $0xb0] sm:$0xff] %vm2625_vm4, %v1652_v36  ;;  %v1655_v47 = vadd.f32 %v5819_v61, %v1654_v45  ;;  %v4903_v49 = vpop.f32.mrb[47].mxu0  ;;  %2782 = vst.msk [vmem:[#allocation2 + $0x4e0] sm:$0xff] %vm2625_vm4, %v2188_v43  ;;  %v2191_v52 = vadd.f32 %v5819_v61, %v2190_v48  ;;  %v5171_v53 = vpop.f32.mrb[47].mxu1  ;;  %v3617_v43 = vld [vmem:[#allocation2 + $0x4bd] ss:$2 sm:$0xff] }
 0x141   : > { %v2966_v50 = vld [vmem:[#allocation2 + $0x9a] ss:$2 sm:$0xff]  ;;  %v2972_v51 = vld [vmem:[#allocation2 + $0x9b] ss:$2 sm:$0xff] }
 0x142   : > { %4495 = vst.msk [vmem:[%s5912_s27 + $0xc] sm:$0xf] %vm2890_vm5, %v4651_v46  ;;  %v2976_v55 = vmax.f32 %v2966_v50, %v2972_v51  ;;  %5009 = vmatmul.mubr.msk.bf16.gmra.mrb[152].mxu0 %vm1122_vm3, %v5483_v39  ;;  %5277 = vmatmul.mubr.msk.bf16.gmra.mrb[152].mxu1 %vm1122_vm3, %v5484_v40  ;;  %v3621_v50 = vmax.f32 %v3611_v42, %v3617_v43  ;;  %v3613_v53 = vld [vmem:[#allocation2 + $0x4cc] ss:$2 sm:$0x7f] }
 0x143   : > { %2649 = vst.msk [vmem:[#allocation2 + $0xb8] sm:$0xff] %vm2625_vm4, %v1655_v47  ;;  %2783 = vst.msk [vmem:[#allocation2 + $0x4e8] sm:$0xff] %vm2625_vm4, %v2191_v52  ;;  %5012 = vmatprep.mubr.msk.bf16.mxu0 %vm5553_vm2, %v5551_v1  ;;  %5280 = vmatprep.mubr.msk.bf16.mxu1 %vm5553_vm2, %v5551_v1 }
 0x144   : > { %v2979_v57 = vmax.f32 %v2961_v54, %v2976_v55 }
 0x145   : > { %v1659_v59 = vpop.f32.mrb[48].mxu0  ;;  %v2195_v63 = vpop.f32.mrb[48].mxu1 }
 0x146   : > { %v2982_v60 = vmax.f32 %v2979_v57, 0.0  ;;  %v1660_v62 = vadd.f32 %v5819_v61, %v1659_v59  ;;  %v4906_v0 = vpop.f32.mrb[49].mxu0  ;;  %v2196_v6 = vadd.f32 %v5819_v61, %v2195_v63  ;;  %v5174_v13 = vpop.f32.mrb[49].mxu1  ;;  %v3619_v59 = vld [vmem:[#allocation2 + $0x4cd] ss:$2 sm:$0x7f] }
 0x147   : > { %v2968_v4 = vld [vmem:[#allocation2 + $0xaa] ss:$2 sm:$0x7f]  ;;  %v2974_v5 = vld [vmem:[#allocation2 + $0xab] ss:$2 sm:$0x7f] }
 0x148   : > { %v4652_v10 = vpack.c.bf16 %v2982_v60, %v2982_v60  ;;  %v2977_v12 = vmax.f32 %v2968_v4, %v2974_v5  ;;  %2650 = vst.msk [vmem:[#allocation2 + $0xc0] sm:$0xff] %vm2625_vm4, %v1660_v62  ;;  %v1662_v14 = vpop.f32.mrb[50].mxu0  ;;  %2784 = vst.msk [vmem:[#allocation2 + $0x4f0] sm:$0xff] %vm2625_vm4, %v2196_v6  ;;  %v2198_v16 = vpop.f32.mrb[50].mxu1  ;;  %v5490_v63 = vld [vmem:[%s5602_s21 + $0x360] sm:$0xff]  }
 0x149   : > { %v1663_v15 = vadd.f32 %v5819_v61, %v1662_v14  ;;  %v4907_v17 = vpop.f32.mrb[51].mxu0  ;;  %v2199_v21 = vadd.f32 %v5819_v61, %v2198_v16  ;;  %v5175_v22 = vpop.f32.mrb[51].mxu1 }
 0x14a   : > { %4496 = vst.msk [vmem:[%s5912_s27 + $0x10] sm:$0xf] %vm2890_vm5, %v4652_v10  ;;  %v2980_v18 = vmax.f32 %v2962_v7, %v2977_v12  ;;  %v3624_v19 = vld [vmem:[#allocation2 + $0x4da] ss:$2 sm:$0xff]  ;;  %v3630_v20 = vld [vmem:[#allocation2 + $0x4db] ss:$2 sm:$0xff]  ;;  %5013 = vmatmul.mubr.msk.bf16.gmra.mrb[156].mxu0 %vm1122_vm3, %v5485_v2  ;;  %5281 = vmatmul.mubr.msk.bf16.gmra.mrb[156].mxu1 %vm1122_vm3, %v5486_v3  ;;  %v3622_v10 = vmax.f32 %v3613_v53, %v3619_v59 }
 0x14b   : > { %v3635_v24 = vmax.f32 %v3624_v19, %v3630_v20  ;;  %2651 = vst.msk [vmem:[#allocation2 + $0xc8] sm:$0xff] %vm2625_vm4, %v1663_v15  ;;  %5016 = vmatprep.mubr.msk.bf16.mxu0 %vm5553_vm2, %v5551_v1  ;;  %2785 = vst.msk [vmem:[#allocation2 + $0x4f8] sm:$0xff] %vm2625_vm4, %v2199_v21  ;;  %5284 = vmatprep.mubr.msk.bf16.mxu1 %vm5553_vm2, %v5551_v1  ;;  %v5491_v20 = vld [vmem:[%s5602_s21 + $0x150] sm:$0xff]   ;;  %v4581_v21 = vld [vmem:[%s5912_s27 + $0xa4] sm:$0xf] }
 0x14c   : > { %v2983_v25 = vmax.f32 %v2980_v18, 0.0 }
 0x14d   : > { %v3638_v27 = vmax.f32 %v3620_v23, %v3635_v24  ;;  %v1667_v28 = vpop.f32.mrb[52].mxu0  ;;  %v2203_v31 = vpop.f32.mrb[52].mxu1  ;;  %v5492_v23 = vld [vmem:[%s5602_s21 + $0x368] sm:$0xff]  }
 0x14e   : > { %v4653_v29 = vpack.c.bf16 %v2983_v25, %v2983_v25  ;;  %v1668_v30 = vadd.f32 %v5819_v61, %v1667_v28  ;;  %v4910_v32 = vpop.f32.mrb[53].mxu0  ;;  %v2204_v35 = vadd.f32 %v5819_v61, %v2203_v31  ;;  %v5178_v41 = vpop.f32.mrb[53].mxu1 }
 0x14f   : > { %v3641_v34 = vmax.f32 %v3638_v27, 0.0  ;;  %v1670_v36 = vpop.f32.mrb[54].mxu0  ;;  %v2206_v45 = vpop.f32.mrb[54].mxu1 }
 0x150   : > { %v3001_v38 = vsel %vm5950_vm7, %v4653_v29, %v4497_v26  ;;  %2652 = vst.msk [vmem:[#allocation2 + $0xd0] sm:$0xff] %vm2625_vm4, %v1668_v30  ;;  %v1671_v39 = vadd.f32 %v5819_v61, %v1670_v36  ;;  %v4911_v40 = vpop.f32.mrb[55].mxu0  ;;  %2786 = vst.msk [vmem:[#allocation2 + $0x500] sm:$0xff] %vm2625_vm4, %v2204_v35  ;;  %v2207_v46 = vadd.f32 %v5819_v61, %v2206_v45  ;;  %v5179_v47 = vpop.f32.mrb[55].mxu1 }
 0x151   : > { %4498 = vst [vmem:[%s5912_s27 + $0x14] sm:$0xf] %v3001_v38  ;;  %v4687_v44 = vpack.c.bf16 %v3641_v34, %v3641_v34  ;;  %v3010_v34 = vld [vmem:[#allocation2 + $0xb9] ss:$2 sm:$0xff]  ;;  %v5494_v40 = vld [vmem:[%s5602_s21 + $0x370] sm:$0xff]  }
 0x152   : > { %2653 = vst.msk [vmem:[#allocation2 + $0xd8] sm:$0xff] %vm2625_vm4, %v1671_v39  ;;  %5017 = vmatmul.mubr.msk.bf16.gmra.mrb[160].mxu0 %vm1122_vm3, %v5487_v33  ;;  %v3626_v48 = vld [vmem:[#allocation2 + $0x4ea] ss:$2 sm:$0xff]  ;;  %v3632_v49 = vld [vmem:[#allocation2 + $0x4eb] ss:$2 sm:$0xff]  ;;  %5285 = vmatmul.mubr.msk.bf16.gmra.mrb[160].mxu1 %vm1122_vm3, %v5488_v37  ;;  %2787 = vst.msk [vmem:[#allocation2 + $0x508] sm:$0xff] %vm2625_vm4, %v2207_v46 }
 0x153   : > { %4579 = vst.msk [vmem:[%s5912_s27 + $0x9c] sm:$0xf] %vm2890_vm5, %v4687_v44  ;;  %5020 = vmatprep.mubr.msk.bf16.mxu0 %vm5553_vm2, %v5551_v1  ;;  %v3636_v51 = vmax.f32 %v3626_v48, %v3632_v49  ;;  %5288 = vmatprep.mubr.msk.bf16.mxu1 %vm5553_vm2, %v5551_v1  ;;  %v3004_v33 = vld [vmem:[#allocation2 + $0xb8] ss:$2 sm:$0xff] }
 0x154   : > { %v5493_v39 = vld [vmem:[%s5602_s21 + $0x158] sm:$0xff]   ;;  %v3015_v46 = vmax.f32 %v3004_v33, %v3010_v34 }
 0x155   : > { %v1675_v52 = vpop.f32.mrb[56].mxu0  ;;  %v3639_v54 = vmax.f32 %v3621_v50, %v3636_v51  ;;  %v2211_v57 = vpop.f32.mrb[56].mxu1 }
 0x156   : > { %v1676_v55 = vadd.f32 %v5819_v61, %v1675_v52  ;;  %v4914_v56 = vpop.f32.mrb[57].mxu0  ;;  %v2212_v60 = vadd.f32 %v5819_v61, %v2211_v57  ;;  %v5182_v0 = vpop.f32.mrb[57].mxu1 }
 0x157   : > { %v1678_v62 = vpop.f32.mrb[58].mxu0  ;;  %v3642_v2 = vmax.f32 %v3639_v54, 0.0  ;;  %v3628_v3 = vld [vmem:[#allocation2 + $0x4fa] ss:$2 sm:$0x7f]  ;;  %v2214_v6 = vpop.f32.mrb[58].mxu1 }
 0x158   : > { %2654 = vst.msk [vmem:[#allocation2 + $0xe0] sm:$0xff] %vm2625_vm4, %v1676_v55  ;;  %v1679_v4 = vadd.f32 %v5819_v61, %v1678_v62  ;;  %v4915_v5 = vpop.f32.mrb[59].mxu0  ;;  %v3634_v7 = vld [vmem:[#allocation2 + $0x4fb] ss:$2 sm:$0x7f]  ;;  %2788 = vst.msk [vmem:[#allocation2 + $0x510] sm:$0xff] %vm2625_vm4, %v2212_v60  ;;  %v2215_v8 = vadd.f32 %v5819_v61, %v2214_v6 }
 0x159   : > { %v5183_v9 = vpop.f32.mrb[59].mxu1  ;;  %v4688_v12 = vpack.c.bf16 %v3642_v2, %v3642_v2  ;;  %v3637_v13 = vmax.f32 %v3628_v3, %v3634_v7  ;;  %v3012_v55 = vld [vmem:[#allocation2 + $0xc9] ss:$2 sm:$0xff]  ;;  %v5496_v0 = vld [vmem:[%s5602_s21 + $0x378] sm:$0xff]  }
 0x15a   : > { %2655 = vst.msk [vmem:[#allocation2 + $0xe8] sm:$0xff] %vm2625_vm4, %v1679_v4  ;;  %5021 = vmatmul.mubr.msk.bf16.gmra.mrb[164].mxu0 %vm1122_vm3, %v5489_v58  ;;  %5289 = vmatmul.mubr.msk.bf16.gmra.mrb[164].mxu1 %vm1122_vm3, %v5490_v63  ;;  %2789 = vst.msk [vmem:[#allocation2 + $0x518] sm:$0xff] %vm2625_vm4, %v2215_v8  ;;  %v6143_v58 = vld [vmem:[%s6882_s2] ss:$0 sm:$0xff] }
 0x15b   : > { %5024 = vmatprep.mubr.msk.bf16.mxu0 %vm5553_vm2, %v5551_v1  ;;  %4580 = vst.msk [vmem:[%s5912_s27 + $0xa0] sm:$0xf] %vm2890_vm5, %v4688_v12  ;;  %v3640_v14 = vmax.f32 %v3622_v10, %v3637_v13  ;;  %5292 = vmatprep.mubr.msk.bf16.mxu1 %vm5553_vm2, %v5551_v1  ;;  %v5495_v63 = vld [vmem:[%s5602_s21 + $0x160] sm:$0xff]  }
 0x15d   : > { %v1683_v15 = vpop.f32.mrb[60].mxu0  ;;  %v3643_v16 = vmax.f32 %v3640_v14, 0.0  ;;  %v2219_v19 = vpop.f32.mrb[60].mxu1 }
 0x15e   : > { %v1684_v17 = vadd.f32 %v5819_v61, %v1683_v15  ;;  %v4918_v18 = vpop.f32.mrb[61].mxu0  ;;  %v2220_v22 = vadd.f32 %v5819_v61, %v2219_v19  ;;  %v5186_v26 = vpop.f32.mrb[61].mxu1 }
 0x15f   : > { %v4689_v24 = vpack.c.bf16 %v3643_v16, %v3643_v16  ;;  %v1686_v25 = vpop.f32.mrb[62].mxu0  ;;  %v2222_v29 = vpop.f32.mrb[62].mxu1  ;;  %v3008_v16 = vld [vmem:[#allocation2 + $0xd8] ss:$2 sm:$0x7f] }
 0x160   : > { %2656 = vst.msk [vmem:[#allocation2 + $0xf0] sm:$0xff] %vm2625_vm4, %v1684_v17  ;;  %2790 = vst.msk [vmem:[#allocation2 + $0x520] sm:$0xff] %vm2625_vm4, %v2220_v22  ;;  %v1687_v27 = vadd.f32 %v5819_v61, %v1686_v25  ;;  %v4919_v28 = vpop.f32.mrb[63].mxu0  ;;  %v2223_v31 = vadd.f32 %v5819_v61, %v2222_v29  ;;  %v5187_v32 = vpop.f32.mrb[63].mxu1  ;;  %v3664_v22 = vld [vmem:[#allocation2 + $0x508] ss:$2 sm:$0xff] }
 0x161   : > { %v3661_v30 = vsel %vm5950_vm7, %v4689_v24, %v4581_v21  ;;  %v3014_v18 = vld [vmem:[#allocation2 + $0xd9] ss:$2 sm:$0x7f] }
 0x162   : > { %5025 = vmatmul.mubr.msk.bf16.gmra.mrb[168].mxu0 %vm1122_vm3, %v5491_v20  ;;  %4582 = vst [vmem:[%s5912_s27 + $0xa4] sm:$0xf] %v3661_v30  ;;  %2657 = vst.msk [vmem:[#allocation2 + $0xf8] sm:$0xff] %vm2625_vm4, %v1687_v27  ;;  %5293 = vmatmul.mubr.msk.bf16.gmra.mrb[168].mxu1 %vm1122_vm3, %v5492_v23  ;;  %v5497_v20 = vld [vmem:[%s5602_s21 + $0x168] sm:$0xff]   ;;  %v5498_v21 = vld [vmem:[%s5602_s21 + $0x380] sm:$0xff]  }
 0x163   : > { %5028 = vmatprep.mubr.msk.bf16.mxu0 %vm5553_vm2, %v5551_v1  ;;  %2791 = vst.msk [vmem:[#allocation2 + $0x528] sm:$0xff] %vm2625_vm4, %v2223_v31  ;;  %5296 = vmatprep.mubr.msk.bf16.mxu1 %vm5553_vm2, %v5551_v1  ;;  %v3670_v23 = vld [vmem:[#allocation2 + $0x509] ss:$2 sm:$0xff]  ;;  %v3017_v31 = vmax.f32 %v3008_v16, %v3014_v18 }
 0x165   : > { %v1691_v35 = vpop.f32.mrb[64].mxu0  ;;  %v2227_v38 = vpop.f32.mrb[64].mxu1 }
 0x166   : > { %v1692_v36 = vadd.f32 %v5819_v61, %v1691_v35  ;;  %v4922_v37 = vpop.f32.mrb[65].mxu0  ;;  %v2228_v43 = vadd.f32 %v5819_v61, %v2227_v38  ;;  %v5190_v45 = vpop.f32.mrb[65].mxu1 }
 0x167   : > { %v3019_v41 = vld [vmem:[#allocation2 + $0xe6] ss:$2 sm:$0xff]  ;;  %v3025_v42 = vld [vmem:[#allocation2 + $0xe7] ss:$2 sm:$0xff]  ;;  %v1694_v44 = vpop.f32.mrb[66].mxu0  ;;  %v2230_v50 = vpop.f32.mrb[66].mxu1  ;;  %v3675_v37 = vmax.f32 %v3664_v22, %v3670_v23 }
 0x168   : > { %v3030_v47 = vmax.f32 %v3019_v41, %v3025_v42  ;;  %2658 = vst.msk [vmem:[#allocation2 + $0x100] sm:$0xff] %vm2625_vm4, %v1692_v36  ;;  %v1695_v48 = vadd.f32 %v5819_v61, %v1694_v44  ;;  %v4923_v49 = vpop.f32.mrb[67].mxu0  ;;  %2792 = vst.msk [vmem:[#allocation2 + $0x530] sm:$0xff] %vm2625_vm4, %v2228_v43  ;;  %v2231_v51 = vadd.f32 %v5819_v61, %v2230_v50  ;;  %v5191_v52 = vpop.f32.mrb[67].mxu1  ;;  %v3006_v61 = vld [vmem:[#allocation2 + $0xc8] ss:$2 sm:$0xff] }
 0x169   : > { %v3016_v7 = vmax.f32 %v3006_v61, %v3012_v55  ;;  %v5499_v50 = vld [vmem:[%s5602_s21 + $0x170] sm:$0xff]   ;;  %v3672_v52 = vld [vmem:[#allocation2 + $0x519] ss:$2 sm:$0xff] }
 0x16a   : > { %v3033_v53 = vmax.f32 %v3015_v46, %v3030_v47  ;;  %2659 = vst.msk [vmem:[#allocation2 + $0x108] sm:$0xff] %vm2625_vm4, %v1695_v48  ;;  %5029 = vmatmul.mubr.msk.bf16.gmra.mrb[172].mxu0 %vm1122_vm3, %v5493_v39  ;;  %5297 = vmatmul.mubr.msk.bf16.gmra.mrb[172].mxu1 %vm1122_vm3, %v5494_v40  ;;  %2793 = vst.msk [vmem:[#allocation2 + $0x538] sm:$0xff] %vm2625_vm4, %v2231_v51  ;;  %v4504_v47 = vld [vmem:[%s5912_s27 + $0x20] sm:$0xf]  ;;  %v5502_v23 = vld [vmem:[%s5602_s21 + $0x390] sm:$0xff]  }
 0x16b   : > { %5032 = vmatprep.mubr.msk.bf16.mxu0 %vm5553_vm2, %v5551_v1  ;;  %5300 = vmatprep.mubr.msk.bf16.mxu1 %vm5553_vm2, %v5551_v1  ;;  %v3666_v51 = vld [vmem:[#allocation2 + $0x518] ss:$2 sm:$0xff] }
 0x16c   : > { %v3036_v54 = vmax.f32 %v3033_v53, 0.0 }
 0x16d   : > { %v1699_v56 = vpop.f32.mrb[68].mxu0  ;;  %v2235_v60 = vpop.f32.mrb[68].mxu1 }
 0x16e   : > { %v4654_v57 = vpack.c.bf16 %v3036_v54, %v3036_v54  ;;  %v1700_v59 = vadd.f32 %v6143_v58, %v1699_v56  ;;  %v4926_v62 = vpop.f32.mrb[69].mxu0  ;;  %v2236_v4 = vadd.f32 %v6143_v58, %v2235_v60  ;;  %v5194_v6 = vpop.f32.mrb[69].mxu1  ;;  %v5500_v60 = vld [vmem:[%s5602_s21 + $0x388] sm:$0xff]  }
 0x16f   : > { %v3021_v2 = vld [vmem:[#allocation2 + $0xf6] ss:$2 sm:$0xff]  ;;  %v3027_v3 = vld [vmem:[#allocation2 + $0xf7] ss:$2 sm:$0xff]  ;;  %v1702_v5 = vpop.f32.mrb[70].mxu0  ;;  %v2238_v12 = vpop.f32.mrb[70].mxu1  ;;  %v3676_v6 = vmax.f32 %v3666_v51, %v3672_v52 }
 0x170   : > { %4502 = vst.msk [vmem:[%s5912_s27 + $0x18] sm:$0xf] %vm2890_vm5, %v4654_v57  ;;  %v3031_v8 = vmax.f32 %v3021_v2, %v3027_v3  ;;  %v1703_v9 = vadd.f32 %v6143_v58, %v1702_v5  ;;  %v4927_v10 = vpop.f32.mrb[71].mxu0  ;;  %v2239_v14 = vadd.f32 %v6143_v58, %v2238_v12  ;;  %v5195_v15 = vpop.f32.mrb[71].mxu1 }
 0x171   : > { %2660 = vst.msk [vmem:[#allocation2 + $0x110] sm:$0xff] %vm2625_vm4, %v1700_v59  ;;  %2794 = vst.msk [vmem:[#allocation2 + $0x540] sm:$0xff] %vm2625_vm4, %v2236_v4  ;;  %v3668_v12 = vld [vmem:[#allocation2 + $0x528] ss:$2 sm:$0x7f] }
 0x172   : > { %v3034_v13 = vmax.f32 %v3016_v7, %v3031_v8  ;;  %2661 = vst.msk [vmem:[#allocation2 + $0x118] sm:$0xff] %vm2625_vm4, %v1703_v9  ;;  %5033 = vmatmul.mubr.msk.bf16.gmra.mrb[176].mxu0 %vm1122_vm3, %v5495_v63  ;;  %5301 = vmatmul.mubr.msk.bf16.gmra.mrb[176].mxu1 %vm1122_vm3, %v5496_v0  ;;  %2795 = vst.msk [vmem:[#allocation2 + $0x548] sm:$0xff] %vm2625_vm4, %v2239_v14  ;;  %v3674_v15 = vld [vmem:[#allocation2 + $0x529] ss:$2 sm:$0x7f] }
 0x173   : > { %5036 = vmatprep.mubr.msk.bf16.mxu0 %vm5553_vm2, %v5551_v1  ;;  %5304 = vmatprep.mubr.msk.bf16.mxu1 %vm5553_vm2, %v5551_v1 }
 0x174   : > { %v3037_v17 = vmax.f32 %v3034_v13, 0.0 }
 0x175   : > { %v1707_v19 = vpop.f32.mrb[72].mxu0  ;;  %v2243_v26 = vpop.f32.mrb[72].mxu1 }
 0x176   : > { %v4655_v24 = vpack.c.bf16 %v3037_v17, %v3037_v17  ;;  %v1708_v25 = vadd.f32 %v6143_v58, %v1707_v19  ;;  %v4930_v27 = vpop.f32.mrb[73].mxu0  ;;  %v2244_v30 = vadd.f32 %v6143_v58, %v2243_v26  ;;  %v5198_v36 = vpop.f32.mrb[73].mxu1  ;;  %v5501_v19 = vld [vmem:[%s5602_s21 + $0x178] sm:$0xff]  }
 0x177   : > { %v1710_v35 = vpop.f32.mrb[74].mxu0  ;;  %v2246_v41 = vpop.f32.mrb[74].mxu1 }
 0x178   : > { %v3023_v28 = vld [vmem:[#allocation2 + $0x106] ss:$2 sm:$0x7f]  ;;  %v3029_v29 = vld [vmem:[#allocation2 + $0x107] ss:$2 sm:$0x7f]  ;;  %v1711_v39 = vadd.f32 %v6143_v58, %v1710_v35  ;;  %v2247_v43 = vadd.f32 %v6143_v58, %v2246_v41 }
 0x179   : > { %4503 = vst.msk [vmem:[%s5912_s27 + $0x1c] sm:$0xf] %vm2890_vm5, %v4655_v24  ;;  %v3032_v32 = vmax.f32 %v3023_v28, %v3029_v29  ;;  %v3679_v33 = vld [vmem:[#allocation2 + $0x536] ss:$2 sm:$0xff]  ;;  %v3685_v34 = vld [vmem:[#allocation2 + $0x537] ss:$2 sm:$0xff]  ;;  %v3677_v28 = vmax.f32 %v3668_v12, %v3674_v15 }
 0x17a   : > { %2662 = vst.msk [vmem:[#allocation2 + $0x120] sm:$0xff] %vm2625_vm4, %v1708_v25  ;;  %v3690_v38 = vmax.f32 %v3679_v33, %v3685_v34  ;;  %2796 = vst.msk [vmem:[#allocation2 + $0x550] sm:$0xff] %vm2625_vm4, %v2244_v30  ;;  %v4931_v40 = vpop.f32.mrb[75].mxu0  ;;  %5037 = vmatmul.mubr.msk.bf16.gmra.mrb[180].mxu0 %vm1122_vm3, %v5497_v20  ;;  %v5199_v44 = vpop.f32.mrb[75].mxu1  ;;  %5305 = vmatmul.mubr.msk.bf16.gmra.mrb[180].mxu1 %vm1122_vm3, %v5498_v21  ;;  %v5503_v41 = vld [vmem:[%s5602_s21 + $0x180] sm:$0xff]   ;;  %v5507_v15 = vld [vmem:[%s5602_s21 + $0x190] sm:$0xff]  }
 0x17b   : > { %v3035_v42 = vmax.f32 %v3017_v31, %v3032_v32  ;;  %2663 = vst.msk [vmem:[#allocation2 + $0x128] sm:$0xff] %vm2625_vm4, %v1711_v39  ;;  %5040 = vmatprep.mubr.msk.bf16.mxu0 %vm5553_vm2, %v5551_v1  ;;  %2797 = vst.msk [vmem:[#allocation2 + $0x558] sm:$0xff] %vm2625_vm4, %v2247_v43  ;;  %5308 = vmatprep.mubr.msk.bf16.mxu1 %vm5553_vm2, %v5551_v1  ;;  %v5504_v44 = vld [vmem:[%s5602_s21 + $0x398] sm:$0xff]  }
 0x17c   : > { %v3693_v45 = vmax.f32 %v3675_v37, %v3690_v38  ;;  %v4588_v37 = vld [vmem:[%s5912_s27 + $0xb0] sm:$0xf] }
 0x17d   : > { %v3038_v46 = vmax.f32 %v3035_v42, 0.0  ;;  %v1715_v49 = vpop.f32.mrb[76].mxu0  ;;  %v2251_v61 = vpop.f32.mrb[76].mxu1 }
 0x17e   : > { %v3696_v48 = vmax.f32 %v3693_v45, 0.0  ;;  %v1716_v54 = vadd.f32 %v6143_v58, %v1715_v49  ;;  %v4934_v55 = vpop.f32.mrb[77].mxu0  ;;  %v2252_v57 = vadd.f32 %v6143_v58, %v2251_v61  ;;  %v5202_v62 = vpop.f32.mrb[77].mxu1 }
 0x17f   : > { %v4656_v53 = vpack.c.bf16 %v3038_v46, %v3038_v46  ;;  %v1718_v59 = vpop.f32.mrb[78].mxu0  ;;  %v2254_v5 = vpop.f32.mrb[78].mxu1 }
 0x180   : > { %v4690_v56 = vpack.c.bf16 %v3696_v48, %v3696_v48  ;;  %2664 = vst.msk [vmem:[#allocation2 + $0x130] sm:$0xff] %vm2625_vm4, %v1716_v54  ;;  %v1719_v3 = vadd.f32 %v6143_v58, %v1718_v59  ;;  %v4935_v4 = vpop.f32.mrb[79].mxu0  ;;  %2798 = vst.msk [vmem:[#allocation2 + $0x560] sm:$0xff] %vm2625_vm4, %v2252_v57  ;;  %v2255_v8 = vadd.f32 %v6143_v58, %v2254_v5  ;;  %v5203_v9 = vpop.f32.mrb[79].mxu1  ;;  %v5505_v59 = vld [vmem:[%s5602_s21 + $0x188] sm:$0xff]  }
 0x181   : > { %v3056_v63 = vsel %vm5950_vm7, %v4656_v53, %v4504_v47  ;;  %v3681_v0 = vld [vmem:[#allocation2 + $0x546] ss:$2 sm:$0xff]  ;;  %v3687_v2 = vld [vmem:[#allocation2 + $0x547] ss:$2 sm:$0xff] }
 0x182   : > { %4505 = vst [vmem:[%s5912_s27 + $0x20] sm:$0xf] %v3056_v63  ;;  %4586 = vst.msk [vmem:[%s5912_s27 + $0xa8] sm:$0xf] %vm2890_vm5, %v4690_v56  ;;  %v3691_v7 = vmax.f32 %v3681_v0, %v3687_v2  ;;  %5041 = vmatmul.mubr.msk.bf16.gmra.mrb[184].mxu0 %vm1122_vm3, %v5499_v50  ;;  %5309 = vmatmul.mubr.msk.bf16.gmra.mrb[184].mxu1 %vm1122_vm3, %v5500_v60  ;;  %v3059_v53 = vld [vmem:[#allocation2 + $0x114] ss:$2 sm:$0xff] }
 0x183   : > { %2665 = vst.msk [vmem:[#allocation2 + $0x138] sm:$0xff] %vm2625_vm4, %v1719_v3  ;;  %2799 = vst.msk [vmem:[#allocation2 + $0x568] sm:$0xff] %vm2625_vm4, %v2255_v8  ;;  %5044 = vmatprep.mubr.msk.bf16.mxu0 %vm5553_vm2, %v5551_v1  ;;  %5312 = vmatprep.mubr.msk.bf16.mxu1 %vm5553_vm2, %v5551_v1  ;;  %v3065_v54 = vld [vmem:[#allocation2 + $0x115] ss:$2 sm:$0xff] }
 0x184   : > { %v3694_v10 = vmax.f32 %v3676_v6, %v3691_v7  ;;  %v5506_v60 = vld [vmem:[%s5602_s21 + $0x3a0] sm:$0xff]   ;;  %v3070_v4 = vmax.f32 %v3059_v53, %v3065_v54  ;;  %v4511_v53 = vld [vmem:[%s5912_s27 + $0x2c] sm:$0xf] }
 0x185   : > { %v1723_v14 = vpop.f32.mrb[80].mxu0  ;;  %v2259_v18 = vpop.f32.mrb[80].mxu1 }
 0x186   : > { %v3697_v13 = vmax.f32 %v3694_v10, 0.0  ;;  %v1724_v16 = vadd.f32 %v6143_v58, %v1723_v14  ;;  %v4938_v17 = vpop.f32.mrb[81].mxu0  ;;  %v2260_v21 = vadd.f32 %v6143_v58, %v2259_v18  ;;  %v5206_v24 = vpop.f32.mrb[81].mxu1 }
 0x187   : > { %v1726_v22 = vpop.f32.mrb[82].mxu0  ;;  %v3683_v25 = vld [vmem:[#allocation2 + $0x556] ss:$2 sm:$0x7f]  ;;  %v2262_v31 = vpop.f32.mrb[82].mxu1  ;;  %v5508_v24 = vld [vmem:[%s5602_s21 + $0x3a8] sm:$0xff]  }
 0x188   : > { %v4691_v20 = vpack.c.bf16 %v3697_v13, %v3697_v13  ;;  %v3689_v26 = vld [vmem:[#allocation2 + $0x557] ss:$2 sm:$0x7f]  ;;  %2666 = vst.msk [vmem:[#allocation2 + $0x140] sm:$0xff] %vm2625_vm4, %v1724_v16  ;;  %v1727_v27 = vadd.f32 %v6143_v58, %v1726_v22  ;;  %2800 = vst.msk [vmem:[#allocation2 + $0x570] sm:$0xff] %vm2625_vm4, %v2260_v21  ;;  %v4939_v30 = vpop.f32.mrb[83].mxu0  ;;  %v2263_v32 = vadd.f32 %v6143_v58, %v2262_v31 }
 0x189   : > { %v3692_v29 = vmax.f32 %v3683_v25, %v3689_v26  ;;  %v5207_v33 = vpop.f32.mrb[83].mxu1  ;;  %v3061_v13 = vld [vmem:[#allocation2 + $0x124] ss:$2 sm:$0xff]  ;;  %v3067_v16 = vld [vmem:[#allocation2 + $0x125] ss:$2 sm:$0xff] }
 0x18a   : > { %4587 = vst.msk [vmem:[%s5912_s27 + $0xac] sm:$0xf] %vm2890_vm5, %v4691_v20  ;;  %5045 = vmatmul.mubr.msk.bf16.gmra.mrb[188].mxu0 %vm1122_vm3, %v5501_v19  ;;  %5313 = vmatmul.mubr.msk.bf16.gmra.mrb[188].mxu1 %vm1122_vm3, %v5502_v23  ;;  %v3071_v30 = vmax.f32 %v3061_v13, %v3067_v16  ;;  %v5511_v16 = vld [vmem:[%s5602_s21 + $0x1a0] sm:$0xff]  }
 0x18b   : > { %2667 = vst.msk [vmem:[#allocation2 + $0x148] sm:$0xff] %vm2625_vm4, %v1727_v27  ;;  %v3695_v34 = vmax.f32 %v3677_v28, %v3692_v29  ;;  %5048 = vmatprep.mubr.msk.bf16.mxu0 %vm5553_vm2, %v5551_v1  ;;  %2801 = vst.msk [vmem:[#allocation2 + $0x578] sm:$0xff] %vm2625_vm4, %v2263_v32  ;;  %5316 = vmatprep.mubr.msk.bf16.mxu1 %vm5553_vm2, %v5551_v1 }
 0x18d   : > { %v3698_v35 = vmax.f32 %v3695_v34, 0.0  ;;  %v1731_v36 = vpop.f32.mrb[84].mxu0  ;;  %v2267_v40 = vpop.f32.mrb[84].mxu1 }
 0x18e   : > { %v1732_v38 = vadd.f32 %v6143_v58, %v1731_v36  ;;  %v4942_v39 = vpop.f32.mrb[85].mxu0  ;;  %v2268_v43 = vadd.f32 %v6143_v58, %v2267_v40  ;;  %v5210_v46 = vpop.f32.mrb[85].mxu1 }
 0x18f   : > { %v4692_v42 = vpack.c.bf16 %v3698_v35, %v3698_v35  ;;  %v1734_v45 = vpop.f32.mrb[86].mxu0  ;;  %v2270_v50 = vpop.f32.mrb[86].mxu1  ;;  %v3063_v17 = vld [vmem:[#allocation2 + $0x134] ss:$2 sm:$0x7f] }
 0x190   : > { %2668 = vst.msk [vmem:[#allocation2 + $0x150] sm:$0xff] %vm2625_vm4, %v1732_v38  ;;  %2802 = vst.msk [vmem:[#allocation2 + $0x580] sm:$0xff] %vm2625_vm4, %v2268_v43  ;;  %v1735_v48 = vadd.f32 %v6143_v58, %v1734_v45  ;;  %v4943_v49 = vpop.f32.mrb[87].mxu0  ;;  %v2271_v51 = vadd.f32 %v6143_v58, %v2270_v50  ;;  %v5211_v52 = vpop.f32.mrb[87].mxu1  ;;  %v3725_v46 = vld [vmem:[#allocation2 + $0x565] ss:$2 sm:$0xff] }
 0x191   : > { %v3716_v47 = vsel %vm5950_vm7, %v4692_v42, %v4588_v37  ;;  %v3069_v19 = vld [vmem:[#allocation2 + $0x135] ss:$2 sm:$0x7f] }
 0x192   : > { %4589 = vst [vmem:[%s5912_s27 + $0xb0] sm:$0xf] %v3716_v47  ;;  %5049 = vmatmul.mubr.msk.bf16.gmra.mrb[192].mxu0 %vm1122_vm3, %v5503_v41  ;;  %2669 = vst.msk [vmem:[#allocation2 + $0x158] sm:$0xff] %vm2625_vm4, %v1735_v48  ;;  %5317 = vmatmul.mubr.msk.bf16.gmra.mrb[192].mxu1 %vm1122_vm3, %v5504_v44  ;;  %v3072_v35 = vmax.f32 %v3063_v17, %v3069_v19  ;;  %v3719_v44 = vld [vmem:[#allocation2 + $0x564] ss:$2 sm:$0xff]  ;;  %v5509_v52 = vld [vmem:[%s5602_s21 + $0x198] sm:$0xff]  }
 0x193   : > { %5052 = vmatprep.mubr.msk.bf16.mxu0 %vm5553_vm2, %v5551_v1  ;;  %2803 = vst.msk [vmem:[#allocation2 + $0x588] sm:$0xff] %vm2625_vm4, %v2271_v51  ;;  %5320 = vmatprep.mubr.msk.bf16.mxu1 %vm5553_vm2, %v5551_v1 }
 0x195   : > { %v1739_v61 = vpop.f32.mrb[88].mxu0  ;;  %v2275_v57 = vpop.f32.mrb[88].mxu1 }
 0x196   : > { %v1740_v55 = vadd.f32 %v6143_v58, %v1739_v61  ;;  %v4946_v56 = vpop.f32.mrb[89].mxu0  ;;  %v2276_v0 = vadd.f32 %v6143_v58, %v2275_v57  ;;  %v5214_v3 = vpop.f32.mrb[89].mxu1 }
 0x197   : > { %v3074_v62 = vld [vmem:[#allocation2 + $0x142] ss:$2 sm:$0xff]  ;;  %v3080_v63 = vld [vmem:[#allocation2 + $0x143] ss:$2 sm:$0xff]  ;;  %v1742_v2 = vpop.f32.mrb[90].mxu0  ;;  %v2278_v8 = vpop.f32.mrb[90].mxu1 }
 0x198   : > { %v3085_v5 = vmax.f32 %v3074_v62, %v3080_v63  ;;  %2670 = vst.msk [vmem:[#allocation2 + $0x160] sm:$0xff] %vm2625_vm4, %v1740_v55  ;;  %v1743_v6 = vadd.f32 %v6143_v58, %v1742_v2  ;;  %v4947_v7 = vpop.f32.mrb[91].mxu0  ;;  %2804 = vst.msk [vmem:[#allocation2 + $0x590] sm:$0xff] %vm2625_vm4, %v2276_v0  ;;  %v2279_v9 = vadd.f32 %v6143_v58, %v2278_v8  ;;  %v5215_v10 = vpop.f32.mrb[91].mxu1  ;;  %v5510_v56 = vld [vmem:[%s5602_s21 + $0x3b0] sm:$0xff]  }
 0x199   : > { %v3730_v2 = vmax.f32 %v3719_v44, %v3725_v46  ;;  %v3721_v8 = vld [vmem:[#allocation2 + $0x574] ss:$2 sm:$0xff] }
 0x19a   : > { %v3088_v12 = vmax.f32 %v3070_v4, %v3085_v5  ;;  %2671 = vst.msk [vmem:[#allocation2 + $0x168] sm:$0xff] %vm2625_vm4, %v1743_v6  ;;  %5053 = vmatmul.mubr.msk.bf16.gmra.mrb[196].mxu0 %vm1122_vm3, %v5505_v59  ;;  %5321 = vmatmul.mubr.msk.bf16.gmra.mrb[196].mxu1 %vm1122_vm3, %v5506_v60  ;;  %2805 = vst.msk [vmem:[#allocation2 + $0x598] sm:$0xff] %vm2625_vm4, %v2279_v9  ;;  %v3727_v9 = vld [vmem:[#allocation2 + $0x575] ss:$2 sm:$0xff] }
 0x19b   : > { %5056 = vmatprep.mubr.msk.bf16.mxu0 %vm5553_vm2, %v5551_v1  ;;  %5324 = vmatprep.mubr.msk.bf16.mxu1 %vm5553_vm2, %v5551_v1 }
 0x19c   : > { %v3091_v14 = vmax.f32 %v3088_v12, 0.0 }
 0x19d   : > { %v1747_v18 = vpop.f32.mrb[92].mxu0  ;;  %v2283_v22 = vpop.f32.mrb[92].mxu1 }
 0x19e   : > { %v4657_v20 = vpack.c.bf16 %v3091_v14, %v3091_v14  ;;  %v1748_v21 = vadd.f32 %v6143_v58, %v1747_v18  ;;  %v4950_v23 = vpop.f32.mrb[93].mxu0  ;;  %v2284_v27 = vadd.f32 %v6143_v58, %v2283_v22  ;;  %v5218_v29 = vpop.f32.mrb[93].mxu1 }
 0x19f   : > { %v3076_v25 = vld [vmem:[#allocation2 + $0x152] ss:$2 sm:$0xff]  ;;  %v3082_v26 = vld [vmem:[#allocation2 + $0x153] ss:$2 sm:$0xff]  ;;  %v1750_v28 = vpop.f32.mrb[94].mxu0  ;;  %v2286_v39 = vpop.f32.mrb[94].mxu1  ;;  %v3731_v29 = vmax.f32 %v3721_v8, %v3727_v9 }
 0x1a0   : > { %4509 = vst.msk [vmem:[%s5912_s27 + $0x24] sm:$0xf] %vm2890_vm5, %v4657_v20  ;;  %v3086_v31 = vmax.f32 %v3076_v25, %v3082_v26  ;;  %v1751_v32 = vadd.f32 %v6143_v58, %v1750_v28  ;;  %v4951_v38 = vpop.f32.mrb[95].mxu0  ;;  %v2287_v40 = vadd.f32 %v6143_v58, %v2286_v39  ;;  %v5219_v41 = vpop.f32.mrb[95].mxu1 }
 0x1a1   : > { %2672 = vst.msk [vmem:[#allocation2 + $0x170] sm:$0xff] %vm2625_vm4, %v1748_v21  ;;  %v3078_v33 = vld [vmem:[#allocation2 + $0x162] ss:$2 sm:$0x7f]  ;;  %2806 = vst.msk [vmem:[#allocation2 + $0x5a0] sm:$0xff] %vm2625_vm4, %v2284_v27  ;;  %v5512_v21 = vld [vmem:[%s5602_s21 + $0x3b8] sm:$0xff]  }
 0x1a2   : > { %v3084_v34 = vld [vmem:[#allocation2 + $0x163] ss:$2 sm:$0x7f]  ;;  %v3089_v36 = vmax.f32 %v3071_v30, %v3086_v31  ;;  %2673 = vst.msk [vmem:[#allocation2 + $0x178] sm:$0xff] %vm2625_vm4, %v1751_v32  ;;  %5057 = vmatmul.mubr.msk.bf16.gmra.mrb[200].mxu0 %vm1122_vm3, %v5507_v15  ;;  %5325 = vmatmul.mubr.msk.bf16.gmra.mrb[200].mxu1 %vm1122_vm3, %v5508_v24  ;;  %2807 = vst.msk [vmem:[#allocation2 + $0x5a8] sm:$0xff] %vm2625_vm4, %v2287_v40 }
 0x1a3   : > { %v3087_v37 = vmax.f32 %v3078_v33, %v3084_v34  ;;  %5060 = vmatprep.mubr.msk.bf16.mxu0 %vm5553_vm2, %v5551_v1  ;;  %5328 = vmatprep.mubr.msk.bf16.mxu1 %vm5553_vm2, %v5551_v1  ;;  %v3723_v13 = vld [vmem:[#allocation2 + $0x584] ss:$2 sm:$0x7f]  ;;  %v3729_v18 = vld [vmem:[#allocation2 + $0x585] ss:$2 sm:$0x7f] }
 0x1a4   : > { %v3092_v42 = vmax.f32 %v3089_v36, 0.0 }
 0x1a5   : > { %v3090_v43 = vmax.f32 %v3072_v35, %v3087_v37  ;;  %v1755_v45 = vpop.f32.mrb[96].mxu0  ;;  %v2291_v50 = vpop.f32.mrb[96].mxu1  ;;  %v3732_v35 = vmax.f32 %v3723_v13, %v3729_v18 }
 0x1a6   : > { %v4658_v47 = vpack.c.bf16 %v3092_v42, %v3092_v42  ;;  %v1756_v49 = vadd.f32 %v6143_v58, %v1755_v45  ;;  %v4954_v51 = vpop.f32.mrb[97].mxu0  ;;  %v2292_v54 = vadd.f32 %v6143_v58, %v2291_v50  ;;  %v5222_v61 = vpop.f32.mrb[97].mxu1 }
 0x1a7   : > { %v3093_v48 = vmax.f32 %v3090_v43, 0.0  ;;  %v1758_v55 = vpop.f32.mrb[98].mxu0  ;;  %v2294_v63 = vpop.f32.mrb[98].mxu1  ;;  %v5513_v43 = vld [vmem:[%s5602_s21 + $0x1a8] sm:$0xff]   ;;  %v4595_v51 = vld [vmem:[%s5912_s27 + $0xbc] sm:$0xf] }
 0x1a8   : > { %4510 = vst.msk [vmem:[%s5912_s27 + $0x28] sm:$0xf] %vm2890_vm5, %v4658_v47  ;;  %v3734_v59 = vld [vmem:[#allocation2 + $0x592] ss:$2 sm:$0xff]  ;;  %v3740_v60 = vld [vmem:[#allocation2 + $0x593] ss:$2 sm:$0xff]  ;;  %v1759_v62 = vadd.f32 %v6143_v58, %v1758_v55  ;;  %v2295_v4 = vadd.f32 %v6143_v58, %v2294_v63 }
 0x1a9   : > { %v4659_v57 = vpack.c.bf16 %v3093_v48, %v3093_v48  ;;  %2674 = vst.msk [vmem:[#allocation2 + $0x180] sm:$0xff] %vm2625_vm4, %v1756_v49  ;;  %v4955_v0 = vpop.f32.mrb[99].mxu0  ;;  %v3745_v3 = vmax.f32 %v3734_v59, %v3740_v60  ;;  %2808 = vst.msk [vmem:[#allocation2 + $0x5b0] sm:$0xff] %vm2625_vm4, %v2292_v54  ;;  %v5223_v5 = vpop.f32.mrb[99].mxu1  ;;  %v5514_v48 = vld [vmem:[%s5602_s21 + $0x3c0] sm:$0xff]  }
 0x1aa   : > { %2675 = vst.msk [vmem:[#allocation2 + $0x188] sm:$0xff] %vm2625_vm4, %v1759_v62  ;;  %5061 = vmatmul.mubr.msk.bf16.gmra.mrb[204].mxu0 %vm1122_vm3, %v5509_v52  ;;  %2809 = vst.msk [vmem:[#allocation2 + $0x5b8] sm:$0xff] %vm2625_vm4, %v2295_v4  ;;  %5329 = vmatmul.mubr.msk.bf16.gmra.mrb[204].mxu1 %vm1122_vm3, %v5510_v56  ;;  %v5515_v0 = vld [vmem:[%s5602_s21 + $0x1b0] sm:$0xff]  }
 0x1ab   : > { %v3111_v6 = vsel %vm5950_vm7, %v4659_v57, %v4511_v53  ;;  %v3748_v7 = vmax.f32 %v3730_v2, %v3745_v3  ;;  %5064 = vmatprep.mubr.msk.bf16.mxu0 %vm5553_vm2, %v5551_v1  ;;  %5332 = vmatprep.mubr.msk.bf16.mxu1 %vm5553_vm2, %v5551_v1  ;;  %v5516_v2 = vld [vmem:[%s5602_s21 + $0x3c8] sm:$0xff]   ;;  %v3114_v3 = vld [vmem:[#allocation2 + $0x170] ss:$2 sm:$0xff]  ;;  %v3120_v4 = vld [vmem:[#allocation2 + $0x171] ss:$2 sm:$0xff] }
 0x1ac   : > { %4512 = vst [vmem:[%s5912_s27 + $0x2c] sm:$0xf] %v3111_v6 }
 0x1ad   : > { %v3751_v10 = vmax.f32 %v3748_v7, 0.0  ;;  %v1763_v12 = vpop.f32.mrb[100].mxu0  ;;  %v2299_v17 = vpop.f32.mrb[100].mxu1 }
 0x1ae   : > { %v1764_v14 = vadd.f32 %v6143_v58, %v1763_v12  ;;  %v4958_v15 = vpop.f32.mrb[101].mxu0  ;;  %v2300_v22 = vadd.f32 %v6143_v58, %v2299_v17  ;;  %v5226_v23 = vpop.f32.mrb[101].mxu1 }
 0x1af   : > { %v4693_v19 = vpack.c.bf16 %v3751_v10, %v3751_v10  ;;  %v1766_v20 = vpop.f32.mrb[102].mxu0  ;;  %v2302_v28 = vpop.f32.mrb[102].mxu1 }
 0x1b0   : > { %v3736_v24 = vld [vmem:[#allocation2 + $0x5a2] ss:$2 sm:$0xff]  ;;  %v3742_v25 = vld [vmem:[#allocation2 + $0x5a3] ss:$2 sm:$0xff]  ;;  %2676 = vst.msk [vmem:[#allocation2 + $0x190] sm:$0xff] %vm2625_vm4, %v1764_v14  ;;  %v1767_v26 = vadd.f32 %v6143_v58, %v1766_v20  ;;  %v4959_v27 = vpop.f32.mrb[103].mxu0  ;;  %v2303_v31 = vadd.f32 %v6143_v58, %v2302_v28 }
 0x1b1   : > { %4593 = vst.msk [vmem:[%s5912_s27 + $0xb4] sm:$0xf] %vm2890_vm5, %v4693_v19  ;;  %v3746_v30 = vmax.f32 %v3736_v24, %v3742_v25  ;;  %v5227_v32 = vpop.f32.mrb[103].mxu1  ;;  %v3738_v33 = vld [vmem:[#allocation2 + $0x5b2] ss:$2 sm:$0x7f] }
 0x1b2   : > { %2810 = vst.msk [vmem:[#allocation2 + $0x5c0] sm:$0xff] %vm2625_vm4, %v2300_v22  ;;  %v3744_v34 = vld [vmem:[#allocation2 + $0x5b3] ss:$2 sm:$0x7f]  ;;  %2677 = vst.msk [vmem:[#allocation2 + $0x198] sm:$0xff] %vm2625_vm4, %v1767_v26  ;;  %5065 = vmatmul.mubr.msk.bf16.gmra.mrb[208].mxu0 %vm1122_vm3, %v5511_v16  ;;  %5333 = vmatmul.mubr.msk.bf16.gmra.mrb[208].mxu1 %vm1122_vm3, %v5512_v21  ;;  %v3125_v16 = vmax.f32 %v3114_v3, %v3120_v4 }
 0x1b3   : > { %v3749_v36 = vmax.f32 %v3731_v29, %v3746_v30  ;;  %v3747_v37 = vmax.f32 %v3738_v33, %v3744_v34  ;;  %2811 = vst.msk [vmem:[#allocation2 + $0x5c8] sm:$0xff] %vm2625_vm4, %v2303_v31  ;;  %5068 = vmatprep.mubr.msk.bf16.mxu0 %vm5553_vm2, %v5551_v1  ;;  %5336 = vmatprep.mubr.msk.bf16.mxu1 %vm5553_vm2, %v5551_v1  ;;  %v5517_v24 = vld [vmem:[%s5602_s21 + $0x1b8] sm:$0xff]   ;;  %v5518_v25 = vld [vmem:[%s5602_s21 + $0x3d0] sm:$0xff]   ;;  %v3116_v26 = vld [vmem:[#allocation2 + $0x180] ss:$2 sm:$0xff] }
 0x1b4   : > { %v3122_v27 = vld [vmem:[#allocation2 + $0x181] ss:$2 sm:$0xff] }
 0x1b5   : > { %v3752_v38 = vmax.f32 %v3749_v36, 0.0  ;;  %v3750_v39 = vmax.f32 %v3732_v35, %v3747_v37  ;;  %v1771_v40 = vpop.f32.mrb[104].mxu0  ;;  %v2307_v44 = vpop.f32.mrb[104].mxu1 }
 0x1b6   : > { %v1772_v41 = vadd.f32 %v6143_v58, %v1771_v40  ;;  %v4962_v42 = vpop.f32.mrb[105].mxu0  ;;  %v2308_v49 = vadd.f32 %v6143_v58, %v2307_v44  ;;  %v5230_v50 = vpop.f32.mrb[105].mxu1 }
 0x1b7   : > { %v4694_v45 = vpack.c.bf16 %v3752_v38, %v3752_v38  ;;  %v3753_v46 = vmax.f32 %v3750_v39, 0.0  ;;  %v1774_v47 = vpop.f32.mrb[106].mxu0  ;;  %v2310_v54 = vpop.f32.mrb[106].mxu1  ;;  %v3126_v39 = vmax.f32 %v3116_v26, %v3122_v27 }
 0x1b8   : > { %2678 = vst.msk [vmem:[#allocation2 + $0x1a0] sm:$0xff] %vm2625_vm4, %v1772_v41  ;;  %v1775_v52 = vadd.f32 %v6143_v58, %v1774_v47  ;;  %v4963_v53 = vpop.f32.mrb[107].mxu0  ;;  %2812 = vst.msk [vmem:[#allocation2 + $0x5d0] sm:$0xff] %vm2625_vm4, %v2308_v49  ;;  %v2311_v55 = vadd.f32 %v6143_v58, %v2310_v54  ;;  %v5231_v56 = vpop.f32.mrb[107].mxu1 }
 0x1b9   : > { %4594 = vst.msk [vmem:[%s5912_s27 + $0xb8] sm:$0xf] %vm2890_vm5, %v4694_v45  ;;  %v4695_v61 = vpack.c.bf16 %v3753_v46, %v3753_v46  ;;  %v3118_v44 = vld [vmem:[#allocation2 + $0x190] ss:$2 sm:$0x7f] }
 0x1ba   : > { %2679 = vst.msk [vmem:[#allocation2 + $0x1a8] sm:$0xff] %vm2625_vm4, %v1775_v52  ;;  %5069 = vmatmul.mubr.msk.bf16.gmra.mrb[212].mxu0 %vm1122_vm3, %v5513_v43  ;;  %5337 = vmatmul.mubr.msk.bf16.gmra.mrb[212].mxu1 %vm1122_vm3, %v5514_v48  ;;  %2813 = vst.msk [vmem:[#allocation2 + $0x5d8] sm:$0xff] %vm2625_vm4, %v2311_v55  ;;  %v5519_v43 = vld [vmem:[%s5602_s21 + $0x1c0] sm:$0xff]   ;;  %v3124_v49 = vld [vmem:[#allocation2 + $0x191] ss:$2 sm:$0x7f] }
 0x1bb   : > { %v3771_v57 = vsel %vm5950_vm7, %v4695_v61, %v4595_v51  ;;  %5072 = vmatprep.mubr.msk.bf16.mxu0 %vm5553_vm2, %v5551_v1  ;;  %5340 = vmatprep.mubr.msk.bf16.mxu1 %vm5553_vm2, %v5551_v1  ;;  %v5520_v53 = vld [vmem:[%s5602_s21 + $0x3d8] sm:$0xff]   ;;  %v3774_v54 = vld [vmem:[#allocation2 + $0x5c0] ss:$2 sm:$0xff]  ;;  %v3780_v61 = vld [vmem:[#allocation2 + $0x5c1] ss:$2 sm:$0xff] }
 0x1bc   : > { %4596 = vst [vmem:[%s5912_s27 + $0xbc] sm:$0xf] %v3771_v57 }
 0x1bd   : > { %v1779_v59 = vpop.f32.mrb[108].mxu0  ;;  %v2315_v63 = vpop.f32.mrb[108].mxu1 }
 0x1be   : > { %v1780_v60 = vadd.f32 %v6143_v58, %v1779_v59  ;;  %v4966_v62 = vpop.f32.mrb[109].mxu0  ;;  %v2316_v6 = vadd.f32 %v6143_v58, %v2315_v63  ;;  %v5234_v7 = vpop.f32.mrb[109].mxu1 }
 0x1bf   : > { %v1782_v5 = vpop.f32.mrb[110].mxu0  ;;  %v2318_v10 = vpop.f32.mrb[110].mxu1 }
 0x1c0   : > { %2680 = vst.msk [vmem:[#allocation2 + $0x1b0] sm:$0xff] %vm2625_vm4, %v1780_v60  ;;  %v1783_v8 = vadd.f32 %v6143_v58, %v1782_v5  ;;  %v4967_v9 = vpop.f32.mrb[111].mxu0  ;;  %2814 = vst.msk [vmem:[#allocation2 + $0x5e0] sm:$0xff] %vm2625_vm4, %v2316_v6  ;;  %v2319_v14 = vadd.f32 %v6143_v58, %v2318_v10  ;;  %v5235_v15 = vpop.f32.mrb[111].mxu1  ;;  %v3785_v6 = vmax.f32 %v3774_v54, %v3780_v61 }
 0x1c1   : > { %v3129_v12 = vld [vmem:[#allocation2 + $0x19e] ss:$2 sm:$0xff]  ;;  %v3135_v13 = vld [vmem:[#allocation2 + $0x19f] ss:$2 sm:$0xff] }
 0x1c2   : > { %v3140_v17 = vmax.f32 %v3129_v12, %v3135_v13  ;;  %2681 = vst.msk [vmem:[#allocation2 + $0x1b8] sm:$0xff] %vm2625_vm4, %v1783_v8  ;;  %5073 = vmatmul.mubr.msk.bf16.gmra.mrb[216].mxu0 %vm1122_vm3, %v5515_v0  ;;  %5341 = vmatmul.mubr.msk.bf16.gmra.mrb[216].mxu1 %vm1122_vm3, %v5516_v2  ;;  %2815 = vst.msk [vmem:[#allocation2 + $0x5e8] sm:$0xff] %vm2625_vm4, %v2319_v14  ;;  %v3127_v0 = vmax.f32 %v3118_v44, %v3124_v49 }
 0x1c3   : > { %5076 = vmatprep.mubr.msk.bf16.mxu0 %vm5553_vm2, %v5551_v1  ;;  %5344 = vmatprep.mubr.msk.bf16.mxu1 %vm5553_vm2, %v5551_v1 }
 0x1c4   : > { %v3143_v18 = vmax.f32 %v3125_v16, %v3140_v17  ;;  %v5521_v16 = vld [vmem:[%s5602_s21 + $0x1c8] sm:$0xff]   ;;  %v4518_v17 = vld [vmem:[%s5912_s27 + $0x38] sm:$0xf] }
 0x1c5   : > { %v1787_v19 = vpop.f32.mrb[112].mxu0  ;;  %v2323_v22 = vpop.f32.mrb[112].mxu1 }
 0x1c6   : > { %v3146_v20 = vmax.f32 %v3143_v18, 0.0  ;;  %v1788_v21 = vadd.f32 %v6143_v58, %v1787_v19  ;;  %v4970_v23 = vpop.f32.mrb[113].mxu0  ;;  %v2324_v28 = vadd.f32 %v6143_v58, %v2323_v22  ;;  %v5238_v29 = vpop.f32.mrb[113].mxu1  ;;  %v5522_v22 = vld [vmem:[%s5602_s21 + $0x3e0] sm:$0xff]  }
 0x1c7   : > { %v1790_v30 = vpop.f32.mrb[114].mxu0  ;;  %v2326_v33 = vpop.f32.mrb[114].mxu1  ;;  %v3776_v23 = vld [vmem:[#allocation2 + $0x5d0] ss:$2 sm:$0xff] }
 0x1c8   : > { %v4660_v31 = vpack.c.bf16 %v3146_v20, %v3146_v20  ;;  %2682 = vst.msk [vmem:[#allocation2 + $0x1c0] sm:$0xff] %vm2625_vm4, %v1788_v21  ;;  %v1791_v32 = vadd.f32 %v6143_v58, %v1790_v30  ;;  %v4971_v34 = vpop.f32.mrb[115].mxu0  ;;  %2816 = vst.msk [vmem:[#allocation2 + $0x5f0] sm:$0xff] %vm2625_vm4, %v2324_v28  ;;  %v2327_v37 = vadd.f32 %v6143_v58, %v2326_v33  ;;  %v5239_v38 = vpop.f32.mrb[115].mxu1 }
 0x1c9   : > { %v3131_v35 = vld [vmem:[#allocation2 + $0x1ae] ss:$2 sm:$0xff]  ;;  %v3137_v36 = vld [vmem:[#allocation2 + $0x1af] ss:$2 sm:$0xff] }
 0x1ca   : > { %4516 = vst.msk [vmem:[%s5912_s27 + $0x30] sm:$0xf] %vm2890_vm5, %v4660_v31  ;;  %v3141_v40 = vmax.f32 %v3131_v35, %v3137_v36  ;;  %5077 = vmatmul.mubr.msk.bf16.gmra.mrb[220].mxu0 %vm1122_vm3, %v5517_v24  ;;  %5345 = vmatmul.mubr.msk.bf16.gmra.mrb[220].mxu1 %vm1122_vm3, %v5518_v25  ;;  %v3782_v24 = vld [vmem:[#allocation2 + $0x5d1] ss:$2 sm:$0xff] }
 0x1cb   : > { %2683 = vst.msk [vmem:[#allocation2 + $0x1c8] sm:$0xff] %vm2625_vm4, %v1791_v32  ;;  %2817 = vst.msk [vmem:[#allocation2 + $0x5f8] sm:$0xff] %vm2625_vm4, %v2327_v37  ;;  %5080 = vmatprep.mubr.msk.bf16.mxu0 %vm5553_vm2, %v5551_v1  ;;  %5348 = vmatprep.mubr.msk.bf16.mxu1 %vm5553_vm2, %v5551_v1  ;;  %v3786_v35 = vmax.f32 %v3776_v23, %v3782_v24  ;;  %v3778_v44 = vld [vmem:[#allocation2 + $0x5e0] ss:$2 sm:$0x7f]  ;;  %v5528_v23 = vld [vmem:[%s5602_s21 + $0x3f8] sm:$0xff]  }
 0x1cc   : > { %v3144_v41 = vmax.f32 %v3126_v39, %v3141_v40  ;;  %v3784_v49 = vld [vmem:[#allocation2 + $0x5e1] ss:$2 sm:$0x7f] }
 0x1cd   : > { %v1795_v42 = vpop.f32.mrb[116].mxu0  ;;  %v2331_v47 = vpop.f32.mrb[116].mxu1 }
 0x1ce   : > { %v3147_v45 = vmax.f32 %v3144_v41, 0.0  ;;  %v1796_v46 = vadd.f32 %v6143_v58, %v1795_v42  ;;  %v4974_v48 = vpop.f32.mrb[117].mxu0  ;;  %v2332_v50 = vadd.f32 %v6143_v58, %v2331_v47  ;;  %v5242_v51 = vpop.f32.mrb[117].mxu1  ;;  %v5523_v42 = vld [vmem:[%s5602_s21 + $0x1d0] sm:$0xff]  }
 0x1cf   : > { %v1798_v52 = vpop.f32.mrb[118].mxu0  ;;  %v2334_v57 = vpop.f32.mrb[118].mxu1 }
 0x1d0   : > { %v4661_v55 = vpack.c.bf16 %v3147_v45, %v3147_v45  ;;  %2684 = vst.msk [vmem:[#allocation2 + $0x1d0] sm:$0xff] %vm2625_vm4, %v1796_v46  ;;  %v1799_v56 = vadd.f32 %v6143_v58, %v1798_v52  ;;  %v4975_v59 = vpop.f32.mrb[119].mxu0  ;;  %2818 = vst.msk [vmem:[#allocation2 + $0x600] sm:$0xff] %vm2625_vm4, %v2332_v50  ;;  %v2335_v63 = vadd.f32 %v6143_v58, %v2334_v57  ;;  %v5243_v5 = vpop.f32.mrb[119].mxu1 }
 0x1d1   : > { %v3787_v57 = vmax.f32 %v3778_v44, %v3784_v49  ;;  %v5529_v44 = vld [vmem:[%s5602_s21 + $0x1e8] sm:$0xff]  }
 0x1d2   : > { %v3133_v60 = vld [vmem:[#allocation2 + $0x1be] ss:$2 sm:$0x7f]  ;;  %v3139_v62 = vld [vmem:[#allocation2 + $0x1bf] ss:$2 sm:$0x7f]  ;;  %5081 = vmatmul.mubr.msk.bf16.gmra.mrb[224].mxu0 %vm1122_vm3, %v5519_v43  ;;  %5349 = vmatmul.mubr.msk.bf16.gmra.mrb[224].mxu1 %vm1122_vm3, %v5520_v53 }
 0x1d3   : > { %4517 = vst.msk [vmem:[%s5912_s27 + $0x34] sm:$0xf] %vm2890_vm5, %v4661_v55  ;;  %v3142_v2 = vmax.f32 %v3133_v60, %v3139_v62  ;;  %v3789_v3 = vld [vmem:[#allocation2 + $0x5ee] ss:$2 sm:$0xff]  ;;  %v3795_v4 = vld [vmem:[#allocation2 + $0x5ef] ss:$2 sm:$0xff]  ;;  %5084 = vmatprep.mubr.msk.bf16.mxu0 %vm5553_vm2, %v5551_v1  ;;  %5352 = vmatprep.mubr.msk.bf16.mxu1 %vm5553_vm2, %v5551_v1 }
 0x1d4   : > { %2685 = vst.msk [vmem:[#allocation2 + $0x1d8] sm:$0xff] %vm2625_vm4, %v1799_v56  ;;  %v3800_v7 = vmax.f32 %v3789_v3, %v3795_v4  ;;  %2819 = vst.msk [vmem:[#allocation2 + $0x608] sm:$0xff] %vm2625_vm4, %v2335_v63  ;;  %v5524_v43 = vld [vmem:[%s5602_s21 + $0x3e8] sm:$0xff]   ;;  %v5525_v3 = vld [vmem:[%s5602_s21 + $0x1d8] sm:$0xff]  }
 0x1d5   : > { %v3145_v8 = vmax.f32 %v3127_v0, %v3142_v2  ;;  %v1803_v10 = vpop.f32.mrb[120].mxu0  ;;  %v2339_v14 = vpop.f32.mrb[120].mxu1 }
 0x1d6   : > { %v3803_v9 = vmax.f32 %v3785_v6, %v3800_v7  ;;  %v1804_v13 = vadd.f32 %v6143_v58, %v1803_v10  ;;  %v4978_v15 = vpop.f32.mrb[121].mxu0  ;;  %v2340_v19 = vadd.f32 %v6143_v58, %v2339_v14  ;;  %v5246_v20 = vpop.f32.mrb[121].mxu1  ;;  %v6438_v10 = vld [vmem:[%s6882_s2] ss:$0 sm:$0xff] }
 0x1d7   : > { %v3148_v12 = vmax.f32 %v3145_v8, 0.0  ;;  %v1806_v21 = vpop.f32.mrb[122].mxu0  ;;  %v2342_v27 = vpop.f32.mrb[122].mxu1  ;;  %v5526_v8 = vld [vmem:[%s5602_s21 + $0x3f0] sm:$0xff]  }
 0x1d8   : > { %v3806_v18 = vmax.f32 %v3803_v9, 0.0  ;;  %2686 = vst.msk [vmem:[#allocation2 + $0x1e0] sm:$0xff] %vm2625_vm4, %v1804_v13  ;;  %v1807_v26 = vadd.f32 %v6143_v58, %v1806_v21  ;;  %v4979_v28 = vpop.f32.mrb[123].mxu0  ;;  %2820 = vst.msk [vmem:[#allocation2 + $0x610] sm:$0xff] %vm2625_vm4, %v2340_v19  ;;  %v2343_v30 = vadd.f32 %v6143_v58, %v2342_v27  ;;  %v5247_v31 = vpop.f32.mrb[123].mxu1 }
 0x1d9   : > { %v4662_v25 = vpack.c.bf16 %v3148_v12, %v3148_v12  ;;  %v4602_v9 = vld [vmem:[%s5912_s27 + $0xc8] sm:$0xf] }
 0x1da   : > { %v4696_v29 = vpack.c.bf16 %v3806_v18, %v3806_v18  ;;  %2687 = vst.msk [vmem:[#allocation2 + $0x1e8] sm:$0xff] %vm2625_vm4, %v1807_v26  ;;  %5085 = vmatmul.mubr.msk.bf16.gmra.mrb[228].mxu0 %vm1122_vm3, %v5521_v16  ;;  %2821 = vst.msk [vmem:[#allocation2 + $0x618] sm:$0xff] %vm2625_vm4, %v2343_v30  ;;  %5353 = vmatmul.mubr.msk.bf16.gmra.mrb[228].mxu1 %vm1122_vm3, %v5522_v22  ;;  %v5527_v22 = vld [vmem:[%s5602_s21 + $0x1e0] sm:$0xff]  }
 0x1db   : > { %v3166_v32 = vsel %vm5950_vm7, %v4662_v25, %v4518_v17  ;;  %v3791_v33 = vld [vmem:[#allocation2 + $0x5fe] ss:$2 sm:$0xff]  ;;  %v3797_v34 = vld [vmem:[#allocation2 + $0x5ff] ss:$2 sm:$0xff]  ;;  %5088 = vmatprep.mubr.msk.bf16.mxu0 %vm5553_vm2, %v5551_v1  ;;  %5356 = vmatprep.mubr.msk.bf16.mxu1 %vm5553_vm2, %v5551_v1 }
 0x1dc   : > { %4519 = vst [vmem:[%s5912_s27 + $0x38] sm:$0xf] %v3166_v32  ;;  %4600 = vst.msk [vmem:[%s5912_s27 + $0xc0] sm:$0xf] %vm2890_vm5, %v4696_v29  ;;  %v3801_v36 = vmax.f32 %v3791_v33, %v3797_v34  ;;  %v3169_v24 = vld [vmem:[#allocation2 + $0x1cc] ss:$2 sm:$0xff] }
 0x1dd   : > { %v1811_v38 = vpop.f32.mrb[124].mxu0  ;;  %v2347_v40 = vpop.f32.mrb[124].mxu1  ;;  %v3175_v25 = vld [vmem:[#allocation2 + $0x1cd] ss:$2 sm:$0xff] }
 0x1de   : > { %v3804_v37 = vmax.f32 %v3786_v35, %v3801_v36  ;;  %v1812_v39 = vadd.f32 %v6143_v58, %v1811_v38  ;;  %v4982_v41 = vpop.f32.mrb[125].mxu0  ;;  %v2348_v46 = vadd.f32 %v6143_v58, %v2347_v40  ;;  %v5250_v47 = vpop.f32.mrb[125].mxu1  ;;  %v3180_v36 = vmax.f32 %v3169_v24, %v3175_v25 }
 0x1df   : > { %v1814_v48 = vpop.f32.mrb[126].mxu0  ;;  %v2350_v51 = vpop.f32.mrb[126].mxu1 }
 0x1e0   : > { %v3807_v45 = vmax.f32 %v3804_v37, 0.0  ;;  %2688 = vst.msk [vmem:[#allocation2 + $0x1f0] sm:$0xff] %vm2625_vm4, %v1812_v39  ;;  %v1815_v50 = vadd.f32 %v6143_v58, %v1814_v48  ;;  %v4983_v52 = vpop.f32.mrb[127].mxu0  ;;  %2822 = vst.msk [vmem:[#allocation2 + $0x620] sm:$0xff] %vm2625_vm4, %v2348_v46  ;;  %v2351_v54 = vadd.f32 %v6143_v58, %v2350_v51  ;;  %v5251_v61 = vpop.f32.mrb[127].mxu1 }
 0x1e1   : > { %v3793_v55 = vld [vmem:[#allocation2 + $0x60e] ss:$2 sm:$0x7f]  ;;  %v3799_v56 = vld [vmem:[#allocation2 + $0x60f] ss:$2 sm:$0x7f] }
 0x1e2   : > { %v4697_v53 = vpack.c.bf16 %v3807_v45, %v3807_v45  ;;  %2689 = vst.msk [vmem:[#allocation2 + $0x1f8] sm:$0xff] %vm2625_vm4, %v1815_v50  ;;  %5089 = vmatmul.mubr.msk.bf16.gmra.mrb[232].mxu0 %vm1122_vm3, %v5523_v42  ;;  %v3802_v59 = vmax.f32 %v3793_v55, %v3799_v56  ;;  %2823 = vst.msk [vmem:[#allocation2 + $0x628] sm:$0xff] %vm2625_vm4, %v2351_v54  ;;  %5357 = vmatmul.mubr.msk.bf16.gmra.mrb[232].mxu1 %vm1122_vm3, %v5524_v43  ;;  %v5530_v45 = vld [vmem:[%s5602_s21 + $0x400] sm:$0xff]  }
 0x1e3   : > { %5092 = vmatprep.mubr.msk.bf16.mxu0 %vm5553_vm2, %v5551_v1  ;;  %5360 = vmatprep.mubr.msk.bf16.mxu1 %vm5553_vm2, %v5551_v1  ;;  %v3171_v46 = vld [vmem:[#allocation2 + $0x1dc] ss:$2 sm:$0xff]  ;;  %v3177_v47 = vld [vmem:[#allocation2 + $0x1dd] ss:$2 sm:$0xff] }
 0x1e4   : > { %4601 = vst.msk [vmem:[%s5912_s27 + $0xc4] sm:$0xf] %vm2890_vm5, %v4697_v53  ;;  %v3805_v60 = vmax.f32 %v3787_v57, %v3802_v59  ;;  %v3181_v59 = vmax.f32 %v3171_v46, %v3177_v47 }
 0x1e5   : > { %v1819_v62 = vpop.f32.mrb[128].mxu0  ;;  %v2355_v0 = vpop.f32.mrb[128].mxu1 }
 0x1e6   : > { %v1820_v63 = vadd.f32 %v6143_v58, %v1819_v62  ;;  %v4986_v2 = vpop.f32.mrb[129].mxu0  ;;  %v3808_v4 = vmax.f32 %v3805_v60, 0.0  ;;  %v2356_v5 = vadd.f32 %v6143_v58, %v2355_v0  ;;  %v5254_v6 = vpop.f32.mrb[129].mxu1 }
 0x1e7   : > { %v1822_v7 = vpop.f32.mrb[130].mxu0  ;;  %v2358_v13 = vpop.f32.mrb[130].mxu1 }
 0x1e8   : > { %2690 = vst.msk [vmem:[#allocation2 + $0x200] sm:$0xff] %vm2625_vm4, %v1820_v63  ;;  %v1823_v12 = vadd.f32 %v6438_v10, %v1822_v7  ;;  %v4987_v14 = vpop.f32.mrb[131].mxu0  ;;  %v4698_v15 = vpack.c.bf16 %v3808_v4, %v3808_v4  ;;  %2824 = vst.msk [vmem:[#allocation2 + $0x630] sm:$0xff] %vm2625_vm4, %v2356_v5  ;;  %v2359_v58 = vadd.f32 %v6438_v10, %v2358_v13  ;;  %v5255_v16 = vpop.f32.mrb[131].mxu1  ;;  %v5531_v7 = vld [vmem:[%s5602_s21 + $0x1f0] sm:$0xff]  }
 0x1e9   : > { %v3173_v62 = vld [vmem:[#allocation2 + $0x1ec] ss:$2 sm:$0x7f]  ;;  %v3179_v0 = vld [vmem:[#allocation2 + $0x1ed] ss:$2 sm:$0x7f] }
 0x1ea   : > { %2691 = vst.msk [vmem:[#allocation2 + $0x208] sm:$0xff] %vm2625_vm4, %v1823_v12  ;;  %5093 = vmatmul.mubr.msk.bf16.gmra.mrb[236].mxu0 %vm1122_vm3, %v5525_v3  ;;  %v3826_v17 = vsel %vm5950_vm7, %v4698_v15, %v4602_v9  ;;  %2825 = vst.msk [vmem:[#allocation2 + $0x638] sm:$0xff] %vm2625_vm4, %v2359_v58  ;;  %5361 = vmatmul.mubr.msk.bf16.gmra.mrb[236].mxu1 %vm1122_vm3, %v5526_v8  ;;  %v5532_v8 = vld [vmem:[%s5602_s21 + $0x408] sm:$0xff]   ;;  %v3182_v14 = vmax.f32 %v3173_v62, %v3179_v0  ;;  %v5535_v0 = vld [vmem:[%s5602_s21 + $0x200] sm:$0xff]  }
 0x1eb   : > { %5096 = vmatprep.mubr.msk.bf16.mxu0 %vm5553_vm2, %v5551_v1  ;;  %4603 = vst [vmem:[%s5912_s27 + $0xc8] sm:$0xf] %v3826_v17  ;;  %5364 = vmatprep.mubr.msk.bf16.mxu1 %vm5553_vm2, %v5551_v1  ;;  %v3829_v15 = vld [vmem:[#allocation2 + $0x61c] ss:$2 sm:$0xff]  ;;  %v3835_v58 = vld [vmem:[#allocation2 + $0x61d] ss:$2 sm:$0xff] }
 0x1ed   : > { %v1827_v18 = vpop.f32.mrb[132].mxu0  ;;  %v2363_v20 = vpop.f32.mrb[132].mxu1 }
 0x1ee   : > { %v1828_v19 = vadd.f32 %v6438_v10, %v1827_v18  ;;  %v4990_v21 = vpop.f32.mrb[133].mxu0  ;;  %v2364_v26 = vadd.f32 %v6438_v10, %v2363_v20  ;;  %v5258_v27 = vpop.f32.mrb[133].mxu1 }
 0x1ef   : > { %v1830_v28 = vpop.f32.mrb[134].mxu0  ;;  %v2366_v30 = vpop.f32.mrb[134].mxu1 }
 0x1f0   : > { %2692 = vst.msk [vmem:[#allocation2 + $0x210] sm:$0xff] %vm2625_vm4, %v1828_v19  ;;  %v1831_v29 = vadd.f32 %v6438_v10, %v1830_v28  ;;  %v4991_v31 = vpop.f32.mrb[135].mxu0  ;;  %2826 = vst.msk [vmem:[#allocation2 + $0x640] sm:$0xff] %vm2625_vm4, %v2364_v26  ;;  %v2367_v34 = vadd.f32 %v6438_v10, %v2366_v30  ;;  %v5259_v35 = vpop.f32.mrb[135].mxu1  ;;  %v3840_v28 = vmax.f32 %v3829_v15, %v3835_v58 }
 0x1f1   : > { %v3184_v32 = vld [vmem:[#allocation2 + $0x1fa] ss:$2 sm:$0xff]  ;;  %v3190_v33 = vld [vmem:[#allocation2 + $0x1fb] ss:$2 sm:$0xff] }
 0x1f2   : > { %v3195_v37 = vmax.f32 %v3184_v32, %v3190_v33  ;;  %2693 = vst.msk [vmem:[#allocation2 + $0x218] sm:$0xff] %vm2625_vm4, %v1831_v29  ;;  %5097 = vmatmul.mubr.msk.bf16.gmra.mrb[240].mxu0 %vm1122_vm3, %v5527_v22  ;;  %2827 = vst.msk [vmem:[#allocation2 + $0x648] sm:$0xff] %vm2625_vm4, %v2367_v34  ;;  %5365 = vmatmul.mubr.msk.bf16.gmra.mrb[240].mxu1 %vm1122_vm3, %v5528_v23  ;;  %v4525_v31 = vld [vmem:[%s5912_s27 + $0x44] sm:$0xf]  ;;  %v3831_v47 = vld [vmem:[#allocation2 + $0x62c] ss:$2 sm:$0xff] }
 0x1f3   : > { %5100 = vmatprep.mubr.msk.bf16.mxu0 %vm5553_vm2, %v5551_v1  ;;  %5368 = vmatprep.mubr.msk.bf16.mxu1 %vm5553_vm2, %v5551_v1 }
 0x1f4   : > { %v3198_v38 = vmax.f32 %v3180_v36, %v3195_v37 }
 0x1f5   : > { %v1835_v39 = vpop.f32.mrb[136].mxu0  ;;  %v2371_v42 = vpop.f32.mrb[136].mxu1 }
 0x1f6   : > { %v3201_v40 = vmax.f32 %v3198_v38, 0.0  ;;  %v1836_v41 = vadd.f32 %v6438_v10, %v1835_v39  ;;  %v4994_v43 = vpop.f32.mrb[137].mxu0  ;;  %v2372_v48 = vadd.f32 %v6438_v10, %v2371_v42  ;;  %v5262_v49 = vpop.f32.mrb[137].mxu1  ;;  %v5533_v38 = vld [vmem:[%s5602_s21 + $0x1f8] sm:$0xff]   ;;  %v5534_v42 = vld [vmem:[%s5602_s21 + $0x410] sm:$0xff]  }
 0x1f7   : > { %v1838_v50 = vpop.f32.mrb[138].mxu0  ;;  %v2374_v53 = vpop.f32.mrb[138].mxu1 }
 0x1f8   : > { %v4663_v51 = vpack.c.bf16 %v3201_v40, %v3201_v40  ;;  %2694 = vst.msk [vmem:[#allocation2 + $0x220] sm:$0xff] %vm2625_vm4, %v1836_v41  ;;  %v1839_v52 = vadd.f32 %v6438_v10, %v1838_v50  ;;  %v4995_v54 = vpop.f32.mrb[139].mxu0  ;;  %2828 = vst.msk [vmem:[#allocation2 + $0x650] sm:$0xff] %vm2625_vm4, %v2372_v48  ;;  %v2375_v56 = vadd.f32 %v6438_v10, %v2374_v53  ;;  %v5263_v57 = vpop.f32.mrb[139].mxu1  ;;  %v3837_v48 = vld [vmem:[#allocation2 + $0x62d] ss:$2 sm:$0xff] }
 0x1f9   : > { %v3186_v61 = vld [vmem:[#allocation2 + $0x20a] ss:$2 sm:$0xff]  ;;  %v3192_v55 = vld [vmem:[#allocation2 + $0x20b] ss:$2 sm:$0xff] }
 0x1fa   : > { %4523 = vst.msk [vmem:[%s5912_s27 + $0x3c] sm:$0xf] %vm2890_vm5, %v4663_v51  ;;  %v3196_v60 = vmax.f32 %v3186_v61, %v3192_v55  ;;  %5101 = vmatmul.mubr.msk.bf16.gmra.mrb[244].mxu0 %vm1122_vm3, %v5529_v44  ;;  %5369 = vmatmul.mubr.msk.bf16.gmra.mrb[244].mxu1 %vm1122_vm3, %v5530_v45  ;;  %v3841_v61 = vmax.f32 %v3831_v47, %v3837_v48  ;;  %v3833_v57 = vld [vmem:[#allocation2 + $0x63c] ss:$2 sm:$0x7f] }
 0x1fb   : > { %2695 = vst.msk [vmem:[#allocation2 + $0x228] sm:$0xff] %vm2625_vm4, %v1839_v52  ;;  %2829 = vst.msk [vmem:[#allocation2 + $0x658] sm:$0xff] %vm2625_vm4, %v2375_v56  ;;  %5104 = vmatprep.mubr.msk.bf16.mxu0 %vm5553_vm2, %v5551_v1  ;;  %5372 = vmatprep.mubr.msk.bf16.mxu1 %vm5553_vm2, %v5551_v1 }
 0x1fc   : > { %v3199_v63 = vmax.f32 %v3181_v59, %v3196_v60 }
 0x1fd   : > { %v1843_v2 = vpop.f32.mrb[140].mxu0  ;;  %v2379_v5 = vpop.f32.mrb[140].mxu1 }
 0x1fe   : > { %v3202_v3 = vmax.f32 %v3199_v63, 0.0  ;;  %v1844_v4 = vadd.f32 %v6438_v10, %v1843_v2  ;;  %v4998_v6 = vpop.f32.mrb[141].mxu0  ;;  %v2380_v13 = vadd.f32 %v6438_v10, %v2379_v5  ;;  %v5266_v18 = vpop.f32.mrb[141].mxu1  ;;  %v3839_v2 = vld [vmem:[#allocation2 + $0x63d] ss:$2 sm:$0x7f] }
 0x1ff   : > { %v3188_v9 = vld [vmem:[#allocation2 + $0x21a] ss:$2 sm:$0x7f]  ;;  %v3194_v12 = vld [vmem:[#allocation2 + $0x21b] ss:$2 sm:$0x7f] }
 0x200   : > { %v4664_v16 = vpack.c.bf16 %v3202_v3, %v3202_v3  ;;  %v3197_v17 = vmax.f32 %v3188_v9, %v3194_v12  ;;  %2696 = vst.msk [vmem:[#allocation2 + $0x230] sm:$0xff] %vm2625_vm4, %v1844_v4  ;;  %v1846_v19 = vpop.f32.mrb[142].mxu0  ;;  %2830 = vst.msk [vmem:[#allocation2 + $0x660] sm:$0xff] %vm2625_vm4, %v2380_v13  ;;  %v2382_v21 = vpop.f32.mrb[142].mxu1  ;;  %v5536_v5 = vld [vmem:[%s5602_s21 + $0x418] sm:$0xff]  }
 0x201   : > { %v1847_v20 = vadd.f32 %v6438_v10, %v1846_v19  ;;  %v4999_v22 = vpop.f32.mrb[143].mxu0  ;;  %v2383_v26 = vadd.f32 %v6438_v10, %v2382_v21  ;;  %v5267_v27 = vpop.f32.mrb[143].mxu1 }
 0x202   : > { %4524 = vst.msk [vmem:[%s5912_s27 + $0x40] sm:$0xf] %vm2890_vm5, %v4664_v16  ;;  %v3200_v23 = vmax.f32 %v3182_v14, %v3197_v17  ;;  %v3844_v24 = vld [vmem:[#allocation2 + $0x64a] ss:$2 sm:$0xff]  ;;  %v3850_v25 = vld [vmem:[#allocation2 + $0x64b] ss:$2 sm:$0xff]  ;;  %5105 = vmatmul.mubr.msk.bf16.gmra.mrb[248].mxu0 %vm1122_vm3, %v5531_v7  ;;  %5373 = vmatmul.mubr.msk.bf16.gmra.mrb[248].mxu1 %vm1122_vm3, %v5532_v8  ;;  %v3842_v16 = vmax.f32 %v3833_v57, %v3839_v2 }
 0x203   : > { %v3855_v29 = vmax.f32 %v3844_v24, %v3850_v25  ;;  %2697 = vst.msk [vmem:[#allocation2 + $0x238] sm:$0xff] %vm2625_vm4, %v1847_v20  ;;  %5108 = vmatprep.mubr.msk.bf16.mxu0 %vm5553_vm2, %v5551_v1  ;;  %2831 = vst.msk [vmem:[#allocation2 + $0x668] sm:$0xff] %vm2625_vm4, %v2383_v26  ;;  %5376 = vmatprep.mubr.msk.bf16.mxu1 %vm5553_vm2, %v5551_v1  ;;  %v5537_v25 = vld [vmem:[%s5602_s21 + $0x208] sm:$0xff]   ;;  %v4609_v26 = vld [vmem:[%s5912_s27 + $0xd4] sm:$0xf] }
 0x204   : > { %v3203_v30 = vmax.f32 %v3200_v23, 0.0 }
 0x205   : > { %v3858_v32 = vmax.f32 %v3840_v28, %v3855_v29  ;;  %v1851_v33 = vpop.f32.mrb[144].mxu0  ;;  %v2387_v36 = vpop.f32.mrb[144].mxu1  ;;  %v5538_v28 = vld [vmem:[%s5602_s21 + $0x420] ss:$0 sps:$4 sm:$0x33]  }
 0x206   : > { %v4665_v34 = vpack.c.bf16 %v3203_v30, %v3203_v30  ;;  %v1852_v35 = vadd.f32 %v6438_v10, %v1851_v33  ;;  %v5002_v37 = vpop.f32.mrb[145].mxu0  ;;  %v2388_v40 = vadd.f32 %v6438_v10, %v2387_v36  ;;  %v5270_v46 = vpop.f32.mrb[145].mxu1 }
 0x207   : > { %v3861_v39 = vmax.f32 %v3858_v32, 0.0  ;;  %v1854_v41 = vpop.f32.mrb[146].mxu0  ;;  %v2390_v50 = vpop.f32.mrb[146].mxu1 }
 0x208   : > { %v3221_v43 = vsel %vm5950_vm7, %v4665_v34, %v4525_v31  ;;  %2698 = vst.msk [vmem:[#allocation2 + $0x240] sm:$0xff] %vm2625_vm4, %v1852_v35  ;;  %v1855_v44 = vadd.f32 %v6438_v10, %v1854_v41  ;;  %v5003_v45 = vpop.f32.mrb[147].mxu0  ;;  %2832 = vst.msk [vmem:[#allocation2 + $0x670] sm:$0xff] %vm2625_vm4, %v2388_v40  ;;  %v2391_v51 = vadd.f32 %v6438_v10, %v2390_v50  ;;  %v5271_v52 = vpop.f32.mrb[147].mxu1 }
 0x209   : > { %4526 = vst [vmem:[%s5912_s27 + $0x44] sm:$0xf] %v3221_v43  ;;  %v4699_v49 = vpack.c.bf16 %v3861_v39, %v3861_v39  ;;  %v3230_v39 = vld [vmem:[#allocation2 + $0x229] ss:$2 sm:$0xff] }
 0x20a   : > { %2699 = vst.msk [vmem:[#allocation2 + $0x248] sm:$0xff] %vm2625_vm4, %v1855_v44  ;;  %5109 = vmatmul.mubr.msk.bf16.gmra.mrb[252].mxu0 %vm1122_vm3, %v5533_v38  ;;  %v3846_v53 = vld [vmem:[#allocation2 + $0x65a] ss:$2 sm:$0xff]  ;;  %v3852_v54 = vld [vmem:[#allocation2 + $0x65b] ss:$2 sm:$0xff]  ;;  %5377 = vmatmul.mubr.msk.bf16.gmra.mrb[252].mxu1 %vm1122_vm3, %v5534_v42  ;;  %2833 = vst.msk [vmem:[#allocation2 + $0x678] sm:$0xff] %vm2625_vm4, %v2391_v51 }
 0x20b   : > { %4607 = vst.msk [vmem:[%s5912_s27 + $0xcc] sm:$0xf] %vm2890_vm5, %v4699_v49  ;;  %5112 = vmatprep.mubr.msk.bf16.mxu0 %vm5553_vm2, %v5551_v1  ;;  %v3856_v55 = vmax.f32 %v3846_v53, %v3852_v54  ;;  %5380 = vmatprep.mubr.msk.bf16.mxu1 %vm5553_vm2, %v5551_v1  ;;  %v3224_v38 = vld [vmem:[#allocation2 + $0x228] ss:$2 sm:$0xff] }
 0x20c   : > { %v5539_v44 = vld [vmem:[%s5602_s21 + $0x210] sm:$0xff]   ;;  %v3235_v50 = vmax.f32 %v3224_v38, %v3230_v39 }
 0x20d   : > { %v1859_v56 = vpop.f32.mrb[148].mxu0  ;;  %v3859_v59 = vmax.f32 %v3841_v61, %v3856_v55  ;;  %v2395_v63 = vpop.f32.mrb[148].mxu1 }
 0x20e   : > { %v1860_v60 = vadd.f32 %v6438_v10, %v1859_v56  ;;  %v5006_v62 = vpop.f32.mrb[149].mxu0  ;;  %v2396_v3 = vadd.f32 %v6438_v10, %v2395_v63  ;;  %v5274_v6 = vpop.f32.mrb[149].mxu1 }
 0x20f   : > { %v1862_v4 = vpop.f32.mrb[150].mxu0  ;;  %v3862_v7 = vmax.f32 %v3859_v59, 0.0  ;;  %v3848_v8 = vld [vmem:[#allocation2 + $0x66a] ss:$2 sm:$0x7f]  ;;  %v2398_v13 = vpop.f32.mrb[150].mxu1 }
 0x210   : > { %2700 = vst.msk [vmem:[#allocation2 + $0x250] sm:$0xff] %vm2625_vm4, %v1860_v60  ;;  %v1863_v9 = vadd.f32 %v6438_v10, %v1862_v4  ;;  %v5007_v12 = vpop.f32.mrb[151].mxu0  ;;  %v3854_v14 = vld [vmem:[#allocation2 + $0x66b] ss:$2 sm:$0x7f]  ;;  %2834 = vst.msk [vmem:[#allocation2 + $0x680] sm:$0xff] %vm2625_vm4, %v2396_v3  ;;  %v2399_v15 = vadd.f32 %v6438_v10, %v2398_v13 }
 0x211   : > { %v5275_v58 = vpop.f32.mrb[151].mxu1  ;;  %v4700_v17 = vpack.c.bf16 %v3862_v7, %v3862_v7  ;;  %v3857_v18 = vmax.f32 %v3848_v8, %v3854_v14  ;;  %v3226_v57 = vld [vmem:[#allocation2 + $0x238] ss:$2 sm:$0xff]  ;;  %v3232_v59 = vld [vmem:[#allocation2 + $0x239] ss:$2 sm:$0xff] }
 0x212   : > { %2701 = vst.msk [vmem:[#allocation2 + $0x258] sm:$0xff] %vm2625_vm4, %v1863_v9  ;;  %5113 = vmatmul.mubr.msk.bf16.gmra.mrb[0].mxu0 %vm1122_vm3, %v5535_v0  ;;  %5381 = vmatmul.mubr.msk.bf16.gmra.mrb[0].mxu1 %vm1122_vm3, %v5536_v5  ;;  %2835 = vst.msk [vmem:[#allocation2 + $0x688] sm:$0xff] %vm2625_vm4, %v2399_v15  ;;  %v3236_v8 = vmax.f32 %v3226_v57, %v3232_v59 }
 0x213   : > { %5116 = vmatprep.mubr.msk.bf16.mxu0 %vm5553_vm2, %v5551_v1  ;;  %4608 = vst.msk [vmem:[%s5912_s27 + $0xd0] sm:$0xf] %vm2890_vm5, %v4700_v17  ;;  %v3860_v19 = vmax.f32 %v3842_v16, %v3857_v18  ;;  %5384 = vmatprep.mubr.msk.bf16.mxu1 %vm5553_vm2, %v5551_v1 }
 0x215   : > { %v1867_v20 = vpop.f32.mrb[152].mxu0  ;;  %v3863_v21 = vmax.f32 %v3860_v19, 0.0  ;;  %v2403_v24 = vpop.f32.mrb[152].mxu1 }
 0x216   : > { %v1868_v22 = vadd.f32 %v6438_v10, %v1867_v20  ;;  %v5010_v23 = vpop.f32.mrb[153].mxu0  ;;  %v2404_v27 = vadd.f32 %v6438_v10, %v2403_v24  ;;  %v5278_v31 = vpop.f32.mrb[153].mxu1 }
 0x217   : > { %v4701_v29 = vpack.c.bf16 %v3863_v21, %v3863_v21  ;;  %v1870_v30 = vpop.f32.mrb[154].mxu0  ;;  %v2406_v34 = vpop.f32.mrb[154].mxu1  ;;  %v3228_v17 = vld [vmem:[#allocation2 + $0x248] ss:$2 sm:$0x7f] }
 0x218   : > { %2702 = vst.msk [vmem:[#allocation2 + $0x260] sm:$0xff] %vm2625_vm4, %v1868_v22  ;;  %2836 = vst.msk [vmem:[#allocation2 + $0x690] sm:$0xff] %vm2625_vm4, %v2404_v27  ;;  %v1871_v32 = vadd.f32 %v6438_v10, %v1870_v30  ;;  %v5011_v33 = vpop.f32.mrb[155].mxu0  ;;  %v2407_v36 = vadd.f32 %v6438_v10, %v2406_v34  ;;  %v5279_v37 = vpop.f32.mrb[155].mxu1  ;;  %v3884_v21 = vld [vmem:[#allocation2 + $0x678] ss:$2 sm:$0xff] }
 0x219   : > { %v3881_v35 = vsel %vm5950_vm7, %v4701_v29, %v4609_v26  ;;  %v3234_v19 = vld [vmem:[#allocation2 + $0x249] ss:$2 sm:$0x7f]  ;;  %v3890_v22 = vld [vmem:[#allocation2 + $0x679] ss:$2 sm:$0xff] }
 0x21a   : > { %5117 = vmatmul.mubr.msk.bf16.gmra.mrb[4].mxu0 %vm1122_vm3, %v5537_v25  ;;  %4610 = vst [vmem:[%s5912_s27 + $0xd4] sm:$0xf] %v3881_v35  ;;  %2703 = vst.msk [vmem:[#allocation2 + $0x268] sm:$0xff] %vm2625_vm4, %v1871_v32  ;;  %5385 = vmatmul.mubr.msk.bf16.gmra.mrb[4].mxu1 %vm1122_vm3, %v5538_v28  ;;  %v3237_v30 = vmax.f32 %v3228_v17, %v3234_v19 }
 0x21b   : > { %5120 = vmatprep.mubr.msk.bf16.mxu0 %vm5553_vm2, %v5551_v1  ;;  %2837 = vst.msk [vmem:[#allocation2 + $0x698] sm:$0xff] %vm2625_vm4, %v2407_v36  ;;  %v3895_v36 = vmax.f32 %v3884_v21, %v3890_v22 }
 0x21d   : > { %v1875_v40 = vpop.f32.mrb[156].mxu0  ;;  %v2411_v43 = vpop.f32.mrb[156].mxu1 }
 0x21e   : > { %v1876_v41 = vadd.f32 %v6438_v10, %v1875_v40  ;;  %v5014_v42 = vpop.f32.mrb[157].mxu0  ;;  %v2412_v47 = vadd.f32 %v6438_v10, %v2411_v43  ;;  %v5282_v49 = vpop.f32.mrb[157].mxu1 }
 0x21f   : > { %v3239_v45 = vld [vmem:[#allocation2 + $0x256] ss:$2 sm:$0xff]  ;;  %v3245_v46 = vld [vmem:[#allocation2 + $0x257] ss:$2 sm:$0xff]  ;;  %v1878_v48 = vpop.f32.mrb[158].mxu0  ;;  %v2414_v53 = vpop.f32.mrb[158].mxu1 }
 0x220   : > { %v3250_v51 = vmax.f32 %v3239_v45, %v3245_v46  ;;  %2704 = vst.msk [vmem:[#allocation2 + $0x270] sm:$0xff] %vm2625_vm4, %v1876_v41  ;;  %v1879_v1 = vadd.f32 %v6438_v10, %v1878_v48  ;;  %v5015_v52 = vpop.f32.mrb[159].mxu0  ;;  %2838 = vst.msk [vmem:[#allocation2 + $0x6a0] sm:$0xff] %vm2625_vm4, %v2412_v47  ;;  %v2415_v54 = vadd.f32 %v6438_v10, %v2414_v53  ;;  %v5283_v61 = vpop.f32.mrb[159].mxu1  ;;  %v4532_v46 = vld [vmem:[%s5912_s27 + $0x50] sm:$0xf] }
 0x221   : > { %v3886_v49 = vld [vmem:[#allocation2 + $0x688] ss:$2 sm:$0xff] }
 0x222   : > { %v3253_v55 = vmax.f32 %v3235_v50, %v3250_v51  ;;  %2705 = vst.msk [vmem:[#allocation2 + $0x278] sm:$0xff] %vm2625_vm4, %v1879_v1  ;;  %5121 = vmatmul.mubr.msk.bf16.gmra.mrb[8].mxu0 %vm1122_vm3, %v5539_v44  ;;  %2839 = vst.msk [vmem:[#allocation2 + $0x6a8] sm:$0xff] %vm2625_vm4, %v2415_v54  ;;  %v3892_v50 = vld [vmem:[#allocation2 + $0x689] ss:$2 sm:$0xff] }
 0x224   : > { %v3256_v56 = vmax.f32 %v3253_v55, 0.0 }
 0x225   : > { %v1883_v60 = vpop.f32.mrb[160].mxu0  ;;  %v2419_v0 = vpop.f32.mrb[160].mxu1 }
 0x226   : > { %v4666_v62 = vpack.c.bf16 %v3256_v56, %v3256_v56  ;;  %v1884_v63 = vadd.f32 %v6438_v10, %v1883_v60  ;;  %v5018_v2 = vpop.f32.mrb[161].mxu0  ;;  %v2420_v5 = vadd.f32 %v6438_v10, %v2419_v0  ;;  %v5286_v7 = vpop.f32.mrb[161].mxu1 }
 0x227   : > { %v3241_v3 = vld [vmem:[#allocation2 + $0x266] ss:$2 sm:$0xff]  ;;  %v3247_v4 = vld [vmem:[#allocation2 + $0x267] ss:$2 sm:$0xff]  ;;  %v1886_v6 = vpop.f32.mrb[162].mxu0  ;;  %v2422_v14 = vpop.f32.mrb[162].mxu1  ;;  %v3896_v2 = vmax.f32 %v3886_v49, %v3892_v50 }
 0x228   : > { %4530 = vst.msk [vmem:[%s5912_s27 + $0x48] sm:$0xf] %vm2890_vm5, %v4666_v62  ;;  %v3251_v9 = vmax.f32 %v3241_v3, %v3247_v4  ;;  %v1887_v12 = vadd.f32 %v6438_v10, %v1886_v6  ;;  %v5019_v13 = vpop.f32.mrb[163].mxu0  ;;  %v2423_v58 = vadd.f32 %v6438_v10, %v2422_v14  ;;  %v5287_v16 = vpop.f32.mrb[163].mxu1 }
 0x229   : > { %2706 = vst.msk [vmem:[#allocation2 + $0x280] sm:$0xff] %vm2625_vm4, %v1884_v63  ;;  %2840 = vst.msk [vmem:[#allocation2 + $0x6b0] sm:$0xff] %vm2625_vm4, %v2420_v5  ;;  %v3888_v7 = vld [vmem:[#allocation2 + $0x698] ss:$2 sm:$0x7f] }
 0x22a   : > { %v3254_v15 = vmax.f32 %v3236_v8, %v3251_v9  ;;  %2707 = vst.msk [vmem:[#allocation2 + $0x288] sm:$0xff] %vm2625_vm4, %v1887_v12  ;;  %2841 = vst.msk [vmem:[#allocation2 + $0x6b8] sm:$0xff] %vm2625_vm4, %v2423_v58  ;;  %v3894_v12 = vld [vmem:[#allocation2 + $0x699] ss:$2 sm:$0x7f] }
 0x22b   : > { %v3897_v22 = vmax.f32 %v3888_v7, %v3894_v12 }
 0x22c   : > { %v3257_v18 = vmax.f32 %v3254_v15, 0.0 }
 0x22d   : > { %v1891_v20 = vpop.f32.mrb[164].mxu0  ;;  %v2427_v25 = vpop.f32.mrb[164].mxu1 }
 0x22e   : > { %v4667_v23 = vpack.c.bf16 %v3257_v18, %v3257_v18  ;;  %v1892_v24 = vadd.f32 %v6438_v10, %v1891_v20  ;;  %v5022_v26 = vpop.f32.mrb[165].mxu0  ;;  %v2428_v29 = vadd.f32 %v6438_v10, %v2427_v25  ;;  %v5290_v35 = vpop.f32.mrb[165].mxu1 }
 0x22f   : > { %v1894_v34 = vpop.f32.mrb[166].mxu0  ;;  %v2430_v40 = vpop.f32.mrb[166].mxu1 }
 0x230   : > { %v3243_v27 = vld [vmem:[#allocation2 + $0x276] ss:$2 sm:$0x7f]  ;;  %v3249_v28 = vld [vmem:[#allocation2 + $0x277] ss:$2 sm:$0x7f]  ;;  %v1895_v38 = vadd.f32 %v6438_v10, %v1894_v34  ;;  %v2431_v42 = vadd.f32 %v6438_v10, %v2430_v40 }
 0x231   : > { %4531 = vst.msk [vmem:[%s5912_s27 + $0x4c] sm:$0xf] %vm2890_vm5, %v4667_v23  ;;  %v3252_v31 = vmax.f32 %v3243_v27, %v3249_v28  ;;  %v3899_v32 = vld [vmem:[#allocation2 + $0x6a6] ss:$2 sm:$0xff]  ;;  %v3905_v33 = vld [vmem:[#allocation2 + $0x6a7] ss:$2 sm:$0xff] }
 0x232   : > { %2708 = vst.msk [vmem:[#allocation2 + $0x290] sm:$0xff] %vm2625_vm4, %v1892_v24  ;;  %v3910_v37 = vmax.f32 %v3899_v32, %v3905_v33  ;;  %2842 = vst.msk [vmem:[#allocation2 + $0x6c0] sm:$0xff] %vm2625_vm4, %v2428_v29  ;;  %v5023_v39 = vpop.f32.mrb[167].mxu0  ;;  %v5291_v43 = vpop.f32.mrb[167].mxu1 }
 0x233   : > { %v3255_v41 = vmax.f32 %v3237_v30, %v3252_v31  ;;  %2709 = vst.msk [vmem:[#allocation2 + $0x298] sm:$0xff] %vm2625_vm4, %v1895_v38  ;;  %2843 = vst.msk [vmem:[#allocation2 + $0x6c8] sm:$0xff] %vm2625_vm4, %v2431_v42  ;;  %v4616_v31 = vld [vmem:[%s5912_s27 + $0xe0] sm:$0xf] }
 0x234   : > { %v3913_v44 = vmax.f32 %v3895_v36, %v3910_v37 }
 0x235   : > { %v3258_v45 = vmax.f32 %v3255_v41, 0.0  ;;  %v1899_v48 = vpop.f32.mrb[168].mxu0  ;;  %v2435_v52 = vpop.f32.mrb[168].mxu1 }
 0x236   : > { %v3916_v47 = vmax.f32 %v3913_v44, 0.0  ;;  %v1900_v1 = vadd.f32 %v6438_v10, %v1899_v48  ;;  %v5026_v53 = vpop.f32.mrb[169].mxu0  ;;  %v2436_v61 = vadd.f32 %v6438_v10, %v2435_v52  ;;  %v5294_v56 = vpop.f32.mrb[169].mxu1 }
 0x237   : > { %v4668_v51 = vpack.c.bf16 %v3258_v45, %v3258_v45  ;;  %v1902_v55 = vpop.f32.mrb[170].mxu0  ;;  %v2438_v0 = vpop.f32.mrb[170].mxu1 }
 0x238   : > { %v4702_v54 = vpack.c.bf16 %v3916_v47, %v3916_v47  ;;  %2710 = vst.msk [vmem:[#allocation2 + $0x2a0] sm:$0xff] %vm2625_vm4, %v1900_v1  ;;  %v1903_v62 = vadd.f32 %v6438_v10, %v1902_v55  ;;  %v5027_v63 = vpop.f32.mrb[171].mxu0  ;;  %2844 = vst.msk [vmem:[#allocation2 + $0x6d0] sm:$0xff] %vm2625_vm4, %v2436_v61  ;;  %v2439_v4 = vadd.f32 %v6438_v10, %v2438_v0  ;;  %v5295_v5 = vpop.f32.mrb[171].mxu1 }
 0x239   : > { %v3276_v57 = vsel %vm5950_vm7, %v4668_v51, %v4532_v46  ;;  %v3901_v59 = vld [vmem:[#allocation2 + $0x6b6] ss:$2 sm:$0xff]  ;;  %v3907_v60 = vld [vmem:[#allocation2 + $0x6b7] ss:$2 sm:$0xff] }
 0x23a   : > { %4533 = vst [vmem:[%s5912_s27 + $0x50] sm:$0xf] %v3276_v57  ;;  %4614 = vst.msk [vmem:[%s5912_s27 + $0xd8] sm:$0xf] %vm2890_vm5, %v4702_v54  ;;  %v3911_v3 = vmax.f32 %v3901_v59, %v3907_v60  ;;  %v3279_v45 = vld [vmem:[#allocation2 + $0x284] ss:$2 sm:$0xff] }
 0x23b   : > { %2711 = vst.msk [vmem:[#allocation2 + $0x2a8] sm:$0xff] %vm2625_vm4, %v1903_v62  ;;  %2845 = vst.msk [vmem:[#allocation2 + $0x6d8] sm:$0xff] %vm2625_vm4, %v2439_v4  ;;  %v3285_v46 = vld [vmem:[#allocation2 + $0x285] ss:$2 sm:$0xff] }
 0x23c   : > { %v3914_v6 = vmax.f32 %v3896_v2, %v3911_v3  ;;  %v3290_v61 = vmax.f32 %v3279_v45, %v3285_v46 }
 0x23d   : > { %v1907_v9 = vpop.f32.mrb[172].mxu0  ;;  %v2443_v15 = vpop.f32.mrb[172].mxu1 }
 0x23e   : > { %v3917_v8 = vmax.f32 %v3914_v6, 0.0  ;;  %v1908_v13 = vadd.f32 %v6438_v10, %v1907_v9  ;;  %v5030_v14 = vpop.f32.mrb[173].mxu0  ;;  %v2444_v16 = vadd.f32 %v6438_v10, %v2443_v15  ;;  %v5298_v18 = vpop.f32.mrb[173].mxu1 }
 0x23f   : > { %v1910_v17 = vpop.f32.mrb[174].mxu0  ;;  %v3903_v19 = vld [vmem:[#allocation2 + $0x6c6] ss:$2 sm:$0x7f]  ;;  %v2446_v25 = vpop.f32.mrb[174].mxu1 }
 0x240   : > { %v4703_v58 = vpack.c.bf16 %v3917_v8, %v3917_v8  ;;  %v3909_v20 = vld [vmem:[#allocation2 + $0x6c7] ss:$2 sm:$0x7f]  ;;  %2712 = vst.msk [vmem:[#allocation2 + $0x2b0] sm:$0xff] %vm2625_vm4, %v1908_v13  ;;  %v1911_v21 = vadd.f32 %v6438_v10, %v1910_v17  ;;  %2846 = vst.msk [vmem:[#allocation2 + $0x6e0] sm:$0xff] %vm2625_vm4, %v2444_v16  ;;  %v5031_v24 = vpop.f32.mrb[175].mxu0  ;;  %v2447_v26 = vadd.f32 %v6438_v10, %v2446_v25 }
 0x241   : > { %v3912_v23 = vmax.f32 %v3903_v19, %v3909_v20  ;;  %v5299_v27 = vpop.f32.mrb[175].mxu1  ;;  %v3281_v0 = vld [vmem:[#allocation2 + $0x294] ss:$2 sm:$0xff]  ;;  %v3287_v3 = vld [vmem:[#allocation2 + $0x295] ss:$2 sm:$0xff] }
 0x242   : > { %4615 = vst.msk [vmem:[%s5912_s27 + $0xdc] sm:$0xf] %vm2890_vm5, %v4703_v58  ;;  %v3291_v17 = vmax.f32 %v3281_v0, %v3287_v3 }
 0x243   : > { %2713 = vst.msk [vmem:[#allocation2 + $0x2b8] sm:$0xff] %vm2625_vm4, %v1911_v21  ;;  %v3915_v28 = vmax.f32 %v3897_v22, %v3912_v23  ;;  %2847 = vst.msk [vmem:[#allocation2 + $0x6e8] sm:$0xff] %vm2625_vm4, %v2447_v26 }
 0x245   : > { %v3918_v29 = vmax.f32 %v3915_v28, 0.0  ;;  %v1915_v30 = vpop.f32.mrb[176].mxu0  ;;  %v2451_v34 = vpop.f32.mrb[176].mxu1 }
 0x246   : > { %v1916_v32 = vadd.f32 %v6438_v10, %v1915_v30  ;;  %v5034_v33 = vpop.f32.mrb[177].mxu0  ;;  %v2452_v36 = vadd.f32 %v6438_v10, %v2451_v34  ;;  %v5302_v38 = vpop.f32.mrb[177].mxu1 }
 0x247   : > { %v4704_v35 = vpack.c.bf16 %v3918_v29, %v3918_v29  ;;  %v1918_v37 = vpop.f32.mrb[178].mxu0  ;;  %v2454_v42 = vpop.f32.mrb[178].mxu1  ;;  %v3283_v4 = vld [vmem:[#allocation2 + $0x2a4] ss:$2 sm:$0x7f] }
 0x248   : > { %2714 = vst.msk [vmem:[#allocation2 + $0x2c0] sm:$0xff] %vm2625_vm4, %v1916_v32  ;;  %2848 = vst.msk [vmem:[#allocation2 + $0x6f0] sm:$0xff] %vm2625_vm4, %v2452_v36  ;;  %v1919_v40 = vadd.f32 %v6438_v10, %v1918_v37  ;;  %v5035_v41 = vpop.f32.mrb[179].mxu0  ;;  %v2455_v43 = vadd.f32 %v6438_v10, %v2454_v42  ;;  %v5303_v44 = vpop.f32.mrb[179].mxu1  ;;  %v3945_v33 = vld [vmem:[#allocation2 + $0x6d5] ss:$2 sm:$0xff] }
 0x249   : > { %v3936_v39 = vsel %vm5950_vm7, %v4704_v35, %v4616_v31  ;;  %v3289_v6 = vld [vmem:[#allocation2 + $0x2a5] ss:$2 sm:$0x7f]  ;;  %v3939_v31 = vld [vmem:[#allocation2 + $0x6d4] ss:$2 sm:$0xff] }
 0x24a   : > { %4617 = vst [vmem:[%s5912_s27 + $0xe0] sm:$0xf] %v3936_v39  ;;  %2715 = vst.msk [vmem:[#allocation2 + $0x2c8] sm:$0xff] %vm2625_vm4, %v1919_v40  ;;  %v3292_v22 = vmax.f32 %v3283_v4, %v3289_v6  ;;  %v4539_v39 = vld [vmem:[%s5912_s27 + $0x5c] sm:$0xf] }
 0x24b   : > { %2849 = vst.msk [vmem:[#allocation2 + $0x6f8] sm:$0xff] %vm2625_vm4, %v2455_v43 }
 0x24d   : > { %v1923_v47 = vpop.f32.mrb[180].mxu0  ;;  %v2459_v50 = vpop.f32.mrb[180].mxu1 }
 0x24e   : > { %v1924_v48 = vadd.f32 %v6438_v10, %v1923_v47  ;;  %v5038_v49 = vpop.f32.mrb[181].mxu0  ;;  %v2460_v52 = vadd.f32 %v6438_v10, %v2459_v50  ;;  %v5306_v54 = vpop.f32.mrb[181].mxu1 }
 0x24f   : > { %v3294_v51 = vld [vmem:[#allocation2 + $0x2b2] ss:$2 sm:$0xff]  ;;  %v3300_v1 = vld [vmem:[#allocation2 + $0x2b3] ss:$2 sm:$0xff]  ;;  %v1926_v53 = vpop.f32.mrb[182].mxu0  ;;  %v2462_v59 = vpop.f32.mrb[182].mxu1  ;;  %v3950_v49 = vmax.f32 %v3939_v31, %v3945_v33 }
 0x250   : > { %v3305_v55 = vmax.f32 %v3294_v51, %v3300_v1  ;;  %2716 = vst.msk [vmem:[#allocation2 + $0x2d0] sm:$0xff] %vm2625_vm4, %v1924_v48  ;;  %v1927_v56 = vadd.f32 %v6438_v10, %v1926_v53  ;;  %v5039_v57 = vpop.f32.mrb[183].mxu0  ;;  %2850 = vst.msk [vmem:[#allocation2 + $0x700] sm:$0xff] %vm2625_vm4, %v2460_v52  ;;  %v2463_v60 = vadd.f32 %v6438_v10, %v2462_v59  ;;  %v5307_v62 = vpop.f32.mrb[183].mxu1  ;;  %v3941_v54 = vld [vmem:[#allocation2 + $0x6e4] ss:$2 sm:$0xff] }
 0x251   : > { %v4623_v31 = vld [vmem:[%s5912_s27 + $0xec] sm:$0xf] }
 0x252   : > { %v3308_v63 = vmax.f32 %v3290_v61, %v3305_v55  ;;  %2717 = vst.msk [vmem:[#allocation2 + $0x2d8] sm:$0xff] %vm2625_vm4, %v1927_v56  ;;  %2851 = vst.msk [vmem:[#allocation2 + $0x708] sm:$0xff] %vm2625_vm4, %v2463_v60  ;;  %v3947_v61 = vld [vmem:[#allocation2 + $0x6e5] ss:$2 sm:$0xff] }
 0x254   : > { %v3311_v2 = vmax.f32 %v3308_v63, 0.0 }
 0x255   : > { %v1931_v5 = vpop.f32.mrb[184].mxu0  ;;  %v2467_v9 = vpop.f32.mrb[184].mxu1 }
 0x256   : > { %v4669_v7 = vpack.c.bf16 %v3311_v2, %v3311_v2  ;;  %v1932_v8 = vadd.f32 %v6438_v10, %v1931_v5  ;;  %v5042_v12 = vpop.f32.mrb[185].mxu0  ;;  %v2468_v15 = vadd.f32 %v6438_v10, %v2467_v9  ;;  %v5310_v16 = vpop.f32.mrb[185].mxu1 }
 0x257   : > { %v3296_v13 = vld [vmem:[#allocation2 + $0x2c2] ss:$2 sm:$0xff]  ;;  %v3302_v14 = vld [vmem:[#allocation2 + $0x2c3] ss:$2 sm:$0xff]  ;;  %v1934_v58 = vpop.f32.mrb[186].mxu0  ;;  %v2470_v26 = vpop.f32.mrb[186].mxu1  ;;  %v3951_v12 = vmax.f32 %v3941_v54, %v3947_v61 }
 0x258   : > { %4537 = vst.msk [vmem:[%s5912_s27 + $0x54] sm:$0xf] %vm2890_vm5, %v4669_v7  ;;  %v3306_v18 = vmax.f32 %v3296_v13, %v3302_v14  ;;  %v1935_v19 = vadd.f32 %v6438_v10, %v1934_v58  ;;  %v5043_v25 = vpop.f32.mrb[187].mxu0  ;;  %v2471_v27 = vadd.f32 %v6438_v10, %v2470_v26  ;;  %v5311_v28 = vpop.f32.mrb[187].mxu1 }
 0x259   : > { %2718 = vst.msk [vmem:[#allocation2 + $0x2e0] sm:$0xff] %vm2625_vm4, %v1932_v8  ;;  %v3298_v20 = vld [vmem:[#allocation2 + $0x2d2] ss:$2 sm:$0x7f]  ;;  %2852 = vst.msk [vmem:[#allocation2 + $0x710] sm:$0xff] %vm2625_vm4, %v2468_v15 }
 0x25a   : > { %v3304_v21 = vld [vmem:[#allocation2 + $0x2d3] ss:$2 sm:$0x7f]  ;;  %v3309_v23 = vmax.f32 %v3291_v17, %v3306_v18  ;;  %2719 = vst.msk [vmem:[#allocation2 + $0x2e8] sm:$0xff] %vm2625_vm4, %v1935_v19  ;;  %2853 = vst.msk [vmem:[#allocation2 + $0x718] sm:$0xff] %vm2625_vm4, %v2471_v27 }
 0x25b   : > { %v3307_v24 = vmax.f32 %v3298_v20, %v3304_v21  ;;  %v3943_v57 = vld [vmem:[#allocation2 + $0x6f4] ss:$2 sm:$0x7f]  ;;  %v3949_v63 = vld [vmem:[#allocation2 + $0x6f5] ss:$2 sm:$0x7f] }
 0x25c   : > { %v3312_v29 = vmax.f32 %v3309_v23, 0.0  ;;  %v3952_v17 = vmax.f32 %v3943_v57, %v3949_v63 }
 0x25d   : > { %v3310_v30 = vmax.f32 %v3292_v22, %v3307_v24  ;;  %v1939_v32 = vpop.f32.mrb[188].mxu0  ;;  %v2475_v37 = vpop.f32.mrb[188].mxu1 }
 0x25e   : > { %v4670_v34 = vpack.c.bf16 %v3312_v29, %v3312_v29  ;;  %v1940_v36 = vadd.f32 %v6438_v10, %v1939_v32  ;;  %v5046_v38 = vpop.f32.mrb[189].mxu0  ;;  %v2476_v40 = vadd.f32 %v6438_v10, %v2475_v37  ;;  %v5314_v41 = vpop.f32.mrb[189].mxu1 }
 0x25f   : > { %v3313_v35 = vmax.f32 %v3310_v30, 0.0  ;;  %v1942_v42 = vpop.f32.mrb[190].mxu0  ;;  %v2478_v47 = vpop.f32.mrb[190].mxu1 }
 0x260   : > { %4538 = vst.msk [vmem:[%s5912_s27 + $0x58] sm:$0xf] %vm2890_vm5, %v4670_v34  ;;  %v3954_v44 = vld [vmem:[#allocation2 + $0x702] ss:$2 sm:$0xff]  ;;  %v3960_v45 = vld [vmem:[#allocation2 + $0x703] ss:$2 sm:$0xff]  ;;  %v1943_v46 = vadd.f32 %v6438_v10, %v1942_v42  ;;  %v2479_v51 = vadd.f32 %v6438_v10, %v2478_v47 }
 0x261   : > { %v4671_v43 = vpack.c.bf16 %v3313_v35, %v3313_v35  ;;  %2720 = vst.msk [vmem:[#allocation2 + $0x2f0] sm:$0xff] %vm2625_vm4, %v1940_v36  ;;  %v5047_v48 = vpop.f32.mrb[191].mxu0  ;;  %v3965_v50 = vmax.f32 %v3954_v44, %v3960_v45  ;;  %2854 = vst.msk [vmem:[#allocation2 + $0x720] sm:$0xff] %vm2625_vm4, %v2476_v40  ;;  %v5315_v1 = vpop.f32.mrb[191].mxu1  ;;  %v6689_v40 = vld [vmem:[%s6882_s2] ss:$0 sm:$0xff] }
 0x262   : > { %2721 = vst.msk [vmem:[#allocation2 + $0x2f8] sm:$0xff] %vm2625_vm4, %v1943_v46  ;;  %2855 = vst.msk [vmem:[#allocation2 + $0x728] sm:$0xff] %vm2625_vm4, %v2479_v51  ;;  %v3340_v44 = vld [vmem:[#allocation2 + $0x2e1] ss:$2 sm:$0xff] }
 0x263   : > { %v3331_v52 = vsel %vm5950_vm7, %v4671_v43, %v4539_v39  ;;  %v3968_v53 = vmax.f32 %v3950_v49, %v3965_v50 }
 0x264   : > { %4540 = vst [vmem:[%s5912_s27 + $0x5c] sm:$0xf] %v3331_v52 }
 0x265   : > { %v3971_v55 = vmax.f32 %v3968_v53, 0.0  ;;  %v1947_v56 = vpop.f32.mrb[192].mxu0  ;;  %v2483_v62 = vpop.f32.mrb[192].mxu1 }
 0x266   : > { %v1948_v59 = vadd.f32 %v6438_v10, %v1947_v56  ;;  %v5050_v60 = vpop.f32.mrb[193].mxu0  ;;  %v2484_v3 = vadd.f32 %v6438_v10, %v2483_v62  ;;  %v5318_v4 = vpop.f32.mrb[193].mxu1 }
 0x267   : > { %v4705_v0 = vpack.c.bf16 %v3971_v55, %v3971_v55  ;;  %v1950_v2 = vpop.f32.mrb[194].mxu0  ;;  %v2486_v9 = vpop.f32.mrb[194].mxu1 }
 0x268   : > { %v3956_v5 = vld [vmem:[#allocation2 + $0x712] ss:$2 sm:$0xff]  ;;  %v3962_v6 = vld [vmem:[#allocation2 + $0x713] ss:$2 sm:$0xff]  ;;  %2722 = vst.msk [vmem:[#allocation2 + $0x300] sm:$0xff] %vm2625_vm4, %v1948_v59  ;;  %v1951_v7 = vadd.f32 %v6438_v10, %v1950_v2  ;;  %v5051_v8 = vpop.f32.mrb[195].mxu0  ;;  %v2487_v14 = vadd.f32 %v6438_v10, %v2486_v9 }
 0x269   : > { %4621 = vst.msk [vmem:[%s5912_s27 + $0xe4] sm:$0xf] %vm2890_vm5, %v4705_v0  ;;  %v3966_v13 = vmax.f32 %v3956_v5, %v3962_v6  ;;  %v5319_v15 = vpop.f32.mrb[195].mxu1  ;;  %v3958_v58 = vld [vmem:[#allocation2 + $0x722] ss:$2 sm:$0x7f] }
 0x26a   : > { %2856 = vst.msk [vmem:[#allocation2 + $0x730] sm:$0xff] %vm2625_vm4, %v2484_v3  ;;  %v3964_v16 = vld [vmem:[#allocation2 + $0x723] ss:$2 sm:$0x7f]  ;;  %2723 = vst.msk [vmem:[#allocation2 + $0x308] sm:$0xff] %vm2625_vm4, %v1951_v7 }
 0x26b   : > { %v3969_v18 = vmax.f32 %v3951_v12, %v3966_v13  ;;  %v3967_v19 = vmax.f32 %v3958_v58, %v3964_v16  ;;  %2857 = vst.msk [vmem:[#allocation2 + $0x738] sm:$0xff] %vm2625_vm4, %v2487_v14  ;;  %v3336_v63 = vld [vmem:[#allocation2 + $0x2f0] ss:$2 sm:$0xff]  ;;  %v3342_v0 = vld [vmem:[#allocation2 + $0x2f1] ss:$2 sm:$0xff] }
 0x26c   : > { %v3346_v15 = vmax.f32 %v3336_v63, %v3342_v0 }
 0x26d   : > { %v3972_v20 = vmax.f32 %v3969_v18, 0.0  ;;  %v3970_v21 = vmax.f32 %v3952_v17, %v3967_v19  ;;  %v1955_v22 = vpop.f32.mrb[196].mxu0  ;;  %v2491_v25 = vpop.f32.mrb[196].mxu1 }
 0x26e   : > { %v1956_v23 = vadd.f32 %v6438_v10, %v1955_v22  ;;  %v5054_v24 = vpop.f32.mrb[197].mxu0  ;;  %v2492_v29 = vadd.f32 %v6438_v10, %v2491_v25  ;;  %v5322_v30 = vpop.f32.mrb[197].mxu1 }
 0x26f   : > { %v4706_v26 = vpack.c.bf16 %v3972_v20, %v3972_v20  ;;  %v3973_v27 = vmax.f32 %v3970_v21, 0.0  ;;  %v1958_v28 = vpop.f32.mrb[198].mxu0  ;;  %v2494_v34 = vpop.f32.mrb[198].mxu1 }
 0x270   : > { %2724 = vst.msk [vmem:[#allocation2 + $0x310] sm:$0xff] %vm2625_vm4, %v1956_v23  ;;  %v1959_v32 = vadd.f32 %v6438_v10, %v1958_v28  ;;  %v5055_v33 = vpop.f32.mrb[199].mxu0  ;;  %2858 = vst.msk [vmem:[#allocation2 + $0x740] sm:$0xff] %vm2625_vm4, %v2492_v29  ;;  %v2495_v36 = vadd.f32 %v6438_v10, %v2494_v34  ;;  %v5323_v37 = vpop.f32.mrb[199].mxu1  ;;  %v3334_v10 = vld [vmem:[#allocation2 + $0x2e0] ss:$2 sm:$0xff] }
 0x271   : > { %4622 = vst.msk [vmem:[%s5912_s27 + $0xe8] sm:$0xf] %vm2890_vm5, %v4706_v26  ;;  %v4707_v35 = vpack.c.bf16 %v3973_v27, %v3973_v27  ;;  %v3345_v54 = vmax.f32 %v3334_v10, %v3340_v44  ;;  %v3338_v18 = vld [vmem:[#allocation2 + $0x300] ss:$2 sm:$0x7f] }
 0x272   : > { %2725 = vst.msk [vmem:[#allocation2 + $0x318] sm:$0xff] %vm2625_vm4, %v1959_v32  ;;  %2859 = vst.msk [vmem:[#allocation2 + $0x748] sm:$0xff] %vm2625_vm4, %v2495_v36  ;;  %v3344_v23 = vld [vmem:[#allocation2 + $0x301] ss:$2 sm:$0x7f] }
 0x273   : > { %v3991_v38 = vsel %vm5950_vm7, %v4707_v35, %v4623_v31  ;;  %v3994_v27 = vld [vmem:[#allocation2 + $0x730] ss:$2 sm:$0xff]  ;;  %v4000_v28 = vld [vmem:[#allocation2 + $0x731] ss:$2 sm:$0xff]  ;;  %v3347_v36 = vmax.f32 %v3338_v18, %v3344_v23 }
 0x274   : > { %4624 = vst [vmem:[%s5912_s27 + $0xec] sm:$0xf] %v3991_v38 }
 0x275   : > { %v1963_v39 = vpop.f32.mrb[200].mxu0  ;;  %v2499_v43 = vpop.f32.mrb[200].mxu1 }
 0x276   : > { %v1964_v41 = vadd.f32 %v6689_v40, %v1963_v39  ;;  %v5058_v42 = vpop.f32.mrb[201].mxu0  ;;  %v2500_v46 = vadd.f32 %v6689_v40, %v2499_v43  ;;  %v5326_v47 = vpop.f32.mrb[201].mxu1 }
 0x277   : > { %v1966_v45 = vpop.f32.mrb[202].mxu0  ;;  %v2502_v50 = vpop.f32.mrb[202].mxu1  ;;  %v4005_v42 = vmax.f32 %v3994_v27, %v4000_v28 }
 0x278   : > { %2726 = vst.msk [vmem:[#allocation2 + $0x320] sm:$0xff] %vm2625_vm4, %v1964_v41  ;;  %v1967_v48 = vadd.f32 %v6689_v40, %v1966_v45  ;;  %v5059_v49 = vpop.f32.mrb[203].mxu0  ;;  %2860 = vst.msk [vmem:[#allocation2 + $0x750] sm:$0xff] %vm2625_vm4, %v2500_v46  ;;  %v2503_v52 = vadd.f32 %v6689_v40, %v2502_v50  ;;  %v5327_v53 = vpop.f32.mrb[203].mxu1  ;;  %v4546_v50 = vld [vmem:[%s5912_s27 + $0x68] sm:$0xf] }
 0x279   : > { %v3349_v51 = vld [vmem:[#allocation2 + $0x30e] ss:$2 sm:$0xff]  ;;  %v3355_v1 = vld [vmem:[#allocation2 + $0x30f] ss:$2 sm:$0xff] }
 0x27a   : > { %v3360_v61 = vmax.f32 %v3349_v51, %v3355_v1  ;;  %2727 = vst.msk [vmem:[#allocation2 + $0x328] sm:$0xff] %vm2625_vm4, %v1967_v48  ;;  %2861 = vst.msk [vmem:[#allocation2 + $0x758] sm:$0xff] %vm2625_vm4, %v2503_v52 }
 0x27c   : > { %v3363_v55 = vmax.f32 %v3345_v54, %v3360_v61  ;;  %v3996_v54 = vld [vmem:[#allocation2 + $0x740] ss:$2 sm:$0xff]  ;;  %v4002_v61 = vld [vmem:[#allocation2 + $0x741] ss:$2 sm:$0xff] }
 0x27d   : > { %v1971_v56 = vpop.f32.mrb[204].mxu0  ;;  %v2507_v60 = vpop.f32.mrb[204].mxu1 }
 0x27e   : > { %v3366_v57 = vmax.f32 %v3363_v55, 0.0  ;;  %v1972_v59 = vadd.f32 %v6689_v40, %v1971_v56  ;;  %v5062_v62 = vpop.f32.mrb[205].mxu0  ;;  %v2508_v2 = vadd.f32 %v6689_v40, %v2507_v60  ;;  %v5330_v3 = vpop.f32.mrb[205].mxu1 }
 0x27f   : > { %v1974_v4 = vpop.f32.mrb[206].mxu0  ;;  %v2510_v7 = vpop.f32.mrb[206].mxu1 }
 0x280   : > { %v4672_v5 = vpack.c.bf16 %v3366_v57, %v3366_v57  ;;  %2728 = vst.msk [vmem:[#allocation2 + $0x330] sm:$0xff] %vm2625_vm4, %v1972_v59  ;;  %v1975_v6 = vadd.f32 %v6689_v40, %v1974_v4  ;;  %v5063_v8 = vpop.f32.mrb[207].mxu0  ;;  %2862 = vst.msk [vmem:[#allocation2 + $0x760] sm:$0xff] %vm2625_vm4, %v2508_v2  ;;  %v2511_v13 = vadd.f32 %v6689_v40, %v2510_v7  ;;  %v5331_v14 = vpop.f32.mrb[207].mxu1 }
 0x281   : > { %v3351_v9 = vld [vmem:[#allocation2 + $0x31e] ss:$2 sm:$0xff]  ;;  %v3357_v12 = vld [vmem:[#allocation2 + $0x31f] ss:$2 sm:$0xff]  ;;  %v4006_v4 = vmax.f32 %v3996_v54, %v4002_v61 }
 0x282   : > { %4544 = vst.msk [vmem:[%s5912_s27 + $0x60] sm:$0xf] %vm2890_vm5, %v4672_v5  ;;  %v3361_v58 = vmax.f32 %v3351_v9, %v3357_v12 }
 0x283   : > { %2729 = vst.msk [vmem:[#allocation2 + $0x338] sm:$0xff] %vm2625_vm4, %v1975_v6  ;;  %2863 = vst.msk [vmem:[#allocation2 + $0x768] sm:$0xff] %vm2625_vm4, %v2511_v13  ;;  %v3998_v13 = vld [vmem:[#allocation2 + $0x750] ss:$2 sm:$0x7f] }
 0x284   : > { %v3364_v16 = vmax.f32 %v3346_v15, %v3361_v58 }
 0x285   : > { %v1979_v17 = vpop.f32.mrb[208].mxu0  ;;  %v2515_v21 = vpop.f32.mrb[208].mxu1 }
 0x286   : > { %v3367_v19 = vmax.f32 %v3364_v16, 0.0  ;;  %v1980_v20 = vadd.f32 %v6689_v40, %v1979_v17  ;;  %v5066_v22 = vpop.f32.mrb[209].mxu0  ;;  %v2516_v24 = vadd.f32 %v6689_v40, %v2515_v21  ;;  %v5334_v25 = vpop.f32.mrb[209].mxu1  ;;  %v4004_v17 = vld [vmem:[#allocation2 + $0x751] ss:$2 sm:$0x7f] }
 0x287   : > { %v1982_v26 = vpop.f32.mrb[210].mxu0  ;;  %v2518_v31 = vpop.f32.mrb[210].mxu1 }
 0x288   : > { %v4673_v29 = vpack.c.bf16 %v3367_v19, %v3367_v19  ;;  %2730 = vst.msk [vmem:[#allocation2 + $0x340] sm:$0xff] %vm2625_vm4, %v1980_v20  ;;  %v1983_v30 = vadd.f32 %v6689_v40, %v1982_v26  ;;  %v5067_v32 = vpop.f32.mrb[211].mxu0  ;;  %2864 = vst.msk [vmem:[#allocation2 + $0x770] sm:$0xff] %vm2625_vm4, %v2516_v24  ;;  %v2519_v35 = vadd.f32 %v6689_v40, %v2518_v31  ;;  %v5335_v41 = vpop.f32.mrb[211].mxu1 }
 0x289   : > { %v4007_v26 = vmax.f32 %v3998_v13, %v4004_v17 }
 0x28a   : > { %v3353_v33 = vld [vmem:[#allocation2 + $0x32e] ss:$2 sm:$0x7f]  ;;  %v3359_v34 = vld [vmem:[#allocation2 + $0x32f] ss:$2 sm:$0x7f] }
 0x28b   : > { %4545 = vst.msk [vmem:[%s5912_s27 + $0x64] sm:$0xf] %vm2890_vm5, %v4673_v29  ;;  %v3362_v37 = vmax.f32 %v3353_v33, %v3359_v34  ;;  %v4009_v38 = vld [vmem:[#allocation2 + $0x75e] ss:$2 sm:$0xff]  ;;  %v4015_v39 = vld [vmem:[#allocation2 + $0x75f] ss:$2 sm:$0xff] }
 0x28c   : > { %2731 = vst.msk [vmem:[#allocation2 + $0x348] sm:$0xff] %vm2625_vm4, %v1983_v30  ;;  %v4020_v43 = vmax.f32 %v4009_v38, %v4015_v39  ;;  %2865 = vst.msk [vmem:[#allocation2 + $0x778] sm:$0xff] %vm2625_vm4, %v2519_v35 }
 0x28d   : > { %v3365_v10 = vmax.f32 %v3347_v36, %v3362_v37  ;;  %v1987_v45 = vpop.f32.mrb[212].mxu0  ;;  %v2523_v48 = vpop.f32.mrb[212].mxu1  ;;  %v4630_v37 = vld [vmem:[%s5912_s27 + $0xf8] sm:$0xf] }
 0x28e   : > { %v4023_v44 = vmax.f32 %v4005_v42, %v4020_v43  ;;  %v1988_v47 = vadd.f32 %v6689_v40, %v1987_v45  ;;  %v5070_v49 = vpop.f32.mrb[213].mxu0  ;;  %v2524_v1 = vadd.f32 %v6689_v40, %v2523_v48  ;;  %v5338_v52 = vpop.f32.mrb[213].mxu1 }
 0x28f   : > { %v3368_v46 = vmax.f32 %v3365_v10, 0.0  ;;  %v1990_v53 = vpop.f32.mrb[214].mxu0  ;;  %v2526_v57 = vpop.f32.mrb[214].mxu1 }
 0x290   : > { %v4026_v51 = vmax.f32 %v4023_v44, 0.0  ;;  %2732 = vst.msk [vmem:[#allocation2 + $0x350] sm:$0xff] %vm2625_vm4, %v1988_v47  ;;  %v1991_v56 = vadd.f32 %v6689_v40, %v1990_v53  ;;  %v5071_v59 = vpop.f32.mrb[215].mxu0  ;;  %2866 = vst.msk [vmem:[#allocation2 + $0x780] sm:$0xff] %vm2625_vm4, %v2524_v1  ;;  %v2527_v62 = vadd.f32 %v6689_v40, %v2526_v57  ;;  %v5339_v63 = vpop.f32.mrb[215].mxu1 }
 0x291   : > { %v4674_v55 = vpack.c.bf16 %v3368_v46, %v3368_v46 }
 0x292   : > { %v4708_v60 = vpack.c.bf16 %v4026_v51, %v4026_v51  ;;  %2733 = vst.msk [vmem:[#allocation2 + $0x358] sm:$0xff] %vm2625_vm4, %v1991_v56  ;;  %2867 = vst.msk [vmem:[#allocation2 + $0x788] sm:$0xff] %vm2625_vm4, %v2527_v62 }
 0x293   : > { %v3386_v0 = vsel %vm5950_vm7, %v4674_v55, %v4546_v50  ;;  %v4011_v2 = vld [vmem:[#allocation2 + $0x76e] ss:$2 sm:$0xff]  ;;  %v4017_v3 = vld [vmem:[#allocation2 + $0x76f] ss:$2 sm:$0xff] }
 0x294   : > { %4547 = vst [vmem:[%s5912_s27 + $0x68] sm:$0xf] %v3386_v0  ;;  %4628 = vst.msk [vmem:[%s5912_s27 + $0xf0] sm:$0xf] %vm2890_vm5, %v4708_v60  ;;  %v4021_v5 = vmax.f32 %v4011_v2, %v4017_v3  ;;  %v3389_v49 = vld [vmem:[#allocation2 + $0x33c] ss:$2 sm:$0xff] }
 0x295   : > { %v1995_v7 = vpop.f32.mrb[216].mxu0  ;;  %v2531_v9 = vpop.f32.mrb[216].mxu1  ;;  %v3395_v50 = vld [vmem:[#allocation2 + $0x33d] ss:$2 sm:$0xff] }
 0x296   : > { %v4024_v6 = vmax.f32 %v4006_v4, %v4021_v5  ;;  %v1996_v8 = vadd.f32 %v6689_v40, %v1995_v7  ;;  %v5074_v12 = vpop.f32.mrb[217].mxu0  ;;  %v2532_v15 = vadd.f32 %v6689_v40, %v2531_v9  ;;  %v5342_v58 = vpop.f32.mrb[217].mxu1  ;;  %v3400_v60 = vmax.f32 %v3389_v49, %v3395_v50 }
 0x297   : > { %v1998_v16 = vpop.f32.mrb[218].mxu0  ;;  %v2534_v19 = vpop.f32.mrb[218].mxu1 }
 0x298   : > { %v4027_v14 = vmax.f32 %v4024_v6, 0.0  ;;  %2734 = vst.msk [vmem:[#allocation2 + $0x360] sm:$0xff] %vm2625_vm4, %v1996_v8  ;;  %v1999_v18 = vadd.f32 %v6689_v40, %v1998_v16  ;;  %v5075_v20 = vpop.f32.mrb[219].mxu0  ;;  %2868 = vst.msk [vmem:[#allocation2 + $0x790] sm:$0xff] %vm2625_vm4, %v2532_v15  ;;  %v2535_v22 = vadd.f32 %v6689_v40, %v2534_v19  ;;  %v5343_v23 = vpop.f32.mrb[219].mxu1 }
 0x299   : > { %v4013_v24 = vld [vmem:[#allocation2 + $0x77e] ss:$2 sm:$0x7f]  ;;  %v4019_v25 = vld [vmem:[#allocation2 + $0x77f] ss:$2 sm:$0x7f] }
 0x29a   : > { %v4709_v21 = vpack.c.bf16 %v4027_v14, %v4027_v14  ;;  %2735 = vst.msk [vmem:[#allocation2 + $0x368] sm:$0xff] %vm2625_vm4, %v1999_v18  ;;  %v4022_v27 = vmax.f32 %v4013_v24, %v4019_v25  ;;  %2869 = vst.msk [vmem:[#allocation2 + $0x798] sm:$0xff] %vm2625_vm4, %v2535_v22  ;;  %v3391_v6 = vld [vmem:[#allocation2 + $0x34c] ss:$2 sm:$0xff]  ;;  %v3397_v7 = vld [vmem:[#allocation2 + $0x34d] ss:$2 sm:$0xff] }
 0x29b   : > { %v3401_v20 = vmax.f32 %v3391_v6, %v3397_v7 }
 0x29c   : > { %4629 = vst.msk [vmem:[%s5912_s27 + $0xf4] sm:$0xf] %vm2890_vm5, %v4709_v21  ;;  %v4025_v28 = vmax.f32 %v4007_v26, %v4022_v27 }
 0x29d   : > { %v2003_v29 = vpop.f32.mrb[220].mxu0  ;;  %v2539_v31 = vpop.f32.mrb[220].mxu1 }
 0x29e   : > { %v2004_v30 = vadd.f32 %v6689_v40, %v2003_v29  ;;  %v5078_v32 = vpop.f32.mrb[221].mxu0  ;;  %v4028_v33 = vmax.f32 %v4025_v28, 0.0  ;;  %v2540_v34 = vadd.f32 %v6689_v40, %v2539_v31  ;;  %v5346_v35 = vpop.f32.mrb[221].mxu1 }
 0x29f   : > { %v2006_v36 = vpop.f32.mrb[222].mxu0  ;;  %v2542_v39 = vpop.f32.mrb[222].mxu1 }
 0x2a0   : > { %2736 = vst.msk [vmem:[#allocation2 + $0x370] sm:$0xff] %vm2625_vm4, %v2004_v30  ;;  %v2007_v38 = vadd.f32 %v6689_v40, %v2006_v36  ;;  %v5079_v41 = vpop.f32.mrb[223].mxu0  ;;  %v4710_v42 = vpack.c.bf16 %v4028_v33, %v4028_v33  ;;  %2870 = vst.msk [vmem:[#allocation2 + $0x7a0] sm:$0xff] %vm2625_vm4, %v2540_v34  ;;  %v2543_v43 = vadd.f32 %v6689_v40, %v2542_v39  ;;  %v5347_v10 = vpop.f32.mrb[223].mxu1 }
 0x2a1   : > { %v3393_v22 = vld [vmem:[#allocation2 + $0x35c] ss:$2 sm:$0x7f]  ;;  %v3399_v24 = vld [vmem:[#allocation2 + $0x35d] ss:$2 sm:$0x7f] }
 0x2a2   : > { %2737 = vst.msk [vmem:[#allocation2 + $0x378] sm:$0xff] %vm2625_vm4, %v2007_v38  ;;  %v4046_v44 = vsel %vm5950_vm7, %v4710_v42, %v4630_v37  ;;  %2871 = vst.msk [vmem:[#allocation2 + $0x7a8] sm:$0xff] %vm2625_vm4, %v2543_v43  ;;  %v3402_v33 = vmax.f32 %v3393_v22, %v3399_v24  ;;  %v4049_v34 = vld [vmem:[#allocation2 + $0x78c] ss:$2 sm:$0xff]  ;;  %v4055_v35 = vld [vmem:[#allocation2 + $0x78d] ss:$2 sm:$0xff] }
 0x2a3   : > { %4631 = vst [vmem:[%s5912_s27 + $0xf8] sm:$0xf] %v4046_v44 }
 0x2a5   : > { %v2011_v45 = vpop.f32.mrb[224].mxu0  ;;  %v2547_v47 = vpop.f32.mrb[224].mxu1 }
 0x2a6   : > { %v2012_v46 = vadd.f32 %v6689_v40, %v2011_v45  ;;  %v5082_v48 = vpop.f32.mrb[225].mxu0  ;;  %v2548_v51 = vadd.f32 %v6689_v40, %v2547_v47  ;;  %v5350_v1 = vpop.f32.mrb[225].mxu1 }
 0x2a7   : > { %v2014_v52 = vpop.f32.mrb[226].mxu0  ;;  %v2550_v54 = vpop.f32.mrb[226].mxu1  ;;  %v4060_v48 = vmax.f32 %v4049_v34, %v4055_v35 }
 0x2a8   : > { %2738 = vst.msk [vmem:[#allocation2 + $0x380] sm:$0xff] %vm2625_vm4, %v2012_v46  ;;  %v2015_v53 = vadd.f32 %v6689_v40, %v2014_v52  ;;  %v5083_v61 = vpop.f32.mrb[227].mxu0  ;;  %2872 = vst.msk [vmem:[#allocation2 + $0x7b0] sm:$0xff] %vm2625_vm4, %v2548_v51  ;;  %v2551_v57 = vadd.f32 %v6689_v40, %v2550_v54  ;;  %v5351_v59 = vpop.f32.mrb[227].mxu1  ;;  %v4553_v51 = vld [vmem:[%s5912_s27 + $0x74] sm:$0xf] }
 0x2a9   : > { %v3404_v55 = vld [vmem:[#allocation2 + $0x36a] ss:$2 sm:$0xff]  ;;  %v3410_v56 = vld [vmem:[#allocation2 + $0x36b] ss:$2 sm:$0xff] }
 0x2aa   : > { %v3415_v62 = vmax.f32 %v3404_v55, %v3410_v56  ;;  %2739 = vst.msk [vmem:[#allocation2 + $0x388] sm:$0xff] %vm2625_vm4, %v2015_v53  ;;  %2873 = vst.msk [vmem:[#allocation2 + $0x7b8] sm:$0xff] %vm2625_vm4, %v2551_v57 }
 0x2ac   : > { %v3418_v63 = vmax.f32 %v3400_v60, %v3415_v62 }
 0x2ad   : > { %v2019_v0 = vpop.f32.mrb[228].mxu0  ;;  %v2555_v4 = vpop.f32.mrb[228].mxu1 }
 0x2ae   : > { %v3421_v2 = vmax.f32 %v3418_v63, 0.0  ;;  %v2020_v3 = vadd.f32 %v6689_v40, %v2019_v0  ;;  %v5086_v5 = vpop.f32.mrb[229].mxu0  ;;  %v2556_v8 = vadd.f32 %v6689_v40, %v2555_v4  ;;  %v5354_v9 = vpop.f32.mrb[229].mxu1 }
 0x2af   : > { %v2022_v12 = vpop.f32.mrb[230].mxu0  ;;  %v2558_v15 = vpop.f32.mrb[230].mxu1 }
 0x2b0   : > { %v4675_v13 = vpack.c.bf16 %v3421_v2, %v3421_v2  ;;  %2740 = vst.msk [vmem:[#allocation2 + $0x390] sm:$0xff] %vm2625_vm4, %v2020_v3  ;;  %v2023_v14 = vadd.f32 %v6689_v40, %v2022_v12  ;;  %v5087_v58 = vpop.f32.mrb[231].mxu0  ;;  %2874 = vst.msk [vmem:[#allocation2 + $0x7c0] sm:$0xff] %vm2625_vm4, %v2556_v8  ;;  %v2559_v18 = vadd.f32 %v6689_v40, %v2558_v15  ;;  %v5355_v19 = vpop.f32.mrb[231].mxu1  ;;  %v4051_v2 = vld [vmem:[#allocation2 + $0x79c] ss:$2 sm:$0xff] }
 0x2b1   : > { %v3406_v16 = vld [vmem:[#allocation2 + $0x37a] ss:$2 sm:$0xff]  ;;  %v3412_v17 = vld [vmem:[#allocation2 + $0x37b] ss:$2 sm:$0xff] }
 0x2b2   : > { %4551 = vst.msk [vmem:[%s5912_s27 + $0x6c] sm:$0xf] %vm2890_vm5, %v4675_v13  ;;  %v3416_v21 = vmax.f32 %v3406_v16, %v3412_v17  ;;  %v4057_v3 = vld [vmem:[#allocation2 + $0x79d] ss:$2 sm:$0xff] }
 0x2b3   : > { %2741 = vst.msk [vmem:[#allocation2 + $0x398] sm:$0xff] %vm2625_vm4, %v2023_v14  ;;  %2875 = vst.msk [vmem:[#allocation2 + $0x7c8] sm:$0xff] %vm2625_vm4, %v2559_v18  ;;  %v4061_v12 = vmax.f32 %v4051_v2, %v4057_v3  ;;  %v4053_v15 = vld [vmem:[#allocation2 + $0x7ac] ss:$2 sm:$0x7f] }
 0x2b4   : > { %v3419_v23 = vmax.f32 %v3401_v20, %v3416_v21  ;;  %v4059_v19 = vld [vmem:[#allocation2 + $0x7ad] ss:$2 sm:$0x7f] }
 0x2b5   : > { %v2027_v25 = vpop.f32.mrb[232].mxu0  ;;  %v2563_v28 = vpop.f32.mrb[232].mxu1 }
 0x2b6   : > { %v3422_v26 = vmax.f32 %v3419_v23, 0.0  ;;  %v2028_v27 = vadd.f32 %v6689_v40, %v2027_v25  ;;  %v5090_v29 = vpop.f32.mrb[233].mxu0  ;;  %v2564_v32 = vadd.f32 %v6689_v40, %v2563_v28  ;;  %v5358_v38 = vpop.f32.mrb[233].mxu1 }
 0x2b7   : > { %v3408_v30 = vld [vmem:[#allocation2 + $0x38a] ss:$2 sm:$0x7f]  ;;  %v3414_v31 = vld [vmem:[#allocation2 + $0x38b] ss:$2 sm:$0x7f] }
 0x2b8   : > { %v4676_v36 = vpack.c.bf16 %v3422_v26, %v3422_v26  ;;  %v3417_v37 = vmax.f32 %v3408_v30, %v3414_v31  ;;  %2742 = vst.msk [vmem:[#allocation2 + $0x3a0] sm:$0xff] %vm2625_vm4, %v2028_v27  ;;  %v2030_v39 = vpop.f32.mrb[234].mxu0  ;;  %2876 = vst.msk [vmem:[#allocation2 + $0x7d0] sm:$0xff] %vm2625_vm4, %v2564_v32  ;;  %v2566_v42 = vpop.f32.mrb[234].mxu1  ;;  %v4062_v31 = vmax.f32 %v4053_v15, %v4059_v19 }
 0x2b9   : > { %v2031_v41 = vadd.f32 %v6689_v40, %v2030_v39  ;;  %v5091_v43 = vpop.f32.mrb[235].mxu0  ;;  %v2567_v46 = vadd.f32 %v6689_v40, %v2566_v42  ;;  %v5359_v47 = vpop.f32.mrb[235].mxu1 }
 0x2ba   : > { %4552 = vst.msk [vmem:[%s5912_s27 + $0x70] sm:$0xf] %vm2890_vm5, %v4676_v36  ;;  %v3420_v10 = vmax.f32 %v3402_v33, %v3417_v37  ;;  %v4064_v44 = vld [vmem:[#allocation2 + $0x7ba] ss:$2 sm:$0xff]  ;;  %v4070_v45 = vld [vmem:[#allocation2 + $0x7bb] ss:$2 sm:$0xff] }
 0x2bb   : > { %v4075_v49 = vmax.f32 %v4064_v44, %v4070_v45  ;;  %2743 = vst.msk [vmem:[#allocation2 + $0x3a8] sm:$0xff] %vm2625_vm4, %v2031_v41  ;;  %2877 = vst.msk [vmem:[#allocation2 + $0x7d8] sm:$0xff] %vm2625_vm4, %v2567_v46  ;;  %v4637_v41 = vld [vmem:[%s5912_s27 + $0x104] sm:$0xf] }
 0x2bc   : > { %v3423_v50 = vmax.f32 %v3420_v10, 0.0 }
 0x2bd   : > { %v4078_v1 = vmax.f32 %v4060_v48, %v4075_v49  ;;  %v2035_v52 = vpop.f32.mrb[236].mxu0  ;;  %v2571_v61 = vpop.f32.mrb[236].mxu1 }
 0x2be   : > { %v4677_v53 = vpack.c.bf16 %v3423_v50, %v3423_v50  ;;  %v2036_v54 = vadd.f32 %v6689_v40, %v2035_v52  ;;  %v5094_v55 = vpop.f32.mrb[237].mxu0  ;;  %v2572_v57 = vadd.f32 %v6689_v40, %v2571_v61  ;;  %v5362_v0 = vpop.f32.mrb[237].mxu1 }
 0x2bf   : > { %v4081_v56 = vmax.f32 %v4078_v1, 0.0  ;;  %v2038_v59 = vpop.f32.mrb[238].mxu0  ;;  %v2574_v5 = vpop.f32.mrb[238].mxu1  ;;  %v3450_v1 = vld [vmem:[#allocation2 + $0x399] ss:$2 sm:$0xff] }
 0x2c0   : > { %v3441_v60 = vsel %vm5950_vm7, %v4677_v53, %v4553_v51  ;;  %2744 = vst.msk [vmem:[#allocation2 + $0x3b0] sm:$0xff] %vm2625_vm4, %v2036_v54  ;;  %v2039_v62 = vadd.f32 %v6689_v40, %v2038_v59  ;;  %v5095_v63 = vpop.f32.mrb[239].mxu0  ;;  %2878 = vst.msk [vmem:[#allocation2 + $0x7e0] sm:$0xff] %vm2625_vm4, %v2572_v57  ;;  %v2575_v6 = vadd.f32 %v6689_v40, %v2574_v5  ;;  %v5363_v7 = vpop.f32.mrb[239].mxu1  ;;  %v3444_v51 = vld [vmem:[#allocation2 + $0x398] ss:$2 sm:$0xff] }
 0x2c1   : > { %4554 = vst [vmem:[%s5912_s27 + $0x74] sm:$0xf] %v3441_v60  ;;  %v4711_v4 = vpack.c.bf16 %v4081_v56, %v4081_v56 }
 0x2c2   : > { %2745 = vst.msk [vmem:[#allocation2 + $0x3b8] sm:$0xff] %vm2625_vm4, %v2039_v62  ;;  %v4066_v8 = vld [vmem:[#allocation2 + $0x7ca] ss:$2 sm:$0xff]  ;;  %v4072_v9 = vld [vmem:[#allocation2 + $0x7cb] ss:$2 sm:$0xff]  ;;  %2879 = vst.msk [vmem:[#allocation2 + $0x7e8] sm:$0xff] %vm2625_vm4, %v2575_v6  ;;  %v3455_v62 = vmax.f32 %v3444_v51, %v3450_v1 }
 0x2c3   : > { %4635 = vst.msk [vmem:[%s5912_s27 + $0xfc] sm:$0xf] %vm2890_vm5, %v4711_v4  ;;  %v4076_v13 = vmax.f32 %v4066_v8, %v4072_v9 }
 0x2c5   : > { %v2043_v14 = vpop.f32.mrb[240].mxu0  ;;  %v4079_v58 = vmax.f32 %v4061_v12, %v4076_v13  ;;  %v2579_v18 = vpop.f32.mrb[240].mxu1 }
 0x2c6   : > { %v2044_v16 = vadd.f32 %v6689_v40, %v2043_v14  ;;  %v5098_v17 = vpop.f32.mrb[241].mxu0  ;;  %v2580_v20 = vadd.f32 %v6689_v40, %v2579_v18  ;;  %v5366_v22 = vpop.f32.mrb[241].mxu1 }
 0x2c7   : > { %v2046_v21 = vpop.f32.mrb[242].mxu0  ;;  %v4082_v23 = vmax.f32 %v4079_v58, 0.0  ;;  %v4068_v24 = vld [vmem:[#allocation2 + $0x7da] ss:$2 sm:$0x7f]  ;;  %v2582_v27 = vpop.f32.mrb[242].mxu1 }
 0x2c8   : > { %2746 = vst.msk [vmem:[#allocation2 + $0x3c0] sm:$0xff] %vm2625_vm4, %v2044_v16  ;;  %v2047_v25 = vadd.f32 %v6689_v40, %v2046_v21  ;;  %v5099_v26 = vpop.f32.mrb[243].mxu0  ;;  %v4074_v28 = vld [vmem:[#allocation2 + $0x7db] ss:$2 sm:$0x7f]  ;;  %2880 = vst.msk [vmem:[#allocation2 + $0x7f0] sm:$0xff] %vm2625_vm4, %v2580_v20  ;;  %v2583_v29 = vadd.f32 %v6689_v40, %v2582_v27 }
 0x2c9   : > { %v5367_v30 = vpop.f32.mrb[243].mxu1  ;;  %v4712_v32 = vpack.c.bf16 %v4082_v23, %v4082_v23  ;;  %v4077_v33 = vmax.f32 %v4068_v24, %v4074_v28  ;;  %v3446_v8 = vld [vmem:[#allocation2 + $0x3a8] ss:$2 sm:$0xff]  ;;  %v3452_v9 = vld [vmem:[#allocation2 + $0x3a9] ss:$2 sm:$0xff] }
 0x2ca   : > { %2747 = vst.msk [vmem:[#allocation2 + $0x3c8] sm:$0xff] %vm2625_vm4, %v2047_v25  ;;  %2881 = vst.msk [vmem:[#allocation2 + $0x7f8] sm:$0xff] %vm2625_vm4, %v2583_v29  ;;  %v3456_v21 = vmax.f32 %v3446_v8, %v3452_v9 }
 0x2cb   : > { %4636 = vst.msk [vmem:[%s5912_s27 + $0x100] sm:$0xf] %vm2890_vm5, %v4712_v32  ;;  %v4080_v34 = vmax.f32 %v4062_v31, %v4077_v33 }
 0x2cd   : > { %v2051_v35 = vpop.f32.mrb[244].mxu0  ;;  %v4083_v36 = vmax.f32 %v4080_v34, 0.0  ;;  %v2587_v39 = vpop.f32.mrb[244].mxu1 }
 0x2ce   : > { %v2052_v37 = vadd.f32 %v6689_v40, %v2051_v35  ;;  %v5102_v38 = vpop.f32.mrb[245].mxu0  ;;  %v2588_v42 = vadd.f32 %v6689_v40, %v2587_v39  ;;  %v5370_v44 = vpop.f32.mrb[245].mxu1 }
 0x2cf   : > { %v4713_v43 = vpack.c.bf16 %v4083_v36, %v4083_v36  ;;  %v2054_v10 = vpop.f32.mrb[246].mxu0  ;;  %v2590_v47 = vpop.f32.mrb[246].mxu1  ;;  %v3448_v29 = vld [vmem:[#allocation2 + $0x3b8] ss:$2 sm:$0x7f] }
 0x2d0   : > { %2748 = vst.msk [vmem:[#allocation2 + $0x3d0] sm:$0xff] %vm2625_vm4, %v2052_v37  ;;  %2882 = vst.msk [vmem:[#allocation2 + $0x800] sm:$0xff] %vm2625_vm4, %v2588_v42  ;;  %v2055_v45 = vadd.f32 %v6689_v40, %v2054_v10  ;;  %v5103_v46 = vpop.f32.mrb[247].mxu0  ;;  %v2591_v49 = vadd.f32 %v6689_v40, %v2590_v47  ;;  %v5371_v50 = vpop.f32.mrb[247].mxu1  ;;  %v4104_v33 = vld [vmem:[#allocation2 + $0x7e8] ss:$2 sm:$0xff] }
 0x2d1   : > { %v4101_v48 = vsel %vm5950_vm7, %v4713_v43, %v4637_v41  ;;  %v3454_v31 = vld [vmem:[#allocation2 + $0x3b9] ss:$2 sm:$0x7f]  ;;  %v4110_v34 = vld [vmem:[#allocation2 + $0x7e9] ss:$2 sm:$0xff] }
 0x2d2   : > { %4638 = vst [vmem:[%s5912_s27 + $0x104] sm:$0xf] %v4101_v48  ;;  %2749 = vst.msk [vmem:[#allocation2 + $0x3d8] sm:$0xff] %vm2625_vm4, %v2055_v45  ;;  %v3457_v43 = vmax.f32 %v3448_v29, %v3454_v31  ;;  %v4115_v48 = vmax.f32 %v4104_v33, %v4110_v34 }
 0x2d3   : > { %2883 = vst.msk [vmem:[#allocation2 + $0x808] sm:$0xff] %vm2625_vm4, %v2591_v49 }
 0x2d5   : > { %v2059_v52 = vpop.f32.mrb[248].mxu0  ;;  %v2595_v61 = vpop.f32.mrb[248].mxu1 }
 0x2d6   : > { %v2060_v53 = vadd.f32 %v6689_v40, %v2059_v52  ;;  %v5106_v54 = vpop.f32.mrb[249].mxu0  ;;  %v2596_v57 = vadd.f32 %v6689_v40, %v2595_v61  ;;  %v5374_v60 = vpop.f32.mrb[249].mxu1 }
 0x2d7   : > { %v3459_v55 = vld [vmem:[#allocation2 + $0x3c6] ss:$2 sm:$0xff]  ;;  %v3465_v56 = vld [vmem:[#allocation2 + $0x3c7] ss:$2 sm:$0xff]  ;;  %v2062_v59 = vpop.f32.mrb[250].mxu0  ;;  %v2598_v3 = vpop.f32.mrb[250].mxu1 }
 0x2d8   : > { %v3470_v63 = vmax.f32 %v3459_v55, %v3465_v56  ;;  %2750 = vst.msk [vmem:[#allocation2 + $0x3e0] sm:$0xff] %vm2625_vm4, %v2060_v53  ;;  %v2063_v0 = vadd.f32 %v6689_v40, %v2062_v59  ;;  %v5107_v2 = vpop.f32.mrb[251].mxu0  ;;  %2884 = vst.msk [vmem:[#allocation2 + $0x810] sm:$0xff] %vm2625_vm4, %v2596_v57  ;;  %v2599_v4 = vadd.f32 %v6689_v40, %v2598_v3  ;;  %v5375_v5 = vpop.f32.mrb[251].mxu1  ;;  %v4560_v56 = vld [vmem:[%s5912_s27 + $0x80] sm:$0xf] }
 0x2d9   : > { %v4106_v60 = vld [vmem:[#allocation2 + $0x7f8] ss:$2 sm:$0xff] }
 0x2da   : > { %v3473_v6 = vmax.f32 %v3455_v62, %v3470_v63  ;;  %2751 = vst.msk [vmem:[#allocation2 + $0x3e8] sm:$0xff] %vm2625_vm4, %v2063_v0  ;;  %2885 = vst.msk [vmem:[#allocation2 + $0x818] sm:$0xff] %vm2625_vm4, %v2599_v4  ;;  %v4112_v62 = vld [vmem:[#allocation2 + $0x7f9] ss:$2 sm:$0xff] }
 0x2dc   : > { %v3476_v7 = vmax.f32 %v3473_v6, 0.0 }
 0x2dd   : > { %v2067_v12 = vpop.f32.mrb[252].mxu0  ;;  %v2603_v15 = vpop.f32.mrb[252].mxu1 }
 0x2de   : > { %v4678_v13 = vpack.c.bf16 %v3476_v7, %v3476_v7  ;;  %v2068_v14 = vadd.f32 %v6689_v40, %v2067_v12  ;;  %v5110_v58 = vpop.f32.mrb[253].mxu0  ;;  %v2604_v18 = vadd.f32 %v6689_v40, %v2603_v15  ;;  %v5378_v20 = vpop.f32.mrb[253].mxu1 }
 0x2df   : > { %v3461_v16 = vld [vmem:[#allocation2 + $0x3d6] ss:$2 sm:$0xff]  ;;  %v3467_v17 = vld [vmem:[#allocation2 + $0x3d7] ss:$2 sm:$0xff]  ;;  %v2070_v19 = vpop.f32.mrb[254].mxu0  ;;  %v2606_v25 = vpop.f32.mrb[254].mxu1  ;;  %v4116_v58 = vmax.f32 %v4106_v60, %v4112_v62 }
 0x2e0   : > { %4558 = vst.msk [vmem:[%s5912_s27 + $0x78] sm:$0xf] %vm2890_vm5, %v4678_v13  ;;  %v3471_v22 = vmax.f32 %v3461_v16, %v3467_v17  ;;  %v2071_v23 = vadd.f32 %v6689_v40, %v2070_v19  ;;  %v5111_v24 = vpop.f32.mrb[255].mxu0  ;;  %v2607_v27 = vadd.f32 %v6689_v40, %v2606_v25  ;;  %v5379_v28 = vpop.f32.mrb[255].mxu1  ;;  %v3516_v19 = vld [vmem:[#allocation2 + $0x432] ss:$2 sm:$0xff] }
 0x2e1   : > { %2752 = vst.msk [vmem:[#allocation2 + $0x3f0] sm:$0xff] %vm2625_vm4, %v2068_v14  ;;  %2886 = vst.msk [vmem:[#allocation2 + $0x820] sm:$0xff] %vm2625_vm4, %v2604_v18  ;;  %v3522_v20 = vld [vmem:[#allocation2 + $0x433] ss:$2 sm:$0xff]  ;;  %v4567_v60 = vld [vmem:[%s5912_s27 + $0x8c] sm:$0xf] }
 0x2e2   : > { %v3474_v26 = vmax.f32 %v3456_v21, %v3471_v22  ;;  %2753 = vst.msk [vmem:[#allocation2 + $0x3f8] sm:$0xff] %vm2625_vm4, %v2071_v23  ;;  %2887 = vst.msk [vmem:[#allocation2 + $0x828] sm:$0xff] %vm2625_vm4, %v2607_v27  ;;  %v4108_v21 = vld [vmem:[#allocation2 + $0x808] ss:$2 sm:$0x7f]  ;;  %v3526_v31 = vmax.f32 %v3516_v19, %v3522_v20 }
 0x2e3   : > { %v4114_v24 = vld [vmem:[#allocation2 + $0x809] ss:$2 sm:$0x7f] }
 0x2e4   : > { %v3477_v30 = vmax.f32 %v3474_v26, 0.0 }
 0x2e5   : > { %v2075_v32 = vpop.f32.mrb[0].mxu0  ;;  %v2611_v37 = vpop.f32.mrb[0].mxu1 }
 0x2e6   : > { %v4679_v35 = vpack.c.bf16 %v3477_v30, %v3477_v30  ;;  %v2076_v36 = vadd.f32 %v6689_v40, %v2075_v32  ;;  %v5114_v38 = vpop.f32.mrb[1].mxu0  ;;  %v2612_v42 = vadd.f32 %v6689_v40, %v2611_v37  ;;  %v5382_v47 = vpop.f32.mrb[1].mxu1 }
 0x2e7   : > { %v2078_v46 = vpop.f32.mrb[2].mxu0  ;;  %v2614_v1 = vpop.f32.mrb[2].mxu1 }
 0x2e8   : > { %v3463_v39 = vld [vmem:[#allocation2 + $0x3e6] ss:$2 sm:$0x7f]  ;;  %v3469_v41 = vld [vmem:[#allocation2 + $0x3e7] ss:$2 sm:$0x7f]  ;;  %v2079_v50 = vadd.f32 %v6689_v40, %v2078_v46  ;;  %v2615_v53 = vadd.f32 %v6689_v40, %v2614_v1 }
 0x2e9   : > { %4559 = vst.msk [vmem:[%s5912_s27 + $0x7c] sm:$0xf] %vm2890_vm5, %v4679_v35  ;;  %v3472_v10 = vmax.f32 %v3463_v39, %v3469_v41  ;;  %v4119_v44 = vld [vmem:[#allocation2 + $0x816] ss:$2 sm:$0xff]  ;;  %v4125_v45 = vld [vmem:[#allocation2 + $0x817] ss:$2 sm:$0xff] }
 0x2ea   : > { %2754 = vst.msk [vmem:[#allocation2 + $0x400] sm:$0xff] %vm2625_vm4, %v2076_v36  ;;  %v4130_v49 = vmax.f32 %v4119_v44, %v4125_v45  ;;  %2888 = vst.msk [vmem:[#allocation2 + $0x830] sm:$0xff] %vm2625_vm4, %v2612_v42  ;;  %v5115_v51 = vpop.f32.mrb[3].mxu0  ;;  %v5383_v54 = vpop.f32.mrb[3].mxu1  ;;  %v4117_v36 = vmax.f32 %v4108_v21, %v4114_v24 }
 0x2eb   : > { %v3475_v52 = vmax.f32 %v3457_v43, %v3472_v10  ;;  %2755 = vst.msk [vmem:[#allocation2 + $0x408] sm:$0xff] %vm2625_vm4, %v2079_v50  ;;  %2889 = vst.msk [vmem:[#allocation2 + $0x838] sm:$0xff] %vm2625_vm4, %v2615_v53  ;;  %v3518_v42 = vld [vmem:[#allocation2 + $0x442] ss:$2 sm:$0x7f] }
 0x2ec   : > { %v4133_v61 = vmax.f32 %v4115_v48, %v4130_v49  ;;  %v3524_v10 = vld [vmem:[#allocation2 + $0x443] ss:$2 sm:$0x7f]  ;;  %v4644_v48 = vld [vmem:[%s5912_s27 + $0x110] sm:$0xf] }
 0x2ed   : > { %v3478_v55 = vmax.f32 %v3475_v52, 0.0  ;;  %v2083_v59 = vpop.f32.mrb[4].mxu0  ;;  %v2619_v2 = vpop.f32.mrb[4].mxu1  ;;  %v3527_v51 = vmax.f32 %v3518_v42, %v3524_v10 }
 0x2ee   : > { %v4136_v57 = vmax.f32 %v4133_v61, 0.0  ;;  %v2084_v0 = vadd.f32 %v6689_v40, %v2083_v59  ;;  %v5118_v3 = vpop.f32.mrb[5].mxu0  ;;  %v2620_v5 = vadd.f32 %v6689_v40, %v2619_v2  ;;  %v5386_v7 = vpop.f32.mrb[5].mxu1 }
 0x2ef   : > { %v4680_v63 = vpack.c.bf16 %v3478_v55, %v3478_v55  ;;  %v2086_v6 = vpop.f32.mrb[6].mxu0  ;;  %v2622_v15 = vpop.f32.mrb[6].mxu1 }
 0x2f0   : > { %v4714_v4 = vpack.c.bf16 %v4136_v57, %v4136_v57  ;;  %2756 = vst.msk [vmem:[#allocation2 + $0x410] sm:$0xff] %vm2625_vm4, %v2084_v0  ;;  %v2087_v13 = vadd.f32 %v6689_v40, %v2086_v6  ;;  %v5119_v14 = vpop.f32.mrb[7].mxu0  ;;  %v5387_v17 = vpop.f32.mrb[7].mxu1 }
 0x2f1   : > { %v3496_v8 = vsel %vm5950_vm7, %v4680_v63, %v4560_v56  ;;  %v4121_v9 = vld [vmem:[#allocation2 + $0x826] ss:$2 sm:$0xff]  ;;  %v4127_v12 = vld [vmem:[#allocation2 + $0x827] ss:$2 sm:$0xff]  ;;  %2891 = vst.msk [vmem:[#allocation2 + $0x840] sm:$0xf] %vm2890_vm5, %v2620_v5 }
 0x2f2   : > { %4561 = vst [vmem:[%s5912_s27 + $0x80] sm:$0xf] %v3496_v8  ;;  %4642 = vst.msk [vmem:[%s5912_s27 + $0x108] sm:$0xf] %vm2890_vm5, %v4714_v4  ;;  %v4131_v16 = vmax.f32 %v4121_v9, %v4127_v12  ;;  %v3499_v45 = vld [vmem:[#allocation2 + $0x3f4] ss:$2 sm:$0xff] }
 0x2f3   : > { %2757 = vst.msk [vmem:[#allocation2 + $0x418] sm:$0xff] %vm2625_vm4, %v2087_v13  ;;  %v3505_v46 = vld [vmem:[#allocation2 + $0x3f5] ss:$2 sm:$0xff] }
 0x2f4   : > { %v4134_v18 = vmax.f32 %v4116_v58, %v4131_v16  ;;  %v3510_v61 = vmax.f32 %v3499_v45, %v3505_v46 }
 0x2f5   : > { %v2091_v23 = vpop.f32.mrb[8].mxu0 }
 0x2f6   : > { %v4137_v22 = vmax.f32 %v4134_v18, 0.0  ;;  %v2092_v25 = vadd.f32 %v6689_v40, %v2091_v23  ;;  %v5122_v26 = vpop.f32.mrb[9].mxu0 }
 0x2f7   : > { %v3501_v28 = vld [vmem:[#allocation2 + $0x404] ss:$2 sm:$0xff]  ;;  %v3507_v29 = vld [vmem:[#allocation2 + $0x405] ss:$2 sm:$0xff]  ;;  %v2094_v30 = vpop.f32.mrb[10].mxu0 }
 0x2f8   : > { %v4715_v27 = vpack.c.bf16 %v4137_v22, %v4137_v22  ;;  %v3511_v32 = vmax.f32 %v3501_v28, %v3507_v29  ;;  %v4123_v33 = vld [vmem:[#allocation2 + $0x836] ss:$2 sm:$0x7f]  ;;  %v4129_v34 = vld [vmem:[#allocation2 + $0x837] ss:$2 sm:$0x7f]  ;;  %v2095_v35 = vadd.f32 %v6689_v40, %v2094_v30 }
 0x2f9   : > { %2758 = vst.msk [vmem:[#allocation2 + $0x420] sm:$0xff] %vm2625_vm4, %v2092_v25  ;;  %v4132_v37 = vmax.f32 %v4123_v33, %v4129_v34  ;;  %v5123_v38 = vpop.f32.mrb[11].mxu0 }
 0x2fa   : > { %4643 = vst.msk [vmem:[%s5912_s27 + $0x10c] sm:$0xf] %vm2890_vm5, %v4715_v27  ;;  %v3529_v39 = vmax.f32 %v3511_v32, %v3526_v31 }
 0x2fb   : > { %2759 = vst.msk [vmem:[#allocation2 + $0x428] sm:$0xff] %vm2625_vm4, %v2095_v35  ;;  %v4135_v41 = vmax.f32 %v4117_v36, %v4132_v37 }
 0x2fc   : > { %v3532_v43 = vmax.f32 %v3529_v39, 0.0 }
 0x2fd   : > { %v4138_v44 = vmax.f32 %v4135_v41, 0.0 }
 0x2fe   : > { %v4682_v47 = vpack.c.bf16 %v3532_v43, %v3532_v43 }
 0x2ff   : > { %v4716_v40 = vpack.c.bf16 %v4138_v44, %v4138_v44 }
 0x300   : > { %v3503_v49 = vld [vmem:[#allocation2 + $0x414] ss:$2 sm:$0x7f]  ;;  %v3509_v50 = vld [vmem:[#allocation2 + $0x415] ss:$2 sm:$0x7f] }
 0x301   : > { %4566 = vst.msk [vmem:[%s5912_s27 + $0x88] sm:$0xf] %vm2890_vm5, %v4682_v47  ;;  %v3512_v1 = vmax.f32 %v3503_v49, %v3509_v50  ;;  %v4156_v52 = vsel %vm5950_vm7, %v4716_v40, %v4644_v48 }
 0x302   : > { %v3514_v53 = vld [vmem:[#allocation2 + $0x422] ss:$2 sm:$0xff]  ;;  %v3520_v54 = vld [vmem:[#allocation2 + $0x423] ss:$2 sm:$0xff]  ;;  %4645 = vst [vmem:[%s5912_s27 + $0x110] sm:$0xf] %v4156_v52 }
 0x303   : > { %v3530_v55 = vmax.f32 %v3512_v1, %v3527_v51  ;;  %v3525_v56 = vmax.f32 %v3514_v53, %v3520_v54 }
 0x305   : > { %v3533_v57 = vmax.f32 %v3530_v55, 0.0  ;;  %v3528_v59 = vmax.f32 %v3510_v61, %v3525_v56 }
 0x307   : > { %v4683_v62 = vpack.c.bf16 %v3533_v57, %v3533_v57  ;;  %v3531_v63 = vmax.f32 %v3528_v59, 0.0 }
 0x309   : > { %v3551_v0 = vsel %vm5950_vm7, %v4683_v62, %v4567_v60  ;;  %v4681_v2 = vpack.c.bf16 %v3531_v63, %v3531_v63 }
 0x30a   : > { %4568 = vst [vmem:[%s5912_s27 + $0x8c] sm:$0xf] %v3551_v0 }
 0x30b   : > { %4565 = vst.msk [vmem:[%s5912_s27 + $0x84] sm:$0xf] %vm2890_vm5, %v4681_v2 }
 0x30c PF: > { %s13_s12 = sadd.s32 1, %s5549_s12  }
 0x30d   : > { %p10_p4 = scmp.ge.s32.totalorder %s13_s12, 4  }
 0x30f   :  { %12 = sbr.rel (!%p10_p4) target bundleno = 1 (0x1), region = 359 }

// kernel: cnn_base_forward.5
= control target key start
LH: loop header
LB: loop body
LE: loop exit
PB: predicated region body
PF: predicated region fallthrough
CT: control target
= control target key end

     0   :  { %s2406_s12 = smov 0   ;;  %s2879_s0 = inlined_call_operand.vmem [shape: bf16[2,441,288], index: 0, kind: input, shape index: {}]   ;;  %s2880_s1 = inlined_call_operand.vmem [shape: bf16[288,64], index: 1, kind: input, shape index: {}]   ;;  %s2881_s2 = inlined_call_operand.vmem [shape: f32[1,64], index: 2, kind: input, shape index: {}]   ;;  %s2882_s3 = inlined_call_operand.vmem [shape: bf16[2,10,10,64], index: 3, kind: output, shape index: {}]  }
   0x1 LB: > { %s1916_s13 = sadd.s32 4294967295, %s2383_s12   ;;  %p1920_p0 = scmp.ge.s32.totalorder %s2383_s12, 1  ;;  %s2383_s12 = sphi %s2406_s12, %s13_s12  }
   0x2   : > { %p137_p1 = scmp.lt.s32.totalorder %s2383_s12, 3 }
   0x4   : > { %p138_p2 = pnand %p1920_p0, %p137_p1 }
   0x5   : > { %v2247_v0 = vld [vmem:[%s2880_s1] sm:$0xff] (!%p138_p2)   ;;  %v2385_v1 = vmov (!%p138_p2), 0   ;;  %v2248_v2 = vld [vmem:[%s2880_s1 + $0x8] sm:$0xff] (!%p138_p2)   ;;  %p161_p3 = scmp.lt.s32.totalorder (!%p138_p2), %s1916_s13, 1  ;;  %v2249_v3 = vld [vmem:[%s2880_s1 + $0x10] sm:$0xff] (!%p138_p2)   ;;  %vm855_vm0 = vcmask (!%p138_p2), 261120  }
   0x6   : > { %141 = sbr.rel (%p138_p2) target bundleno = 469 (0x1d5), region = 32  ;;  %940 = vmatprep.subr.bf16.mxu0 (!%p138_p2), %v2385_v1  ;;  %2204 = vmatprep.subr.bf16.mxu1 (!%p138_p2), %v2385_v1  ;;  %v2250_v4 = vld [vmem:[%s2880_s1 + $0x18] sm:$0xff] (!%p138_p2)   ;;  %v2251_v5 = vld [vmem:[%s2880_s1 + $0x20] sm:$0xff] (!%p138_p2)   ;;  %v2252_v7 = vld [vmem:[%s2880_s1 + $0x28] sm:$0xff] (!%p138_p2)   ;;  %vm1454_vm1 = vcmask (!%p138_p2), 523264   ;;  %vm1543_vm2 = vcmask (!%p138_p2), 519168  }
   0x7   : > { %941 = vmatpush1.bf16.msra.mxu0 (!%p138_p2), %v2247_v0  ;;  %2220 = vmatpush1.bf16.msra.mxu1 (!%p138_p2), %v2247_v0  ;;  %v2253_v9 = vld [vmem:[%s2880_s1 + $0x30] sm:$0xff] (!%p138_p2)   ;;  %v2254_v10 = vld [vmem:[%s2880_s1 + $0x38] sm:$0xff] (!%p138_p2)   ;;  %v2255_v11 = vld [vmem:[%s2880_s1 + $0x40] sm:$0xff] (!%p138_p2)   ;;  %vm1510_vm3 = vcmask (!%p138_p2), 516096  }
   0x8   : > { %942 = vmatprep.subr.bf16.mxu0 (!%p138_p2), %v2385_v1  ;;  %2205 = vmatprep.subr.bf16.mxu1 (!%p138_p2), %v2385_v1  ;;  %v2256_v12 = vld [vmem:[%s2880_s1 + $0x48] sm:$0xff] (!%p138_p2)   ;;  %v2257_v13 = vld [vmem:[%s2880_s1 + $0x50] sm:$0xff] (!%p138_p2)   ;;  %v2258_v14 = vld [vmem:[%s2880_s1 + $0x58] sm:$0xff] (!%p138_p2)  }
   0x9   : > { %v2259_v15 = vld [vmem:[%s2880_s1 + $0x60] sm:$0xff] (!%p138_p2)   ;;  %v2260_v16 = vld [vmem:[%s2880_s1 + $0x68] sm:$0xff] (!%p138_p2)   ;;  %v2261_v17 = vld [vmem:[%s2880_s1 + $0x70] sm:$0xff] (!%p138_p2)  }
   0xa   : > { %v2262_v18 = vld [vmem:[%s2880_s1 + $0x78] sm:$0xff] (!%p138_p2)   ;;  %v2269_v20 = vld [vmem:[%s2880_s1 + $0x80] sm:$0xff] (!%p138_p2)   ;;  %v2288_v24 = vld [vmem:[%s2880_s1 + $0x88] sm:$0xff] (!%p138_p2)  }
   0xb   : > { %943 = vmatpush1.bf16.msra.mxu0 (!%p138_p2), %v2248_v2  ;;  %2221 = vmatpush1.bf16.msra.mxu1 (!%p138_p2), %v2248_v2 }
   0xc   : > { %944 = vmatprep.subr.bf16.mxu0 (!%p138_p2), %v2385_v1  ;;  %2206 = vmatprep.subr.bf16.mxu1 (!%p138_p2), %v2385_v1 }
   0xd   : > { %s2884_s13 = smov (!%p161_p3, %s1916_s13), 1 }
   0xe   : > { %s2236_s22 = smul.u32 672, %s2884_s13 }
   0xf   : > { %945 = vmatpush1.bf16.msra.mxu0 %v2249_v3  ;;  %2222 = vmatpush1.bf16.msra.mxu1 %v2249_v3  ;;  %s2237_s4 = smul.u32 80, %s2884_s13 }
  0x10   : > { %946 = vmatprep.subr.bf16.mxu0 %v2385_v1  ;;  %2207 = vmatprep.subr.bf16.mxu1 %v2385_v1  ;;  %s2443_s27 = scalar_lea.vmem %s2879_s0, %s2236_s22 }
  0x11   : > { %v2265_v6 = vld [vmem:[%s2443_s27 + $0x4] ss:$12 sps:$4 sm:$0xff]   ;;  %v2268_v8 = vld [vmem:[%s2443_s27 + $0x1fc] ss:$12 sps:$4 sm:$0xff]   ;;  %v2263_v19 = vld [vmem:[%s2443_s27] ss:$12 sps:$4 sm:$0xff]   ;;  %s2713_s6 = scalar_lea.vmem %s2882_s3, %s2237_s4 }
  0x12   : > { %972 = vmatprep.mubr.bf16.mxu0 %v2265_v6  ;;  %1140 = vmatprep.mubr.bf16.mxu1 %v2268_v8  ;;  %v2266_v21 = vld [vmem:[%s2443_s27 + $0x1f8] ss:$12 sps:$4 sm:$0xff]   ;;  %v2270_v22 = vld [vmem:[%s2443_s27 + $0x1c] ss:$12 sps:$4 sm:$0xff]   ;;  %v2272_v23 = vld [vmem:[%s2443_s27 + $0x214] ss:$12 sps:$4 sm:$0xff]  }
  0x13   : > { %947 = vmatpush1.bf16.msra.mxu0 %v2250_v4  ;;  %2223 = vmatpush1.bf16.msra.mxu1 %v2250_v4  ;;  %v2274_v25 = vld [vmem:[%s2443_s27 + $0x18] ss:$12 sps:$4 sm:$0xff]   ;;  %v2275_v26 = vld [vmem:[%s2443_s27 + $0x210] ss:$12 sps:$4 sm:$0xff]   ;;  %v2276_v27 = vld [vmem:[%s2443_s27 + $0x34] ss:$12 sps:$4 sm:$0xff]  }
  0x14   : > { %948 = vmatprep.subr.bf16.mxu0 %v2385_v1  ;;  %2208 = vmatprep.subr.bf16.mxu1 %v2385_v1  ;;  %v2278_v28 = vld [vmem:[%s2443_s27 + $0x22c] ss:$12 sps:$4 sm:$0xff]   ;;  %v2280_v29 = vld [vmem:[%s2443_s27 + $0x30] ss:$12 sps:$4 sm:$0xff]   ;;  %v2281_v30 = vld [vmem:[%s2443_s27 + $0x228] ss:$12 sps:$4 sm:$0xff]  }
  0x15   : > { %v2282_v31 = vld [vmem:[%s2443_s27 + $0x4c] ss:$12 sps:$4 sm:$0xff]   ;;  %v2284_v32 = vld [vmem:[%s2443_s27 + $0x244] ss:$12 sps:$4 sm:$0xff]   ;;  %v2286_v33 = vld [vmem:[%s2443_s27 + $0x48] ss:$12 sps:$4 sm:$0xff]  }
  0x16   : > { %v2287_v34 = vld [vmem:[%s2443_s27 + $0x240] ss:$12 sps:$4 sm:$0xff]   ;;  %v2289_v35 = vld [vmem:[%s2443_s27 + $0x64] ss:$12 sps:$4 sm:$0xff]   ;;  %v2291_v36 = vld [vmem:[%s2443_s27 + $0x25c] ss:$12 sps:$4 sm:$0xff]  }
  0x17   : > { %949 = vmatpush1.bf16.msra.mxu0 %v2251_v5  ;;  %2224 = vmatpush1.bf16.msra.mxu1 %v2251_v5  ;;  %v2293_v37 = vld [vmem:[%s2443_s27 + $0x60] ss:$12 sps:$4 sm:$0xff]   ;;  %v2294_v38 = vld [vmem:[%s2443_s27 + $0x258] ss:$12 sps:$4 sm:$0xff]   ;;  %v2295_v39 = vld [vmem:[%s2443_s27 + $0x7c] ss:$12 sps:$4 sm:$0xff]  }
  0x18   : > { %950 = vmatprep.subr.bf16.mxu0 %v2385_v1  ;;  %2209 = vmatprep.subr.bf16.mxu1 %v2385_v1  ;;  %v2297_v40 = vld [vmem:[%s2443_s27 + $0x274] ss:$12 sps:$4 sm:$0xff]   ;;  %v2299_v41 = vld [vmem:[%s2443_s27 + $0x78] ss:$12 sps:$4 sm:$0xff]   ;;  %v2300_v42 = vld [vmem:[%s2443_s27 + $0x270] ss:$12 sps:$4 sm:$0xff]  }
  0x19   : > { %v2301_v43 = vld [vmem:[%s2443_s27 + $0x94] ss:$12 sps:$4 sm:$0xff]   ;;  %v2303_v44 = vld [vmem:[%s2443_s27 + $0x28c] ss:$12 sps:$4 sm:$0x1f]  }
  0x1a   : > { %v2305_v45 = vld [vmem:[%s2443_s27 + $0x90] ss:$12 sps:$4 sm:$0xff]   ;;  %v2306_v46 = vld [vmem:[%s2443_s27 + $0x288] ss:$12 sps:$4 sm:$0x1f]  }
  0x1b   : > { %951 = vmatpush1.bf16.msra.mxu0 %v2252_v7  ;;  %2225 = vmatpush1.bf16.msra.mxu1 %v2252_v7  ;;  %v2307_v47 = vld [vmem:[%s2443_s27 + $0xac] ss:$12 sps:$4 sm:$0xff]   ;;  %v2309_v48 = vld [vmem:[%s2443_s27 + $0x8] ss:$12 sps:$4 sm:$0xff]   ;;  %v2312_v51 = vld [vmem:[%s2443_s27 + $0xc4] ss:$12 sps:$4 sm:$0xff]  }
  0x1c   : > { %952 = vmatprep.subr.bf16.mxu0 %v2385_v1  ;;  %2210 = vmatprep.subr.bf16.mxu1 %v2385_v1  ;;  %v2310_v49 = vld [vmem:[%s2443_s27 + $0xa8] ss:$12 sps:$4 sm:$0xff]   ;;  %v2311_v50 = vld [vmem:[%s2443_s27 + $0x20] ss:$12 sps:$4 sm:$0xff]   ;;  %v2314_v52 = vld [vmem:[%s2443_s27 + $0x38] ss:$12 sps:$4 sm:$0xff]  }
  0x1d   : > { %v2315_v53 = vld [vmem:[%s2443_s27 + $0xc0] ss:$12 sps:$4 sm:$0xff]   ;;  %v2316_v54 = vld [vmem:[%s2443_s27 + $0x50] ss:$12 sps:$4 sm:$0xff]   ;;  %v2319_v56 = vld [vmem:[%s2443_s27 + $0x68] ss:$12 sps:$4 sm:$0xff]  }
  0x1e   : > { %v2317_v55 = vld [vmem:[%s2443_s27 + $0xdc] ss:$12 sps:$4 sm:$0xff]   ;;  %v2320_v57 = vld [vmem:[%s2443_s27 + $0xd8] ss:$12 sps:$4 sm:$0xff]   ;;  %v2321_v58 = vld [vmem:[%s2443_s27 + $0x80] ss:$12 sps:$4 sm:$0xff]  }
  0x1f   : > { %953 = vmatpush1.bf16.msra.mxu0 %v2253_v9  ;;  %2226 = vmatpush1.bf16.msra.mxu1 %v2253_v9  ;;  %v2322_v59 = vld [vmem:[%s2443_s27 + $0xf4] ss:$12 sps:$4 sm:$0xff]   ;;  %v2324_v60 = vld [vmem:[%s2443_s27 + $0x98] ss:$12 sps:$4 sm:$0xff]   ;;  %v2325_v61 = vld [vmem:[%s2443_s27 + $0xf0] ss:$12 sps:$4 sm:$0xff]  }
  0x20   : > { %954 = vmatprep.subr.bf16.mxu0 %v2385_v1  ;;  %2211 = vmatprep.subr.bf16.mxu1 %v2385_v1  ;;  %v2326_v62 = vld [vmem:[%s2443_s27 + $0xb0] ss:$12 sps:$4 sm:$0xff]   ;;  %v2327_v63 = vld [vmem:[%s2443_s27 + $0x10c] ss:$12 sps:$4 sm:$0xff]   ;;  %v2329_v0 = vld [vmem:[%s2443_s27 + $0xc8] ss:$12 sps:$4 sm:$0xff]  }
  0x21   : > { %v2331_v2 = vld [vmem:[%s2443_s27 + $0xe0] ss:$12 sps:$4 sm:$0xff]   ;;  %v2332_v3 = vld [vmem:[%s2443_s27 + $0x124] ss:$12 sps:$4 sm:$0xff]   ;;  %v2337_v7 = vld [vmem:[%s2443_s27 + $0x13c] ss:$12 sps:$4 sm:$0xff]  }
  0x22   : > { %v2334_v4 = vld [vmem:[%s2443_s27 + $0xf8] ss:$12 sps:$4 sm:$0xff]   ;;  %v2335_v5 = vld [vmem:[%s2443_s27 + $0x120] ss:$12 sps:$4 sm:$0xff]   ;;  %v2336_v6 = vld [vmem:[%s2443_s27 + $0x110] ss:$12 sps:$4 sm:$0xff]  }
  0x23   : > { %955 = vmatpush1.bf16.msra.mxu0 %v2254_v10  ;;  %2227 = vmatpush1.bf16.msra.mxu1 %v2254_v10  ;;  %v2339_v8 = vld [vmem:[%s2443_s27 + $0x128] ss:$12 sps:$4 sm:$0xff]   ;;  %v2340_v9 = vld [vmem:[%s2443_s27 + $0x138] ss:$12 sps:$4 sm:$0xff]   ;;  %v2341_v10 = vld [vmem:[%s2443_s27 + $0x140] ss:$12 sps:$4 sm:$0xff]  }
  0x24   : > { %956 = vmatprep.subr.bf16.mxu0 %v2385_v1  ;;  %2212 = vmatprep.subr.bf16.mxu1 %v2385_v1 }
  0x27   : > { %957 = vmatpush1.bf16.msra.mxu0 %v2255_v11  ;;  %2228 = vmatpush1.bf16.msra.mxu1 %v2255_v11  ;;  %v2342_v11 = vld [vmem:[%s2443_s27 + $0x154] ss:$12 sps:$4 sm:$0xff]  }
  0x28   : > { %958 = vmatprep.subr.bf16.mxu0 %v2385_v1  ;;  %2213 = vmatprep.subr.bf16.mxu1 %v2385_v1 }
  0x2b   : > { %959 = vmatpush1.bf16.msra.mxu0 %v2256_v12  ;;  %2229 = vmatpush1.bf16.msra.mxu1 %v2256_v12  ;;  %v2344_v12 = vld [vmem:[%s2443_s27 + $0x158] ss:$12 sps:$4 sm:$0xff]  }
  0x2c   : > { %960 = vmatprep.subr.bf16.mxu0 %v2385_v1  ;;  %2214 = vmatprep.subr.bf16.mxu1 %v2385_v1 }
  0x2f   : > { %961 = vmatpush1.bf16.msra.mxu0 %v2257_v13  ;;  %2230 = vmatpush1.bf16.msra.mxu1 %v2257_v13  ;;  %v2345_v13 = vld [vmem:[%s2443_s27 + $0x150] ss:$12 sps:$4 sm:$0xff]  }
  0x30   : > { %962 = vmatprep.subr.bf16.mxu0 %v2385_v1  ;;  %2215 = vmatprep.subr.bf16.mxu1 %v2385_v1 }
  0x33   : > { %963 = vmatpush1.bf16.msra.mxu0 %v2258_v14  ;;  %2231 = vmatpush1.bf16.msra.mxu1 %v2258_v14  ;;  %v2346_v14 = vld [vmem:[%s2443_s27 + $0x170] ss:$12 sps:$4 sm:$0xff]  }
  0x34   : > { %964 = vmatprep.subr.bf16.mxu0 %v2385_v1  ;;  %2216 = vmatprep.subr.bf16.mxu1 %v2385_v1 }
  0x37   : > { %965 = vmatpush1.bf16.msra.mxu0 %v2259_v15  ;;  %2232 = vmatpush1.bf16.msra.mxu1 %v2259_v15  ;;  %v2347_v15 = vld [vmem:[%s2443_s27 + $0x16c] ss:$12 sps:$4 sm:$0xff]  }
  0x38   : > { %966 = vmatprep.subr.bf16.mxu0 %v2385_v1  ;;  %2217 = vmatprep.subr.bf16.mxu1 %v2385_v1 }
  0x3b   : > { %967 = vmatpush1.bf16.msra.mxu0 %v2260_v16  ;;  %2233 = vmatpush1.bf16.msra.mxu1 %v2260_v16  ;;  %v2349_v16 = vld [vmem:[%s2443_s27 + $0x188] ss:$12 sps:$4 sm:$0xff]  }
  0x3c   : > { %968 = vmatprep.subr.bf16.mxu0 %v2385_v1  ;;  %2218 = vmatprep.subr.bf16.mxu1 %v2385_v1 }
  0x3f   : > { %969 = vmatpush1.bf16.msra.mxu0 %v2261_v17  ;;  %2234 = vmatpush1.bf16.msra.mxu1 %v2261_v17  ;;  %v2350_v17 = vld [vmem:[%s2443_s27 + $0x168] ss:$12 sps:$4 sm:$0xff]  }
  0x40   : > { %970 = vmatprep.subr.bf16.mxu0 %v2385_v1  ;;  %2219 = vmatprep.subr.bf16.mxu1 %v2385_v1  ;;  %v2330_v1 = vld [vmem:[%s2443_s27 + $0x108] ss:$12 sps:$4 sm:$0xff]  }
  0x43   : > { %971 = vmatpush1.bf16.msra.mxu0 %v2262_v18  ;;  %2235 = vmatpush1.bf16.msra.mxu1 %v2262_v18  ;;  %v2351_v18 = vld [vmem:[%s2443_s27 + $0x1a0] ss:$12 sps:$4 sm:$0xff]  }
  0x44   : > { %2144 = vmatprep.subr.bf16.mxu1 %v2269_v20 }
  0x46   : > { %973 = vmatmul.mubr.bf16.vlgmr.msra.gmra.mrb[0].mxu0 %v2263_v19  ;;  %1141 = vmatmul.mubr.bf16.vlgmr.msra.gmra.mrb[0].mxu1 %v2266_v21  ;;  %v2352_v19 = vld [vmem:[%s2443_s27 + $0x184] ss:$12 sps:$4 sm:$0xff]   ;;  %v2355_v21 = vld [vmem:[%s2443_s27 + $0x180] ss:$12 sps:$4 sm:$0xff]  }
  0x47   : > { %2145 = vmatpush3.bf16.msra.mxu1 %v2269_v20  ;;  %980 = vmatprep.mubr.bf16.mxu0 %v2270_v22  ;;  %v2354_v20 = vld [vmem:[%s2443_s27 + $0x1b8] ss:$12 sps:$4 sm:$0xff]   ;;  %v2356_v22 = vld [vmem:[%s2443_s27 + $0x1d0] ss:$12 sps:$4 sm:$0xff]  }
  0x48   : > { %1148 = vmatprep.mubr.bf16.mxu1 %v2272_v23  ;;  %2146 = vmatprep.subr.bf16.mxu1 %v2288_v24  ;;  %v2357_v23 = vld [vmem:[%s2443_s27 + $0x19c] ss:$12 sps:$4 sm:$0xff]  }
  0x4b   : > { %2147 = vmatpush3.bf16.msra.mxu1 %v2288_v24  ;;  %v2359_v24 = vld [vmem:[%s2443_s27 + $0x1e8] ss:$12 sps:$4 sm:$0xff]  }
  0x4e   : > { %981 = vmatmul.mubr.bf16.gmra.mrb[4].mxu0 %v2274_v25  ;;  %1149 = vmatmul.mubr.bf16.gmra.mrb[4].mxu1 %v2275_v26  ;;  %v2360_v25 = vld [vmem:[%s2443_s27 + $0x198] ss:$12 sps:$4 sm:$0xff]   ;;  %v2361_v26 = vld [vmem:[%s2443_s27 + $0x200] ss:$12 sps:$4 sm:$0xff]  }
  0x4f   : > { %988 = vmatprep.mubr.bf16.mxu0 %v2276_v27  ;;  %1156 = vmatprep.mubr.bf16.mxu1 %v2278_v28  ;;  %v2362_v27 = vld [vmem:[%s2443_s27 + $0x1b4] ss:$12 sps:$4 sm:$0xff]   ;;  %v2364_v28 = vld [vmem:[%s2443_s27 + $0x218] ss:$12 sps:$4 sm:$0xff]  }
  0x56   : > { %989 = vmatmul.mubr.bf16.gmra.mrb[8].mxu0 %v2280_v29  ;;  %1157 = vmatmul.mubr.bf16.gmra.mrb[8].mxu1 %v2281_v30  ;;  %v2365_v29 = vld [vmem:[%s2443_s27 + $0x1b0] ss:$12 sps:$4 sm:$0xff]  }
  0x57   : > { %996 = vmatprep.mubr.bf16.mxu0 %v2282_v31  ;;  %1164 = vmatprep.mubr.bf16.mxu1 %v2284_v32  ;;  %v2366_v30 = vld [vmem:[%s2443_s27 + $0x230] ss:$12 sps:$4 sm:$0xff]   ;;  %v2367_v31 = vld [vmem:[%s2443_s27 + $0x1cc] ss:$12 sps:$4 sm:$0xff]   ;;  %v2369_v32 = vld [vmem:[%s2443_s27 + $0x248] ss:$12 sps:$4 sm:$0xff]  }
  0x5e   : > { %997 = vmatmul.mubr.bf16.gmra.mrb[12].mxu0 %v2286_v33  ;;  %1165 = vmatmul.mubr.bf16.gmra.mrb[12].mxu1 %v2287_v34  ;;  %v2370_v33 = vld [vmem:[%s2443_s27 + $0x1c8] ss:$12 sps:$4 sm:$0xff]   ;;  %v2371_v34 = vld [vmem:[%s2443_s27 + $0x260] ss:$12 sps:$4 sm:$0xff]  }
  0x5f   : > { %1004 = vmatprep.mubr.bf16.mxu0 %v2289_v35  ;;  %1172 = vmatprep.mubr.bf16.mxu1 %v2291_v36  ;;  %v2372_v35 = vld [vmem:[%s2443_s27 + $0x1e4] ss:$12 sps:$4 sm:$0xff]  }
  0x60   : > { %v2374_v36 = vld [vmem:[%s2443_s27 + $0x278] ss:$12 sps:$4 sm:$0xff]  }
  0x66   : > { %1005 = vmatmul.mubr.bf16.gmra.mrb[16].mxu0 %v2293_v37  ;;  %1173 = vmatmul.mubr.bf16.gmra.mrb[16].mxu1 %v2294_v38  ;;  %v2375_v37 = vld [vmem:[%s2443_s27 + $0x1e0] ss:$12 sps:$4 sm:$0xff]   ;;  %v2376_v38 = vld [vmem:[%s2443_s27 + $0x290] ss:$12 sps:$4 sm:$0x1f]  }
  0x67   : > { %1012 = vmatprep.mubr.bf16.mxu0 %v2295_v39  ;;  %1180 = vmatprep.mubr.bf16.mxu1 %v2297_v40 }
  0x6e   : > { %1013 = vmatmul.mubr.bf16.gmra.mrb[20].mxu0 %v2299_v41  ;;  %1181 = vmatmul.mubr.bf16.gmra.mrb[20].mxu1 %v2300_v42 }
  0x6f   : > { %1020 = vmatprep.mubr.bf16.mxu0 %v2301_v43  ;;  %1188 = vmatprep.mubr.bf16.mxu1 %v2303_v44 }
  0x76   : > { %1021 = vmatmul.mubr.bf16.gmra.mrb[24].mxu0 %v2305_v45  ;;  %1189 = vmatmul.mubr.bf16.gmra.mrb[24].mxu1 %v2306_v46 }
  0x77   : > { %1028 = vmatprep.mubr.bf16.mxu0 %v2307_v47  ;;  %2148 = vmatprep.mubr.msk.bf16.mxu1 %vm855_vm0, %v2309_v48 }
  0x7e   : > { %1029 = vmatmul.mubr.bf16.gmra.mrb[28].mxu0 %v2310_v49  ;;  %2149 = vmatmul.mubr.msk.bf16.vlgmr.msra.gmra.mrb[28].mxu1 %vm855_vm0, %v2311_v50 }
  0x7f   : > { %1036 = vmatprep.mubr.bf16.mxu0 %v2312_v51  ;;  %2152 = vmatprep.mubr.msk.bf16.mxu1 %vm855_vm0, %v2314_v52 }
  0x86   : > { %1037 = vmatmul.mubr.bf16.gmra.mrb[32].mxu0 %v2315_v53  ;;  %2153 = vmatmul.mubr.msk.bf16.gmra.mrb[32].mxu1 %vm855_vm0, %v2316_v54 }
  0x87   : > { %1044 = vmatprep.mubr.bf16.mxu0 %v2317_v55  ;;  %2156 = vmatprep.mubr.msk.bf16.mxu1 %vm855_vm0, %v2319_v56 }
  0x8e   : > { %1045 = vmatmul.mubr.bf16.gmra.mrb[36].mxu0 %v2320_v57  ;;  %2157 = vmatmul.mubr.msk.bf16.gmra.mrb[36].mxu1 %vm855_vm0, %v2321_v58 }
  0x8f   : > { %1052 = vmatprep.mubr.bf16.mxu0 %v2322_v59  ;;  %2160 = vmatprep.mubr.msk.bf16.mxu1 %vm855_vm0, %v2324_v60 }
  0x96   : > { %1053 = vmatmul.mubr.bf16.gmra.mrb[40].mxu0 %v2325_v61  ;;  %2161 = vmatmul.mubr.msk.bf16.gmra.mrb[40].mxu1 %vm855_vm0, %v2326_v62 }
  0x97   : > { %1060 = vmatprep.mubr.bf16.mxu0 %v2327_v63  ;;  %2164 = vmatprep.mubr.msk.bf16.mxu1 %vm855_vm0, %v2329_v0 }
  0x9e   : > { %1061 = vmatmul.mubr.bf16.gmra.mrb[44].mxu0 %v2330_v1  ;;  %2165 = vmatmul.mubr.msk.bf16.gmra.mrb[44].mxu1 %vm855_vm0, %v2331_v2 }
  0x9f   : > { %1068 = vmatprep.mubr.bf16.mxu0 %v2332_v3  ;;  %2168 = vmatprep.mubr.msk.bf16.mxu1 %vm855_vm0, %v2334_v4 }
  0xa6   : > { %1069 = vmatmul.mubr.bf16.gmra.mrb[48].mxu0 %v2335_v5  ;;  %2169 = vmatmul.mubr.msk.bf16.gmra.mrb[48].mxu1 %vm855_vm0, %v2336_v6 }
  0xa7   : > { %1076 = vmatprep.mubr.bf16.mxu0 %v2337_v7  ;;  %2172 = vmatprep.mubr.msk.bf16.mxu1 %vm855_vm0, %v2339_v8 }
  0xae   : > { %1077 = vmatmul.mubr.bf16.gmra.mrb[52].mxu0 %v2340_v9  ;;  %2173 = vmatmul.mubr.msk.bf16.gmra.mrb[52].mxu1 %vm855_vm0, %v2341_v10 }
  0xaf   : > { %1084 = vmatprep.mubr.bf16.mxu0 %v2342_v11  ;;  %2176 = vmatprep.mubr.msk.bf16.mxu1 %vm855_vm0, %v2344_v12 }
  0xb6   : > { %1085 = vmatmul.mubr.bf16.gmra.mrb[56].mxu0 %v2345_v13  ;;  %2177 = vmatmul.mubr.msk.bf16.gmra.mrb[56].mxu1 %vm855_vm0, %v2346_v14 }
  0xb7   : > { %1092 = vmatprep.mubr.bf16.mxu0 %v2347_v15  ;;  %2180 = vmatprep.mubr.msk.bf16.mxu1 %vm855_vm0, %v2349_v16 }
  0xbe   : > { %1093 = vmatmul.mubr.bf16.gmra.mrb[60].mxu0 %v2350_v17  ;;  %2181 = vmatmul.mubr.msk.bf16.gmra.mrb[60].mxu1 %vm855_vm0, %v2351_v18 }
  0xbf   : > { %1100 = vmatprep.mubr.bf16.mxu0 %v2352_v19  ;;  %2184 = vmatprep.mubr.msk.bf16.mxu1 %vm855_vm0, %v2354_v20 }
  0xc6   : > { %1101 = vmatmul.mubr.bf16.gmra.mrb[64].mxu0 %v2355_v21  ;;  %2185 = vmatmul.mubr.msk.bf16.gmra.mrb[64].mxu1 %vm855_vm0, %v2356_v22 }
  0xc7   : > { %1108 = vmatprep.mubr.bf16.mxu0 %v2357_v23  ;;  %2188 = vmatprep.mubr.msk.bf16.mxu1 %vm855_vm0, %v2359_v24 }
  0xce   : > { %1109 = vmatmul.mubr.bf16.gmra.mrb[68].mxu0 %v2360_v25  ;;  %2189 = vmatmul.mubr.msk.bf16.gmra.mrb[68].mxu1 %vm855_vm0, %v2361_v26 }
  0xcf   : > { %1116 = vmatprep.mubr.bf16.mxu0 %v2362_v27  ;;  %2192 = vmatprep.mubr.msk.bf16.mxu1 %vm855_vm0, %v2364_v28 }
  0xd6   : > { %1117 = vmatmul.mubr.bf16.gmra.mrb[72].mxu0 %v2365_v29  ;;  %2193 = vmatmul.mubr.msk.bf16.gmra.mrb[72].mxu1 %vm855_vm0, %v2366_v30 }
  0xd7   : > { %1124 = vmatprep.mubr.bf16.mxu0 %v2367_v31  ;;  %2196 = vmatprep.mubr.msk.bf16.mxu1 %vm855_vm0, %v2369_v32  ;;  %v2657_v31 = vld [vmem:[%s2881_s2] ss:$0 sm:$0xff] }
  0xde   : > { %1125 = vmatmul.mubr.bf16.gmra.mrb[76].mxu0 %v2370_v33  ;;  %2197 = vmatmul.mubr.msk.bf16.gmra.mrb[76].mxu1 %vm855_vm0, %v2371_v34 }
  0xdf   : > { %1132 = vmatprep.mubr.bf16.mxu0 %v2372_v35  ;;  %2200 = vmatprep.mubr.msk.bf16.mxu1 %vm855_vm0, %v2374_v36 }
  0xe6   : > { %1133 = vmatmul.mubr.bf16.gmra.mrb[80].mxu0 %v2375_v37  ;;  %2201 = vmatmul.mubr.msk.bf16.gmra.mrb[80].mxu1 %vm855_vm0, %v2376_v38 }
 0x119   : > { %v974_v39 = vpop.f32.mrb[0].mxu0  ;;  %v2620_v40 = vpop.f32.mrb[0].mxu1 }
 0x11a   : > { %v976_v41 = vpop.f32.mrb[1].mxu0  ;;  %v1144_v42 = vpop.f32.mrb[1].mxu1  ;;  %v975_v33 = vadd.f32 %v2657_v31, %v974_v39 }
 0x11b   : > { %v977_v43 = vpop.f32.mrb[2].mxu0  ;;  %v2622_v44 = vpop.f32.mrb[2].mxu1 }
 0x11c   : > { %v979_v45 = vpop.f32.mrb[3].mxu0  ;;  %v1147_v46 = vpop.f32.mrb[3].mxu1  ;;  %v978_v42 = vadd.f32 %v2657_v31, %v977_v43 }
 0x121   : > { %v982_v47 = vpop.f32.mrb[4].mxu0  ;;  %v2624_v48 = vpop.f32.mrb[4].mxu1 }
 0x122   : > { %v984_v49 = vpop.f32.mrb[5].mxu0  ;;  %v1152_v50 = vpop.f32.mrb[5].mxu1  ;;  %v983_v32 = vadd.f32 %v2657_v31, %v982_v47 }
 0x123   : > { %v985_v51 = vpop.f32.mrb[6].mxu0  ;;  %v2626_v52 = vpop.f32.mrb[6].mxu1 }
 0x124   : > { %v987_v53 = vpop.f32.mrb[7].mxu0  ;;  %v1155_v54 = vpop.f32.mrb[7].mxu1  ;;  %v986_v36 = vadd.f32 %v2657_v31, %v985_v51 }
 0x129   : > { %v2628_v55 = vpop.f32.mrb[8].mxu0  ;;  %v2630_v56 = vpop.f32.mrb[8].mxu1 }
 0x12a   : > { %v992_v57 = vpop.f32.mrb[9].mxu0  ;;  %v1160_v58 = vpop.f32.mrb[9].mxu1  ;;  %v991_v43 = vadd.f32 %v2657_v31, %v2628_v55 }
 0x12b   : > { %v2632_v59 = vpop.f32.mrb[10].mxu0  ;;  %v2634_v60 = vpop.f32.mrb[10].mxu1 }
 0x12c   : > { %v995_v61 = vpop.f32.mrb[11].mxu0  ;;  %v1163_v62 = vpop.f32.mrb[11].mxu1 }
 0x131   : > { %v998_v63 = vpop.f32.mrb[12].mxu0  ;;  %v2636_v0 = vpop.f32.mrb[12].mxu1 }
 0x132   : > { %v1000_v1 = vpop.f32.mrb[13].mxu0  ;;  %v1168_v2 = vpop.f32.mrb[13].mxu1  ;;  %v999_v51 = vadd.f32 %v2657_v31, %v998_v63 }
 0x133   : > { %v1001_v3 = vpop.f32.mrb[14].mxu0  ;;  %v2638_v4 = vpop.f32.mrb[14].mxu1 }
 0x134   : > { %v1003_v5 = vpop.f32.mrb[15].mxu0  ;;  %v1171_v6 = vpop.f32.mrb[15].mxu1  ;;  %v1002_v1 = vadd.f32 %v2657_v31, %v1001_v3 }
 0x135   : > { %v994_v5 = vadd.f32 %v2657_v31, %v2632_v59 }
 0x139   : > { %v2640_v7 = vpop.f32.mrb[16].mxu0  ;;  %v2642_v8 = vpop.f32.mrb[16].mxu1 }
 0x13a   : > { %v1008_v9 = vpop.f32.mrb[17].mxu0  ;;  %v1176_v10 = vpop.f32.mrb[17].mxu1  ;;  %v1007_v59 = vadd.f32 %v2657_v31, %v2640_v7 }
 0x13b   : > { %v2644_v11 = vpop.f32.mrb[18].mxu0  ;;  %v2646_v12 = vpop.f32.mrb[18].mxu1 }
 0x13c   : > { %v1011_v13 = vpop.f32.mrb[19].mxu0  ;;  %v1179_v14 = vpop.f32.mrb[19].mxu1 }
 0x141   : > { %v1014_v15 = vpop.f32.mrb[20].mxu0  ;;  %v2648_v16 = vpop.f32.mrb[20].mxu1 }
 0x142   : > { %v1016_v17 = vpop.f32.mrb[21].mxu0  ;;  %v1184_v18 = vpop.f32.mrb[21].mxu1  ;;  %v1015_v14 = vadd.f32 %v2657_v31, %v1014_v15 }
 0x143   : > { %v1017_v19 = vpop.f32.mrb[22].mxu0  ;;  %v1185_v20 = vpop.f32.mrb[22].mxu1 }
 0x144   : > { %v1019_v21 = vpop.f32.mrb[23].mxu0  ;;  %v1187_v22 = vpop.f32.mrb[23].mxu1  ;;  %v1018_v18 = vadd.f32 %v2657_v31, %v1017_v19 }
 0x149   : > { %v2650_v23 = vpop.f32.mrb[24].mxu0  ;;  %v1190_v24 = vpop.f32.mrb[24].mxu1 }
 0x14a   : > { %v1024_v25 = vpop.f32.mrb[25].mxu0  ;;  %v1192_v26 = vpop.f32.mrb[25].mxu1 }
 0x14b   : > { %v2652_v27 = vpop.f32.mrb[26].mxu0  ;;  %v1193_v28 = vpop.f32.mrb[26].mxu1 }
 0x14c   : > { %v1027_v29 = vpop.f32.mrb[27].mxu0  ;;  %v1195_v30 = vpop.f32.mrb[27].mxu1 }
 0x14d   : > { %v1010_v29 = vadd.f32 %v2657_v31, %v2644_v11 }
 0x151   : > { %v2661_v34 = vpop.f32.mrb[28].mxu0  ;;  %v2150_v35 = vpop.f32.mrb[28].mxu1 }
 0x152   : > { %v1240_v37 = vadd.f32 %v2150_v35, %v983_v32  ;;  %v1032_v38 = vpop.f32.mrb[29].mxu0  ;;  %v1231_v41 = vpop.f32.mrb[29].mxu1  ;;  %v1031_v11 = vadd.f32 %v2657_v31, %v2661_v34  ;;  %v1026_v34 = vadd.f32 %v2657_v31, %v2652_v27 }
 0x153   : > { %v1232_v45 = vadd.f32 %v1231_v41, %v975_v33  ;;  %v2665_v46 = vpop.f32.mrb[30].mxu0  ;;  %v2151_v49 = vpop.f32.mrb[30].mxu1 }
 0x154   : > { %1457 = vst.msk [vmem:[#allocation2 + $0x10] sm:$0xff] %vm1454_vm1, %v1240_v37  ;;  %v1243_v47 = vadd.f32 %v2151_v49, %v986_v36  ;;  %v1035_v50 = vpop.f32.mrb[31].mxu0  ;;  %v1234_v39 = vpop.f32.mrb[31].mxu1 }
 0x155   : > { %1455 = vst.msk [vmem:[#allocation2] sm:$0xff] %vm1454_vm1, %v1232_v45  ;;  %v1235_v53 = vadd.f32 %v1234_v39, %v978_v42  ;;  %v1023_v39 = vadd.f32 %v2657_v31, %v2650_v23 }
 0x156   : > { %1458 = vst.msk [vmem:[#allocation2 + $0x18] sm:$0xff] %vm1454_vm1, %v1243_v47 }
 0x157   : > { %1456 = vst.msk [vmem:[#allocation2 + $0x8] sm:$0xff] %vm1454_vm1, %v1235_v53 }
 0x159   : > { %v2674_v54 = vpop.f32.mrb[32].mxu0  ;;  %v2154_v57 = vpop.f32.mrb[32].mxu1 }
 0x15a   : > { %v1256_v58 = vadd.f32 %v2154_v57, %v999_v51  ;;  %v1040_v61 = vpop.f32.mrb[33].mxu0  ;;  %v1247_v62 = vpop.f32.mrb[33].mxu1 }
 0x15b   : > { %v1248_v2 = vadd.f32 %v1247_v62, %v991_v43  ;;  %v2680_v6 = vpop.f32.mrb[34].mxu0  ;;  %v2155_v63 = vpop.f32.mrb[34].mxu1  ;;  %v1514_v30 = vld [vmem:[#allocation2 + $0x10] ss:$2 sm:$0x3]  ;;  %v1034_v43 = vadd.f32 %v2657_v31, %v2665_v46 }
 0x15c   : > { %1461 = vst.msk [vmem:[#allocation2 + $0x30] sm:$0xff] %vm1454_vm1, %v1256_v58  ;;  %v1259_v55 = vadd.f32 %v2155_v63, %v1002_v1  ;;  %v1043_v9 = vpop.f32.mrb[35].mxu0  ;;  %v1250_v10 = vpop.f32.mrb[35].mxu1  ;;  %v1518_v19 = vld [vmem:[#allocation2 + $0x11] ss:$2 sm:$0x3] }
 0x15d   : > { %1459 = vst.msk [vmem:[#allocation2 + $0x20] sm:$0xff] %vm1454_vm1, %v1248_v2  ;;  %v1251_v13 = vadd.f32 %v1250_v10, %v994_v5  ;;  %v1520_v49 = vmax.f32 %v1514_v30, %v1518_v19 }
 0x15e   : > { %1462 = vst.msk [vmem:[#allocation2 + $0x38] sm:$0xff] %vm1454_vm1, %v1259_v55  ;;  %v1512_v24 = vld [vmem:[#allocation2] ss:$2 sm:$0xff]  ;;  %v1516_v25 = vld [vmem:[#allocation2 + $0x1] ss:$2 sm:$0xff] }
 0x15f   : > { %1460 = vst.msk [vmem:[#allocation2 + $0x28] sm:$0xff] %vm1454_vm1, %v1251_v13  ;;  %v1519_v37 = vmax.f32 %v1512_v24, %v1516_v25 }
 0x161   : > { %v2688_v3 = vpop.f32.mrb[36].mxu0  ;;  %v2158_v17 = vpop.f32.mrb[36].mxu1 }
 0x162   : > { %v1272_v20 = vadd.f32 %v2158_v17, %v1015_v14  ;;  %v1048_v21 = vpop.f32.mrb[37].mxu0  ;;  %v1263_v22 = vpop.f32.mrb[37].mxu1  ;;  %v1047_v25 = vadd.f32 %v2657_v31, %v2688_v3 }
 0x163   : > { %v1264_v26 = vadd.f32 %v1263_v22, %v1007_v59  ;;  %v2691_v28 = vpop.f32.mrb[38].mxu0  ;;  %v2159_v15 = vpop.f32.mrb[38].mxu1 }
 0x164   : > { %v1522_v7 = vld [vmem:[#allocation2 + $0x15] ss:$2 sm:$0xff]  ;;  %1465 = vst.msk [vmem:[#allocation2 + $0x50] sm:$0xff] %vm1454_vm1, %v1272_v20  ;;  %v1275_v32 = vadd.f32 %v2159_v15, %v1018_v18  ;;  %v1051_v33 = vpop.f32.mrb[39].mxu0  ;;  %v1526_v35 = vld [vmem:[#allocation2 + $0x16] ss:$2 sm:$0xff]  ;;  %v1050_v19 = vadd.f32 %v2657_v31, %v2691_v28  ;;  %v1042_v28 = vadd.f32 %v2657_v31, %v2680_v6 }
 0x165   : > { %1463 = vst.msk [vmem:[#allocation2 + $0x40] sm:$0xff] %vm1454_vm1, %v1264_v26  ;;  %v1266_v36 = vpop.f32.mrb[39].mxu1  ;;  %v1529_v38 = vmax.f32 %v1522_v7, %v1526_v35  ;;  %v1524_v42 = vld [vmem:[#allocation2 + $0x25] ss:$2 sm:$0x3] }
 0x166   : > { %1466 = vst.msk [vmem:[#allocation2 + $0x58] sm:$0xff] %vm1454_vm1, %v1275_v32  ;;  %v1267_v41 = vadd.f32 %v1266_v36, %v1010_v29  ;;  %v1528_v45 = vld [vmem:[#allocation2 + $0x26] ss:$2 sm:$0x3]  ;;  %v1547_v14 = vld [vmem:[#allocation2 + $0x2a] ss:$2 sm:$0xff]  ;;  %v1039_v29 = vadd.f32 %v2657_v31, %v2674_v54 }
 0x167   : > { %v1531_v47 = vmax.f32 %v1519_v37, %v1529_v38  ;;  %v1530_v50 = vmax.f32 %v1524_v42, %v1528_v45  ;;  %v1549_v63 = vld [vmem:[#allocation2 + $0x3a] ss:$2 sm:$0x3]  ;;  %v1553_v27 = vld [vmem:[#allocation2 + $0x3b] ss:$2 sm:$0x3] }
 0x168   : > { %1464 = vst.msk [vmem:[#allocation2 + $0x48] sm:$0xff] %vm1454_vm1, %v1267_v41  ;;  %v1551_v18 = vld [vmem:[#allocation2 + $0x2b] ss:$2 sm:$0xff]  ;;  %v1555_v24 = vmax.f32 %v1549_v63, %v1553_v27 }
 0x169   : > { %v2704_v53 = vpop.f32.mrb[40].mxu0  ;;  %v2162_v51 = vpop.f32.mrb[40].mxu1  ;;  %v1533_v57 = vmax.f32 %v1531_v47, 0.0  ;;  %v1532_v58 = vmax.f32 %v1520_v49, %v1530_v50  ;;  %v1554_v30 = vmax.f32 %v1547_v14, %v1551_v18 }
 0x16a   : > { %v1288_v61 = vadd.f32 %v2162_v51, %v1031_v11  ;;  %v1056_v62 = vpop.f32.mrb[41].mxu0  ;;  %v1279_v1 = vpop.f32.mrb[41].mxu1  ;;  %v1055_v6 = vadd.f32 %v2657_v31, %v2704_v53 }
 0x16b   : > { %v1280_v23 = vadd.f32 %v1279_v1, %v1023_v39  ;;  %v2715_v2 = vpop.f32.mrb[42].mxu0  ;;  %v2163_v5 = vpop.f32.mrb[42].mxu1  ;;  %v2094_v46 = vpack.c.bf16 %v1533_v57, %v1533_v57  ;;  %v1534_v55 = vmax.f32 %v1532_v58, 0.0  ;;  %v1563_v20 = vld [vmem:[#allocation2 + $0x50] ss:$2 sm:$0x3] }
 0x16c   : > { %1469 = vst.msk [vmem:[#allocation2 + $0x70] sm:$0xff] %vm1454_vm1, %v1288_v61  ;;  %v1291_v9 = vadd.f32 %v2163_v5, %v1034_v43  ;;  %v1059_v10 = vpop.f32.mrb[43].mxu0  ;;  %v1282_v13 = vpop.f32.mrb[43].mxu1 }
 0x16d   : > { %1467 = vst.msk [vmem:[#allocation2 + $0x60] sm:$0xff] %vm1454_vm1, %v1280_v23  ;;  %v1283_v59 = vadd.f32 %v1282_v13, %v1026_v34  ;;  %v2095_v17 = vpack.c.bf16 %v1534_v55, %v1534_v55 }
 0x16e   : > { %1544 = vst.msk [vmem:[%s2713_s6] sm:$0xf] %vm1543_vm2, %v2094_v46 }
 0x16f   : > { %1470 = vst.msk [vmem:[#allocation2 + $0x78] sm:$0xff] %vm1454_vm1, %v1291_v9  ;;  %v1557_v21 = vld [vmem:[#allocation2 + $0x3f] ss:$2 sm:$0xff]  ;;  %v1559_v22 = vld [vmem:[#allocation2 + $0x4f] ss:$2 sm:$0x3] }
 0x170   : > { %1468 = vst.msk [vmem:[#allocation2 + $0x68] sm:$0xff] %vm1454_vm1, %v1283_v59  ;;  %v1561_v26 = vld [vmem:[#allocation2 + $0x40] ss:$2 sm:$0xff]  ;;  %v1565_v15 = vmax.f32 %v1559_v22, %v1563_v20  ;;  %v1058_v22 = vadd.f32 %v2657_v31, %v2715_v2 }
 0x171   : > { %1545 = vst.msk [vmem:[%s2713_s6 + $0x4] sm:$0x1] %vm1510_vm3, %v2095_v17  ;;  %v1564_v7 = vmax.f32 %v1557_v21, %v1561_v26  ;;  %v1062_v32 = vpop.f32.mrb[44].mxu0  ;;  %v2166_v33 = vpop.f32.mrb[44].mxu1 }
 0x172   : > { %v1567_v35 = vmax.f32 %v1555_v24, %v1565_v15  ;;  %v1304_v36 = vadd.f32 %v2166_v33, %v1047_v25  ;;  %v1064_v37 = vpop.f32.mrb[45].mxu0  ;;  %v1295_v38 = vpop.f32.mrb[45].mxu1  ;;  %v1063_v9 = vadd.f32 %v2657_v31, %v1062_v32 }
 0x173   : > { %v1566_v41 = vmax.f32 %v1554_v30, %v1564_v7  ;;  %v1296_v3 = vadd.f32 %v1295_v38, %v1039_v29  ;;  %v1065_v42 = vpop.f32.mrb[46].mxu0  ;;  %v2167_v45 = vpop.f32.mrb[46].mxu1 }
 0x174   : > { %v1569_v11 = vmax.f32 %v1567_v35, 0.0  ;;  %v1582_v49 = vld [vmem:[#allocation2 + $0x54] ss:$2 sm:$0xff]  ;;  %v1584_v47 = vld [vmem:[#allocation2 + $0x64] ss:$2 sm:$0x3]  ;;  %v1307_v54 = vadd.f32 %v2167_v45, %v1050_v19  ;;  %v1066_v17 = vadd.f32 %v2657_v31, %v1065_v42 }
 0x175   : > { %1473 = vst.msk [vmem:[#allocation2 + $0x90] sm:$0xff] %vm1454_vm1, %v1304_v36  ;;  %v1568_v50 = vmax.f32 %v1566_v41, 0.0  ;;  %v1586_v39 = vld [vmem:[#allocation2 + $0x55] ss:$2 sm:$0xff]  ;;  %1471 = vst.msk [vmem:[#allocation2 + $0x80] sm:$0xff] %vm1454_vm1, %v1296_v3  ;;  %v1067_v5 = vpop.f32.mrb[47].mxu0 }
 0x176   : > { %v1588_v51 = vld [vmem:[#allocation2 + $0x65] ss:$2 sm:$0x3]  ;;  %v2097_v43 = vpack.c.bf16 %v1569_v11, %v1569_v11  ;;  %v1594_v58 = vld [vmem:[#allocation2 + $0x79] ss:$2 sm:$0x3]  ;;  %v1589_v63 = vmax.f32 %v1582_v49, %v1586_v39 }
 0x177   : > { %v1590_v57 = vmax.f32 %v1584_v47, %v1588_v51  ;;  %v1598_v61 = vld [vmem:[#allocation2 + $0x7a] ss:$2 sm:$0x3]  ;;  %1474 = vst.msk [vmem:[#allocation2 + $0x98] sm:$0xff] %vm1454_vm1, %v1307_v54  ;;  %v2096_v62 = vpack.c.bf16 %v1568_v50, %v1568_v50  ;;  %v1592_v34 = vld [vmem:[#allocation2 + $0x69] ss:$2 sm:$0xff] }
 0x178   : > { %v1600_v1 = vmax.f32 %v1594_v58, %v1598_v61  ;;  %v1596_v23 = vld [vmem:[#allocation2 + $0x6a] ss:$2 sm:$0xff]  ;;  %v1298_v46 = vpop.f32.mrb[47].mxu1  ;;  %2059 = vst.msk [vmem:[%s2713_s6 + $0xc] sm:$0x1] %vm1510_vm3, %v2097_v43 }
 0x179   : > { %v1599_v55 = vmax.f32 %v1592_v34, %v1596_v23  ;;  %v1299_v10 = vadd.f32 %v1298_v46, %v1042_v28  ;;  %2058 = vst.msk [vmem:[%s2713_s6 + $0x8] sm:$0xf] %vm1543_vm2, %v2096_v62  ;;  %v1070_v27 = vpop.f32.mrb[48].mxu0  ;;  %v2170_v14 = vpop.f32.mrb[48].mxu1 }
 0x17a   : > { %v1602_v13 = vmax.f32 %v1590_v57, %v1600_v1  ;;  %v1320_v18 = vadd.f32 %v2170_v14, %v1063_v9  ;;  %v1072_v20 = vpop.f32.mrb[49].mxu0  ;;  %v1311_v21 = vpop.f32.mrb[49].mxu1  ;;  %v1071_v38 = vadd.f32 %v2657_v31, %v1070_v27 }
 0x17b   : > { %v1601_v59 = vmax.f32 %v1589_v63, %v1599_v55  ;;  %1472 = vst.msk [vmem:[#allocation2 + $0x88] sm:$0xff] %vm1454_vm1, %v1299_v10  ;;  %v1312_v25 = vadd.f32 %v1311_v21, %v1055_v6  ;;  %v1073_v26 = vpop.f32.mrb[50].mxu0  ;;  %v2171_v53 = vpop.f32.mrb[50].mxu1 }
 0x17c   : > { %v1604_v24 = vmax.f32 %v1602_v13, 0.0  ;;  %1477 = vst.msk [vmem:[#allocation2 + $0xb0] sm:$0xff] %vm1454_vm1, %v1320_v18  ;;  %v1323_v29 = vadd.f32 %v2171_v53, %v1066_v17  ;;  %v1075_v30 = vpop.f32.mrb[51].mxu0  ;;  %v1314_v7 = vpop.f32.mrb[51].mxu1  ;;  %v1074_v43 = vadd.f32 %v2657_v31, %v1073_v26 }
 0x17d   : > { %v1603_v15 = vmax.f32 %v1601_v59, 0.0  ;;  %1475 = vst.msk [vmem:[#allocation2 + $0xa0] sm:$0xff] %vm1454_vm1, %v1312_v25  ;;  %v1315_v33 = vadd.f32 %v1314_v7, %v1058_v22 }
 0x17e   : > { %v2099_v32 = vpack.c.bf16 %v1604_v24, %v1604_v24  ;;  %1478 = vst.msk [vmem:[#allocation2 + $0xb8] sm:$0xff] %vm1454_vm1, %v1323_v29 }
 0x17f   : > { %v2098_v19 = vpack.c.bf16 %v1603_v15, %v1603_v15  ;;  %1476 = vst.msk [vmem:[#allocation2 + $0xa8] sm:$0xff] %vm1454_vm1, %v1315_v33 }
 0x180   : > { %2063 = vst.msk [vmem:[%s2713_s6 + $0x14] sm:$0x1] %vm1510_vm3, %v2099_v32 }
 0x181   : > { %2062 = vst.msk [vmem:[%s2713_s6 + $0x10] sm:$0xf] %vm1543_vm2, %v2098_v19  ;;  %v1078_v35 = vpop.f32.mrb[52].mxu0  ;;  %v2174_v3 = vpop.f32.mrb[52].mxu1 }
 0x182   : > { %v1617_v2 = vld [vmem:[#allocation2 + $0x7e] ss:$2 sm:$0xff]  ;;  %v1619_v36 = vld [vmem:[#allocation2 + $0x8e] ss:$2 sm:$0x3]  ;;  %v1079_v41 = vadd.f32 %v2657_v31, %v1078_v35  ;;  %v1080_v45 = vpop.f32.mrb[53].mxu0 }
 0x183   : > { %v1621_v37 = vld [vmem:[#allocation2 + $0x7f] ss:$2 sm:$0xff]  ;;  %v1623_v42 = vld [vmem:[#allocation2 + $0x8f] ss:$2 sm:$0x3]  ;;  %v1327_v11 = vpop.f32.mrb[53].mxu1 }
 0x184   : > { %v1627_v49 = vld [vmem:[#allocation2 + $0x93] ss:$2 sm:$0xff]  ;;  %v1629_v47 = vld [vmem:[#allocation2 + $0xa3] ss:$2 sm:$0x3]  ;;  %v1336_v54 = vadd.f32 %v2174_v3, %v1079_v41  ;;  %v1328_v50 = vadd.f32 %v1327_v11, %v1071_v38  ;;  %v1081_v39 = vpop.f32.mrb[54].mxu0  ;;  %v1624_v61 = vmax.f32 %v1617_v2, %v1621_v37  ;;  %v1625_v62 = vmax.f32 %v1619_v36, %v1623_v42 }
 0x185   : > { %v1631_v51 = vld [vmem:[#allocation2 + $0x94] ss:$2 sm:$0xff]  ;;  %v1633_v28 = vld [vmem:[#allocation2 + $0xa4] ss:$2 sm:$0x3]  ;;  %v1082_v57 = vadd.f32 %v2657_v31, %v1081_v39  ;;  %v2175_v58 = vpop.f32.mrb[54].mxu1 }
 0x186   : > { %v1634_v1 = vmax.f32 %v1627_v49, %v1631_v51  ;;  %v1635_v34 = vmax.f32 %v1629_v47, %v1633_v28  ;;  %1481 = vst.msk [vmem:[#allocation2 + $0xd0] sm:$0xff] %vm1454_vm1, %v1336_v54  ;;  %1479 = vst.msk [vmem:[#allocation2 + $0xc0] sm:$0xff] %vm1454_vm1, %v1328_v50  ;;  %v1083_v5 = vpop.f32.mrb[55].mxu0  ;;  %v1330_v46 = vpop.f32.mrb[55].mxu1  ;;  %v1652_v7 = vld [vmem:[#allocation2 + $0xa8] ss:$2 sm:$0xff] }
 0x187   : > { %v1339_v23 = vadd.f32 %v2175_v58, %v1082_v57  ;;  %v1331_v9 = vadd.f32 %v1330_v46, %v1074_v43  ;;  %v1654_v29 = vld [vmem:[#allocation2 + $0xb8] ss:$2 sm:$0x3]  ;;  %v1658_v30 = vld [vmem:[#allocation2 + $0xb9] ss:$2 sm:$0x3] }
 0x188   : > { %v1636_v63 = vmax.f32 %v1624_v61, %v1634_v1  ;;  %v1637_v55 = vmax.f32 %v1625_v62, %v1635_v34  ;;  %v1656_v32 = vld [vmem:[#allocation2 + $0xa9] ss:$2 sm:$0xff]  ;;  %v1660_v41 = vmax.f32 %v1654_v29, %v1658_v30 }
 0x189   : > { %1482 = vst.msk [vmem:[#allocation2 + $0xd8] sm:$0xff] %vm1454_vm1, %v1339_v23  ;;  %v1086_v10 = vpop.f32.mrb[56].mxu0  ;;  %v2178_v6 = vpop.f32.mrb[56].mxu1  ;;  %1480 = vst.msk [vmem:[#allocation2 + $0xc8] sm:$0xff] %vm1454_vm1, %v1331_v9  ;;  %v1659_v3 = vmax.f32 %v1652_v7, %v1656_v32 }
 0x18a   : > { %v1638_v13 = vmax.f32 %v1636_v63, 0.0  ;;  %v1639_v27 = vmax.f32 %v1637_v55, 0.0  ;;  %v1087_v14 = vadd.f32 %v2657_v31, %v1086_v10  ;;  %v1088_v59 = vpop.f32.mrb[57].mxu0  ;;  %v1343_v17 = vpop.f32.mrb[57].mxu1 }
 0x18b   : > { %v1089_v18 = vpop.f32.mrb[58].mxu0  ;;  %v2179_v20 = vpop.f32.mrb[58].mxu1 }
 0x18c   : > { %v2100_v21 = vpack.c.bf16 %v1638_v13, %v1638_v13  ;;  %v2101_v22 = vpack.c.bf16 %v1639_v27, %v1639_v27  ;;  %v1344_v24 = vadd.f32 %v1343_v17, %v1087_v14  ;;  %v1090_v25 = vadd.f32 %v2657_v31, %v1089_v18  ;;  %v1091_v26 = vpop.f32.mrb[59].mxu0  ;;  %v1346_v53 = vpop.f32.mrb[59].mxu1 }
 0x18e   : > { %2066 = vst.msk [vmem:[%s2713_s6 + $0x18] sm:$0xf] %vm1543_vm2, %v2100_v21  ;;  %v1347_v15 = vadd.f32 %v1346_v53, %v1090_v25 }
 0x18f   : > { %1483 = vst.msk [vmem:[#allocation2 + $0xe0] sm:$0xff] %vm1454_vm1, %v1344_v24 }
 0x190   : > { %2067 = vst.msk [vmem:[%s2713_s6 + $0x1c] sm:$0x1] %vm1510_vm3, %v2101_v22  ;;  %v1662_v33 = vld [vmem:[#allocation2 + $0xbd] ss:$2 sm:$0xff]  ;;  %v1666_v35 = vld [vmem:[#allocation2 + $0xbe] ss:$2 sm:$0xff] }
 0x191   : > { %1484 = vst.msk [vmem:[#allocation2 + $0xe8] sm:$0xff] %vm1454_vm1, %v1347_v15  ;;  %v1664_v19 = vld [vmem:[#allocation2 + $0xcd] ss:$2 sm:$0x3]  ;;  %v1094_v2 = vpop.f32.mrb[60].mxu0  ;;  %v2772_v38 = vpop.f32.mrb[60].mxu1  ;;  %v1669_v42 = vmax.f32 %v1662_v33, %v1666_v35  ;;  %v1143_v15 = vadd.f32 %v2657_v31, %v2620_v40  ;;  %v1146_v35 = vadd.f32 %v2657_v31, %v2622_v44 }
 0x192   : > { %v1668_v36 = vld [vmem:[#allocation2 + $0xce] ss:$2 sm:$0x3]  ;;  %v1095_v37 = vadd.f32 %v2657_v31, %v1094_v2  ;;  %v1096_v11 = vpop.f32.mrb[61].mxu0  ;;  %v1359_v49 = vpop.f32.mrb[61].mxu1 }
 0x193   : > { %v1670_v45 = vmax.f32 %v1664_v19, %v1668_v36  ;;  %v1097_v54 = vpop.f32.mrb[62].mxu0  ;;  %v2774_v50 = vpop.f32.mrb[62].mxu1  ;;  %v1671_v39 = vmax.f32 %v1659_v3, %v1669_v42 }
 0x194   : > { %v1352_v47 = vadd.f32 %v2178_v6, %v1095_v37  ;;  %v1098_v28 = vadd.f32 %v2657_v31, %v1097_v54  ;;  %v1099_v43 = vpop.f32.mrb[63].mxu0  ;;  %v1362_v57 = vpop.f32.mrb[63].mxu1 }
 0x195   : > { %v1672_v51 = vmax.f32 %v1660_v41, %v1670_v45  ;;  %v1673_v58 = vmax.f32 %v1671_v39, 0.0 }
 0x196   : > { %1485 = vst.msk [vmem:[#allocation2 + $0xf0] sm:$0xff] %vm1454_vm1, %v1352_v47  ;;  %v1355_v62 = vadd.f32 %v2179_v20, %v1098_v28  ;;  %v1687_v9 = vld [vmem:[#allocation2 + $0xd2] ss:$2 sm:$0xff]  ;;  %v1691_v10 = vld [vmem:[#allocation2 + $0xd3] ss:$2 sm:$0xff] }
 0x197   : > { %v1674_v61 = vmax.f32 %v1672_v51, 0.0  ;;  %v2102_v1 = vpack.c.bf16 %v1673_v58, %v1673_v58  ;;  %v1694_v21 = vmax.f32 %v1687_v9, %v1691_v10  ;;  %v1689_v25 = vld [vmem:[#allocation2 + $0xe2] ss:$2 sm:$0x3] }
 0x198   : > { %1486 = vst.msk [vmem:[#allocation2 + $0xf8] sm:$0xff] %vm1454_vm1, %v1355_v62  ;;  %v1693_v26 = vld [vmem:[#allocation2 + $0xe3] ss:$2 sm:$0x3]  ;;  %v1162_v62 = vadd.f32 %v2657_v31, %v2634_v60 }
 0x199   : > { %v2103_v34 = vpack.c.bf16 %v1674_v61, %v1674_v61  ;;  %v1102_v23 = vpop.f32.mrb[64].mxu0  ;;  %v2778_v5 = vpop.f32.mrb[64].mxu1  ;;  %2070 = vst.msk [vmem:[%s2713_s6 + $0x20] sm:$0xf] %vm1543_vm2, %v2102_v1  ;;  %v1695_v7 = vmax.f32 %v1689_v25, %v1693_v26 }
 0x19a   : > { %v1103_v46 = vadd.f32 %v2657_v31, %v1102_v23  ;;  %v1104_v63 = vpop.f32.mrb[65].mxu0  ;;  %v2782_v55 = vpop.f32.mrb[65].mxu1 }
 0x19b   : > { %v1105_v6 = vpop.f32.mrb[66].mxu0  ;;  %v2786_v13 = vpop.f32.mrb[66].mxu1  ;;  %2071 = vst.msk [vmem:[%s2713_s6 + $0x24] sm:$0x1] %vm1510_vm3, %v2103_v34 }
 0x19c   : > { %v1360_v27 = vadd.f32 %v1359_v49, %v1103_v46  ;;  %v1106_v14 = vadd.f32 %v2657_v31, %v1105_v6  ;;  %v1107_v59 = vpop.f32.mrb[67].mxu0  ;;  %v2791_v17 = vpop.f32.mrb[67].mxu1 }
 0x19d   : > { %v1697_v18 = vld [vmem:[#allocation2 + $0xe7] ss:$2 sm:$0xff]  ;;  %v1701_v20 = vld [vmem:[#allocation2 + $0xe8] ss:$2 sm:$0xff] }
 0x19e   : > { %v1704_v22 = vmax.f32 %v1697_v18, %v1701_v20  ;;  %1487 = vst.msk [vmem:[#allocation2 + $0x100] sm:$0xff] %vm1454_vm1, %v1360_v27  ;;  %v1363_v24 = vadd.f32 %v1362_v57, %v1106_v14  ;;  %v1151_v57 = vadd.f32 %v2657_v31, %v2624_v48 }
 0x19f   : > { %v1699_v29 = vld [vmem:[#allocation2 + $0xf7] ss:$2 sm:$0x3]  ;;  %v1703_v30 = vld [vmem:[#allocation2 + $0xf8] ss:$2 sm:$0x3] }
 0x1a0   : > { %v1706_v53 = vmax.f32 %v1694_v21, %v1704_v22  ;;  %1488 = vst.msk [vmem:[#allocation2 + $0x108] sm:$0xff] %vm1454_vm1, %v1363_v24  ;;  %v1705_v33 = vmax.f32 %v1699_v29, %v1703_v30  ;;  %v1178_v24 = vadd.f32 %v2657_v31, %v2646_v12 }
 0x1a1   : > { %v1110_v19 = vpop.f32.mrb[68].mxu0  ;;  %v2190_v2 = vpop.f32.mrb[68].mxu1 }
 0x1a2   : > { %v1708_v32 = vmax.f32 %v1706_v53, 0.0  ;;  %v1111_v36 = vadd.f32 %v2657_v31, %v1110_v19  ;;  %v1400_v37 = vadd.f32 %v2190_v2, %v1143_v15  ;;  %v1112_v41 = vpop.f32.mrb[69].mxu0  ;;  %v2800_v3 = vpop.f32.mrb[69].mxu1  ;;  %v1707_v45 = vmax.f32 %v1695_v7, %v1705_v33 }
 0x1a3   : > { %v1113_v40 = vpop.f32.mrb[70].mxu0  ;;  %v2191_v11 = vpop.f32.mrb[70].mxu1 }
 0x1a4   : > { %v2104_v42 = vpack.c.bf16 %v1708_v32, %v1708_v32  ;;  %v1368_v49 = vadd.f32 %v2772_v38, %v1111_v36  ;;  %1497 = vst.msk [vmem:[#allocation2 + $0x150] sm:$0xff] %vm1454_vm1, %v1400_v37  ;;  %v1114_v47 = vadd.f32 %v2657_v31, %v1113_v40  ;;  %v1403_v54 = vadd.f32 %v2191_v11, %v1146_v35  ;;  %v1115_v39 = vpop.f32.mrb[71].mxu0  ;;  %v2805_v51 = vpop.f32.mrb[71].mxu1 }
 0x1a5   : > { %v1709_v44 = vmax.f32 %v1707_v45, 0.0  ;;  %v1159_v38 = vadd.f32 %v2657_v31, %v2630_v56  ;;  %v1154_v56 = vadd.f32 %v2657_v31, %v2626_v52  ;;  %v1175_v52 = vadd.f32 %v2657_v31, %v2642_v8 }
 0x1a6   : > { %2074 = vst.msk [vmem:[%s2713_s6 + $0x28] sm:$0xf] %vm1543_vm2, %v2104_v42  ;;  %v1371_v28 = vadd.f32 %v2774_v50, %v1114_v47  ;;  %v1170_v11 = vadd.f32 %v2657_v31, %v2638_v4 }
 0x1a7   : > { %1489 = vst.msk [vmem:[#allocation2 + $0x110] sm:$0xff] %vm1454_vm1, %v1368_v49  ;;  %1498 = vst.msk [vmem:[#allocation2 + $0x158] sm:$0xff] %vm1454_vm1, %v1403_v54  ;;  %v2105_v43 = vpack.c.bf16 %v1709_v44, %v1709_v44  ;;  %v1722_v18 = vld [vmem:[#allocation2 + $0xfc] ss:$2 sm:$0xff]  ;;  %v1726_v20 = vld [vmem:[#allocation2 + $0xfd] ss:$2 sm:$0xff] }
 0x1a8   : > { %1490 = vst.msk [vmem:[#allocation2 + $0x118] sm:$0xff] %vm1454_vm1, %v1371_v28  ;;  %v1728_v25 = vld [vmem:[#allocation2 + $0x10d] ss:$2 sm:$0x3]  ;;  %v1729_v49 = vmax.f32 %v1722_v18, %v1726_v20 }
 0x1a9   : > { %v1118_v58 = vpop.f32.mrb[72].mxu0  ;;  %v2194_v61 = vpop.f32.mrb[72].mxu1  ;;  %2075 = vst.msk [vmem:[%s2713_s6 + $0x2c] sm:$0x1] %vm1510_vm3, %v2105_v43 }
 0x1aa   : > { %v1119_v1 = vadd.f32 %v2657_v31, %v1118_v58  ;;  %v1416_v34 = vadd.f32 %v2194_v61, %v1159_v38  ;;  %v1120_v50 = vpop.f32.mrb[73].mxu0  ;;  %v1407_v23 = vpop.f32.mrb[73].mxu1 }
 0x1ab   : > { %v1408_v46 = vadd.f32 %v1407_v23, %v1151_v57  ;;  %v1121_v63 = vpop.f32.mrb[74].mxu0  ;;  %v2195_v48 = vpop.f32.mrb[74].mxu1 }
 0x1ac   : > { %v1376_v9 = vadd.f32 %v2782_v55, %v1119_v1  ;;  %1501 = vst.msk [vmem:[#allocation2 + $0x170] sm:$0xff] %vm1454_vm1, %v1416_v34  ;;  %v1122_v10 = vadd.f32 %v2657_v31, %v1121_v63  ;;  %v1419_v60 = vadd.f32 %v2195_v48, %v1162_v62  ;;  %v1123_v6 = vpop.f32.mrb[75].mxu0  ;;  %v1410_v27 = vpop.f32.mrb[75].mxu1  ;;  %v1167_v55 = vadd.f32 %v2657_v31, %v2636_v0 }
 0x1ad   : > { %1499 = vst.msk [vmem:[#allocation2 + $0x160] sm:$0xff] %vm1454_vm1, %v1408_v46  ;;  %v1411_v14 = vadd.f32 %v1410_v27, %v1154_v56  ;;  %v1183_v34 = vadd.f32 %v2657_v31, %v2648_v16 }
 0x1ae   : > { %1491 = vst.msk [vmem:[#allocation2 + $0x120] sm:$0xff] %vm1454_vm1, %v1376_v9  ;;  %v1379_v59 = vadd.f32 %v2791_v17, %v1122_v10  ;;  %1502 = vst.msk [vmem:[#allocation2 + $0x178] sm:$0xff] %vm1454_vm1, %v1419_v60  ;;  %v1724_v17 = vld [vmem:[#allocation2 + $0x10c] ss:$2 sm:$0x3] }
 0x1af   : > { %1500 = vst.msk [vmem:[#allocation2 + $0x168] sm:$0xff] %vm1454_vm1, %v1411_v14  ;;  %v1732_v8 = vld [vmem:[#allocation2 + $0x111] ss:$2 sm:$0xff]  ;;  %v1792_v30 = vld [vmem:[#allocation2 + $0x150] ss:$2 sm:$0xff]  ;;  %v1730_v44 = vmax.f32 %v1724_v17, %v1728_v25 }
 0x1b0   : > { %1492 = vst.msk [vmem:[#allocation2 + $0x128] sm:$0xff] %vm1454_vm1, %v1379_v59  ;;  %v1796_v7 = vld [vmem:[#allocation2 + $0x151] ss:$2 sm:$0xff] }
 0x1b1   : > { %v1126_v21 = vpop.f32.mrb[76].mxu0  ;;  %v2198_v22 = vpop.f32.mrb[76].mxu1  ;;  %v1799_v61 = vmax.f32 %v1792_v30, %v1796_v7 }
 0x1b2   : > { %v1127_v26 = vadd.f32 %v2657_v31, %v1126_v21  ;;  %v1432_v53 = vadd.f32 %v2198_v22, %v1175_v52  ;;  %v1128_v15 = vpop.f32.mrb[77].mxu0  ;;  %v1423_v29 = vpop.f32.mrb[77].mxu1 }
 0x1b3   : > { %v1424_v32 = vadd.f32 %v1423_v29, %v1167_v55  ;;  %v1129_v33 = vpop.f32.mrb[78].mxu0  ;;  %v2199_v0 = vpop.f32.mrb[78].mxu1  ;;  %v1804_v19 = vld [vmem:[#allocation2 + $0x175] ss:$2 sm:$0x3] }
 0x1b4   : > { %v1794_v2 = vld [vmem:[#allocation2 + $0x160] ss:$2 sm:$0x3]  ;;  %v1798_v35 = vld [vmem:[#allocation2 + $0x161] ss:$2 sm:$0x3]  ;;  %v1384_v36 = vadd.f32 %v2778_v5, %v1127_v26  ;;  %v1130_v12 = vadd.f32 %v2657_v31, %v1129_v33  ;;  %v1435_v37 = vadd.f32 %v2199_v0, %v1178_v24 }
 0x1b5   : > { %1505 = vst.msk [vmem:[#allocation2 + $0x190] sm:$0xff] %vm1454_vm1, %v1432_v53  ;;  %v1734_v41 = vld [vmem:[#allocation2 + $0x121] ss:$2 sm:$0x3]  ;;  %v1736_v42 = vld [vmem:[#allocation2 + $0x112] ss:$2 sm:$0xff]  ;;  %v1800_v45 = vmax.f32 %v1794_v2, %v1798_v35 }
 0x1b6   : > { %1503 = vst.msk [vmem:[#allocation2 + $0x180] sm:$0xff] %vm1454_vm1, %v1424_v32  ;;  %v1131_v40 = vpop.f32.mrb[79].mxu0  ;;  %v1738_v47 = vld [vmem:[#allocation2 + $0x122] ss:$2 sm:$0x3]  ;;  %v1739_v54 = vmax.f32 %v1732_v8, %v1736_v42  ;;  %1493 = vst.msk [vmem:[#allocation2 + $0x130] sm:$0xff] %vm1454_vm1, %v1384_v36  ;;  %v1387_v5 = vadd.f32 %v2786_v13, %v1130_v12 }
 0x1b7   : > { %v1808_v39 = vld [vmem:[#allocation2 + $0x176] ss:$2 sm:$0x3]  ;;  %1506 = vst.msk [vmem:[#allocation2 + $0x198] sm:$0xff] %vm1454_vm1, %v1435_v37  ;;  %v1740_v28 = vmax.f32 %v1734_v41, %v1738_v47  ;;  %v1802_v43 = vld [vmem:[#allocation2 + $0x165] ss:$2 sm:$0xff] }
 0x1b8   : > { %v1810_v38 = vmax.f32 %v1804_v19, %v1808_v39  ;;  %v1806_v57 = vld [vmem:[#allocation2 + $0x166] ss:$2 sm:$0xff]  ;;  %v1426_v58 = vpop.f32.mrb[79].mxu1  ;;  %v1741_v62 = vmax.f32 %v1729_v49, %v1739_v54  ;;  %1494 = vst.msk [vmem:[#allocation2 + $0x138] sm:$0xff] %vm1454_vm1, %v1387_v5 }
 0x1b9   : > { %v1809_v1 = vmax.f32 %v1802_v43, %v1806_v57  ;;  %v1427_v4 = vadd.f32 %v1426_v58, %v1170_v11  ;;  %v1742_v50 = vmax.f32 %v1730_v44, %v1740_v28  ;;  %v1134_v13 = vpop.f32.mrb[80].mxu0  ;;  %v2202_v56 = vpop.f32.mrb[80].mxu1 }
 0x1ba   : > { %v1812_v23 = vmax.f32 %v1800_v45, %v1810_v38  ;;  %v1743_v46 = vmax.f32 %v1741_v62, 0.0  ;;  %v1135_v48 = vadd.f32 %v2657_v31, %v1134_v13  ;;  %v1136_v9 = vpop.f32.mrb[81].mxu0  ;;  %v1439_v10 = vpop.f32.mrb[81].mxu1 }
 0x1bb   : > { %v1811_v63 = vmax.f32 %v1799_v61, %v1809_v1  ;;  %1504 = vst.msk [vmem:[#allocation2 + $0x188] sm:$0xff] %vm1454_vm1, %v1427_v4  ;;  %v1744_v60 = vmax.f32 %v1742_v50, 0.0  ;;  %v1440_v27 = vadd.f32 %v1439_v10, %v1183_v34  ;;  %v1137_v14 = vpop.f32.mrb[82].mxu0  ;;  %v2203_v16 = vpop.f32.mrb[82].mxu1 }
 0x1bc   : > { %v1814_v6 = vmax.f32 %v1812_v23, 0.0  ;;  %v2106_v59 = vpack.c.bf16 %v1743_v46, %v1743_v46  ;;  %v1392_v55 = vadd.f32 %v2800_v3, %v1135_v48  ;;  %v1138_v18 = vadd.f32 %v2657_v31, %v1137_v14  ;;  %v1139_v20 = vpop.f32.mrb[83].mxu0  ;;  %v1442_v21 = vpop.f32.mrb[83].mxu1 }
 0x1bd   : > { %v1813_v52 = vmax.f32 %v1811_v63, 0.0  ;;  %v2107_v22 = vpack.c.bf16 %v1744_v60, %v1744_v60  ;;  %1507 = vst.msk [vmem:[#allocation2 + $0x1a0] sm:$0xff] %vm1454_vm1, %v1440_v27  ;;  %v1757_v33 = vld [vmem:[#allocation2 + $0x126] ss:$2 sm:$0xff] }
 0x1be   : > { %v2111_v24 = vpack.c.bf16 %v1814_v6, %v1814_v6  ;;  %2078 = vst.msk [vmem:[%s2713_s6 + $0x30] sm:$0xf] %vm1543_vm2, %v2106_v59  ;;  %v1395_v25 = vadd.f32 %v2805_v51, %v1138_v18  ;;  %v1841_v31 = vld [vmem:[#allocation2 + $0x190] ss:$2 sm:$0xff]  ;;  %v1761_v51 = vld [vmem:[#allocation2 + $0x127] ss:$2 sm:$0xff] }
 0x1bf   : > { %v2110_v17 = vpack.c.bf16 %v1813_v52, %v1813_v52  ;;  %1495 = vst.msk [vmem:[#allocation2 + $0x140] sm:$0xff] %vm1454_vm1, %v1392_v55  ;;  %v1759_v2 = vld [vmem:[#allocation2 + $0x136] ss:$2 sm:$0x3]  ;;  %v1764_v42 = vmax.f32 %v1757_v33, %v1761_v51 }
 0x1c0   : > { %2079 = vst.msk [vmem:[%s2713_s6 + $0x34] sm:$0x1] %vm1510_vm3, %v2107_v22  ;;  %2087 = vst.msk [vmem:[%s2713_s6 + $0x44] sm:$0x1] %vm1510_vm3, %v2111_v24 }
 0x1c1   : > { %2086 = vst.msk [vmem:[%s2713_s6 + $0x40] sm:$0xf] %vm1543_vm2, %v2110_v17  ;;  %v1763_v35 = vld [vmem:[#allocation2 + $0x137] ss:$2 sm:$0x3] }
 0x1c2   : > { %1496 = vst.msk [vmem:[#allocation2 + $0x148] sm:$0xff] %vm1454_vm1, %v1395_v25  ;;  %v1827_v3 = vld [vmem:[#allocation2 + $0x17a] ss:$2 sm:$0xff]  ;;  %v1829_v26 = vld [vmem:[#allocation2 + $0x18a] ss:$2 sm:$0x3]  ;;  %v1765_v49 = vmax.f32 %v1759_v2, %v1763_v35 }
 0x1c3   : > { %v1831_v53 = vld [vmem:[#allocation2 + $0x17b] ss:$2 sm:$0xff]  ;;  %v1833_v15 = vld [vmem:[#allocation2 + $0x18b] ss:$2 sm:$0x3] }
 0x1c4   : > { %v1834_v29 = vmax.f32 %v1827_v3, %v1831_v53  ;;  %v1837_v8 = vld [vmem:[#allocation2 + $0x18f] ss:$2 sm:$0xff]  ;;  %v1839_v7 = vld [vmem:[#allocation2 + $0x19f] ss:$2 sm:$0x3]  ;;  %v1835_v0 = vmax.f32 %v1829_v26, %v1833_v15 }
 0x1c5   : > { %v1844_v30 = vmax.f32 %v1837_v8, %v1841_v31  ;;  %v1843_v32 = vld [vmem:[#allocation2 + $0x1a0] ss:$2 sm:$0x3] }
 0x1c6   : > { %v1845_v19 = vmax.f32 %v1839_v7, %v1843_v32 }
 0x1c7   : > { %v1846_v36 = vmax.f32 %v1834_v29, %v1844_v30 }
 0x1c8   : > { %v1847_v12 = vmax.f32 %v1835_v0, %v1845_v19 }
 0x1c9   : > { %v1767_v37 = vld [vmem:[#allocation2 + $0x13b] ss:$2 sm:$0xff]  ;;  %v1769_v41 = vld [vmem:[#allocation2 + $0x14b] ss:$2 sm:$0x3]  ;;  %v1848_v45 = vmax.f32 %v1846_v36, 0.0 }
 0x1ca   : > { %v1771_v40 = vld [vmem:[#allocation2 + $0x13c] ss:$2 sm:$0xff]  ;;  %v1773_v11 = vld [vmem:[#allocation2 + $0x14c] ss:$2 sm:$0x3]  ;;  %v1849_v47 = vmax.f32 %v1847_v12, 0.0 }
 0x1cb   : > { %v1774_v54 = vmax.f32 %v1767_v37, %v1771_v40  ;;  %v1775_v39 = vmax.f32 %v1769_v41, %v1773_v11  ;;  %v2112_v5 = vpack.c.bf16 %v1848_v45, %v1848_v45 }
 0x1cc   : > { %v2113_v44 = vpack.c.bf16 %v1849_v47, %v1849_v47 }
 0x1cd   : > { %v1776_v28 = vmax.f32 %v1764_v42, %v1774_v54  ;;  %v1777_v38 = vmax.f32 %v1765_v49, %v1775_v39  ;;  %2090 = vst.msk [vmem:[%s2713_s6 + $0x48] sm:$0xf] %vm1543_vm2, %v2112_v5 }
 0x1ce   : > { %2091 = vst.msk [vmem:[%s2713_s6 + $0x4c] sm:$0x1] %vm1510_vm3, %v2113_v44 }
 0x1cf   : > { %v1778_v43 = vmax.f32 %v1776_v28, 0.0  ;;  %v1779_v57 = vmax.f32 %v1777_v38, 0.0 }
 0x1d1   : > { %v2108_v58 = vpack.c.bf16 %v1778_v43, %v1778_v43  ;;  %v2109_v61 = vpack.c.bf16 %v1779_v57, %v1779_v57 }
 0x1d3   : > { %2082 = vst.msk [vmem:[%s2713_s6 + $0x38] sm:$0xf] %vm1543_vm2, %v2108_v58 }
 0x1d4   : > { %2083 = vst.msk [vmem:[%s2713_s6 + $0x3c] sm:$0x1] %vm1510_vm3, %v2109_v61 }
 0x1d5 PF: > { %s13_s12 = sadd.s32 1, %s2383_s12  }
 0x1d6   : > { %p10_p4 = scmp.ge.s32.totalorder %s13_s12, 4  }
 0x1d8   :  { %12 = sbr.rel (!%p10_p4) target bundleno = 1 (0x1), region = 150 }

// kernel: cnn_base_forward.6
= control target key start
LH: loop header
LB: loop body
LE: loop exit
PB: predicated region body
PF: predicated region fallthrough
CT: control target
= control target key end

     0   :  { %s1208_s12 = smov 0   ;;  %s1371_s0 = inlined_call_operand.vmem [shape: bf16[2,64,576], index: 0, kind: input, shape index: {}]   ;;  %s1372_s1 = inlined_call_operand.vmem [shape: bf16[576,128], index: 1, kind: input, shape index: {}]   ;;  %s1373_s2 = inlined_call_operand.vmem [shape: f32[1,128], index: 2, kind: input, shape index: {}]   ;;  %s1374_s3 = inlined_call_operand.vmem [shape: bf16[2,4,4,128], index: 3, kind: output, shape index: {}]  }
   0x1 LB: > { %s920_s13 = sadd.s32 4294967295, %s1186_s12   ;;  %p924_p0 = scmp.ge.s32.totalorder %s1186_s12, 1  ;;  %s1186_s12 = sphi %s1208_s12, %s13_s12  }
   0x2   : > { %p137_p1 = scmp.lt.s32.totalorder %s1186_s12, 3 }
   0x4   : > { %p138_p2 = pnand %p924_p0, %p137_p1 }
   0x5   : > { %v1116_v0 = vld [vmem:[%s1372_s1 + $0x40] sm:$0xff] (!%p138_p2)   ;;  %v1120_v4 = vld [vmem:[%s1372_s1 + $0x48] sm:$0xff] (!%p138_p2)   ;;  %v1124_v8 = vld [vmem:[%s1372_s1 + $0x50] sm:$0xff] (!%p138_p2)   ;;  %p161_p3 = scmp.lt.s32.totalorder (!%p138_p2), %s920_s13, 1  ;;  %vm591_vm0 = vcmask (!%p138_p2), 523264  }
   0x6   : > { %141 = sbr.rel (%p138_p2) target bundleno = 309 (0x135), region = 32  ;;  %v1117_v1 = vld [vmem:[%s1372_s1 + $0xc0] sm:$0xff] (!%p138_p2)   ;;  %995 = vmatprep.subr.bf16.mxu0 (!%p138_p2), %v1116_v0  ;;  %v1121_v5 = vld [vmem:[%s1372_s1 + $0xc8] sm:$0xff] (!%p138_p2)   ;;  %v1125_v9 = vld [vmem:[%s1372_s1 + $0xd0] sm:$0xff] (!%p138_p2)  }
   0x7   : > { %v1118_v2 = vld [vmem:[%s1372_s1] sm:$0xff] (!%p138_p2)   ;;  %1035 = vmatprep.subr.bf16.mxu1 (!%p138_p2), %v1117_v1  ;;  %v1122_v6 = vld [vmem:[%s1372_s1 + $0x8] sm:$0xff] (!%p138_p2)   ;;  %v1126_v10 = vld [vmem:[%s1372_s1 + $0x10] sm:$0xff] (!%p138_p2)  }
   0x8   : > { %v1119_v3 = vld [vmem:[%s1372_s1 + $0x80] sm:$0xff] (!%p138_p2)   ;;  %996 = vmatpush3.bf16.msra.mxu0 (!%p138_p2), %v1118_v2  ;;  %v1123_v7 = vld [vmem:[%s1372_s1 + $0x88] sm:$0xff] (!%p138_p2)   ;;  %v1127_v11 = vld [vmem:[%s1372_s1 + $0x90] sm:$0xff] (!%p138_p2)  }
   0x9   : > { %1036 = vmatpush3.bf16.msra.mxu1 (!%p138_p2), %v1119_v3  ;;  %997 = vmatprep.subr.bf16.mxu0 (!%p138_p2), %v1120_v4  ;;  %v1128_v12 = vld [vmem:[%s1372_s1 + $0x58] sm:$0xff] (!%p138_p2)   ;;  %v1132_v16 = vld [vmem:[%s1372_s1 + $0x60] sm:$0xff] (!%p138_p2)   ;;  %v1136_v20 = vld [vmem:[%s1372_s1 + $0x68] sm:$0xff] (!%p138_p2)  }
   0xa   : > { %1037 = vmatprep.subr.bf16.mxu1 (!%p138_p2), %v1121_v5  ;;  %v1129_v13 = vld [vmem:[%s1372_s1 + $0xd8] sm:$0xff] (!%p138_p2)   ;;  %v1133_v17 = vld [vmem:[%s1372_s1 + $0xe0] sm:$0xff] (!%p138_p2)   ;;  %v1137_v21 = vld [vmem:[%s1372_s1 + $0xe8] sm:$0xff] (!%p138_p2)  }
   0xb   : > { %v1130_v14 = vld [vmem:[%s1372_s1 + $0x18] sm:$0xff] (!%p138_p2)   ;;  %v1134_v18 = vld [vmem:[%s1372_s1 + $0x20] sm:$0xff] (!%p138_p2)   ;;  %v1138_v22 = vld [vmem:[%s1372_s1 + $0x28] sm:$0xff] (!%p138_p2)  }
   0xc   : > { %998 = vmatpush3.bf16.msra.mxu0 (!%p138_p2), %v1122_v6  ;;  %v1131_v15 = vld [vmem:[%s1372_s1 + $0x98] sm:$0xff] (!%p138_p2)   ;;  %v1135_v19 = vld [vmem:[%s1372_s1 + $0xa0] sm:$0xff] (!%p138_p2)   ;;  %v1139_v23 = vld [vmem:[%s1372_s1 + $0xa8] sm:$0xff] (!%p138_p2)  }
   0xd   : > { %1038 = vmatpush3.bf16.msra.mxu1 %v1123_v7  ;;  %999 = vmatprep.subr.bf16.mxu0 %v1124_v8  ;;  %s1376_s13 = smov (!%p161_p3, %s920_s13), 1  ;;  %v1140_v24 = vld [vmem:[%s1372_s1 + $0x70] sm:$0xff]   ;;  %v1144_v28 = vld [vmem:[%s1372_s1 + $0x78] sm:$0xff]   ;;  %v1154_v36 = vld [vmem:[%s1372_s1 + $0x100] sm:$0xff]  }
   0xe   : > { %1039 = vmatprep.subr.bf16.mxu1 %v1125_v9  ;;  %v1141_v25 = vld [vmem:[%s1372_s1 + $0xf0] sm:$0xff]   ;;  %s1107_s16 = smul.u32 160, %s1376_s13  ;;  %v1145_v29 = vld [vmem:[%s1372_s1 + $0xf8] sm:$0xff]   ;;  %v1161_v39 = vld [vmem:[%s1372_s1 + $0x108] sm:$0xff]   ;;  %s994_s17 = sshll.u32 %s1376_s13, 3 }
   0xf   : > { %v1142_v26 = vld [vmem:[%s1372_s1 + $0x30] sm:$0xff]   ;;  %v1146_v30 = vld [vmem:[%s1372_s1 + $0x38] sm:$0xff]   ;;  %v928_v58 = vld [vmem:[%s1373_s2] ss:$0 sm:$0xff]  ;;  %s170_s20 = scalar_lea.vmem %s1374_s3, %s994_s17 }
  0x10   : > { %1000 = vmatpush3.bf16.msra.mxu0 %v1126_v10  ;;  %v1143_v27 = vld [vmem:[%s1372_s1 + $0xb0] sm:$0xff]   ;;  %s1316_s27 = scalar_lea.vmem %s1371_s0, %s1107_s16  ;;  %v1147_v31 = vld [vmem:[%s1372_s1 + $0xb8] sm:$0xff]  }
  0x11   : > { %1040 = vmatpush3.bf16.msra.mxu1 %v1127_v11  ;;  %1001 = vmatprep.subr.bf16.mxu0 %v1128_v12  ;;  %v1148_v32 = vld [vmem:[%s1316_s27] ss:$20 sps:$4 sm:$0xff]   ;;  %v1150_v33 = vld [vmem:[%s1316_s27 + $0x4] ss:$20 sps:$4 sm:$0xff]   ;;  %v1151_v34 = vld [vmem:[%s1316_s27 + $0x8] ss:$20 sps:$4 sm:$0xff]  }
  0x12   : > { %1041 = vmatprep.subr.bf16.mxu1 %v1129_v13  ;;  %v1153_v35 = vld [vmem:[%s1316_s27 + $0xc] ss:$20 sps:$4 sm:$0xff]   ;;  %636 = vmatprep.mubr.bf16.mxu0 %v1150_v33  ;;  %v1157_v38 = vld [vmem:[%s1316_s27 + $0x34] ss:$20 sps:$4 sm:$0xff]   ;;  %v1160_v41 = vld [vmem:[%s1316_s27 + $0x30] ss:$20 sps:$4 sm:$0xff]  }
  0x13   : > { %701 = vmatprep.mubr.bf16.mxu1 %v1153_v35  ;;  %v1155_v37 = vld [vmem:[%s1316_s27 + $0x2c] ss:$20 sps:$4 sm:$0xff]   ;;  %v1159_v40 = vld [vmem:[%s1316_s27 + $0x28] ss:$20 sps:$4 sm:$0xff]   ;;  %v1168_v44 = vld [vmem:[%s1372_s1 + $0x110] sm:$0xff]  }
  0x14   : > { %1002 = vmatpush3.bf16.msra.mxu0 %v1130_v14  ;;  %v1162_v42 = vld [vmem:[%s1316_s27 + $0x54] ss:$20 sps:$4 sm:$0xff]   ;;  %v1164_v43 = vld [vmem:[%s1316_s27 + $0x5c] ss:$20 sps:$4 sm:$0xff]   ;;  %v1167_v47 = vld [vmem:[%s1316_s27 + $0x58] ss:$20 sps:$4 sm:$0xff]  }
  0x15   : > { %1042 = vmatpush3.bf16.msra.mxu1 %v1131_v15  ;;  %1003 = vmatprep.subr.bf16.mxu0 %v1132_v16  ;;  %v1175_v45 = vld [vmem:[%s1372_s1 + $0x118] sm:$0xff]   ;;  %v1166_v46 = vld [vmem:[%s1316_s27 + $0x50] ss:$20 sps:$4 sm:$0xff]   ;;  %v1174_v51 = vld [vmem:[%s1316_s27 + $0x80] ss:$20 sps:$4 sm:$0xff]  }
  0x16   : > { %1043 = vmatprep.subr.bf16.mxu1 %v1133_v17  ;;  %v1169_v48 = vld [vmem:[%s1316_s27 + $0x7c] ss:$20 sps:$4 sm:$0xff]   ;;  %v1171_v49 = vld [vmem:[%s1316_s27 + $0x84] ss:$20 sps:$4 sm:$0xff]   ;;  %v1177_v53 = vld [vmem:[%s1316_s27 + $0x60] ss:$20 sps:$4 sm:$0xff]  }
  0x17   : > { %v1173_v50 = vld [vmem:[%s1316_s27 + $0x78] ss:$20 sps:$4 sm:$0xff]   ;;  %v1176_v52 = vld [vmem:[%s1316_s27 + $0x10] ss:$20 sps:$4 sm:$0xff]   ;;  %v1179_v55 = vld [vmem:[%s1316_s27 + $0x88] ss:$20 sps:$4 sm:$0xff]  }
  0x18   : > { %1004 = vmatpush3.bf16.msra.mxu0 %v1134_v18  ;;  %v1178_v54 = vld [vmem:[%s1316_s27 + $0x38] ss:$20 sps:$4 sm:$0xff]  }
  0x19   : > { %1044 = vmatpush3.bf16.msra.mxu1 %v1135_v19  ;;  %1005 = vmatprep.subr.bf16.mxu0 %v1136_v20 }
  0x1a   : > { %1045 = vmatprep.subr.bf16.mxu1 %v1137_v21 }
  0x1c   : > { %1006 = vmatpush3.bf16.msra.mxu0 %v1138_v22 }
  0x1d   : > { %1046 = vmatpush3.bf16.msra.mxu1 %v1139_v23  ;;  %1007 = vmatprep.subr.bf16.mxu0 %v1140_v24 }
  0x1e   : > { %1047 = vmatprep.subr.bf16.mxu1 %v1141_v25 }
  0x20   : > { %1008 = vmatpush3.bf16.msra.mxu0 %v1142_v26 }
  0x21   : > { %1048 = vmatpush3.bf16.msra.mxu1 %v1143_v27  ;;  %1009 = vmatprep.subr.bf16.mxu0 %v1144_v28 }
  0x22   : > { %1049 = vmatprep.subr.bf16.mxu1 %v1145_v29 }
  0x24   : > { %1010 = vmatpush3.bf16.msra.mxu0 %v1146_v30 }
  0x25   : > { %1050 = vmatpush3.bf16.msra.mxu1 %v1147_v31  ;;  %1083 = vmatprep.subr.bf16.mxu0 %v1154_v36 }
  0x26   : > { %1099 = vmatprep.subr.bf16.mxu1 %v1154_v36 }
  0x27   : > { %637 = vmatmul.mubr.bf16.vlgmr.msra.gmra.mrb[0].mxu0 %v1148_v32 }
  0x28   : > { %702 = vmatmul.mubr.bf16.vlgmr.msra.gmra.mrb[0].mxu1 %v1151_v34  ;;  %1084 = vmatpush3.bf16.msra.mxu0 %v1154_v36 }
  0x29   : > { %1103 = vmatpush3.bf16.msra.mxu1 %v1154_v36  ;;  %644 = vmatprep.mubr.bf16.mxu0 %v1155_v37 }
  0x2a   : > { %709 = vmatprep.mubr.bf16.mxu1 %v1157_v38  ;;  %1085 = vmatprep.subr.bf16.mxu0 %v1161_v39 }
  0x2b   : > { %1100 = vmatprep.subr.bf16.mxu1 %v1161_v39 }
  0x2c   : > { %1086 = vmatpush3.bf16.msra.mxu0 %v1161_v39 }
  0x2d   : > { %1104 = vmatpush3.bf16.msra.mxu1 %v1161_v39  ;;  %1087 = vmatprep.subr.bf16.mxu0 %v1168_v44 }
  0x2e   : > { %1101 = vmatprep.subr.bf16.mxu1 %v1168_v44 }
  0x2f   : > { %645 = vmatmul.mubr.bf16.gmra.mrb[4].mxu0 %v1159_v40 }
  0x30   : > { %710 = vmatmul.mubr.bf16.gmra.mrb[4].mxu1 %v1160_v41  ;;  %652 = vmatprep.mubr.bf16.mxu0 %v1162_v42 }
  0x31   : > { %717 = vmatprep.mubr.bf16.mxu1 %v1164_v43  ;;  %1088 = vmatpush3.bf16.msra.mxu0 %v1168_v44 }
  0x32   : > { %1105 = vmatpush3.bf16.msra.mxu1 %v1168_v44  ;;  %1089 = vmatprep.subr.bf16.mxu0 %v1175_v45 }
  0x33   : > { %1102 = vmatprep.subr.bf16.mxu1 %v1175_v45 }
  0x35   : > { %1090 = vmatpush3.bf16.msra.mxu0 %v1175_v45 }
  0x36   : > { %1106 = vmatpush3.bf16.msra.mxu1 %v1175_v45 }
  0x37   : > { %653 = vmatmul.mubr.bf16.gmra.mrb[8].mxu0 %v1166_v46 }
  0x38   : > { %718 = vmatmul.mubr.bf16.gmra.mrb[8].mxu1 %v1167_v47  ;;  %660 = vmatprep.mubr.bf16.mxu0 %v1169_v48 }
  0x39   : > { %725 = vmatprep.mubr.bf16.mxu1 %v1171_v49 }
  0x3f   : > { %661 = vmatmul.mubr.bf16.gmra.mrb[12].mxu0 %v1173_v50 }
  0x40   : > { %726 = vmatmul.mubr.bf16.gmra.mrb[12].mxu1 %v1174_v51  ;;  %1091 = vmatprep.mubr.msk.bf16.mxu0 %vm591_vm0, %v1176_v52 }
  0x41   : > { %1095 = vmatprep.mubr.msk.bf16.mxu1 %vm591_vm0, %v1177_v53 }
  0x47   : > { %1092 = vmatmul.mubr.msk.bf16.vlgmr.msra.gmra.mrb[16].mxu0 %vm591_vm0, %v1178_v54 }
  0x48   : > { %1096 = vmatmul.mubr.msk.bf16.vlgmr.msra.gmra.mrb[16].mxu1 %vm591_vm0, %v1179_v55 }
  0xfa   : > { %v1011_v56 = vpop.f32.mrb[0].mxu0 }
  0xfb   : > { %v1051_v57 = vpop.f32.mrb[0].mxu1  ;;  %v1012_v59 = vpop.f32.mrb[1].mxu0 }
  0xfc   : > { %v1013_v60 = vadd.f32 %v1012_v59, %v1011_v56  ;;  %v1052_v61 = vpop.f32.mrb[1].mxu1  ;;  %v1014_v62 = vpop.f32.mrb[2].mxu0 }
  0xfd   : > { %v1053_v63 = vadd.f32 %v1052_v61, %v1051_v57  ;;  %v1054_v0 = vpop.f32.mrb[2].mxu1  ;;  %v1015_v1 = vpop.f32.mrb[3].mxu0 }
  0xfe   : > { %v639_v2 = vadd.f32 %v1013_v60, %v928_v58  ;;  %v1016_v3 = vadd.f32 %v1015_v1, %v1014_v62  ;;  %v1055_v4 = vpop.f32.mrb[3].mxu1 }
  0xff   : > { %v1056_v5 = vadd.f32 %v1055_v4, %v1054_v0 }
 0x100   : > { %v642_v6 = vadd.f32 %v1016_v3, %v928_v58  ;;  %v704_v7 = vadd.f32 %v1053_v63, %v639_v2 }
 0x102   : > { %v1017_v8 = vpop.f32.mrb[4].mxu0  ;;  %v1359_v9 = vadd.f32 %v1056_v5, %v642_v6 }
 0x103   : > { %v1057_v10 = vpop.f32.mrb[4].mxu1  ;;  %v1018_v11 = vpop.f32.mrb[5].mxu0 }
 0x104   : > { %v1019_v12 = vadd.f32 %v1018_v11, %v1017_v8  ;;  %v1058_v13 = vpop.f32.mrb[5].mxu1  ;;  %v1020_v14 = vpop.f32.mrb[6].mxu0 }
 0x105   : > { %v1059_v15 = vadd.f32 %v1058_v13, %v1057_v10  ;;  %v1060_v16 = vpop.f32.mrb[6].mxu1  ;;  %v1021_v17 = vpop.f32.mrb[7].mxu0 }
 0x106   : > { %v647_v18 = vadd.f32 %v1019_v12, %v928_v58  ;;  %v1022_v19 = vadd.f32 %v1021_v17, %v1020_v14  ;;  %v1061_v20 = vpop.f32.mrb[7].mxu1 }
 0x107   : > { %v1062_v21 = vadd.f32 %v1061_v20, %v1060_v16 }
 0x108   : > { %v650_v22 = vadd.f32 %v1022_v19, %v928_v58  ;;  %v712_v23 = vadd.f32 %v1059_v15, %v647_v18 }
 0x10a   : > { %v1023_v24 = vpop.f32.mrb[8].mxu0  ;;  %v715_v25 = vadd.f32 %v1062_v21, %v650_v22 }
 0x10b   : > { %v1063_v26 = vpop.f32.mrb[8].mxu1  ;;  %v1024_v27 = vpop.f32.mrb[9].mxu0 }
 0x10c   : > { %v1025_v28 = vadd.f32 %v1024_v27, %v1023_v24  ;;  %v1064_v29 = vpop.f32.mrb[9].mxu1  ;;  %v1026_v30 = vpop.f32.mrb[10].mxu0 }
 0x10d   : > { %v1065_v31 = vadd.f32 %v1064_v29, %v1063_v26  ;;  %v1066_v32 = vpop.f32.mrb[10].mxu1  ;;  %v1027_v33 = vpop.f32.mrb[11].mxu0 }
 0x10e   : > { %v655_v34 = vadd.f32 %v1025_v28, %v928_v58  ;;  %v1028_v35 = vadd.f32 %v1027_v33, %v1026_v30  ;;  %v1067_v36 = vpop.f32.mrb[11].mxu1 }
 0x10f   : > { %v1068_v37 = vadd.f32 %v1067_v36, %v1066_v32 }
 0x110   : > { %v658_v38 = vadd.f32 %v1028_v35, %v928_v58  ;;  %v720_v39 = vadd.f32 %v1065_v31, %v655_v34 }
 0x112   : > { %v1029_v40 = vpop.f32.mrb[12].mxu0  ;;  %v723_v41 = vadd.f32 %v1068_v37, %v658_v38 }
 0x113   : > { %v1069_v42 = vpop.f32.mrb[12].mxu1  ;;  %v1030_v43 = vpop.f32.mrb[13].mxu0 }
 0x114   : > { %v1031_v44 = vadd.f32 %v1030_v43, %v1029_v40  ;;  %v1070_v45 = vpop.f32.mrb[13].mxu1  ;;  %v1032_v46 = vpop.f32.mrb[14].mxu0 }
 0x115   : > { %v1071_v47 = vadd.f32 %v1070_v45, %v1069_v42  ;;  %v1072_v48 = vpop.f32.mrb[14].mxu1  ;;  %v1033_v49 = vpop.f32.mrb[15].mxu0 }
 0x116   : > { %v663_v50 = vadd.f32 %v1031_v44, %v928_v58  ;;  %v1034_v51 = vadd.f32 %v1033_v49, %v1032_v46  ;;  %v1073_v52 = vpop.f32.mrb[15].mxu1 }
 0x117   : > { %v1074_v53 = vadd.f32 %v1073_v52, %v1072_v48 }
 0x118   : > { %v666_v54 = vadd.f32 %v1034_v51, %v928_v58  ;;  %v728_v55 = vadd.f32 %v1071_v47, %v663_v50 }
 0x11a   : > { %v1093_v56 = vpop.f32.mrb[16].mxu0  ;;  %v731_v57 = vadd.f32 %v1074_v53, %v666_v54 }
 0x11b   : > { %v777_v59 = vadd.f32 %v1093_v56, %v712_v23  ;;  %v1097_v60 = vpop.f32.mrb[16].mxu1  ;;  %v768_v61 = vpop.f32.mrb[17].mxu0 }
 0x11c   : > { %v793_v62 = vadd.f32 %v1097_v60, %v728_v55  ;;  %v769_v63 = vadd.f32 %v768_v61, %v704_v7  ;;  %v784_v0 = vpop.f32.mrb[17].mxu1  ;;  %v1094_v1 = vpop.f32.mrb[18].mxu0 }
 0x11d   : > { %801 = vst [vmem:[#allocation2 + $0x10] sm:$0xff] %v777_v59  ;;  %v785_v2 = vadd.f32 %v784_v0, %v720_v39  ;;  %v780_v3 = vadd.f32 %v1094_v1, %v715_v25  ;;  %v1098_v4 = vpop.f32.mrb[18].mxu1  ;;  %v771_v5 = vpop.f32.mrb[19].mxu0 }
 0x11e   : > { %805 = vst [vmem:[#allocation2 + $0x30] sm:$0xff] %v793_v62  ;;  %799 = vst [vmem:[#allocation2] sm:$0xff] %v769_v63  ;;  %v796_v6 = vadd.f32 %v1098_v4, %v731_v57  ;;  %v772_v58 = vadd.f32 %v771_v5, %v1359_v9  ;;  %v787_v8 = vpop.f32.mrb[19].mxu1 }
 0x11f   : > { %803 = vst [vmem:[#allocation2 + $0x20] sm:$0xff] %v785_v2  ;;  %802 = vst [vmem:[#allocation2 + $0x18] sm:$0xff] %v780_v3  ;;  %v788_v10 = vadd.f32 %v787_v8, %v723_v41 }
 0x120   : > { %806 = vst [vmem:[#allocation2 + $0x38] sm:$0xff] %v796_v6  ;;  %800 = vst [vmem:[#allocation2 + $0x8] sm:$0xff] %v772_v58 }
 0x121   : > { %804 = vst [vmem:[#allocation2 + $0x28] sm:$0xff] %v788_v10 }
 0x124   : > { %v821_v7 = vld [vmem:[#allocation2 + $0x10] ss:$2 sm:$0xf]  ;;  %v823_v11 = vld [vmem:[#allocation2 + $0x11] ss:$2 sm:$0xf] }
 0x125   : > { %v851_v12 = vld [vmem:[#allocation2 + $0x30] ss:$2 sm:$0xf]  ;;  %v853_v13 = vld [vmem:[#allocation2 + $0x31] ss:$2 sm:$0xf]  ;;  %v824_v20 = vmax.f32 %v821_v7, %v823_v11 }
 0x126   : > { %v807_v14 = vld [vmem:[#allocation2] ss:$2 sm:$0xf]  ;;  %v809_v15 = vld [vmem:[#allocation2 + $0x1] ss:$2 sm:$0xf]  ;;  %v854_v23 = vmax.f32 %v851_v12, %v853_v13 }
 0x127   : > { %v836_v16 = vld [vmem:[#allocation2 + $0x20] ss:$2 sm:$0xf]  ;;  %v838_v17 = vld [vmem:[#allocation2 + $0x21] ss:$2 sm:$0xf]  ;;  %v810_v27 = vmax.f32 %v807_v14, %v809_v15 }
 0x128   : > { %v826_v18 = vld [vmem:[#allocation2 + $0x18] ss:$2 sm:$0xf]  ;;  %v828_v19 = vld [vmem:[#allocation2 + $0x19] ss:$2 sm:$0xf]  ;;  %v839_v32 = vmax.f32 %v836_v16, %v838_v17 }
 0x129   : > { %v829_v9 = vmax.f32 %v826_v18, %v828_v19  ;;  %v856_v21 = vld [vmem:[#allocation2 + $0x38] ss:$2 sm:$0xf]  ;;  %v858_v22 = vld [vmem:[#allocation2 + $0x39] ss:$2 sm:$0xf] }
 0x12a   : > { %v859_v24 = vmax.f32 %v856_v21, %v858_v22  ;;  %v812_v25 = vld [vmem:[#allocation2 + $0x8] ss:$2 sm:$0xf]  ;;  %v814_v26 = vld [vmem:[#allocation2 + $0x9] ss:$2 sm:$0xf] }
 0x12b   : > { %v830_v28 = vmax.f32 %v824_v20, %v829_v9  ;;  %v815_v29 = vmax.f32 %v812_v25, %v814_v26  ;;  %v841_v30 = vld [vmem:[#allocation2 + $0x28] ss:$2 sm:$0xf]  ;;  %v843_v31 = vld [vmem:[#allocation2 + $0x29] ss:$2 sm:$0xf] }
 0x12c   : > { %v860_v33 = vmax.f32 %v854_v23, %v859_v24  ;;  %v844_v34 = vmax.f32 %v841_v30, %v843_v31 }
 0x12d   : > { %v831_v35 = vmax.f32 %v830_v28, 0.0  ;;  %v816_v36 = vmax.f32 %v810_v27, %v815_v29 }
 0x12e   : > { %v861_v37 = vmax.f32 %v860_v33, 0.0  ;;  %v845_v38 = vmax.f32 %v839_v32, %v844_v34 }
 0x12f   : > { %v832_v39 = vpack.c.bf16 %v831_v35, %v831_v35  ;;  %v817_v40 = vmax.f32 %v816_v36, 0.0 }
 0x130   : > { %v862_v41 = vpack.c.bf16 %v861_v37, %v861_v37  ;;  %v846_v42 = vmax.f32 %v845_v38, 0.0 }
 0x131   : > { %989 = vst [vmem:[%s170_s20 + $0x2] sm:$0x3] %v832_v39  ;;  %v818_v43 = vpack.c.bf16 %v817_v40, %v817_v40 }
 0x132   : > { %991 = vst [vmem:[%s170_s20 + $0x6] sm:$0x3] %v862_v41  ;;  %v847_v44 = vpack.c.bf16 %v846_v42, %v846_v42 }
 0x133   : > { %819 = vst [vmem:[%s170_s20] sm:$0x3] %v818_v43 }
 0x134   : > { %990 = vst [vmem:[%s170_s20 + $0x4] sm:$0x3] %v847_v44 }
 0x135 PF: > { %s13_s12 = sadd.s32 1, %s1186_s12  }
 0x136   : > { %p10_p4 = scmp.ge.s32.totalorder %s13_s12, 4  }
 0x138   :  { %12 = sbr.rel (!%p10_p4) target bundleno = 1 (0x1), region = 80 }

// kernel: cnn_base_forward.7
= control target key start
LH: loop header
LB: loop body
LE: loop exit
PB: predicated region body
PF: predicated region fallthrough
CT: control target
= control target key end

     0   :  { %v538_v36 = vlaneseq  ;;  %v5734_v37 = vmov 1966171168   ;;  %s7510_s0 = inlined_call_operand.vmem [shape: bf16[2,2048], index: 0, kind: input, shape index: {}]   ;;  %s7511_s1 = inlined_call_operand.vmem [shape: bf16[2048,512], index: 1, kind: input, shape index: {}]   ;;  %s7512_s2 = inlined_call_operand.vmem [shape: f32[1,512], index: 2, kind: input, shape index: {}]   ;;  %s7513_s3 = inlined_call_operand.vmem [shape: bf16[512,50], index: 3, kind: input, shape index: {}]   ;;  %s7514_s4 = inlined_call_operand.vmem [shape: f32[1,50], index: 4, kind: input, shape index: {}]   ;;  %s7515_s5 = inlined_call_operand.hbm [shape: f32[2,50], index: 5, kind: output, shape index: {}]  }
   0x1   :  { %v4908_v0 = vld [vmem:[%s7511_s1 + $0x4] ss:$16 sps:$4 sm:$0xff]   ;;  %v4910_v1 = vld [vmem:[%s7511_s1 + $0xc] ss:$16 sps:$4 sm:$0xff]   ;;  %v4912_v2 = vld [vmem:[%s7511_s1] ss:$16 sps:$4 sm:$0xff]   ;;  %v562_v38 = vunpack.c.l.s4 %v5734_v37 }
   0x2   :  { %3234 = vmatprep.subr.bf16.mxu0 %v4908_v0  ;;  %v4913_v3 = vld [vmem:[%s7511_s1 + $0x8] ss:$16 sps:$4 sm:$0xff]   ;;  %3562 = vmatprep.subr.bf16.mxu1 %v4910_v1  ;;  %v4914_v4 = vld [vmem:[%s7511_s1 + $0x24] ss:$16 sps:$4 sm:$0xff]   ;;  %v4916_v5 = vld [vmem:[%s7511_s1 + $0x2c] ss:$16 sps:$4 sm:$0xff]  }
   0x3   :  { %3235 = vmatpush1.bf16.msra.mxu0 %v4912_v2  ;;  %3563 = vmatpush1.bf16.msra.mxu1 %v4913_v3  ;;  %v4918_v6 = vld [vmem:[%s7511_s1 + $0x20] ss:$16 sps:$4 sm:$0xff]   ;;  %v4919_v7 = vld [vmem:[%s7511_s1 + $0x28] ss:$16 sps:$4 sm:$0xff]   ;;  %v4920_v8 = vld [vmem:[%s7511_s1 + $0x44] ss:$16 sps:$4 sm:$0xff]   ;;  %v563_v43 = vunpack.c.0.s8 %v562_v38 }
   0x4   :  { %3236 = vmatprep.subr.bf16.mxu0 %v4914_v4  ;;  %3564 = vmatprep.subr.bf16.mxu1 %v4916_v5  ;;  %v4922_v9 = vld [vmem:[%s7511_s1 + $0x4c] ss:$16 sps:$4 sm:$0xff]   ;;  %v4924_v10 = vld [vmem:[%s7511_s1 + $0x40] ss:$16 sps:$4 sm:$0xff]   ;;  %v4925_v11 = vld [vmem:[%s7511_s1 + $0x48] ss:$16 sps:$4 sm:$0xff]  }
   0x5   :  { %v4926_v12 = vld [vmem:[%s7511_s1 + $0x64] ss:$16 sps:$4 sm:$0xff]   ;;  %v4928_v13 = vld [vmem:[%s7511_s1 + $0x6c] ss:$16 sps:$4 sm:$0xff]   ;;  %v4930_v14 = vld [vmem:[%s7511_s1 + $0x60] ss:$16 sps:$4 sm:$0xff]  }
   0x6   :  { %v4931_v15 = vld [vmem:[%s7511_s1 + $0x68] ss:$16 sps:$4 sm:$0xff]   ;;  %v4932_v16 = vld [vmem:[%s7511_s1 + $0x84] ss:$16 sps:$4 sm:$0xff]   ;;  %v4934_v17 = vld [vmem:[%s7511_s1 + $0x8c] ss:$16 sps:$4 sm:$0xff]  }
   0x7   :  { %3237 = vmatpush1.bf16.msra.mxu0 %v4918_v6  ;;  %3565 = vmatpush1.bf16.msra.mxu1 %v4919_v7  ;;  %v4936_v18 = vld [vmem:[%s7511_s1 + $0x80] ss:$16 sps:$4 sm:$0xff]   ;;  %v4937_v19 = vld [vmem:[%s7511_s1 + $0x88] ss:$16 sps:$4 sm:$0xff]   ;;  %v4938_v20 = vld [vmem:[%s7511_s1 + $0xa4] ss:$16 sps:$4 sm:$0xff]  }
   0x8   :  { %3238 = vmatprep.subr.bf16.mxu0 %v4920_v8  ;;  %3566 = vmatprep.subr.bf16.mxu1 %v4922_v9  ;;  %v4940_v21 = vld [vmem:[%s7511_s1 + $0xac] ss:$16 sps:$4 sm:$0xff]   ;;  %v4942_v22 = vld [vmem:[%s7511_s1 + $0xa0] ss:$16 sps:$4 sm:$0xff]   ;;  %v4943_v23 = vld [vmem:[%s7511_s1 + $0xa8] ss:$16 sps:$4 sm:$0xff]  }
   0x9   :  { %v4944_v24 = vld [vmem:[%s7511_s1 + $0xc4] ss:$16 sps:$4 sm:$0xff]   ;;  %v4946_v25 = vld [vmem:[%s7511_s1 + $0xcc] ss:$16 sps:$4 sm:$0xff]   ;;  %v4948_v26 = vld [vmem:[%s7511_s1 + $0xc0] ss:$16 sps:$4 sm:$0xff]  }
   0xa   :  { %v4949_v27 = vld [vmem:[%s7511_s1 + $0xc8] ss:$16 sps:$4 sm:$0xff]   ;;  %v4950_v28 = vld [vmem:[%s7511_s1 + $0xe4] ss:$16 sps:$4 sm:$0xff]   ;;  %v4952_v29 = vld [vmem:[%s7511_s1 + $0xec] ss:$16 sps:$4 sm:$0xff]  }
   0xb   :  { %3239 = vmatpush1.bf16.msra.mxu0 %v4924_v10  ;;  %3567 = vmatpush1.bf16.msra.mxu1 %v4925_v11  ;;  %v4954_v30 = vld [vmem:[%s7511_s1 + $0xe0] ss:$16 sps:$4 sm:$0xff]   ;;  %v4955_v31 = vld [vmem:[%s7511_s1 + $0xe8] ss:$16 sps:$4 sm:$0xff]   ;;  %v4956_v32 = vld [vmem:[%s7511_s1 + $0x104] ss:$16 sps:$4 sm:$0xff]  }
   0xc   :  { %3240 = vmatprep.subr.bf16.mxu0 %v4926_v12  ;;  %3568 = vmatprep.subr.bf16.mxu1 %v4928_v13  ;;  %v4958_v33 = vld [vmem:[%s7511_s1 + $0x10c] ss:$16 sps:$4 sm:$0xff]   ;;  %v4960_v34 = vld [vmem:[%s7511_s1 + $0x100] ss:$16 sps:$4 sm:$0xff]   ;;  %v4961_v35 = vld [vmem:[%s7511_s1 + $0x108] ss:$16 sps:$4 sm:$0xff]  }
   0xd   :  { %v4962_v39 = vld [vmem:[%s7511_s1 + $0x124] ss:$16 sps:$4 sm:$0xff]   ;;  %v4964_v40 = vld [vmem:[%s7511_s1 + $0x12c] ss:$16 sps:$4 sm:$0xff]   ;;  %v4966_v41 = vld [vmem:[%s7511_s1 + $0x120] ss:$16 sps:$4 sm:$0xff]  }
   0xe   :  { %v5883_v42 = vshrl.u32 %v538_v36, 7  ;;  %v4967_v44 = vld [vmem:[%s7511_s1 + $0x128] ss:$16 sps:$4 sm:$0xff]   ;;  %v4968_v45 = vld [vmem:[%s7511_s1 + $0x144] ss:$16 sps:$4 sm:$0xff]  }
   0xf   :  { %3241 = vmatpush1.bf16.msra.mxu0 %v4930_v14  ;;  %3569 = vmatpush1.bf16.msra.mxu1 %v4931_v15  ;;  %v4970_v46 = vld [vmem:[%s7511_s1 + $0x14c] ss:$16 sps:$4 sm:$0xff]   ;;  %v4972_v47 = vld [vmem:[%s7511_s1 + $0x140] ss:$16 sps:$4 sm:$0xff]   ;;  %v4973_v48 = vld [vmem:[%s7511_s1 + $0x148] ss:$16 sps:$4 sm:$0xff]  }
  0x10   :  { %3242 = vmatprep.subr.bf16.mxu0 %v4932_v16  ;;  %3570 = vmatprep.subr.bf16.mxu1 %v4934_v17  ;;  %v5901_v49 = vsub.s32 %v563_v43, %v5883_v42  ;;  %v4974_v50 = vld [vmem:[%s7511_s1 + $0x164] ss:$16 sps:$4 sm:$0xff]   ;;  %v4976_v51 = vld [vmem:[%s7511_s1 + $0x16c] ss:$16 sps:$4 sm:$0xff]   ;;  %v4978_v53 = vld [vmem:[%s7511_s1 + $0x160] ss:$16 sps:$4 sm:$0xff]  }
  0x11   :  { %v5912_v52 = vld [vmem:[%s7510_s0] sm:$0xff]  ;;  %v4979_v55 = vld [vmem:[%s7511_s1 + $0x168] ss:$16 sps:$4 sm:$0xff]   ;;  %v4982_v57 = vld [vmem:[%s7511_s1 + $0x18c] ss:$16 sps:$4 sm:$0xff]  }
  0x12   :  { %v567_v54 = vrot.slane %v5912_v52, %v5901_v49  ;;  %v4980_v56 = vld [vmem:[%s7511_s1 + $0x184] ss:$16 sps:$4 sm:$0xff]   ;;  %v4984_v59 = vld [vmem:[%s7511_s1 + $0x180] ss:$16 sps:$4 sm:$0xff]   ;;  %v4985_v61 = vld [vmem:[%s7511_s1 + $0x188] ss:$16 sps:$4 sm:$0xff]  }
  0x13   :  { %3243 = vmatpush1.bf16.msra.mxu0 %v4936_v18  ;;  %3571 = vmatpush1.bf16.msra.mxu1 %v4937_v19  ;;  %v4986_v62 = vld [vmem:[%s7511_s1 + $0x1a4] ss:$16 sps:$4 sm:$0xff]   ;;  %v4988_v63 = vld [vmem:[%s7511_s1 + $0x1ac] ss:$16 sps:$4 sm:$0xff]   ;;  %v4990_v0 = vld [vmem:[%s7511_s1 + $0x1a0] ss:$16 sps:$4 sm:$0xff]  }
  0x14   :  { %3244 = vmatprep.subr.bf16.mxu0 %v4938_v20  ;;  %3572 = vmatprep.subr.bf16.mxu1 %v4940_v21  ;;  %v575_v58 = vcombine.high %v567_v54, %v567_v54  ;;  %v4991_v1 = vld [vmem:[%s7511_s1 + $0x1a8] ss:$16 sps:$4 sm:$0xff]   ;;  %v4992_v2 = vld [vmem:[%s7511_s1 + $0x1c4] ss:$16 sps:$4 sm:$0xff]   ;;  %v4994_v3 = vld [vmem:[%s7511_s1 + $0x1cc] ss:$16 sps:$4 sm:$0xff]   ;;  %v5981_v13 = vrot.slane %v567_v54, %v5901_v49 }
  0x15   :  { %v4996_v4 = vld [vmem:[%s7511_s1 + $0x1c0] ss:$16 sps:$4 sm:$0xff]   ;;  %v4997_v5 = vld [vmem:[%s7511_s1 + $0x1c8] ss:$16 sps:$4 sm:$0xff]   ;;  %v4998_v6 = vld [vmem:[%s7511_s1 + $0x1e4] ss:$16 sps:$4 sm:$0xff]  }
  0x16   :  { %v597_v60 = vrot.slane %v575_v58, %v5901_v49  ;;  %v5000_v7 = vld [vmem:[%s7511_s1 + $0x1ec] ss:$16 sps:$4 sm:$0xff]   ;;  %v5002_v8 = vld [vmem:[%s7511_s1 + $0x1e0] ss:$16 sps:$4 sm:$0xff]   ;;  %v5003_v9 = vld [vmem:[%s7511_s1 + $0x1e8] ss:$16 sps:$4 sm:$0xff]  }
  0x17   :  { %3245 = vmatpush1.bf16.msra.mxu0 %v4942_v22  ;;  %3573 = vmatpush1.bf16.msra.mxu1 %v4943_v23  ;;  %v5006_v10 = vld [vmem:[%s7511_s1 + $0x204] ss:$16 sps:$4 sm:$0xff]   ;;  %v5009_v11 = vld [vmem:[%s7511_s1 + $0x20c] ss:$16 sps:$4 sm:$0xff]   ;;  %v5004_v12 = vld [vmem:[%s7511_s1 + $0x200] ss:$16 sps:$4 sm:$0xff]  }
  0x18   :  { %3246 = vmatprep.subr.bf16.mxu0 %v4944_v24  ;;  %3574 = vmatprep.subr.bf16.mxu1 %v4946_v25  ;;  %v5007_v14 = vld [vmem:[%s7511_s1 + $0x208] ss:$16 sps:$4 sm:$0xff]   ;;  %v5012_v15 = vld [vmem:[%s7511_s1 + $0x224] ss:$16 sps:$4 sm:$0xff]   ;;  %v5015_v16 = vld [vmem:[%s7511_s1 + $0x22c] ss:$16 sps:$4 sm:$0xff]   ;;  %v607_v17 = vcombine.high %v597_v60, %v597_v60 }
  0x19   :  { %3266 = vmatprep.mubr.bf16.mxu0 %v597_v60  ;;  %3594 = vmatprep.mubr.bf16.mxu1 %v597_v60  ;;  %v5010_v18 = vld [vmem:[%s7511_s1 + $0x220] ss:$16 sps:$4 sm:$0xff]   ;;  %v5013_v19 = vld [vmem:[%s7511_s1 + $0x228] ss:$16 sps:$4 sm:$0xff]   ;;  %v5018_v20 = vld [vmem:[%s7511_s1 + $0x244] ss:$16 sps:$4 sm:$0xff]  }
  0x1a   :  { %v5021_v21 = vld [vmem:[%s7511_s1 + $0x24c] ss:$16 sps:$4 sm:$0xff]   ;;  %v5016_v22 = vld [vmem:[%s7511_s1 + $0x240] ss:$16 sps:$4 sm:$0xff]   ;;  %v5019_v23 = vld [vmem:[%s7511_s1 + $0x248] ss:$16 sps:$4 sm:$0xff]  }
  0x1b   :  { %3247 = vmatpush1.bf16.msra.mxu0 %v4948_v26  ;;  %3575 = vmatpush1.bf16.msra.mxu1 %v4949_v27  ;;  %v5024_v24 = vld [vmem:[%s7511_s1 + $0x264] ss:$16 sps:$4 sm:$0xff]   ;;  %v5027_v25 = vld [vmem:[%s7511_s1 + $0x26c] ss:$16 sps:$4 sm:$0xff]   ;;  %v5022_v26 = vld [vmem:[%s7511_s1 + $0x260] ss:$16 sps:$4 sm:$0xff]  }
  0x1c   :  { %3248 = vmatprep.subr.bf16.mxu0 %v4950_v28  ;;  %3576 = vmatprep.subr.bf16.mxu1 %v4952_v29  ;;  %v5025_v27 = vld [vmem:[%s7511_s1 + $0x268] ss:$16 sps:$4 sm:$0xff]   ;;  %v5030_v28 = vld [vmem:[%s7511_s1 + $0x284] ss:$16 sps:$4 sm:$0xff]   ;;  %v5033_v29 = vld [vmem:[%s7511_s1 + $0x28c] ss:$16 sps:$4 sm:$0xff]  }
  0x1d   :  { %v5042_v36 = vld [vmem:[%s7511_s1 + $0x2c4] ss:$16 sps:$4 sm:$0xff]   ;;  %v5045_v37 = vld [vmem:[%s7511_s1 + $0x2cc] ss:$16 sps:$4 sm:$0xff]   ;;  %v5040_v38 = vld [vmem:[%s7511_s1 + $0x2c0] ss:$16 sps:$4 sm:$0xff]  }
  0x1e   :  { %v5046_v43 = vld [vmem:[%s7511_s1 + $0x2e0] ss:$16 sps:$4 sm:$0xff]   ;;  %v5061_v54 = vld [vmem:[%s7511_s1 + $0x328] ss:$16 sps:$4 sm:$0xff]   ;;  %v5075_v60 = vld [vmem:[%s7511_s1 + $0x36c] ss:$16 sps:$4 sm:$0xff]  }
  0x1f   :  { %3249 = vmatpush1.bf16.msra.mxu0 %v4954_v30  ;;  %3577 = vmatpush1.bf16.msra.mxu1 %v4955_v31  ;;  %v5028_v30 = vld [vmem:[%s7511_s1 + $0x280] ss:$16 sps:$4 sm:$0xff]   ;;  %v5031_v31 = vld [vmem:[%s7511_s1 + $0x288] ss:$16 sps:$4 sm:$0xff]  }
  0x20   :  { %3250 = vmatprep.subr.bf16.mxu0 %v4956_v32  ;;  %3578 = vmatprep.subr.bf16.mxu1 %v4958_v33  ;;  %v5036_v32 = vld [vmem:[%s7511_s1 + $0x2a4] ss:$16 sps:$4 sm:$0xff]   ;;  %v5039_v33 = vld [vmem:[%s7511_s1 + $0x2ac] ss:$16 sps:$4 sm:$0xff]   ;;  %v5067_v58 = vld [vmem:[%s7511_s1 + $0x348] ss:$16 sps:$4 sm:$0xff]  }
  0x23   :  { %3251 = vmatpush1.bf16.msra.mxu0 %v4960_v34  ;;  %3579 = vmatpush1.bf16.msra.mxu1 %v4961_v35  ;;  %v5034_v34 = vld [vmem:[%s7511_s1 + $0x2a0] ss:$16 sps:$4 sm:$0xff]   ;;  %v5037_v35 = vld [vmem:[%s7511_s1 + $0x2a8] ss:$16 sps:$4 sm:$0xff]  }
  0x24   :  { %3252 = vmatprep.subr.bf16.mxu0 %v4962_v39  ;;  %3580 = vmatprep.subr.bf16.mxu1 %v4964_v40  ;;  %v5043_v39 = vld [vmem:[%s7511_s1 + $0x2c8] ss:$16 sps:$4 sm:$0xff]   ;;  %v5048_v40 = vld [vmem:[%s7511_s1 + $0x2e4] ss:$16 sps:$4 sm:$0xff]  }
  0x27   :  { %3253 = vmatpush1.bf16.msra.mxu0 %v4966_v41  ;;  %3581 = vmatpush1.bf16.msra.mxu1 %v4967_v44  ;;  %v5051_v41 = vld [vmem:[%s7511_s1 + $0x2ec] ss:$16 sps:$4 sm:$0xff]   ;;  %v5049_v44 = vld [vmem:[%s7511_s1 + $0x2e8] ss:$16 sps:$4 sm:$0xff]  }
  0x28   :  { %3254 = vmatprep.subr.bf16.mxu0 %v4968_v45  ;;  %3582 = vmatprep.subr.bf16.mxu1 %v4970_v46  ;;  %v5054_v45 = vld [vmem:[%s7511_s1 + $0x304] ss:$16 sps:$4 sm:$0xff]   ;;  %v5057_v46 = vld [vmem:[%s7511_s1 + $0x30c] ss:$16 sps:$4 sm:$0xff]  }
  0x2b   :  { %3255 = vmatpush1.bf16.msra.mxu0 %v4972_v47  ;;  %3583 = vmatpush1.bf16.msra.mxu1 %v4973_v48  ;;  %v5052_v47 = vld [vmem:[%s7511_s1 + $0x300] ss:$16 sps:$4 sm:$0xff]   ;;  %v5055_v48 = vld [vmem:[%s7511_s1 + $0x308] ss:$16 sps:$4 sm:$0xff]  }
  0x2c   :  { %3256 = vmatprep.subr.bf16.mxu0 %v4974_v50  ;;  %3584 = vmatprep.subr.bf16.mxu1 %v4976_v51  ;;  %v5060_v50 = vld [vmem:[%s7511_s1 + $0x324] ss:$16 sps:$4 sm:$0xff]   ;;  %v5063_v51 = vld [vmem:[%s7511_s1 + $0x32c] ss:$16 sps:$4 sm:$0xff]  }
  0x2f   :  { %3257 = vmatpush1.bf16.msra.mxu0 %v4978_v53  ;;  %3585 = vmatpush1.bf16.msra.mxu1 %v4979_v55  ;;  %v5058_v53 = vld [vmem:[%s7511_s1 + $0x320] ss:$16 sps:$4 sm:$0xff]   ;;  %v5066_v55 = vld [vmem:[%s7511_s1 + $0x344] ss:$16 sps:$4 sm:$0xff]  }
  0x30   :  { %3258 = vmatprep.subr.bf16.mxu0 %v4980_v56  ;;  %3586 = vmatprep.subr.bf16.mxu1 %v4982_v57  ;;  %v5069_v56 = vld [vmem:[%s7511_s1 + $0x34c] ss:$16 sps:$4 sm:$0xff]   ;;  %v5064_v57 = vld [vmem:[%s7511_s1 + $0x340] ss:$16 sps:$4 sm:$0xff]  }
  0x33   :  { %3259 = vmatpush1.bf16.msra.mxu0 %v4984_v59  ;;  %3587 = vmatpush1.bf16.msra.mxu1 %v4985_v61  ;;  %v5072_v59 = vld [vmem:[%s7511_s1 + $0x364] ss:$16 sps:$4 sm:$0xff]   ;;  %v5070_v61 = vld [vmem:[%s7511_s1 + $0x360] ss:$16 sps:$4 sm:$0xff]  }
  0x34   :  { %3260 = vmatprep.subr.bf16.mxu0 %v4986_v62  ;;  %3588 = vmatprep.subr.bf16.mxu1 %v4988_v63  ;;  %v5073_v62 = vld [vmem:[%s7511_s1 + $0x368] ss:$16 sps:$4 sm:$0xff]   ;;  %v5078_v63 = vld [vmem:[%s7511_s1 + $0x384] ss:$16 sps:$4 sm:$0xff]  }
  0x37   :  { %3261 = vmatpush1.bf16.msra.mxu0 %v4990_v0  ;;  %3589 = vmatpush1.bf16.msra.mxu1 %v4991_v1  ;;  %v5081_v0 = vld [vmem:[%s7511_s1 + $0x38c] ss:$16 sps:$4 sm:$0xff]   ;;  %v5076_v1 = vld [vmem:[%s7511_s1 + $0x380] ss:$16 sps:$4 sm:$0xff]  }
  0x38   :  { %3262 = vmatprep.subr.bf16.mxu0 %v4992_v2  ;;  %3590 = vmatprep.subr.bf16.mxu1 %v4994_v3  ;;  %v5079_v2 = vld [vmem:[%s7511_s1 + $0x388] ss:$16 sps:$4 sm:$0xff]   ;;  %v5084_v3 = vld [vmem:[%s7511_s1 + $0x3a4] ss:$16 sps:$4 sm:$0xff]  }
  0x3b   :  { %3263 = vmatpush1.bf16.msra.mxu0 %v4996_v4  ;;  %3591 = vmatpush1.bf16.msra.mxu1 %v4997_v5  ;;  %v5087_v4 = vld [vmem:[%s7511_s1 + $0x3ac] ss:$16 sps:$4 sm:$0xff]   ;;  %v5082_v5 = vld [vmem:[%s7511_s1 + $0x3a0] ss:$16 sps:$4 sm:$0xff]  }
  0x3c   :  { %3264 = vmatprep.subr.bf16.mxu0 %v4998_v6  ;;  %3592 = vmatprep.subr.bf16.mxu1 %v5000_v7  ;;  %v5085_v6 = vld [vmem:[%s7511_s1 + $0x3a8] ss:$16 sps:$4 sm:$0xff]   ;;  %v5090_v7 = vld [vmem:[%s7511_s1 + $0x3c4] ss:$16 sps:$4 sm:$0xff]  }
  0x3f   :  { %3265 = vmatpush1.bf16.msra.mxu0 %v5002_v8  ;;  %3593 = vmatpush1.bf16.msra.mxu1 %v5003_v9  ;;  %v5093_v8 = vld [vmem:[%s7511_s1 + $0x3cc] ss:$16 sps:$4 sm:$0xff]   ;;  %v560_v9 = vcombine.high %v5912_v52, %v5912_v52 }
  0x40   :  { %3275 = vmatprep.subr.bf16.mxu0 %v5006_v10  ;;  %3603 = vmatprep.subr.bf16.mxu1 %v5009_v11  ;;  %v5088_v10 = vld [vmem:[%s7511_s1 + $0x3c0] ss:$16 sps:$4 sm:$0xff]   ;;  %v5091_v11 = vld [vmem:[%s7511_s1 + $0x3c8] ss:$16 sps:$4 sm:$0xff]   ;;  %v5099_v52 = vld [vmem:[%s7511_s1 + $0x3ec] ss:$16 sps:$4 sm:$0xff]  }
  0x42   :  { %3267 = vmatmul.mubr.bf16.vlgmr.msra.gmra.mrb[0].mxu0 %v5981_v13  ;;  %3595 = vmatmul.mubr.bf16.vlgmr.msra.gmra.mrb[0].mxu1 %v5981_v13 }
  0x43   :  { %3276 = vmatpush1.bf16.msra.mxu0 %v5004_v12  ;;  %3604 = vmatpush1.bf16.msra.mxu1 %v5007_v14  ;;  %v5096_v12 = vld [vmem:[%s7511_s1 + $0x3e4] ss:$16 sps:$4 sm:$0xff]   ;;  %v6165_v14 = vrot.slane %v560_v9, %v5901_v49  ;;  %v5175_v9 = vld [vmem:[%s7511_s1 + $0x588] ss:$16 sps:$4 sm:$0xff]  }
  0x44   :  { %3277 = vmatprep.subr.bf16.mxu0 %v5012_v15  ;;  %3605 = vmatprep.subr.bf16.mxu1 %v5015_v16  ;;  %v5094_v15 = vld [vmem:[%s7511_s1 + $0x3e0] ss:$16 sps:$4 sm:$0xff]   ;;  %v5097_v16 = vld [vmem:[%s7511_s1 + $0x3e8] ss:$16 sps:$4 sm:$0xff]  }
  0x45   :  { %3307 = vmatprep.mubr.bf16.mxu0 %v607_v17  ;;  %3635 = vmatprep.mubr.bf16.mxu1 %v607_v17  ;;  %v5102_v17 = vld [vmem:[%s7511_s1 + $0x404] ss:$16 sps:$4 sm:$0xff]  }
  0x47   :  { %3278 = vmatpush1.bf16.msra.mxu0 %v5010_v18  ;;  %3606 = vmatpush1.bf16.msra.mxu1 %v5013_v19  ;;  %v5105_v18 = vld [vmem:[%s7511_s1 + $0x40c] ss:$16 sps:$4 sm:$0xff]   ;;  %v576_v19 = vcombine.high %v6165_v14, %v6165_v14 }
  0x48   :  { %3279 = vmatprep.subr.bf16.mxu0 %v5018_v20  ;;  %3607 = vmatprep.subr.bf16.mxu1 %v5021_v21  ;;  %v5100_v20 = vld [vmem:[%s7511_s1 + $0x400] ss:$16 sps:$4 sm:$0xff]   ;;  %v605_v21 = vcombine.high %v5981_v13, %v5981_v13 }
  0x49   :  { %v5106_v13 = vld [vmem:[%s7511_s1 + $0x420] ss:$16 sps:$4 sm:$0xff]  }
  0x4b   :  { %3280 = vmatpush1.bf16.msra.mxu0 %v5016_v22  ;;  %3608 = vmatpush1.bf16.msra.mxu1 %v5019_v23  ;;  %v5103_v22 = vld [vmem:[%s7511_s1 + $0x408] ss:$16 sps:$4 sm:$0xff]   ;;  %v5108_v23 = vld [vmem:[%s7511_s1 + $0x424] ss:$16 sps:$4 sm:$0xff]  }
  0x4c   :  { %3281 = vmatprep.subr.bf16.mxu0 %v5024_v24  ;;  %3609 = vmatprep.subr.bf16.mxu1 %v5027_v25  ;;  %v5111_v24 = vld [vmem:[%s7511_s1 + $0x42c] ss:$16 sps:$4 sm:$0xff]   ;;  %v6196_v25 = vrot.slane %v576_v19, %v5901_v49  ;;  %v5192_v19 = vld [vmem:[%s7511_s1 + $0x5e4] ss:$16 sps:$4 sm:$0xff]  }
  0x4f   :  { %3282 = vmatpush1.bf16.msra.mxu0 %v5022_v26  ;;  %3610 = vmatpush1.bf16.msra.mxu1 %v5025_v27  ;;  %v5109_v26 = vld [vmem:[%s7511_s1 + $0x428] ss:$16 sps:$4 sm:$0xff]   ;;  %v5114_v27 = vld [vmem:[%s7511_s1 + $0x444] ss:$16 sps:$4 sm:$0xff]  }
  0x50   :  { %3283 = vmatprep.subr.bf16.mxu0 %v5030_v28  ;;  %3611 = vmatprep.subr.bf16.mxu1 %v5033_v29  ;;  %v5117_v28 = vld [vmem:[%s7511_s1 + $0x44c] ss:$16 sps:$4 sm:$0xff]   ;;  %v5112_v29 = vld [vmem:[%s7511_s1 + $0x440] ss:$16 sps:$4 sm:$0xff]  }
  0x53   :  { %3284 = vmatpush1.bf16.msra.mxu0 %v5028_v30  ;;  %3612 = vmatpush1.bf16.msra.mxu1 %v5031_v31  ;;  %v5115_v30 = vld [vmem:[%s7511_s1 + $0x448] ss:$16 sps:$4 sm:$0xff]   ;;  %v5120_v31 = vld [vmem:[%s7511_s1 + $0x464] ss:$16 sps:$4 sm:$0xff]  }
  0x54   :  { %3285 = vmatprep.subr.bf16.mxu0 %v5036_v32  ;;  %3613 = vmatprep.subr.bf16.mxu1 %v5039_v33  ;;  %v5123_v32 = vld [vmem:[%s7511_s1 + $0x46c] ss:$16 sps:$4 sm:$0xff]   ;;  %v5118_v33 = vld [vmem:[%s7511_s1 + $0x460] ss:$16 sps:$4 sm:$0xff]  }
  0x57   :  { %3286 = vmatpush1.bf16.msra.mxu0 %v5034_v34  ;;  %3614 = vmatpush1.bf16.msra.mxu1 %v5037_v35  ;;  %v5121_v34 = vld [vmem:[%s7511_s1 + $0x468] ss:$16 sps:$4 sm:$0xff]   ;;  %v5126_v35 = vld [vmem:[%s7511_s1 + $0x484] ss:$16 sps:$4 sm:$0xff]  }
  0x58   :  { %3287 = vmatprep.subr.bf16.mxu0 %v5042_v36  ;;  %3615 = vmatprep.subr.bf16.mxu1 %v5045_v37  ;;  %v5129_v36 = vld [vmem:[%s7511_s1 + $0x48c] ss:$16 sps:$4 sm:$0xff]   ;;  %v5124_v37 = vld [vmem:[%s7511_s1 + $0x480] ss:$16 sps:$4 sm:$0xff]  }
  0x5b   :  { %3288 = vmatpush1.bf16.msra.mxu0 %v5040_v38  ;;  %3616 = vmatpush1.bf16.msra.mxu1 %v5043_v39  ;;  %v5127_v38 = vld [vmem:[%s7511_s1 + $0x488] ss:$16 sps:$4 sm:$0xff]   ;;  %v5132_v39 = vld [vmem:[%s7511_s1 + $0x4a4] ss:$16 sps:$4 sm:$0xff]  }
  0x5c   :  { %3289 = vmatprep.subr.bf16.mxu0 %v5048_v40  ;;  %3617 = vmatprep.subr.bf16.mxu1 %v5051_v41  ;;  %v5135_v40 = vld [vmem:[%s7511_s1 + $0x4ac] ss:$16 sps:$4 sm:$0xff]   ;;  %v5130_v41 = vld [vmem:[%s7511_s1 + $0x4a0] ss:$16 sps:$4 sm:$0xff]  }
  0x5f   :  { %3290 = vmatpush1.bf16.msra.mxu0 %v5046_v43  ;;  %3618 = vmatpush1.bf16.msra.mxu1 %v5049_v44  ;;  %v5133_v43 = vld [vmem:[%s7511_s1 + $0x4a8] ss:$16 sps:$4 sm:$0xff]   ;;  %v5138_v44 = vld [vmem:[%s7511_s1 + $0x4c4] ss:$16 sps:$4 sm:$0xff]  }
  0x60   :  { %3291 = vmatprep.subr.bf16.mxu0 %v5054_v45  ;;  %3619 = vmatprep.subr.bf16.mxu1 %v5057_v46  ;;  %v5141_v45 = vld [vmem:[%s7511_s1 + $0x4cc] ss:$16 sps:$4 sm:$0xff]   ;;  %v5136_v46 = vld [vmem:[%s7511_s1 + $0x4c0] ss:$16 sps:$4 sm:$0xff]  }
  0x63   :  { %3292 = vmatpush1.bf16.msra.mxu0 %v5052_v47  ;;  %3620 = vmatpush1.bf16.msra.mxu1 %v5055_v48  ;;  %v5139_v47 = vld [vmem:[%s7511_s1 + $0x4c8] ss:$16 sps:$4 sm:$0xff]   ;;  %v5144_v48 = vld [vmem:[%s7511_s1 + $0x4e4] ss:$16 sps:$4 sm:$0xff]  }
  0x64   :  { %3293 = vmatprep.subr.bf16.mxu0 %v5060_v50  ;;  %3621 = vmatprep.subr.bf16.mxu1 %v5063_v51  ;;  %v5147_v50 = vld [vmem:[%s7511_s1 + $0x4ec] ss:$16 sps:$4 sm:$0xff]   ;;  %v5142_v51 = vld [vmem:[%s7511_s1 + $0x4e0] ss:$16 sps:$4 sm:$0xff]  }
  0x67   :  { %3294 = vmatpush1.bf16.msra.mxu0 %v5058_v53  ;;  %3622 = vmatpush1.bf16.msra.mxu1 %v5061_v54  ;;  %v5145_v53 = vld [vmem:[%s7511_s1 + $0x4e8] ss:$16 sps:$4 sm:$0xff]   ;;  %v5150_v54 = vld [vmem:[%s7511_s1 + $0x504] ss:$16 sps:$4 sm:$0xff]  }
  0x68   :  { %3295 = vmatprep.subr.bf16.mxu0 %v5066_v55  ;;  %3623 = vmatprep.subr.bf16.mxu1 %v5069_v56  ;;  %v5153_v55 = vld [vmem:[%s7511_s1 + $0x50c] ss:$16 sps:$4 sm:$0xff]   ;;  %v5148_v56 = vld [vmem:[%s7511_s1 + $0x500] ss:$16 sps:$4 sm:$0xff]  }
  0x6b   :  { %3296 = vmatpush1.bf16.msra.mxu0 %v5064_v57  ;;  %3624 = vmatpush1.bf16.msra.mxu1 %v5067_v58  ;;  %v5151_v57 = vld [vmem:[%s7511_s1 + $0x508] ss:$16 sps:$4 sm:$0xff]   ;;  %v5156_v58 = vld [vmem:[%s7511_s1 + $0x524] ss:$16 sps:$4 sm:$0xff]  }
  0x6c   :  { %3297 = vmatprep.subr.bf16.mxu0 %v5072_v59  ;;  %3625 = vmatprep.subr.bf16.mxu1 %v5075_v60  ;;  %v5159_v59 = vld [vmem:[%s7511_s1 + $0x52c] ss:$16 sps:$4 sm:$0xff]   ;;  %v5154_v60 = vld [vmem:[%s7511_s1 + $0x520] ss:$16 sps:$4 sm:$0xff]  }
  0x6f   :  { %3298 = vmatpush1.bf16.msra.mxu0 %v5070_v61  ;;  %3626 = vmatpush1.bf16.msra.mxu1 %v5073_v62  ;;  %v5157_v61 = vld [vmem:[%s7511_s1 + $0x528] ss:$16 sps:$4 sm:$0xff]   ;;  %v5162_v62 = vld [vmem:[%s7511_s1 + $0x544] ss:$16 sps:$4 sm:$0xff]  }
  0x70   :  { %3299 = vmatprep.subr.bf16.mxu0 %v5078_v63  ;;  %3627 = vmatprep.subr.bf16.mxu1 %v5081_v0  ;;  %v5165_v63 = vld [vmem:[%s7511_s1 + $0x54c] ss:$16 sps:$4 sm:$0xff]   ;;  %v5160_v0 = vld [vmem:[%s7511_s1 + $0x540] ss:$16 sps:$4 sm:$0xff]  }
  0x73   :  { %3300 = vmatpush1.bf16.msra.mxu0 %v5076_v1  ;;  %3628 = vmatpush1.bf16.msra.mxu1 %v5079_v2  ;;  %v5163_v1 = vld [vmem:[%s7511_s1 + $0x548] ss:$16 sps:$4 sm:$0xff]   ;;  %v5168_v2 = vld [vmem:[%s7511_s1 + $0x564] ss:$16 sps:$4 sm:$0xff]  }
  0x74   :  { %3301 = vmatprep.subr.bf16.mxu0 %v5084_v3  ;;  %3629 = vmatprep.subr.bf16.mxu1 %v5087_v4  ;;  %v5171_v3 = vld [vmem:[%s7511_s1 + $0x56c] ss:$16 sps:$4 sm:$0xff]   ;;  %v5166_v4 = vld [vmem:[%s7511_s1 + $0x560] ss:$16 sps:$4 sm:$0xff]  }
  0x77   :  { %3302 = vmatpush1.bf16.msra.mxu0 %v5082_v5  ;;  %3630 = vmatpush1.bf16.msra.mxu1 %v5085_v6  ;;  %v5169_v5 = vld [vmem:[%s7511_s1 + $0x568] ss:$16 sps:$4 sm:$0xff]   ;;  %v5174_v6 = vld [vmem:[%s7511_s1 + $0x584] ss:$16 sps:$4 sm:$0xff]  }
  0x78   :  { %3303 = vmatprep.subr.bf16.mxu0 %v5090_v7  ;;  %3631 = vmatprep.subr.bf16.mxu1 %v5093_v8  ;;  %v5177_v7 = vld [vmem:[%s7511_s1 + $0x58c] ss:$16 sps:$4 sm:$0xff]   ;;  %v5172_v8 = vld [vmem:[%s7511_s1 + $0x580] ss:$16 sps:$4 sm:$0xff]  }
  0x7b   :  { %3304 = vmatpush1.bf16.msra.mxu0 %v5088_v10  ;;  %3632 = vmatpush1.bf16.msra.mxu1 %v5091_v11  ;;  %v5180_v10 = vld [vmem:[%s7511_s1 + $0x5a4] ss:$16 sps:$4 sm:$0xff]   ;;  %v5183_v11 = vld [vmem:[%s7511_s1 + $0x5ac] ss:$16 sps:$4 sm:$0xff]  }
  0x7c   :  { %3305 = vmatprep.subr.bf16.mxu0 %v5096_v12  ;;  %3633 = vmatprep.subr.bf16.mxu1 %v5099_v52  ;;  %v5178_v12 = vld [vmem:[%s7511_s1 + $0x5a0] ss:$16 sps:$4 sm:$0xff]   ;;  %v5181_v52 = vld [vmem:[%s7511_s1 + $0x5a8] ss:$16 sps:$4 sm:$0xff]  }
  0x7f   :  { %3306 = vmatpush1.bf16.msra.mxu0 %v5094_v15  ;;  %3634 = vmatpush1.bf16.msra.mxu1 %v5097_v16  ;;  %v5186_v15 = vld [vmem:[%s7511_s1 + $0x5c4] ss:$16 sps:$4 sm:$0xff]   ;;  %v5189_v16 = vld [vmem:[%s7511_s1 + $0x5cc] ss:$16 sps:$4 sm:$0xff]  }
  0x80   :  { %3316 = vmatprep.subr.bf16.mxu0 %v5102_v17  ;;  %3644 = vmatprep.subr.bf16.mxu1 %v5105_v18  ;;  %v5184_v17 = vld [vmem:[%s7511_s1 + $0x5c0] ss:$16 sps:$4 sm:$0xff]   ;;  %v5187_v18 = vld [vmem:[%s7511_s1 + $0x5c8] ss:$16 sps:$4 sm:$0xff]  }
  0x82   :  { %3308 = vmatmul.mubr.bf16.vlgmr.msra.gmra.mrb[0].mxu0 %v605_v21  ;;  %3636 = vmatmul.mubr.bf16.vlgmr.msra.gmra.mrb[0].mxu1 %v605_v21  ;;  %v5190_v21 = vld [vmem:[%s7511_s1 + $0x5e0] ss:$16 sps:$4 sm:$0xff]  }
  0x83   :  { %3317 = vmatpush1.bf16.msra.mxu0 %v5100_v20  ;;  %3645 = vmatpush1.bf16.msra.mxu1 %v5103_v22  ;;  %v5195_v20 = vld [vmem:[%s7511_s1 + $0x5ec] ss:$16 sps:$4 sm:$0xff]   ;;  %v5193_v22 = vld [vmem:[%s7511_s1 + $0x5e8] ss:$16 sps:$4 sm:$0xff]  }
  0x84   :  { %3318 = vmatprep.subr.bf16.mxu0 %v5108_v23  ;;  %3646 = vmatprep.subr.bf16.mxu1 %v5111_v24  ;;  %v5199_v23 = vld [vmem:[%s7511_s1 + $0x604] ss:$16 sps:$4 sm:$0xff]   ;;  %v5202_v24 = vld [vmem:[%s7511_s1 + $0x60c] ss:$16 sps:$4 sm:$0xff]  }
  0x85   :  { %3348 = vmatprep.mubr.bf16.mxu0 %v6196_v25  ;;  %3676 = vmatprep.mubr.bf16.mxu1 %v6196_v25 }
  0x87   :  { %3319 = vmatpush1.bf16.msra.mxu0 %v5106_v13  ;;  %3647 = vmatpush1.bf16.msra.mxu1 %v5109_v26  ;;  %v5197_v13 = vld [vmem:[%s7511_s1 + $0x600] ss:$16 sps:$4 sm:$0xff]   ;;  %v6385_v26 = vrot.slane %v6165_v14, %v5901_v49  ;;  %v608_v14 = vcombine.high %v6196_v25, %v6196_v25  ;;  %v5211_v25 = vld [vmem:[%s7511_s1 + $0x644] ss:$16 sps:$4 sm:$0xff]  }
  0x88   :  { %3320 = vmatprep.subr.bf16.mxu0 %v5114_v27  ;;  %3648 = vmatprep.subr.bf16.mxu1 %v5117_v28  ;;  %v5200_v27 = vld [vmem:[%s7511_s1 + $0x608] ss:$16 sps:$4 sm:$0xff]   ;;  %v5205_v28 = vld [vmem:[%s7511_s1 + $0x624] ss:$16 sps:$4 sm:$0xff]  }
  0x8b   :  { %3321 = vmatpush1.bf16.msra.mxu0 %v5112_v29  ;;  %3649 = vmatpush1.bf16.msra.mxu1 %v5115_v30  ;;  %v5208_v29 = vld [vmem:[%s7511_s1 + $0x62c] ss:$16 sps:$4 sm:$0xff]   ;;  %v5203_v30 = vld [vmem:[%s7511_s1 + $0x620] ss:$16 sps:$4 sm:$0xff]  }
  0x8c   :  { %3322 = vmatprep.subr.bf16.mxu0 %v5120_v31  ;;  %3650 = vmatprep.subr.bf16.mxu1 %v5123_v32  ;;  %v5206_v31 = vld [vmem:[%s7511_s1 + $0x628] ss:$16 sps:$4 sm:$0xff]   ;;  %v5214_v32 = vld [vmem:[%s7511_s1 + $0x64c] ss:$16 sps:$4 sm:$0xff]  }
  0x8f   :  { %3323 = vmatpush1.bf16.msra.mxu0 %v5118_v33  ;;  %3651 = vmatpush1.bf16.msra.mxu1 %v5121_v34  ;;  %v5209_v33 = vld [vmem:[%s7511_s1 + $0x640] ss:$16 sps:$4 sm:$0xff]   ;;  %v5212_v34 = vld [vmem:[%s7511_s1 + $0x648] ss:$16 sps:$4 sm:$0xff]  }
  0x90   :  { %3324 = vmatprep.subr.bf16.mxu0 %v5126_v35  ;;  %3652 = vmatprep.subr.bf16.mxu1 %v5129_v36  ;;  %v5217_v35 = vld [vmem:[%s7511_s1 + $0x664] ss:$16 sps:$4 sm:$0xff]   ;;  %v5220_v36 = vld [vmem:[%s7511_s1 + $0x66c] ss:$16 sps:$4 sm:$0xff]  }
  0x93   :  { %3325 = vmatpush1.bf16.msra.mxu0 %v5124_v37  ;;  %3653 = vmatpush1.bf16.msra.mxu1 %v5127_v38  ;;  %v5215_v37 = vld [vmem:[%s7511_s1 + $0x660] ss:$16 sps:$4 sm:$0xff]   ;;  %v5218_v38 = vld [vmem:[%s7511_s1 + $0x668] ss:$16 sps:$4 sm:$0xff]  }
  0x94   :  { %3326 = vmatprep.subr.bf16.mxu0 %v5132_v39  ;;  %3654 = vmatprep.subr.bf16.mxu1 %v5135_v40  ;;  %v5223_v39 = vld [vmem:[%s7511_s1 + $0x684] ss:$16 sps:$4 sm:$0xff]   ;;  %v5226_v40 = vld [vmem:[%s7511_s1 + $0x68c] ss:$16 sps:$4 sm:$0xff]  }
  0x97   :  { %3327 = vmatpush1.bf16.msra.mxu0 %v5130_v41  ;;  %3655 = vmatpush1.bf16.msra.mxu1 %v5133_v43  ;;  %v5221_v41 = vld [vmem:[%s7511_s1 + $0x680] ss:$16 sps:$4 sm:$0xff]   ;;  %v5224_v43 = vld [vmem:[%s7511_s1 + $0x688] ss:$16 sps:$4 sm:$0xff]  }
  0x98   :  { %3328 = vmatprep.subr.bf16.mxu0 %v5138_v44  ;;  %3656 = vmatprep.subr.bf16.mxu1 %v5141_v45  ;;  %v5229_v44 = vld [vmem:[%s7511_s1 + $0x6a4] ss:$16 sps:$4 sm:$0xff]   ;;  %v5232_v45 = vld [vmem:[%s7511_s1 + $0x6ac] ss:$16 sps:$4 sm:$0xff]  }
  0x9b   :  { %3329 = vmatpush1.bf16.msra.mxu0 %v5136_v46  ;;  %3657 = vmatpush1.bf16.msra.mxu1 %v5139_v47  ;;  %v5227_v46 = vld [vmem:[%s7511_s1 + $0x6a0] ss:$16 sps:$4 sm:$0xff]   ;;  %v5230_v47 = vld [vmem:[%s7511_s1 + $0x6a8] ss:$16 sps:$4 sm:$0xff]  }
  0x9c   :  { %3330 = vmatprep.subr.bf16.mxu0 %v5144_v48  ;;  %3658 = vmatprep.subr.bf16.mxu1 %v5147_v50  ;;  %v5235_v48 = vld [vmem:[%s7511_s1 + $0x6c4] ss:$16 sps:$4 sm:$0xff]   ;;  %v5238_v50 = vld [vmem:[%s7511_s1 + $0x6cc] ss:$16 sps:$4 sm:$0xff]  }
  0x9f   :  { %3331 = vmatpush1.bf16.msra.mxu0 %v5142_v51  ;;  %3659 = vmatpush1.bf16.msra.mxu1 %v5145_v53  ;;  %v5233_v51 = vld [vmem:[%s7511_s1 + $0x6c0] ss:$16 sps:$4 sm:$0xff]   ;;  %v5236_v53 = vld [vmem:[%s7511_s1 + $0x6c8] ss:$16 sps:$4 sm:$0xff]  }
  0xa0   :  { %3332 = vmatprep.subr.bf16.mxu0 %v5150_v54  ;;  %3660 = vmatprep.subr.bf16.mxu1 %v5153_v55  ;;  %v5241_v54 = vld [vmem:[%s7511_s1 + $0x6e4] ss:$16 sps:$4 sm:$0xff]   ;;  %v5244_v55 = vld [vmem:[%s7511_s1 + $0x6ec] ss:$16 sps:$4 sm:$0xff]  }
  0xa3   :  { %3333 = vmatpush1.bf16.msra.mxu0 %v5148_v56  ;;  %3661 = vmatpush1.bf16.msra.mxu1 %v5151_v57  ;;  %v5239_v56 = vld [vmem:[%s7511_s1 + $0x6e0] ss:$16 sps:$4 sm:$0xff]   ;;  %v5242_v57 = vld [vmem:[%s7511_s1 + $0x6e8] ss:$16 sps:$4 sm:$0xff]  }
  0xa4   :  { %3334 = vmatprep.subr.bf16.mxu0 %v5156_v58  ;;  %3662 = vmatprep.subr.bf16.mxu1 %v5159_v59  ;;  %v5247_v58 = vld [vmem:[%s7511_s1 + $0x704] ss:$16 sps:$4 sm:$0xff]   ;;  %v5250_v59 = vld [vmem:[%s7511_s1 + $0x70c] ss:$16 sps:$4 sm:$0xff]  }
  0xa7   :  { %3335 = vmatpush1.bf16.msra.mxu0 %v5154_v60  ;;  %3663 = vmatpush1.bf16.msra.mxu1 %v5157_v61  ;;  %v5245_v60 = vld [vmem:[%s7511_s1 + $0x700] ss:$16 sps:$4 sm:$0xff]   ;;  %v5248_v61 = vld [vmem:[%s7511_s1 + $0x708] ss:$16 sps:$4 sm:$0xff]  }
  0xa8   :  { %3336 = vmatprep.subr.bf16.mxu0 %v5162_v62  ;;  %3664 = vmatprep.subr.bf16.mxu1 %v5165_v63  ;;  %v5253_v62 = vld [vmem:[%s7511_s1 + $0x724] ss:$16 sps:$4 sm:$0xff]   ;;  %v5256_v63 = vld [vmem:[%s7511_s1 + $0x72c] ss:$16 sps:$4 sm:$0xff]  }
  0xab   :  { %3337 = vmatpush1.bf16.msra.mxu0 %v5160_v0  ;;  %3665 = vmatpush1.bf16.msra.mxu1 %v5163_v1  ;;  %v5251_v0 = vld [vmem:[%s7511_s1 + $0x720] ss:$16 sps:$4 sm:$0xff]   ;;  %v5254_v1 = vld [vmem:[%s7511_s1 + $0x728] ss:$16 sps:$4 sm:$0xff]  }
  0xac   :  { %3338 = vmatprep.subr.bf16.mxu0 %v5168_v2  ;;  %3666 = vmatprep.subr.bf16.mxu1 %v5171_v3  ;;  %v5259_v2 = vld [vmem:[%s7511_s1 + $0x744] ss:$16 sps:$4 sm:$0xff]   ;;  %v5262_v3 = vld [vmem:[%s7511_s1 + $0x74c] ss:$16 sps:$4 sm:$0xff]  }
  0xaf   :  { %3339 = vmatpush1.bf16.msra.mxu0 %v5166_v4  ;;  %3667 = vmatpush1.bf16.msra.mxu1 %v5169_v5  ;;  %v5257_v4 = vld [vmem:[%s7511_s1 + $0x740] ss:$16 sps:$4 sm:$0xff]   ;;  %v5260_v5 = vld [vmem:[%s7511_s1 + $0x748] ss:$16 sps:$4 sm:$0xff]  }
  0xb0   :  { %3340 = vmatprep.subr.bf16.mxu0 %v5174_v6  ;;  %3668 = vmatprep.subr.bf16.mxu1 %v5177_v7  ;;  %v5265_v6 = vld [vmem:[%s7511_s1 + $0x764] ss:$16 sps:$4 sm:$0xff]   ;;  %v5268_v7 = vld [vmem:[%s7511_s1 + $0x76c] ss:$16 sps:$4 sm:$0xff]  }
  0xb3   :  { %3341 = vmatpush1.bf16.msra.mxu0 %v5172_v8  ;;  %3669 = vmatpush1.bf16.msra.mxu1 %v5175_v9  ;;  %v5263_v8 = vld [vmem:[%s7511_s1 + $0x760] ss:$16 sps:$4 sm:$0xff]   ;;  %v5266_v9 = vld [vmem:[%s7511_s1 + $0x768] ss:$16 sps:$4 sm:$0xff]  }
  0xb4   :  { %3342 = vmatprep.subr.bf16.mxu0 %v5180_v10  ;;  %3670 = vmatprep.subr.bf16.mxu1 %v5183_v11  ;;  %v5271_v10 = vld [vmem:[%s7511_s1 + $0x784] ss:$16 sps:$4 sm:$0xff]   ;;  %v5274_v11 = vld [vmem:[%s7511_s1 + $0x78c] ss:$16 sps:$4 sm:$0xff]  }
  0xb7   :  { %3343 = vmatpush1.bf16.msra.mxu0 %v5178_v12  ;;  %3671 = vmatpush1.bf16.msra.mxu1 %v5181_v52  ;;  %v5269_v12 = vld [vmem:[%s7511_s1 + $0x780] ss:$16 sps:$4 sm:$0xff]   ;;  %v5272_v52 = vld [vmem:[%s7511_s1 + $0x788] ss:$16 sps:$4 sm:$0xff]  }
  0xb8   :  { %3344 = vmatprep.subr.bf16.mxu0 %v5186_v15  ;;  %3672 = vmatprep.subr.bf16.mxu1 %v5189_v16  ;;  %v5277_v15 = vld [vmem:[%s7511_s1 + $0x7a4] ss:$16 sps:$4 sm:$0xff]   ;;  %v5280_v16 = vld [vmem:[%s7511_s1 + $0x7ac] ss:$16 sps:$4 sm:$0xff]  }
  0xbb   :  { %3345 = vmatpush1.bf16.msra.mxu0 %v5184_v17  ;;  %3673 = vmatpush1.bf16.msra.mxu1 %v5187_v18  ;;  %v5275_v17 = vld [vmem:[%s7511_s1 + $0x7a0] ss:$16 sps:$4 sm:$0xff]   ;;  %v5278_v18 = vld [vmem:[%s7511_s1 + $0x7a8] ss:$16 sps:$4 sm:$0xff]  }
  0xbc   :  { %3346 = vmatprep.subr.bf16.mxu0 %v5192_v19  ;;  %3674 = vmatprep.subr.bf16.mxu1 %v5195_v20  ;;  %v5283_v19 = vld [vmem:[%s7511_s1 + $0x7c4] ss:$16 sps:$4 sm:$0xff]   ;;  %v5286_v20 = vld [vmem:[%s7511_s1 + $0x7cc] ss:$16 sps:$4 sm:$0xff]  }
  0xbf   :  { %3347 = vmatpush1.bf16.msra.mxu0 %v5190_v21  ;;  %3675 = vmatpush1.bf16.msra.mxu1 %v5193_v22  ;;  %v6559_v21 = vld [vmem:[%s7510_s0 + $0x8] sm:$0xff]  ;;  %v5281_v22 = vld [vmem:[%s7511_s1 + $0x7c0] ss:$16 sps:$4 sm:$0xff]  }
  0xc0   :  { %3357 = vmatprep.subr.bf16.mxu0 %v5199_v23  ;;  %3685 = vmatprep.subr.bf16.mxu1 %v5202_v24  ;;  %v5284_v23 = vld [vmem:[%s7511_s1 + $0x7c8] ss:$16 sps:$4 sm:$0xff]   ;;  %v5289_v24 = vld [vmem:[%s7511_s1 + $0x7e4] ss:$16 sps:$4 sm:$0xff]  }
  0xc2   :  { %3349 = vmatmul.mubr.bf16.vlgmr.msra.gmra.mrb[0].mxu0 %v6385_v26  ;;  %3677 = vmatmul.mubr.bf16.vlgmr.msra.gmra.mrb[0].mxu1 %v6385_v26 }
  0xc3   :  { %3358 = vmatpush1.bf16.msra.mxu0 %v5197_v13  ;;  %3686 = vmatpush1.bf16.msra.mxu1 %v5200_v27  ;;  %v5292_v13 = vld [vmem:[%s7511_s1 + $0x7ec] ss:$16 sps:$4 sm:$0xff]   ;;  %v6575_v27 = vrot.slane %v6559_v21, %v5901_v49 }
  0xc4   :  { %3359 = vmatprep.subr.bf16.mxu0 %v5205_v28  ;;  %3687 = vmatprep.subr.bf16.mxu1 %v5208_v29  ;;  %v5287_v28 = vld [vmem:[%s7511_s1 + $0x7e0] ss:$16 sps:$4 sm:$0xff]   ;;  %v5290_v29 = vld [vmem:[%s7511_s1 + $0x7e8] ss:$16 sps:$4 sm:$0xff]  }
  0xc5   :  { %3389 = vmatprep.mubr.bf16.mxu0 %v608_v14  ;;  %3717 = vmatprep.mubr.bf16.mxu1 %v608_v14  ;;  %v5295_v14 = vld [vmem:[%s7511_s1 + $0x804] ss:$16 sps:$4 sm:$0xff]  }
  0xc7   :  { %3360 = vmatpush1.bf16.msra.mxu0 %v5203_v30  ;;  %3688 = vmatpush1.bf16.msra.mxu1 %v5206_v31  ;;  %v5298_v30 = vld [vmem:[%s7511_s1 + $0x80c] ss:$16 sps:$4 sm:$0xff]   ;;  %v624_v31 = vcombine.high %v6575_v27, %v6575_v27 }
  0xc8   :  { %3361 = vmatprep.subr.bf16.mxu0 %v5211_v25  ;;  %3689 = vmatprep.subr.bf16.mxu1 %v5214_v32  ;;  %v606_v25 = vcombine.high %v6385_v26, %v6385_v26  ;;  %v5293_v32 = vld [vmem:[%s7511_s1 + $0x800] ss:$16 sps:$4 sm:$0xff]   ;;  %v5304_v26 = vld [vmem:[%s7511_s1 + $0x82c] ss:$16 sps:$4 sm:$0xff]  }
  0xcb   :  { %3362 = vmatpush1.bf16.msra.mxu0 %v5209_v33  ;;  %3690 = vmatpush1.bf16.msra.mxu1 %v5212_v34  ;;  %v5296_v33 = vld [vmem:[%s7511_s1 + $0x808] ss:$16 sps:$4 sm:$0xff]   ;;  %v5301_v34 = vld [vmem:[%s7511_s1 + $0x824] ss:$16 sps:$4 sm:$0xff]  }
  0xcc   :  { %3363 = vmatprep.subr.bf16.mxu0 %v5217_v35  ;;  %3691 = vmatprep.subr.bf16.mxu1 %v5220_v36  ;;  %v6606_v35 = vrot.slane %v624_v31, %v5901_v49  ;;  %v5299_v36 = vld [vmem:[%s7511_s1 + $0x820] ss:$16 sps:$4 sm:$0xff]   ;;  %v5380_v31 = vld [vmem:[%s7511_s1 + $0x9c8] ss:$16 sps:$4 sm:$0xff]  }
  0xcf   :  { %3364 = vmatpush1.bf16.msra.mxu0 %v5215_v37  ;;  %3692 = vmatpush1.bf16.msra.mxu1 %v5218_v38  ;;  %v5302_v37 = vld [vmem:[%s7511_s1 + $0x828] ss:$16 sps:$4 sm:$0xff]   ;;  %v5307_v38 = vld [vmem:[%s7511_s1 + $0x844] ss:$16 sps:$4 sm:$0xff]  }
  0xd0   :  { %3365 = vmatprep.subr.bf16.mxu0 %v5223_v39  ;;  %3693 = vmatprep.subr.bf16.mxu1 %v5226_v40  ;;  %v5310_v39 = vld [vmem:[%s7511_s1 + $0x84c] ss:$16 sps:$4 sm:$0xff]   ;;  %v5305_v40 = vld [vmem:[%s7511_s1 + $0x840] ss:$16 sps:$4 sm:$0xff]  }
  0xd3   :  { %3366 = vmatpush1.bf16.msra.mxu0 %v5221_v41  ;;  %3694 = vmatpush1.bf16.msra.mxu1 %v5224_v43  ;;  %v5308_v41 = vld [vmem:[%s7511_s1 + $0x848] ss:$16 sps:$4 sm:$0xff]   ;;  %v5313_v43 = vld [vmem:[%s7511_s1 + $0x864] ss:$16 sps:$4 sm:$0xff]  }
  0xd4   :  { %3367 = vmatprep.subr.bf16.mxu0 %v5229_v44  ;;  %3695 = vmatprep.subr.bf16.mxu1 %v5232_v45  ;;  %v5316_v44 = vld [vmem:[%s7511_s1 + $0x86c] ss:$16 sps:$4 sm:$0xff]   ;;  %v5311_v45 = vld [vmem:[%s7511_s1 + $0x860] ss:$16 sps:$4 sm:$0xff]  }
  0xd7   :  { %3368 = vmatpush1.bf16.msra.mxu0 %v5227_v46  ;;  %3696 = vmatpush1.bf16.msra.mxu1 %v5230_v47  ;;  %v5314_v46 = vld [vmem:[%s7511_s1 + $0x868] ss:$16 sps:$4 sm:$0xff]   ;;  %v5319_v47 = vld [vmem:[%s7511_s1 + $0x884] ss:$16 sps:$4 sm:$0xff]  }
  0xd8   :  { %3369 = vmatprep.subr.bf16.mxu0 %v5235_v48  ;;  %3697 = vmatprep.subr.bf16.mxu1 %v5238_v50  ;;  %v5322_v48 = vld [vmem:[%s7511_s1 + $0x88c] ss:$16 sps:$4 sm:$0xff]   ;;  %v5317_v50 = vld [vmem:[%s7511_s1 + $0x880] ss:$16 sps:$4 sm:$0xff]  }
  0xdb   :  { %3370 = vmatpush1.bf16.msra.mxu0 %v5233_v51  ;;  %3698 = vmatpush1.bf16.msra.mxu1 %v5236_v53  ;;  %v5320_v51 = vld [vmem:[%s7511_s1 + $0x888] ss:$16 sps:$4 sm:$0xff]   ;;  %v5325_v53 = vld [vmem:[%s7511_s1 + $0x8a4] ss:$16 sps:$4 sm:$0xff]  }
  0xdc   :  { %3371 = vmatprep.subr.bf16.mxu0 %v5241_v54  ;;  %3699 = vmatprep.subr.bf16.mxu1 %v5244_v55  ;;  %v5328_v54 = vld [vmem:[%s7511_s1 + $0x8ac] ss:$16 sps:$4 sm:$0xff]   ;;  %v5323_v55 = vld [vmem:[%s7511_s1 + $0x8a0] ss:$16 sps:$4 sm:$0xff]  }
  0xdf   :  { %3372 = vmatpush1.bf16.msra.mxu0 %v5239_v56  ;;  %3700 = vmatpush1.bf16.msra.mxu1 %v5242_v57  ;;  %v5326_v56 = vld [vmem:[%s7511_s1 + $0x8a8] ss:$16 sps:$4 sm:$0xff]   ;;  %v5331_v57 = vld [vmem:[%s7511_s1 + $0x8c4] ss:$16 sps:$4 sm:$0xff]  }
  0xe0   :  { %3373 = vmatprep.subr.bf16.mxu0 %v5247_v58  ;;  %3701 = vmatprep.subr.bf16.mxu1 %v5250_v59  ;;  %v5334_v58 = vld [vmem:[%s7511_s1 + $0x8cc] ss:$16 sps:$4 sm:$0xff]   ;;  %v5329_v59 = vld [vmem:[%s7511_s1 + $0x8c0] ss:$16 sps:$4 sm:$0xff]  }
  0xe3   :  { %3374 = vmatpush1.bf16.msra.mxu0 %v5245_v60  ;;  %3702 = vmatpush1.bf16.msra.mxu1 %v5248_v61  ;;  %v5332_v60 = vld [vmem:[%s7511_s1 + $0x8c8] ss:$16 sps:$4 sm:$0xff]   ;;  %v5337_v61 = vld [vmem:[%s7511_s1 + $0x8e4] ss:$16 sps:$4 sm:$0xff]  }
  0xe4   :  { %3375 = vmatprep.subr.bf16.mxu0 %v5253_v62  ;;  %3703 = vmatprep.subr.bf16.mxu1 %v5256_v63  ;;  %v5340_v62 = vld [vmem:[%s7511_s1 + $0x8ec] ss:$16 sps:$4 sm:$0xff]   ;;  %v5335_v63 = vld [vmem:[%s7511_s1 + $0x8e0] ss:$16 sps:$4 sm:$0xff]  }
  0xe7   :  { %3376 = vmatpush1.bf16.msra.mxu0 %v5251_v0  ;;  %3704 = vmatpush1.bf16.msra.mxu1 %v5254_v1  ;;  %v5338_v0 = vld [vmem:[%s7511_s1 + $0x8e8] ss:$16 sps:$4 sm:$0xff]   ;;  %v5343_v1 = vld [vmem:[%s7511_s1 + $0x904] ss:$16 sps:$4 sm:$0xff]  }
  0xe8   :  { %3377 = vmatprep.subr.bf16.mxu0 %v5259_v2  ;;  %3705 = vmatprep.subr.bf16.mxu1 %v5262_v3  ;;  %v5346_v2 = vld [vmem:[%s7511_s1 + $0x90c] ss:$16 sps:$4 sm:$0xff]   ;;  %v5341_v3 = vld [vmem:[%s7511_s1 + $0x900] ss:$16 sps:$4 sm:$0xff]  }
  0xeb   :  { %3378 = vmatpush1.bf16.msra.mxu0 %v5257_v4  ;;  %3706 = vmatpush1.bf16.msra.mxu1 %v5260_v5  ;;  %v5344_v4 = vld [vmem:[%s7511_s1 + $0x908] ss:$16 sps:$4 sm:$0xff]   ;;  %v5349_v5 = vld [vmem:[%s7511_s1 + $0x924] ss:$16 sps:$4 sm:$0xff]  }
  0xec   :  { %3379 = vmatprep.subr.bf16.mxu0 %v5265_v6  ;;  %3707 = vmatprep.subr.bf16.mxu1 %v5268_v7  ;;  %v5352_v6 = vld [vmem:[%s7511_s1 + $0x92c] ss:$16 sps:$4 sm:$0xff]   ;;  %v5347_v7 = vld [vmem:[%s7511_s1 + $0x920] ss:$16 sps:$4 sm:$0xff]  }
  0xef   :  { %3380 = vmatpush1.bf16.msra.mxu0 %v5263_v8  ;;  %3708 = vmatpush1.bf16.msra.mxu1 %v5266_v9  ;;  %v5350_v8 = vld [vmem:[%s7511_s1 + $0x928] ss:$16 sps:$4 sm:$0xff]   ;;  %v5355_v9 = vld [vmem:[%s7511_s1 + $0x944] ss:$16 sps:$4 sm:$0xff]  }
  0xf0   :  { %3381 = vmatprep.subr.bf16.mxu0 %v5271_v10  ;;  %3709 = vmatprep.subr.bf16.mxu1 %v5274_v11  ;;  %v5358_v10 = vld [vmem:[%s7511_s1 + $0x94c] ss:$16 sps:$4 sm:$0xff]   ;;  %v5353_v11 = vld [vmem:[%s7511_s1 + $0x940] ss:$16 sps:$4 sm:$0xff]  }
  0xf3   :  { %3382 = vmatpush1.bf16.msra.mxu0 %v5269_v12  ;;  %3710 = vmatpush1.bf16.msra.mxu1 %v5272_v52  ;;  %v5356_v12 = vld [vmem:[%s7511_s1 + $0x948] ss:$16 sps:$4 sm:$0xff]   ;;  %v5361_v52 = vld [vmem:[%s7511_s1 + $0x964] ss:$16 sps:$4 sm:$0xff]  }
  0xf4   :  { %3383 = vmatprep.subr.bf16.mxu0 %v5277_v15  ;;  %3711 = vmatprep.subr.bf16.mxu1 %v5280_v16  ;;  %v5364_v15 = vld [vmem:[%s7511_s1 + $0x96c] ss:$16 sps:$4 sm:$0xff]   ;;  %v5359_v16 = vld [vmem:[%s7511_s1 + $0x960] ss:$16 sps:$4 sm:$0xff]  }
  0xf7   :  { %3384 = vmatpush1.bf16.msra.mxu0 %v5275_v17  ;;  %3712 = vmatpush1.bf16.msra.mxu1 %v5278_v18  ;;  %v5362_v17 = vld [vmem:[%s7511_s1 + $0x968] ss:$16 sps:$4 sm:$0xff]   ;;  %v5367_v18 = vld [vmem:[%s7511_s1 + $0x984] ss:$16 sps:$4 sm:$0xff]  }
  0xf8   :  { %3385 = vmatprep.subr.bf16.mxu0 %v5283_v19  ;;  %3713 = vmatprep.subr.bf16.mxu1 %v5286_v20  ;;  %v5370_v19 = vld [vmem:[%s7511_s1 + $0x98c] ss:$16 sps:$4 sm:$0xff]   ;;  %v5365_v20 = vld [vmem:[%s7511_s1 + $0x980] ss:$16 sps:$4 sm:$0xff]  }
  0xfb   :  { %3386 = vmatpush1.bf16.msra.mxu0 %v5281_v22  ;;  %3714 = vmatpush1.bf16.msra.mxu1 %v5284_v23  ;;  %v5368_v22 = vld [vmem:[%s7511_s1 + $0x988] ss:$16 sps:$4 sm:$0xff]   ;;  %v5373_v23 = vld [vmem:[%s7511_s1 + $0x9a4] ss:$16 sps:$4 sm:$0xff]  }
  0xfc   :  { %3387 = vmatprep.subr.bf16.mxu0 %v5289_v24  ;;  %3715 = vmatprep.subr.bf16.mxu1 %v5292_v13  ;;  %v5376_v24 = vld [vmem:[%s7511_s1 + $0x9ac] ss:$16 sps:$4 sm:$0xff]   ;;  %v5371_v13 = vld [vmem:[%s7511_s1 + $0x9a0] ss:$16 sps:$4 sm:$0xff]  }
  0xff   :  { %3388 = vmatpush1.bf16.msra.mxu0 %v5287_v28  ;;  %3716 = vmatpush1.bf16.msra.mxu1 %v5290_v29  ;;  %v5374_v28 = vld [vmem:[%s7511_s1 + $0x9a8] ss:$16 sps:$4 sm:$0xff]   ;;  %v5379_v29 = vld [vmem:[%s7511_s1 + $0x9c4] ss:$16 sps:$4 sm:$0xff]  }
 0x100   :  { %3398 = vmatprep.subr.bf16.mxu0 %v5295_v14  ;;  %3726 = vmatprep.subr.bf16.mxu1 %v5298_v30  ;;  %v5382_v14 = vld [vmem:[%s7511_s1 + $0x9cc] ss:$16 sps:$4 sm:$0xff]   ;;  %v5377_v30 = vld [vmem:[%s7511_s1 + $0x9c0] ss:$16 sps:$4 sm:$0xff]  }
 0x102   :  { %3390 = vmatmul.mubr.bf16.vlgmr.msra.gmra.mrb[0].mxu0 %v606_v25  ;;  %3718 = vmatmul.mubr.bf16.vlgmr.msra.gmra.mrb[0].mxu1 %v606_v25  ;;  %v5385_v25 = vld [vmem:[%s7511_s1 + $0x9e4] ss:$16 sps:$4 sm:$0xff]  }
 0x103   :  { %3399 = vmatpush1.bf16.msra.mxu0 %v5293_v32  ;;  %3727 = vmatpush1.bf16.msra.mxu1 %v5296_v33  ;;  %v5388_v32 = vld [vmem:[%s7511_s1 + $0x9ec] ss:$16 sps:$4 sm:$0xff]   ;;  %v5383_v33 = vld [vmem:[%s7511_s1 + $0x9e0] ss:$16 sps:$4 sm:$0xff]  }
 0x104   :  { %3400 = vmatprep.subr.bf16.mxu0 %v5301_v34  ;;  %3728 = vmatprep.subr.bf16.mxu1 %v5304_v26  ;;  %v5386_v34 = vld [vmem:[%s7511_s1 + $0x9e8] ss:$16 sps:$4 sm:$0xff]   ;;  %v5391_v26 = vld [vmem:[%s7511_s1 + $0xa04] ss:$16 sps:$4 sm:$0xff]  }
 0x105   :  { %3430 = vmatprep.mubr.bf16.mxu0 %v6606_v35  ;;  %3758 = vmatprep.mubr.bf16.mxu1 %v6606_v35 }
 0x107   :  { %3401 = vmatpush1.bf16.msra.mxu0 %v5299_v36  ;;  %3729 = vmatpush1.bf16.msra.mxu1 %v5302_v37  ;;  %v5394_v36 = vld [vmem:[%s7511_s1 + $0xa0c] ss:$16 sps:$4 sm:$0xff]   ;;  %v6792_v37 = vrot.slane %v6575_v27, %v5901_v49 }
 0x108   :  { %3402 = vmatprep.subr.bf16.mxu0 %v5307_v38  ;;  %3730 = vmatprep.subr.bf16.mxu1 %v5310_v39  ;;  %v5389_v38 = vld [vmem:[%s7511_s1 + $0xa00] ss:$16 sps:$4 sm:$0xff]   ;;  %v5392_v39 = vld [vmem:[%s7511_s1 + $0xa08] ss:$16 sps:$4 sm:$0xff]   ;;  %v5400_v27 = vld [vmem:[%s7511_s1 + $0xa2c] ss:$16 sps:$4 sm:$0xff]  }
 0x10b   :  { %3403 = vmatpush1.bf16.msra.mxu0 %v5305_v40  ;;  %3731 = vmatpush1.bf16.msra.mxu1 %v5308_v41  ;;  %v5397_v40 = vld [vmem:[%s7511_s1 + $0xa24] ss:$16 sps:$4 sm:$0xff]   ;;  %v656_v41 = vcombine.high %v6606_v35, %v6606_v35 }
 0x10c   :  { %3404 = vmatprep.subr.bf16.mxu0 %v5313_v43  ;;  %3732 = vmatprep.subr.bf16.mxu1 %v5316_v44  ;;  %v5395_v43 = vld [vmem:[%s7511_s1 + $0xa20] ss:$16 sps:$4 sm:$0xff]   ;;  %v5398_v44 = vld [vmem:[%s7511_s1 + $0xa28] ss:$16 sps:$4 sm:$0xff]   ;;  %v5403_v35 = vld [vmem:[%s7511_s1 + $0xa44] ss:$16 sps:$4 sm:$0xff]  }
 0x10f   :  { %3405 = vmatpush1.bf16.msra.mxu0 %v5311_v45  ;;  %3733 = vmatpush1.bf16.msra.mxu1 %v5314_v46  ;;  %v5406_v45 = vld [vmem:[%s7511_s1 + $0xa4c] ss:$16 sps:$4 sm:$0xff]   ;;  %v5401_v46 = vld [vmem:[%s7511_s1 + $0xa40] ss:$16 sps:$4 sm:$0xff]  }
 0x110   :  { %3406 = vmatprep.subr.bf16.mxu0 %v5319_v47  ;;  %3734 = vmatprep.subr.bf16.mxu1 %v5322_v48  ;;  %v5404_v47 = vld [vmem:[%s7511_s1 + $0xa48] ss:$16 sps:$4 sm:$0xff]   ;;  %v5409_v48 = vld [vmem:[%s7511_s1 + $0xa64] ss:$16 sps:$4 sm:$0xff]  }
 0x113   :  { %3407 = vmatpush1.bf16.msra.mxu0 %v5317_v50  ;;  %3735 = vmatpush1.bf16.msra.mxu1 %v5320_v51  ;;  %v5412_v50 = vld [vmem:[%s7511_s1 + $0xa6c] ss:$16 sps:$4 sm:$0xff]   ;;  %v5407_v51 = vld [vmem:[%s7511_s1 + $0xa60] ss:$16 sps:$4 sm:$0xff]  }
 0x114   :  { %3408 = vmatprep.subr.bf16.mxu0 %v5325_v53  ;;  %3736 = vmatprep.subr.bf16.mxu1 %v5328_v54  ;;  %v5410_v53 = vld [vmem:[%s7511_s1 + $0xa68] ss:$16 sps:$4 sm:$0xff]   ;;  %v5415_v54 = vld [vmem:[%s7511_s1 + $0xa84] ss:$16 sps:$4 sm:$0xff]  }
 0x117   :  { %3409 = vmatpush1.bf16.msra.mxu0 %v5323_v55  ;;  %3737 = vmatpush1.bf16.msra.mxu1 %v5326_v56  ;;  %v5418_v55 = vld [vmem:[%s7511_s1 + $0xa8c] ss:$16 sps:$4 sm:$0xff]   ;;  %v5413_v56 = vld [vmem:[%s7511_s1 + $0xa80] ss:$16 sps:$4 sm:$0xff]  }
 0x118   :  { %3410 = vmatprep.subr.bf16.mxu0 %v5331_v57  ;;  %3738 = vmatprep.subr.bf16.mxu1 %v5334_v58  ;;  %v5416_v57 = vld [vmem:[%s7511_s1 + $0xa88] ss:$16 sps:$4 sm:$0xff]   ;;  %v5421_v58 = vld [vmem:[%s7511_s1 + $0xaa4] ss:$16 sps:$4 sm:$0xff]  }
 0x11b   :  { %3411 = vmatpush1.bf16.msra.mxu0 %v5329_v59  ;;  %3739 = vmatpush1.bf16.msra.mxu1 %v5332_v60  ;;  %v5424_v59 = vld [vmem:[%s7511_s1 + $0xaac] ss:$16 sps:$4 sm:$0xff]   ;;  %v5419_v60 = vld [vmem:[%s7511_s1 + $0xaa0] ss:$16 sps:$4 sm:$0xff]  }
 0x11c   :  { %3412 = vmatprep.subr.bf16.mxu0 %v5337_v61  ;;  %3740 = vmatprep.subr.bf16.mxu1 %v5340_v62  ;;  %v5422_v61 = vld [vmem:[%s7511_s1 + $0xaa8] ss:$16 sps:$4 sm:$0xff]   ;;  %v5427_v62 = vld [vmem:[%s7511_s1 + $0xac4] ss:$16 sps:$4 sm:$0xff]  }
 0x11f   :  { %3413 = vmatpush1.bf16.msra.mxu0 %v5335_v63  ;;  %3741 = vmatpush1.bf16.msra.mxu1 %v5338_v0  ;;  %v5430_v63 = vld [vmem:[%s7511_s1 + $0xacc] ss:$16 sps:$4 sm:$0xff]   ;;  %v5425_v0 = vld [vmem:[%s7511_s1 + $0xac0] ss:$16 sps:$4 sm:$0xff]  }
 0x120   :  { %3414 = vmatprep.subr.bf16.mxu0 %v5343_v1  ;;  %3742 = vmatprep.subr.bf16.mxu1 %v5346_v2  ;;  %v5428_v1 = vld [vmem:[%s7511_s1 + $0xac8] ss:$16 sps:$4 sm:$0xff]   ;;  %v5433_v2 = vld [vmem:[%s7511_s1 + $0xae4] ss:$16 sps:$4 sm:$0xff]  }
 0x123   :  { %3415 = vmatpush1.bf16.msra.mxu0 %v5341_v3  ;;  %3743 = vmatpush1.bf16.msra.mxu1 %v5344_v4  ;;  %v5436_v3 = vld [vmem:[%s7511_s1 + $0xaec] ss:$16 sps:$4 sm:$0xff]   ;;  %v5431_v4 = vld [vmem:[%s7511_s1 + $0xae0] ss:$16 sps:$4 sm:$0xff]  }
 0x124   :  { %3416 = vmatprep.subr.bf16.mxu0 %v5349_v5  ;;  %3744 = vmatprep.subr.bf16.mxu1 %v5352_v6  ;;  %v5434_v5 = vld [vmem:[%s7511_s1 + $0xae8] ss:$16 sps:$4 sm:$0xff]   ;;  %v5439_v6 = vld [vmem:[%s7511_s1 + $0xb04] ss:$16 sps:$4 sm:$0xff]  }
 0x127   :  { %3417 = vmatpush1.bf16.msra.mxu0 %v5347_v7  ;;  %3745 = vmatpush1.bf16.msra.mxu1 %v5350_v8  ;;  %v5442_v7 = vld [vmem:[%s7511_s1 + $0xb0c] ss:$16 sps:$4 sm:$0xff]   ;;  %v5437_v8 = vld [vmem:[%s7511_s1 + $0xb00] ss:$16 sps:$4 sm:$0xff]  }
 0x128   :  { %3418 = vmatprep.subr.bf16.mxu0 %v5355_v9  ;;  %3746 = vmatprep.subr.bf16.mxu1 %v5358_v10  ;;  %v5440_v9 = vld [vmem:[%s7511_s1 + $0xb08] ss:$16 sps:$4 sm:$0xff]   ;;  %v5445_v10 = vld [vmem:[%s7511_s1 + $0xb24] ss:$16 sps:$4 sm:$0xff]  }
 0x12b   :  { %3419 = vmatpush1.bf16.msra.mxu0 %v5353_v11  ;;  %3747 = vmatpush1.bf16.msra.mxu1 %v5356_v12  ;;  %v5448_v11 = vld [vmem:[%s7511_s1 + $0xb2c] ss:$16 sps:$4 sm:$0xff]  }
 0x12c   :  { %3420 = vmatprep.subr.bf16.mxu0 %v5361_v52  ;;  %3748 = vmatprep.subr.bf16.mxu1 %v5364_v15 }
 0x12f   :  { %3421 = vmatpush1.bf16.msra.mxu0 %v5359_v16  ;;  %3749 = vmatpush1.bf16.msra.mxu1 %v5362_v17 }
 0x130   :  { %3422 = vmatprep.subr.bf16.mxu0 %v5367_v18  ;;  %3750 = vmatprep.subr.bf16.mxu1 %v5370_v19 }
 0x133   :  { %3423 = vmatpush1.bf16.msra.mxu0 %v5365_v20  ;;  %3751 = vmatpush1.bf16.msra.mxu1 %v5368_v22 }
 0x134   :  { %3424 = vmatprep.subr.bf16.mxu0 %v5373_v23  ;;  %3752 = vmatprep.subr.bf16.mxu1 %v5376_v24 }
 0x137   :  { %3425 = vmatpush1.bf16.msra.mxu0 %v5371_v13  ;;  %3753 = vmatpush1.bf16.msra.mxu1 %v5374_v28 }
 0x138   :  { %3426 = vmatprep.subr.bf16.mxu0 %v5379_v29  ;;  %3754 = vmatprep.subr.bf16.mxu1 %v5382_v14 }
 0x13b   :  { %3427 = vmatpush1.bf16.msra.mxu0 %v5377_v30  ;;  %3755 = vmatpush1.bf16.msra.mxu1 %v5380_v31 }
 0x13c   :  { %3428 = vmatprep.subr.bf16.mxu0 %v5385_v25  ;;  %3756 = vmatprep.subr.bf16.mxu1 %v5388_v32 }
 0x13f   :  { %3429 = vmatpush1.bf16.msra.mxu0 %v5383_v33  ;;  %3757 = vmatpush1.bf16.msra.mxu1 %v5386_v34 }
 0x140   :  { %3439 = vmatprep.subr.bf16.mxu0 %v5391_v26  ;;  %3767 = vmatprep.subr.bf16.mxu1 %v5394_v36 }
 0x142   :  { %3431 = vmatmul.mubr.bf16.vlgmr.msra.gmra.mrb[0].mxu0 %v6792_v37  ;;  %3759 = vmatmul.mubr.bf16.vlgmr.msra.gmra.mrb[0].mxu1 %v6792_v37 }
 0x143   :  { %3440 = vmatpush1.bf16.msra.mxu0 %v5389_v38  ;;  %3768 = vmatpush1.bf16.msra.mxu1 %v5392_v39 }
 0x144   :  { %3441 = vmatprep.subr.bf16.mxu0 %v5397_v40  ;;  %3769 = vmatprep.subr.bf16.mxu1 %v5400_v27 }
 0x145   :  { %3471 = vmatprep.mubr.bf16.mxu0 %v656_v41  ;;  %3799 = vmatprep.mubr.bf16.mxu1 %v656_v41 }
 0x147   :  { %3442 = vmatpush1.bf16.msra.mxu0 %v5395_v43  ;;  %3770 = vmatpush1.bf16.msra.mxu1 %v5398_v44 }
 0x148   :  { %3443 = vmatprep.subr.bf16.mxu0 %v5403_v35  ;;  %3771 = vmatprep.subr.bf16.mxu1 %v5406_v45 }
 0x14b   :  { %3444 = vmatpush1.bf16.msra.mxu0 %v5401_v46  ;;  %3772 = vmatpush1.bf16.msra.mxu1 %v5404_v47 }
 0x14c   :  { %3445 = vmatprep.subr.bf16.mxu0 %v5409_v48  ;;  %3773 = vmatprep.subr.bf16.mxu1 %v5412_v50 }
 0x14f   :  { %3446 = vmatpush1.bf16.msra.mxu0 %v5407_v51  ;;  %3774 = vmatpush1.bf16.msra.mxu1 %v5410_v53 }
 0x150   :  { %3447 = vmatprep.subr.bf16.mxu0 %v5415_v54  ;;  %3775 = vmatprep.subr.bf16.mxu1 %v5418_v55 }
 0x153   :  { %3448 = vmatpush1.bf16.msra.mxu0 %v5413_v56  ;;  %3776 = vmatpush1.bf16.msra.mxu1 %v5416_v57 }
 0x154   :  { %3449 = vmatprep.subr.bf16.mxu0 %v5421_v58  ;;  %3777 = vmatprep.subr.bf16.mxu1 %v5424_v59 }
 0x157   :  { %3450 = vmatpush1.bf16.msra.mxu0 %v5419_v60  ;;  %3778 = vmatpush1.bf16.msra.mxu1 %v5422_v61 }
 0x158   :  { %3451 = vmatprep.subr.bf16.mxu0 %v5427_v62  ;;  %3779 = vmatprep.subr.bf16.mxu1 %v5430_v63 }
 0x15b   :  { %3452 = vmatpush1.bf16.msra.mxu0 %v5425_v0  ;;  %3780 = vmatpush1.bf16.msra.mxu1 %v5428_v1 }
 0x15c   :  { %3453 = vmatprep.subr.bf16.mxu0 %v5433_v2  ;;  %3781 = vmatprep.subr.bf16.mxu1 %v5436_v3 }
 0x15f   :  { %3454 = vmatpush1.bf16.msra.mxu0 %v5431_v4  ;;  %3782 = vmatpush1.bf16.msra.mxu1 %v5434_v5 }
 0x160   :  { %3455 = vmatprep.subr.bf16.mxu0 %v5439_v6  ;;  %3783 = vmatprep.subr.bf16.mxu1 %v5442_v7 }
 0x161   :  { %10 = vsyncpa [#allocation3], 0  ;;  %v5443_v12 = vld [vmem:[%s7511_s1 + $0xb20] ss:$16 sps:$4 sm:$0xff]   ;;  %v5446_v52 = vld [vmem:[%s7511_s1 + $0xb28] ss:$16 sps:$4 sm:$0xff]   ;;  %v609_v34 = vcombine.high %v6559_v21, %v6559_v21  ;;  %v654_v35 = vcombine.high %v6792_v37, %v6792_v37 }
 0x162   :  { %v5451_v15 = vld [vmem:[%s7511_s1 + $0xb44] ss:$16 sps:$4 sm:$0xff]   ;;  %v5454_v16 = vld [vmem:[%s7511_s1 + $0xb4c] ss:$16 sps:$4 sm:$0xff]   ;;  %v5449_v17 = vld [vmem:[%s7511_s1 + $0xb40] ss:$16 sps:$4 sm:$0xff]  }
 0x163   :  { %3456 = vmatpush1.bf16.msra.mxu0 %v5437_v8  ;;  %3784 = vmatpush1.bf16.msra.mxu1 %v5440_v9  ;;  %v5452_v18 = vld [vmem:[%s7511_s1 + $0xb48] ss:$16 sps:$4 sm:$0xff]   ;;  %v5457_v19 = vld [vmem:[%s7511_s1 + $0xb64] ss:$16 sps:$4 sm:$0xff]   ;;  %v5460_v20 = vld [vmem:[%s7511_s1 + $0xb6c] ss:$16 sps:$4 sm:$0xff]   ;;  %v6981_v39 = vrot.slane %v609_v34, %v5901_v49 }
 0x164   :  { %3457 = vmatprep.subr.bf16.mxu0 %v5445_v10  ;;  %3785 = vmatprep.subr.bf16.mxu1 %v5448_v11  ;;  %v5455_v22 = vld [vmem:[%s7511_s1 + $0xb60] ss:$16 sps:$4 sm:$0xff]   ;;  %v5458_v23 = vld [vmem:[%s7511_s1 + $0xb68] ss:$16 sps:$4 sm:$0xff]   ;;  %v5463_v24 = vld [vmem:[%s7511_s1 + $0xb84] ss:$16 sps:$4 sm:$0xff]  }
 0x165   :  { %v5466_v13 = vld [vmem:[%s7511_s1 + $0xb8c] ss:$16 sps:$4 sm:$0xff]   ;;  %v5461_v28 = vld [vmem:[%s7511_s1 + $0xb80] ss:$16 sps:$4 sm:$0xff]   ;;  %v5464_v29 = vld [vmem:[%s7511_s1 + $0xb88] ss:$16 sps:$4 sm:$0xff]   ;;  %v625_v44 = vcombine.high %v6981_v39, %v6981_v39 }
 0x166   :  { %v5469_v14 = vld [vmem:[%s7511_s1 + $0xba4] ss:$16 sps:$4 sm:$0xff]   ;;  %v5472_v30 = vld [vmem:[%s7511_s1 + $0xbac] ss:$16 sps:$4 sm:$0xff]   ;;  %v5467_v31 = vld [vmem:[%s7511_s1 + $0xba0] ss:$16 sps:$4 sm:$0xff]  }
 0x167   :  { %3458 = vmatpush1.bf16.msra.mxu0 %v5443_v12  ;;  %3786 = vmatpush1.bf16.msra.mxu1 %v5446_v52  ;;  %v5470_v25 = vld [vmem:[%s7511_s1 + $0xba8] ss:$16 sps:$4 sm:$0xff]   ;;  %v5475_v32 = vld [vmem:[%s7511_s1 + $0xbc4] ss:$16 sps:$4 sm:$0xff]   ;;  %v5478_v33 = vld [vmem:[%s7511_s1 + $0xbcc] ss:$16 sps:$4 sm:$0xff]   ;;  %v7012_v48 = vrot.slane %v625_v44, %v5901_v49 }
 0x168   :  { %3459 = vmatprep.subr.bf16.mxu0 %v5451_v15  ;;  %3787 = vmatprep.subr.bf16.mxu1 %v5454_v16  ;;  %v5473_v26 = vld [vmem:[%s7511_s1 + $0xbc0] ss:$16 sps:$4 sm:$0xff]   ;;  %v5476_v36 = vld [vmem:[%s7511_s1 + $0xbc8] ss:$16 sps:$4 sm:$0xff]   ;;  %v5481_v38 = vld [vmem:[%s7511_s1 + $0xbe4] ss:$16 sps:$4 sm:$0xff]  }
 0x169   :  { %v5484_v21 = vld [vmem:[%s7511_s1 + $0xbec] ss:$16 sps:$4 sm:$0xff]   ;;  %v5479_v40 = vld [vmem:[%s7511_s1 + $0xbe0] ss:$16 sps:$4 sm:$0xff]   ;;  %v5482_v27 = vld [vmem:[%s7511_s1 + $0xbe8] ss:$16 sps:$4 sm:$0xff]  }
 0x16a   :  { %v5487_v41 = vld [vmem:[%s7511_s1 + $0xc04] ss:$16 sps:$4 sm:$0xff]   ;;  %v5490_v43 = vld [vmem:[%s7511_s1 + $0xc0c] ss:$16 sps:$4 sm:$0xff]   ;;  %v5485_v45 = vld [vmem:[%s7511_s1 + $0xc00] ss:$16 sps:$4 sm:$0xff]  }
 0x16b   :  { %3460 = vmatpush1.bf16.msra.mxu0 %v5449_v17  ;;  %3788 = vmatpush1.bf16.msra.mxu1 %v5452_v18  ;;  %v5488_v46 = vld [vmem:[%s7511_s1 + $0xc08] ss:$16 sps:$4 sm:$0xff]   ;;  %v5493_v47 = vld [vmem:[%s7511_s1 + $0xc24] ss:$16 sps:$4 sm:$0xff]   ;;  %v5496_v37 = vld [vmem:[%s7511_s1 + $0xc2c] ss:$16 sps:$4 sm:$0xff]  }
 0x16c   :  { %3461 = vmatprep.subr.bf16.mxu0 %v5457_v19  ;;  %3789 = vmatprep.subr.bf16.mxu1 %v5460_v20  ;;  %v5491_v50 = vld [vmem:[%s7511_s1 + $0xc20] ss:$16 sps:$4 sm:$0xff]   ;;  %v5494_v51 = vld [vmem:[%s7511_s1 + $0xc28] ss:$16 sps:$4 sm:$0xff]   ;;  %v5499_v53 = vld [vmem:[%s7511_s1 + $0xc44] ss:$16 sps:$4 sm:$0xff]  }
 0x16d   :  { %v5502_v54 = vld [vmem:[%s7511_s1 + $0xc4c] ss:$16 sps:$4 sm:$0xff]   ;;  %v5497_v55 = vld [vmem:[%s7511_s1 + $0xc40] ss:$16 sps:$4 sm:$0xff]   ;;  %v5500_v56 = vld [vmem:[%s7511_s1 + $0xc48] ss:$16 sps:$4 sm:$0xff]  }
 0x16e   :  { %v5505_v57 = vld [vmem:[%s7511_s1 + $0xc64] ss:$16 sps:$4 sm:$0xff]   ;;  %v5508_v58 = vld [vmem:[%s7511_s1 + $0xc6c] ss:$16 sps:$4 sm:$0xff]   ;;  %v5503_v59 = vld [vmem:[%s7511_s1 + $0xc60] ss:$16 sps:$4 sm:$0xff]  }
 0x16f   :  { %3462 = vmatpush1.bf16.msra.mxu0 %v5455_v22  ;;  %3790 = vmatpush1.bf16.msra.mxu1 %v5458_v23  ;;  %v5506_v60 = vld [vmem:[%s7511_s1 + $0xc68] ss:$16 sps:$4 sm:$0xff]   ;;  %v5511_v61 = vld [vmem:[%s7511_s1 + $0xc84] ss:$16 sps:$4 sm:$0xff]   ;;  %v5514_v62 = vld [vmem:[%s7511_s1 + $0xc8c] ss:$16 sps:$4 sm:$0xff]  }
 0x170   :  { %3463 = vmatprep.subr.bf16.mxu0 %v5463_v24  ;;  %3791 = vmatprep.subr.bf16.mxu1 %v5466_v13  ;;  %v5509_v63 = vld [vmem:[%s7511_s1 + $0xc80] ss:$16 sps:$4 sm:$0xff]   ;;  %v5512_v0 = vld [vmem:[%s7511_s1 + $0xc88] ss:$16 sps:$4 sm:$0xff]   ;;  %v5517_v1 = vld [vmem:[%s7511_s1 + $0xca4] ss:$16 sps:$4 sm:$0xff]  }
 0x171   :  { %v5520_v2 = vld [vmem:[%s7511_s1 + $0xcac] ss:$16 sps:$4 sm:$0xff]   ;;  %v5515_v3 = vld [vmem:[%s7511_s1 + $0xca0] ss:$16 sps:$4 sm:$0xff]   ;;  %v5518_v4 = vld [vmem:[%s7511_s1 + $0xca8] ss:$16 sps:$4 sm:$0xff]  }
 0x172   :  { %v5523_v5 = vld [vmem:[%s7511_s1 + $0xcc4] ss:$16 sps:$4 sm:$0xff]   ;;  %v5526_v6 = vld [vmem:[%s7511_s1 + $0xccc] ss:$16 sps:$4 sm:$0xff]   ;;  %v5521_v7 = vld [vmem:[%s7511_s1 + $0xcc0] ss:$16 sps:$4 sm:$0xff]  }
 0x173   :  { %3464 = vmatpush1.bf16.msra.mxu0 %v5461_v28  ;;  %3792 = vmatpush1.bf16.msra.mxu1 %v5464_v29  ;;  %v5524_v8 = vld [vmem:[%s7511_s1 + $0xcc8] ss:$16 sps:$4 sm:$0xff]   ;;  %v5529_v9 = vld [vmem:[%s7511_s1 + $0xce4] ss:$16 sps:$4 sm:$0xff]   ;;  %v5532_v10 = vld [vmem:[%s7511_s1 + $0xcec] ss:$16 sps:$4 sm:$0xff]  }
 0x174   :  { %3465 = vmatprep.subr.bf16.mxu0 %v5469_v14  ;;  %3793 = vmatprep.subr.bf16.mxu1 %v5472_v30  ;;  %v5527_v11 = vld [vmem:[%s7511_s1 + $0xce0] ss:$16 sps:$4 sm:$0xff]   ;;  %v5530_v12 = vld [vmem:[%s7511_s1 + $0xce8] ss:$16 sps:$4 sm:$0xff]   ;;  %v5535_v52 = vld [vmem:[%s7511_s1 + $0xd04] ss:$16 sps:$4 sm:$0xff]  }
 0x175   :  { %v5538_v15 = vld [vmem:[%s7511_s1 + $0xd0c] ss:$16 sps:$4 sm:$0xff]   ;;  %v5533_v16 = vld [vmem:[%s7511_s1 + $0xd00] ss:$16 sps:$4 sm:$0xff]   ;;  %v5536_v17 = vld [vmem:[%s7511_s1 + $0xd08] ss:$16 sps:$4 sm:$0xff]  }
 0x176   :  { %v5541_v18 = vld [vmem:[%s7511_s1 + $0xd24] ss:$16 sps:$4 sm:$0xff]   ;;  %v5544_v19 = vld [vmem:[%s7511_s1 + $0xd2c] ss:$16 sps:$4 sm:$0xff]   ;;  %v5539_v20 = vld [vmem:[%s7511_s1 + $0xd20] ss:$16 sps:$4 sm:$0xff]  }
 0x177   :  { %3466 = vmatpush1.bf16.msra.mxu0 %v5467_v31  ;;  %3794 = vmatpush1.bf16.msra.mxu1 %v5470_v25  ;;  %v5542_v22 = vld [vmem:[%s7511_s1 + $0xd28] ss:$16 sps:$4 sm:$0xff]   ;;  %v5547_v23 = vld [vmem:[%s7511_s1 + $0xd44] ss:$16 sps:$4 sm:$0xff]   ;;  %v5550_v24 = vld [vmem:[%s7511_s1 + $0xd4c] ss:$16 sps:$4 sm:$0xff]  }
 0x178   :  { %3467 = vmatprep.subr.bf16.mxu0 %v5475_v32  ;;  %3795 = vmatprep.subr.bf16.mxu1 %v5478_v33  ;;  %v5545_v13 = vld [vmem:[%s7511_s1 + $0xd40] ss:$16 sps:$4 sm:$0xff]   ;;  %v5548_v28 = vld [vmem:[%s7511_s1 + $0xd48] ss:$16 sps:$4 sm:$0xff]   ;;  %v5553_v29 = vld [vmem:[%s7511_s1 + $0xd64] ss:$16 sps:$4 sm:$0xff]  }
 0x179   :  { %v5556_v14 = vld [vmem:[%s7511_s1 + $0xd6c] ss:$16 sps:$4 sm:$0xff]   ;;  %v5551_v30 = vld [vmem:[%s7511_s1 + $0xd60] ss:$16 sps:$4 sm:$0xff]   ;;  %v5554_v31 = vld [vmem:[%s7511_s1 + $0xd68] ss:$16 sps:$4 sm:$0xff]  }
 0x17a   :  { %v5559_v25 = vld [vmem:[%s7511_s1 + $0xd84] ss:$16 sps:$4 sm:$0xff]   ;;  %v5562_v32 = vld [vmem:[%s7511_s1 + $0xd8c] ss:$16 sps:$4 sm:$0xff]   ;;  %v5557_v33 = vld [vmem:[%s7511_s1 + $0xd80] ss:$16 sps:$4 sm:$0xff]  }
 0x17b   :  { %3468 = vmatpush1.bf16.msra.mxu0 %v5473_v26  ;;  %3796 = vmatpush1.bf16.msra.mxu1 %v5476_v36  ;;  %v5560_v34 = vld [vmem:[%s7511_s1 + $0xd88] ss:$16 sps:$4 sm:$0xff]   ;;  %v5565_v26 = vld [vmem:[%s7511_s1 + $0xda4] ss:$16 sps:$4 sm:$0xff]   ;;  %v5568_v36 = vld [vmem:[%s7511_s1 + $0xdac] ss:$16 sps:$4 sm:$0xff]  }
 0x17c   :  { %3469 = vmatprep.subr.bf16.mxu0 %v5481_v38  ;;  %3797 = vmatprep.subr.bf16.mxu1 %v5484_v21  ;;  %v5563_v38 = vld [vmem:[%s7511_s1 + $0xda0] ss:$16 sps:$4 sm:$0xff]   ;;  %v5566_v21 = vld [vmem:[%s7511_s1 + $0xda8] ss:$16 sps:$4 sm:$0xff]   ;;  %v5577_v44 = vld [vmem:[%s7511_s1 + $0xde4] ss:$16 sps:$4 sm:$0xff]  }
 0x17d   :  { %s5735_s11 = smov [#allocation2]   ;;  %vm4241_vm0 = vcmask 402432  }
 0x17e   :  { %s4249_s12 = sshll.u32 %s5735_s11, 4  ;;  %s4250_s12 = int_to_ptr.vmem [resolvable:$true] %s4249_s12 }
 0x17f   :  { %3470 = vmatpush1.bf16.msra.mxu0 %v5479_v40  ;;  %3798 = vmatpush1.bf16.msra.mxu1 %v5482_v27  ;;  %v5571_v40 = vld [vmem:[%s7511_s1 + $0xdc4] ss:$16 sps:$4 sm:$0xff]   ;;  %v5574_v27 = vld [vmem:[%s7511_s1 + $0xdcc] ss:$16 sps:$4 sm:$0xff]   ;;  %s5710_s13 = scalar_lea.vmem %s4250_s12, 32  ;;  %p5715_p1 = scmp.lt.s32.totalorder %s4250_s12, %s4250_s12 }
 0x180   :  { %3480 = vmatprep.subr.bf16.mxu0 %v5487_v41  ;;  %3808 = vmatprep.subr.bf16.mxu1 %v5490_v43  ;;  %v5569_v41 = vld [vmem:[%s7511_s1 + $0xdc0] ss:$16 sps:$4 sm:$0xff]   ;;  %v5572_v43 = vld [vmem:[%s7511_s1 + $0xdc8] ss:$16 sps:$4 sm:$0xff]   ;;  %p5711_p0 = scmp.ne.s32.totalorder %s4250_s12, %s5710_s13  ;;  %p5716_p2 = scmp.lt.s32.totalorder %s5710_s13, %s5710_s13 }
 0x182   :  { %3472 = vmatmul.mubr.bf16.vlgmr.msra.gmra.mrb[0].mxu0 %v654_v35  ;;  %3800 = vmatmul.mubr.bf16.vlgmr.msra.gmra.mrb[0].mxu1 %v654_v35  ;;  %v5580_v35 = vld [vmem:[%s7511_s1 + $0xdec] ss:$16 sps:$4 sm:$0xff]   ;;  %p5717_p3 = por %p5716_p2, %p5715_p1 }
 0x183   :  { %3481 = vmatpush1.bf16.msra.mxu0 %v5485_v45  ;;  %3809 = vmatpush1.bf16.msra.mxu1 %v5488_v46  ;;  %v5575_v45 = vld [vmem:[%s7511_s1 + $0xde0] ss:$16 sps:$4 sm:$0xff]   ;;  %v5578_v46 = vld [vmem:[%s7511_s1 + $0xde8] ss:$16 sps:$4 sm:$0xff]  }
 0x184   :  { %3482 = vmatprep.subr.bf16.mxu0 %v5493_v47  ;;  %3810 = vmatprep.subr.bf16.mxu1 %v5496_v37  ;;  %v5584_v47 = vld [vmem:[%s7511_s1 + $0xe04] ss:$16 sps:$4 sm:$0xff]   ;;  %v5587_v37 = vld [vmem:[%s7511_s1 + $0xe0c] ss:$16 sps:$4 sm:$0xff]   ;;  %p5718_p4 = pnand %p5717_p3, %p5711_p0 }
 0x185   :  { %3512 = vmatprep.mubr.bf16.mxu0 %v7012_v48  ;;  %3840 = vmatprep.mubr.bf16.mxu1 %v7012_v48 }
 0x187   :  { %3483 = vmatpush1.bf16.msra.mxu0 %v5491_v50  ;;  %3811 = vmatpush1.bf16.msra.mxu1 %v5494_v51  ;;  %v7198_v50 = vrot.slane %v6981_v39, %v5901_v49  ;;  %v5582_v51 = vld [vmem:[%s7511_s1 + $0xe00] ss:$16 sps:$4 sm:$0xff]   ;;  %v5593_v49 = vld [vmem:[%s7511_s1 + $0xe2c] ss:$16 sps:$4 sm:$0xff]   ;;  %v657_v39 = vcombine.high %v7012_v48, %v7012_v48  ;;  %v5596_v48 = vld [vmem:[%s7511_s1 + $0xe44] ss:$16 sps:$4 sm:$0xff]  }
 0x188   :  { %3484 = vmatprep.subr.bf16.mxu0 %v5499_v53  ;;  %3812 = vmatprep.subr.bf16.mxu1 %v5502_v54  ;;  %v5585_v53 = vld [vmem:[%s7511_s1 + $0xe08] ss:$16 sps:$4 sm:$0xff]   ;;  %v5590_v54 = vld [vmem:[%s7511_s1 + $0xe24] ss:$16 sps:$4 sm:$0xff]  }
 0x18b   :  { %3485 = vmatpush1.bf16.msra.mxu0 %v5497_v55  ;;  %3813 = vmatpush1.bf16.msra.mxu1 %v5500_v56  ;;  %v5588_v55 = vld [vmem:[%s7511_s1 + $0xe20] ss:$16 sps:$4 sm:$0xff]   ;;  %v5591_v56 = vld [vmem:[%s7511_s1 + $0xe28] ss:$16 sps:$4 sm:$0xff]  }
 0x18c   :  { %3486 = vmatprep.subr.bf16.mxu0 %v5505_v57  ;;  %3814 = vmatprep.subr.bf16.mxu1 %v5508_v58  ;;  %v5599_v57 = vld [vmem:[%s7511_s1 + $0xe4c] ss:$16 sps:$4 sm:$0xff]   ;;  %v5594_v58 = vld [vmem:[%s7511_s1 + $0xe40] ss:$16 sps:$4 sm:$0xff]  }
 0x18f   :  { %3487 = vmatpush1.bf16.msra.mxu0 %v5503_v59  ;;  %3815 = vmatpush1.bf16.msra.mxu1 %v5506_v60  ;;  %v5597_v59 = vld [vmem:[%s7511_s1 + $0xe48] ss:$16 sps:$4 sm:$0xff]   ;;  %v5602_v60 = vld [vmem:[%s7511_s1 + $0xe64] ss:$16 sps:$4 sm:$0xff]  }
 0x190   :  { %3488 = vmatprep.subr.bf16.mxu0 %v5511_v61  ;;  %3816 = vmatprep.subr.bf16.mxu1 %v5514_v62  ;;  %v5605_v61 = vld [vmem:[%s7511_s1 + $0xe6c] ss:$16 sps:$4 sm:$0xff]   ;;  %v5600_v62 = vld [vmem:[%s7511_s1 + $0xe60] ss:$16 sps:$4 sm:$0xff]  }
 0x193   :  { %3489 = vmatpush1.bf16.msra.mxu0 %v5509_v63  ;;  %3817 = vmatpush1.bf16.msra.mxu1 %v5512_v0  ;;  %v5603_v63 = vld [vmem:[%s7511_s1 + $0xe68] ss:$16 sps:$4 sm:$0xff]   ;;  %v5608_v0 = vld [vmem:[%s7511_s1 + $0xe84] ss:$16 sps:$4 sm:$0xff]  }
 0x194   :  { %3490 = vmatprep.subr.bf16.mxu0 %v5517_v1  ;;  %3818 = vmatprep.subr.bf16.mxu1 %v5520_v2  ;;  %v5611_v1 = vld [vmem:[%s7511_s1 + $0xe8c] ss:$16 sps:$4 sm:$0xff]   ;;  %v5606_v2 = vld [vmem:[%s7511_s1 + $0xe80] ss:$16 sps:$4 sm:$0xff]  }
 0x197   :  { %3491 = vmatpush1.bf16.msra.mxu0 %v5515_v3  ;;  %3819 = vmatpush1.bf16.msra.mxu1 %v5518_v4  ;;  %v5609_v3 = vld [vmem:[%s7511_s1 + $0xe88] ss:$16 sps:$4 sm:$0xff]   ;;  %v5614_v4 = vld [vmem:[%s7511_s1 + $0xea4] ss:$16 sps:$4 sm:$0xff]  }
 0x198   :  { %3492 = vmatprep.subr.bf16.mxu0 %v5523_v5  ;;  %3820 = vmatprep.subr.bf16.mxu1 %v5526_v6  ;;  %v5617_v5 = vld [vmem:[%s7511_s1 + $0xeac] ss:$16 sps:$4 sm:$0xff]   ;;  %v5612_v6 = vld [vmem:[%s7511_s1 + $0xea0] ss:$16 sps:$4 sm:$0xff]  }
 0x19b   :  { %3493 = vmatpush1.bf16.msra.mxu0 %v5521_v7  ;;  %3821 = vmatpush1.bf16.msra.mxu1 %v5524_v8  ;;  %v5615_v7 = vld [vmem:[%s7511_s1 + $0xea8] ss:$16 sps:$4 sm:$0xff]   ;;  %v5620_v8 = vld [vmem:[%s7511_s1 + $0xec4] ss:$16 sps:$4 sm:$0xff]  }
 0x19c   :  { %3494 = vmatprep.subr.bf16.mxu0 %v5529_v9  ;;  %3822 = vmatprep.subr.bf16.mxu1 %v5532_v10  ;;  %v5623_v9 = vld [vmem:[%s7511_s1 + $0xecc] ss:$16 sps:$4 sm:$0xff]   ;;  %v5618_v10 = vld [vmem:[%s7511_s1 + $0xec0] ss:$16 sps:$4 sm:$0xff]  }
 0x19f   :  { %3495 = vmatpush1.bf16.msra.mxu0 %v5527_v11  ;;  %3823 = vmatpush1.bf16.msra.mxu1 %v5530_v12  ;;  %v5621_v11 = vld [vmem:[%s7511_s1 + $0xec8] ss:$16 sps:$4 sm:$0xff]   ;;  %v5626_v12 = vld [vmem:[%s7511_s1 + $0xee4] ss:$16 sps:$4 sm:$0xff]  }
 0x1a0   :  { %3496 = vmatprep.subr.bf16.mxu0 %v5535_v52  ;;  %3824 = vmatprep.subr.bf16.mxu1 %v5538_v15  ;;  %v5629_v52 = vld [vmem:[%s7511_s1 + $0xeec] ss:$16 sps:$4 sm:$0xff]   ;;  %v5624_v15 = vld [vmem:[%s7511_s1 + $0xee0] ss:$16 sps:$4 sm:$0xff]  }
 0x1a3   :  { %3497 = vmatpush1.bf16.msra.mxu0 %v5533_v16  ;;  %3825 = vmatpush1.bf16.msra.mxu1 %v5536_v17  ;;  %v5627_v16 = vld [vmem:[%s7511_s1 + $0xee8] ss:$16 sps:$4 sm:$0xff]   ;;  %v5632_v17 = vld [vmem:[%s7511_s1 + $0xf04] ss:$16 sps:$4 sm:$0xff]  }
 0x1a4   :  { %3498 = vmatprep.subr.bf16.mxu0 %v5541_v18  ;;  %3826 = vmatprep.subr.bf16.mxu1 %v5544_v19  ;;  %v5635_v18 = vld [vmem:[%s7511_s1 + $0xf0c] ss:$16 sps:$4 sm:$0xff]   ;;  %v5630_v19 = vld [vmem:[%s7511_s1 + $0xf00] ss:$16 sps:$4 sm:$0xff]  }
 0x1a7   :  { %3499 = vmatpush1.bf16.msra.mxu0 %v5539_v20  ;;  %3827 = vmatpush1.bf16.msra.mxu1 %v5542_v22  ;;  %v5633_v20 = vld [vmem:[%s7511_s1 + $0xf08] ss:$16 sps:$4 sm:$0xff]   ;;  %v5638_v22 = vld [vmem:[%s7511_s1 + $0xf24] ss:$16 sps:$4 sm:$0xff]  }
 0x1a8   :  { %3500 = vmatprep.subr.bf16.mxu0 %v5547_v23  ;;  %3828 = vmatprep.subr.bf16.mxu1 %v5550_v24  ;;  %v5641_v23 = vld [vmem:[%s7511_s1 + $0xf2c] ss:$16 sps:$4 sm:$0xff]   ;;  %v5636_v24 = vld [vmem:[%s7511_s1 + $0xf20] ss:$16 sps:$4 sm:$0xff]  }
 0x1ab   :  { %3501 = vmatpush1.bf16.msra.mxu0 %v5545_v13  ;;  %3829 = vmatpush1.bf16.msra.mxu1 %v5548_v28  ;;  %v5639_v13 = vld [vmem:[%s7511_s1 + $0xf28] ss:$16 sps:$4 sm:$0xff]   ;;  %v5644_v28 = vld [vmem:[%s7511_s1 + $0xf44] ss:$16 sps:$4 sm:$0xff]  }
 0x1ac   :  { %3502 = vmatprep.subr.bf16.mxu0 %v5553_v29  ;;  %3830 = vmatprep.subr.bf16.mxu1 %v5556_v14  ;;  %v5647_v29 = vld [vmem:[%s7511_s1 + $0xf4c] ss:$16 sps:$4 sm:$0xff]   ;;  %v5642_v14 = vld [vmem:[%s7511_s1 + $0xf40] ss:$16 sps:$4 sm:$0xff]  }
 0x1af   :  { %3503 = vmatpush1.bf16.msra.mxu0 %v5551_v30  ;;  %3831 = vmatpush1.bf16.msra.mxu1 %v5554_v31  ;;  %v5645_v30 = vld [vmem:[%s7511_s1 + $0xf48] ss:$16 sps:$4 sm:$0xff]   ;;  %v5650_v31 = vld [vmem:[%s7511_s1 + $0xf64] ss:$16 sps:$4 sm:$0xff]  }
 0x1b0   :  { %3504 = vmatprep.subr.bf16.mxu0 %v5559_v25  ;;  %3832 = vmatprep.subr.bf16.mxu1 %v5562_v32  ;;  %v5653_v25 = vld [vmem:[%s7511_s1 + $0xf6c] ss:$16 sps:$4 sm:$0xff]   ;;  %v5648_v32 = vld [vmem:[%s7511_s1 + $0xf60] ss:$16 sps:$4 sm:$0xff]  }
 0x1b3   :  { %3505 = vmatpush1.bf16.msra.mxu0 %v5557_v33  ;;  %3833 = vmatpush1.bf16.msra.mxu1 %v5560_v34  ;;  %v5651_v33 = vld [vmem:[%s7511_s1 + $0xf68] ss:$16 sps:$4 sm:$0xff]   ;;  %v5656_v34 = vld [vmem:[%s7511_s1 + $0xf84] ss:$16 sps:$4 sm:$0xff]  }
 0x1b4   :  { %3506 = vmatprep.subr.bf16.mxu0 %v5565_v26  ;;  %3834 = vmatprep.subr.bf16.mxu1 %v5568_v36  ;;  %v5659_v26 = vld [vmem:[%s7511_s1 + $0xf8c] ss:$16 sps:$4 sm:$0xff]   ;;  %v5654_v36 = vld [vmem:[%s7511_s1 + $0xf80] ss:$16 sps:$4 sm:$0xff]  }
 0x1b7   :  { %3507 = vmatpush1.bf16.msra.mxu0 %v5563_v38  ;;  %3835 = vmatpush1.bf16.msra.mxu1 %v5566_v21  ;;  %v5657_v38 = vld [vmem:[%s7511_s1 + $0xf88] ss:$16 sps:$4 sm:$0xff]   ;;  %v5662_v21 = vld [vmem:[%s7511_s1 + $0xfa4] ss:$16 sps:$4 sm:$0xff]  }
 0x1b8   :  { %3508 = vmatprep.subr.bf16.mxu0 %v5571_v40  ;;  %3836 = vmatprep.subr.bf16.mxu1 %v5574_v27  ;;  %v5665_v40 = vld [vmem:[%s7511_s1 + $0xfac] ss:$16 sps:$4 sm:$0xff]   ;;  %v5660_v27 = vld [vmem:[%s7511_s1 + $0xfa0] ss:$16 sps:$4 sm:$0xff]  }
 0x1bb   :  { %3509 = vmatpush1.bf16.msra.mxu0 %v5569_v41  ;;  %3837 = vmatpush1.bf16.msra.mxu1 %v5572_v43  ;;  %v5663_v41 = vld [vmem:[%s7511_s1 + $0xfa8] ss:$16 sps:$4 sm:$0xff]   ;;  %v5668_v43 = vld [vmem:[%s7511_s1 + $0xfc4] ss:$16 sps:$4 sm:$0xff]  }
 0x1bc   :  { %3510 = vmatprep.subr.bf16.mxu0 %v5577_v44  ;;  %3838 = vmatprep.subr.bf16.mxu1 %v5580_v35  ;;  %v5671_v44 = vld [vmem:[%s7511_s1 + $0xfcc] ss:$16 sps:$4 sm:$0xff]   ;;  %v5666_v35 = vld [vmem:[%s7511_s1 + $0xfc0] ss:$16 sps:$4 sm:$0xff]  }
 0x1bf   :  { %3511 = vmatpush1.bf16.msra.mxu0 %v5575_v45  ;;  %3839 = vmatpush1.bf16.msra.mxu1 %v5578_v46  ;;  %v5669_v45 = vld [vmem:[%s7511_s1 + $0xfc8] ss:$16 sps:$4 sm:$0xff]   ;;  %v5674_v46 = vld [vmem:[%s7511_s1 + $0xfe4] ss:$16 sps:$4 sm:$0xff]  }
 0x1c0   :  { %3521 = vmatprep.subr.bf16.mxu0 %v5584_v47  ;;  %3849 = vmatprep.subr.bf16.mxu1 %v5587_v37  ;;  %v5677_v47 = vld [vmem:[%s7511_s1 + $0xfec] ss:$16 sps:$4 sm:$0xff]   ;;  %v5672_v37 = vld [vmem:[%s7511_s1 + $0xfe0] ss:$16 sps:$4 sm:$0xff]  }
 0x1c2   :  { %3513 = vmatmul.mubr.bf16.vlgmr.msra.gmra.mrb[0].mxu0 %v7198_v50  ;;  %3841 = vmatmul.mubr.bf16.vlgmr.msra.gmra.mrb[0].mxu1 %v7198_v50 }
 0x1c3   :  { %3522 = vmatpush1.bf16.msra.mxu0 %v5582_v51  ;;  %3850 = vmatpush1.bf16.msra.mxu1 %v5585_v53  ;;  %v5675_v51 = vld [vmem:[%s7511_s1 + $0xfe8] ss:$16 sps:$4 sm:$0xff]   ;;  %v5678_v53 = vld [vmem:[%s7513_s3 + $0x40] sm:$0xff]  }
 0x1c4   :  { %3523 = vmatprep.subr.bf16.mxu0 %v5590_v54  ;;  %3851 = vmatprep.subr.bf16.mxu1 %v5593_v49  ;;  %v5679_v54 = vld [vmem:[%s7513_s3 + $0xc0] sm:$0xff]   ;;  %v655_v49 = vcombine.high %v7198_v50, %v7198_v50  ;;  %v5683_v50 = vld [vmem:[%s7513_s3 + $0xc8] sm:$0xff]  }
 0x1c5   :  { %3553 = vmatprep.mubr.bf16.mxu0 %v657_v39  ;;  %3881 = vmatprep.mubr.bf16.mxu1 %v657_v39  ;;  %v5680_v39 = vld [vmem:[%s7513_s3] sm:$0xff]  }
 0x1c7   :  { %3524 = vmatpush1.bf16.msra.mxu0 %v5588_v55  ;;  %3852 = vmatpush1.bf16.msra.mxu1 %v5591_v56  ;;  %v5681_v55 = vld [vmem:[%s7513_s3 + $0x80] sm:$0xff]   ;;  %v5682_v56 = vld [vmem:[%s7513_s3 + $0x48] sm:$0xff]  }
 0x1c8   :  { %3525 = vmatprep.subr.bf16.mxu0 %v5596_v48  ;;  %3853 = vmatprep.subr.bf16.mxu1 %v5599_v57  ;;  %v5684_v48 = vld [vmem:[%s7513_s3 + $0x8] sm:$0xff]  }
 0x1c9   :  { %v5685_v57 = vld [vmem:[%s7513_s3 + $0x88] sm:$0xff]  }
 0x1cb   :  { %3526 = vmatpush1.bf16.msra.mxu0 %v5594_v58  ;;  %3854 = vmatpush1.bf16.msra.mxu1 %v5597_v59  ;;  %v5686_v58 = vld [vmem:[%s7513_s3 + $0x50] sm:$0xff]  }
 0x1cc   :  { %3527 = vmatprep.subr.bf16.mxu0 %v5602_v60  ;;  %3855 = vmatprep.subr.bf16.mxu1 %v5605_v61  ;;  %v5687_v59 = vld [vmem:[%s7513_s3 + $0xd0] sm:$0xff]  }
 0x1cd   :  { %v5688_v60 = vld [vmem:[%s7513_s3 + $0x10] sm:$0xff]  }
 0x1ce   :  { %v5689_v61 = vld [vmem:[%s7513_s3 + $0x90] sm:$0xff]  }
 0x1cf   :  { %3528 = vmatpush1.bf16.msra.mxu0 %v5600_v62  ;;  %3856 = vmatpush1.bf16.msra.mxu1 %v5603_v63  ;;  %v5690_v62 = vld [vmem:[%s7513_s3 + $0x58] sm:$0xff]  }
 0x1d0   :  { %3529 = vmatprep.subr.bf16.mxu0 %v5608_v0  ;;  %3857 = vmatprep.subr.bf16.mxu1 %v5611_v1  ;;  %v5691_v63 = vld [vmem:[%s7513_s3 + $0xd8] sm:$0xff]  }
 0x1d1   :  { %v5692_v0 = vld [vmem:[%s7513_s3 + $0x18] sm:$0xff]  }
 0x1d2   :  { %v5693_v1 = vld [vmem:[%s7513_s3 + $0x98] sm:$0xff]  }
 0x1d3   :  { %3530 = vmatpush1.bf16.msra.mxu0 %v5606_v2  ;;  %3858 = vmatpush1.bf16.msra.mxu1 %v5609_v3  ;;  %v5694_v2 = vld [vmem:[%s7513_s3 + $0x60] sm:$0xff]  }
 0x1d4   :  { %3531 = vmatprep.subr.bf16.mxu0 %v5614_v4  ;;  %3859 = vmatprep.subr.bf16.mxu1 %v5617_v5  ;;  %v5695_v3 = vld [vmem:[%s7513_s3 + $0xe0] sm:$0xff]  }
 0x1d5   :  { %v5696_v4 = vld [vmem:[%s7513_s3 + $0x20] sm:$0xff]  }
 0x1d6   :  { %v5697_v5 = vld [vmem:[%s7513_s3 + $0xa0] sm:$0xff]  }
 0x1d7   :  { %3532 = vmatpush1.bf16.msra.mxu0 %v5612_v6  ;;  %3860 = vmatpush1.bf16.msra.mxu1 %v5615_v7  ;;  %v5698_v6 = vld [vmem:[%s7513_s3 + $0x68] sm:$0xff]  }
 0x1d8   :  { %3533 = vmatprep.subr.bf16.mxu0 %v5620_v8  ;;  %3861 = vmatprep.subr.bf16.mxu1 %v5623_v9  ;;  %v5699_v7 = vld [vmem:[%s7513_s3 + $0xe8] sm:$0xff]  }
 0x1d9   :  { %v5700_v8 = vld [vmem:[%s7513_s3 + $0x28] sm:$0xff]  }
 0x1da   :  { %v5701_v9 = vld [vmem:[%s7513_s3 + $0xa8] sm:$0xff]  }
 0x1db   :  { %3534 = vmatpush1.bf16.msra.mxu0 %v5618_v10  ;;  %3862 = vmatpush1.bf16.msra.mxu1 %v5621_v11  ;;  %v5702_v10 = vld [vmem:[%s7513_s3 + $0x70] sm:$0xff]  }
 0x1dc   :  { %3535 = vmatprep.subr.bf16.mxu0 %v5626_v12  ;;  %3863 = vmatprep.subr.bf16.mxu1 %v5629_v52  ;;  %v5703_v11 = vld [vmem:[%s7513_s3 + $0xf0] sm:$0xff]  }
 0x1dd   :  { %v5704_v12 = vld [vmem:[%s7513_s3 + $0x30] sm:$0xff]  }
 0x1de   :  { %v5705_v52 = vld [vmem:[%s7513_s3 + $0xb0] sm:$0xff]  }
 0x1df   :  { %3536 = vmatpush1.bf16.msra.mxu0 %v5624_v15  ;;  %3864 = vmatpush1.bf16.msra.mxu1 %v5627_v16  ;;  %v5706_v15 = vld [vmem:[%s7513_s3 + $0x78] sm:$0xff]  }
 0x1e0   :  { %3537 = vmatprep.subr.bf16.mxu0 %v5632_v17  ;;  %3865 = vmatprep.subr.bf16.mxu1 %v5635_v18  ;;  %v5707_v16 = vld [vmem:[%s7513_s3 + $0xf8] sm:$0xff]  }
 0x1e1   :  { %v5708_v17 = vld [vmem:[%s7513_s3 + $0x38] sm:$0xff]  }
 0x1e2   :  { %v5709_v18 = vld [vmem:[%s7513_s3 + $0xb8] sm:$0xff]  }
 0x1e3   :  { %3538 = vmatpush1.bf16.msra.mxu0 %v5630_v19  ;;  %3866 = vmatpush1.bf16.msra.mxu1 %v5633_v20  ;;  %v540_v19 = vsub.s32 0, %v5883_v42  ;;  %v548_v20 = vsub.s32 2, %v5883_v42 }
 0x1e4   :  { %3539 = vmatprep.subr.bf16.mxu0 %v5638_v22  ;;  %3867 = vmatprep.subr.bf16.mxu1 %v5641_v23  ;;  %v536_v22 = vld [vmem:[%s7512_s2] sm:$0xf]  ;;  %v544_v23 = vsub.s32 1, %v5883_v42 }
 0x1e7   :  { %3540 = vmatpush1.bf16.msra.mxu0 %v5636_v24  ;;  %3868 = vmatpush1.bf16.msra.mxu1 %v5639_v13  ;;  %v552_v24 = vsub.s32 3, %v5883_v42  ;;  %v541_v13 = vrot.slane %v536_v22, %v540_v19 }
 0x1e8   :  { %3541 = vmatprep.subr.bf16.mxu0 %v5644_v28  ;;  %3869 = vmatprep.subr.bf16.mxu1 %v5647_v29  ;;  %v549_v28 = vrot.slane %v536_v22, %v548_v20  ;;  %v545_v29 = vrot.slane %v536_v22, %v544_v23 }
 0x1eb   :  { %3542 = vmatpush1.bf16.msra.mxu0 %v5642_v14  ;;  %3870 = vmatpush1.bf16.msra.mxu1 %v5645_v30  ;;  %v553_v14 = vrot.slane %v536_v22, %v552_v24 }
 0x1ec   :  { %3543 = vmatprep.subr.bf16.mxu0 %v5650_v31  ;;  %3871 = vmatprep.subr.bf16.mxu1 %v5653_v25 }
 0x1ef   :  { %3544 = vmatpush1.bf16.msra.mxu0 %v5648_v32  ;;  %3872 = vmatpush1.bf16.msra.mxu1 %v5651_v33 }
 0x1f0   :  { %3545 = vmatprep.subr.bf16.mxu0 %v5656_v34  ;;  %3873 = vmatprep.subr.bf16.mxu1 %v5659_v26 }
 0x1f3   :  { %3546 = vmatpush1.bf16.msra.mxu0 %v5654_v36  ;;  %3874 = vmatpush1.bf16.msra.mxu1 %v5657_v38 }
 0x1f4   :  { %3547 = vmatprep.subr.bf16.mxu0 %v5662_v21  ;;  %3875 = vmatprep.subr.bf16.mxu1 %v5665_v40 }
 0x1f7   :  { %3548 = vmatpush1.bf16.msra.mxu0 %v5660_v27  ;;  %3876 = vmatpush1.bf16.msra.mxu1 %v5663_v41 }
 0x1f8   :  { %3549 = vmatprep.subr.bf16.mxu0 %v5668_v43  ;;  %3877 = vmatprep.subr.bf16.mxu1 %v5671_v44 }
 0x1fb   :  { %3550 = vmatpush1.bf16.msra.mxu0 %v5666_v35  ;;  %3878 = vmatpush1.bf16.msra.mxu1 %v5669_v45 }
 0x1fc   :  { %3551 = vmatprep.subr.bf16.mxu0 %v5674_v46  ;;  %3879 = vmatprep.subr.bf16.mxu1 %v5677_v47 }
 0x1ff   :  { %3552 = vmatpush1.bf16.msra.mxu0 %v5672_v37  ;;  %3880 = vmatpush1.bf16.msra.mxu1 %v5675_v51 }
 0x200   :  { %4802 = vmatprep.subr.bf16.mxu0 %v5678_v53  ;;  %4824 = vmatprep.subr.bf16.mxu1 %v5679_v54  ;;  %v4769_v53 = vld [vmem:[%s7514_s4] ss:$0 sm:$0xff] }
 0x202   :  { %3554 = vmatmul.mubr.bf16.vlgmr.msra.gmra.mrb[0].mxu0 %v655_v49  ;;  %3882 = vmatmul.mubr.bf16.vlgmr.msra.gmra.mrb[0].mxu1 %v655_v49 }
 0x203   :  { %4803 = vmatpush3.bf16.msra.mxu0 %v5680_v39  ;;  %4825 = vmatpush3.bf16.msra.mxu1 %v5681_v55 }
 0x204   :  { %4804 = vmatprep.subr.bf16.mxu0 %v5682_v56  ;;  %4826 = vmatprep.subr.bf16.mxu1 %v5683_v50 }
 0x207   :  { %4805 = vmatpush3.bf16.msra.mxu0 %v5684_v48  ;;  %4827 = vmatpush3.bf16.msra.mxu1 %v5685_v57 }
 0x208   :  { %4806 = vmatprep.subr.bf16.mxu0 %v5686_v58  ;;  %4828 = vmatprep.subr.bf16.mxu1 %v5687_v59 }
 0x20b   :  { %4807 = vmatpush3.bf16.msra.mxu0 %v5688_v60  ;;  %4829 = vmatpush3.bf16.msra.mxu1 %v5689_v61 }
 0x20c   :  { %4808 = vmatprep.subr.bf16.mxu0 %v5690_v62  ;;  %4830 = vmatprep.subr.bf16.mxu1 %v5691_v63 }
 0x20f   :  { %4809 = vmatpush3.bf16.msra.mxu0 %v5692_v0  ;;  %4831 = vmatpush3.bf16.msra.mxu1 %v5693_v1 }
 0x210   :  { %4810 = vmatprep.subr.bf16.mxu0 %v5694_v2  ;;  %4832 = vmatprep.subr.bf16.mxu1 %v5695_v3 }
 0x213   :  { %4811 = vmatpush3.bf16.msra.mxu0 %v5696_v4  ;;  %4833 = vmatpush3.bf16.msra.mxu1 %v5697_v5 }
 0x214   :  { %4812 = vmatprep.subr.bf16.mxu0 %v5698_v6  ;;  %4834 = vmatprep.subr.bf16.mxu1 %v5699_v7 }
 0x217   :  { %4813 = vmatpush3.bf16.msra.mxu0 %v5700_v8  ;;  %4835 = vmatpush3.bf16.msra.mxu1 %v5701_v9 }
 0x218   :  { %4814 = vmatprep.subr.bf16.mxu0 %v5702_v10  ;;  %4836 = vmatprep.subr.bf16.mxu1 %v5703_v11 }
 0x21b   :  { %4815 = vmatpush3.bf16.msra.mxu0 %v5704_v12  ;;  %4837 = vmatpush3.bf16.msra.mxu1 %v5705_v52 }
 0x21c   :  { %4816 = vmatprep.subr.bf16.mxu0 %v5706_v15  ;;  %4838 = vmatprep.subr.bf16.mxu1 %v5707_v16 }
 0x21f   :  { %4817 = vmatpush3.bf16.msra.mxu0 %v5708_v17  ;;  %4839 = vmatpush3.bf16.msra.mxu1 %v5709_v18 }
 0x2d5   :  { %v3555_v30 = vpop.f32.mrb[0].mxu0  ;;  %v3883_v31 = vpop.f32.mrb[0].mxu1 }
 0x2d6   :  { %v4846_v25 = vadd.f32 %v3555_v30, %v541_v13  ;;  %v4848_v32 = vadd.f32 %v3883_v31, %v549_v28  ;;  %v3557_v33 = vpop.f32.mrb[1].mxu0  ;;  %v3885_v34 = vpop.f32.mrb[1].mxu1 }
 0x2d7   :  { %v4847_v26 = vadd.f32 %v3557_v33, %v545_v29  ;;  %v4849_v36 = vadd.f32 %v3885_v34, %v553_v14  ;;  %v3559_v38 = vpop.f32.mrb[2].mxu0  ;;  %v3887_v21 = vpop.f32.mrb[2].mxu1 }
 0x2d8   :  { %v3890_v40 = vmax.f32 %v4846_v25, 0.0  ;;  %v3892_v27 = vmax.f32 %v4848_v32, 0.0  ;;  %v3560_v41 = vpop.f32.mrb[3].mxu0  ;;  %v3888_v43 = vpop.f32.mrb[3].mxu1 }
 0x2d9   :  { %v3891_v44 = vmax.f32 %v4847_v26, 0.0  ;;  %v3893_v42 = vmax.f32 %v4849_v36, 0.0 }
 0x2da   :  { %v3894_v46 = vpack.c.bf16 %v3890_v40, %v3890_v40  ;;  %v3896_v47 = vpack.c.bf16 %v3892_v27, %v3892_v27 }
 0x2db   :  { %v3895_v35 = vpack.c.bf16 %v3891_v44, %v3891_v44  ;;  %v3897_v45 = vpack.c.bf16 %v3893_v42, %v3893_v42 }
 0x2dd   :  { %4193 = vmatprep.mubr.bf16.mxu0 %v3895_v35  ;;  %4233 = vmatprep.mubr.bf16.mxu1 %v3897_v45 }
 0x2de   :  { %4194 = vmatmul.mubr.bf16.vlgmr.msra.gmra.mrb[4].mxu0 %v3894_v46  ;;  %4234 = vmatmul.mubr.bf16.vlgmr.msra.gmra.mrb[4].mxu1 %v3896_v47 }
 0x3b1   :  { %v4818_v37 = vpop.f32.mrb[4].mxu0  ;;  %v4840_v51 = vpop.f32.mrb[4].mxu1 }
 0x3b2   :  { %v4819_v54 = vpop.f32.mrb[5].mxu0  ;;  %v4841_v49 = vpop.f32.mrb[5].mxu1 }
 0x3b3   :  { %v4820_v39 = vadd.f32 %v4819_v54, %v4818_v37  ;;  %v4842_v55 = vadd.f32 %v4841_v49, %v4840_v51  ;;  %v4821_v56 = vpop.f32.mrb[6].mxu0  ;;  %v4843_v50 = vpop.f32.mrb[6].mxu1 }
 0x3b4   :  { %v4822_v48 = vpop.f32.mrb[7].mxu0  ;;  %v4844_v57 = vpop.f32.mrb[7].mxu1 }
 0x3b5   :  { %v4196_v58 = vadd.f32 %v4820_v39, %v4769_v53 }
 0x3b7   :  { %v4236_v59 = vadd.f32 %v4842_v55, %v4196_v58 }
 0x3b9   :  { %4242 = vst.msk [vmem:[#allocation2] sm:$0x3] %vm4241_vm0, %v4236_v59 }
 0x3ba   :  { %5721 = shalt.err (!%p5718_p4)
}
 0x3bb   :  { %s5722_s15 = scalar_lea.hbm %s7515_s5, 32 }
 0x3bc   :  { %p5723_p5 = scmp.ne.s32.totalorder %s7515_s5, %s5722_s15  ;;  %p5726_p6 = scmp.lt.u32.totalorder %s5722_s15, %s7515_s5 }
 0x3be   :  { %p5728_p7 = pnand %p5726_p6, %p5723_p5 }
 0x3c0   :  { %5731 = shalt.err (!%p5728_p7)
}
 0x3c1   :  { %4252 = dma.vmem_to_hbm [thread:$0]  %s4250_s12, 32, %s7515_s5, [#allocation3]  }
 0x3c2   :  { %5732 = dma.done.wait [#allocation3], 32  }
 0x3c3   :  { %5733 = vsyncadd [#allocation3], 4294967264 }
 0x3c4   :  { %4256 = vsyncpa [#allocation3], 1 }

</bundles_post_ra>
